<compile_context>
chip_gen: v7x
topology: tpu7x:2x2x1
jax: 0.10.0
libtpu: 0.0.40
codegen_flags: <defaults>
</compile_context>

<pallas_src>
import functools

import jax
import jax.numpy as jnp
from jax.experimental import pallas as pl
from jax.experimental.pallas import tpu as pltpu


def _rope_kernel(t_ref, inv_ref, o_ref, *, sequence_scale, lane_aligned_halves):
    # t_ref   : (TN, 1)    flattened (batch*seq) positions, sublane-major
    # inv_ref : (1, Dh)    inverse frequencies (Dh = dim // 2)
    # o_ref   : (2, TN, D) fused output: o_ref[0] = cos, o_ref[1] = sin
    Dh = inv_ref.shape[-1]
    t = (t_ref[...] + 0.5) * sequence_scale            # (TN, 1)
    freqs = t * inv_ref[...]                           # (TN, Dh) VPU broadcast-mul
    c = jnp.cos(freqs).astype(o_ref.dtype)             # EUP, unique half only
    s = jnp.sin(freqs).astype(o_ref.dtype)
    if lane_aligned_halves:
        # Dh % 128 == 0: both half-width stores are lane-aligned and unmasked.
        o_ref[0, :, pl.ds(0, Dh)] = c
        o_ref[0, :, pl.ds(Dh, Dh)] = c
        o_ref[1, :, pl.ds(0, Dh)] = s
        o_ref[1, :, pl.ds(Dh, Dh)] = s
    else:
        # Dh not lane-aligned: build cat([f, f], -1) in-register (XLU is idle in
        # this write-bound kernel) and issue one contiguous store per plane
        # instead of two masked, misaligned half-width stores.
        o_ref[0, :, :] = jnp.concatenate([c, c], axis=-1)
        o_ref[1, :, :] = jnp.concatenate([s, s], axis=-1)


def _choose_tile(n, d, itemsize, max_block_bytes):
    """Pick the flattened-position tile TN and the (possibly padded) length."""
    sub = 32 // itemsize                           # sublane multiple: 8 f32 / 16 bf16
    cap = max_block_bytes // (2 * d * itemsize)    # rows per output block budget
    cap = min(cap, 4096)                           # also bounds the (TN,1) pos buffer
    cap = max((cap // sub) * sub, sub)
    if n <= cap:
        return n, n                                # one full tile: no pad, no slice
    best = 0
    for tn in range(cap, 0, -sub):                 # largest sublane-aligned divisor
        if n % tn == 0:
            best = tn
            break
    # Accept an exact divisor when its block is big enough that per-step
    # overhead stays small; otherwise the pad+slice fallback is cheaper.
    if best and (best * 2 * d * itemsize >= (512 << 10) or 2 * best >= cap):
        return best, n
    # TODO(synk): pathological N (no well-sized sublane-aligned divisor): pad and
    # slice the tail off after the kernel (costs one extra pass over the output).
    n_pad = ((n + cap - 1) // cap) * cap
    return cap, n_pad


def continuous_rotary_embedding(t, inv_freq, sequence_scale, *,
                                out_dtype=jnp.float32,
                                max_block_bytes=8 << 20):
    """t: (B, S) float32, inv_freq: (dim//2,) float32 -> (2, B, 1, S, dim)."""
    B, S = t.shape
    Dh = int(inv_freq.shape[0])
    D = 2 * Dh
    N = B * S
    itemsize = jnp.dtype(out_dtype).itemsize

    TN, N_pad = _choose_tile(N, D, itemsize, max_block_bytes)

    t_flat = t.reshape(N, 1).astype(jnp.float32)       # metadata-only reshape
    if N_pad != N:
        t_flat = jnp.pad(t_flat, ((0, N_pad - N), (0, 0)))
    inv_2d = inv_freq.reshape(1, Dh).astype(jnp.float32)

    kernel = functools.partial(
        _rope_kernel,
        sequence_scale=float(sequence_scale),
        lane_aligned_halves=(Dh % 128 == 0),
    )

    cost = pl.CostEstimate(
        flops=N_pad * (Dh + 2),                         # shift/scale + outer product
        transcendentals=2 * N_pad * Dh,                 # cos + sin on unique half
        bytes_accessed=itemsize * 2 * N_pad * D + 4 * (N_pad + Dh),
    )

    out = pl.pallas_call(
        kernel,
        out_shape=jax.ShapeDtypeStruct((2, N_pad, D), out_dtype),
        grid_spec=pltpu.PrefetchScalarGridSpec(
            num_scalar_prefetch=0,
            grid=(N_pad // TN,),
            in_specs=[
                pl.BlockSpec((TN, 1), lambda i: (i, 0)),   # positions, sublane-major
                pl.BlockSpec((1, Dh), lambda i: (0, 0)),   # inv_freq (same block)
            ],
            out_specs=pl.BlockSpec((2, TN, D), lambda i: (0, i, 0)),
        ),
        # TODO(synk): on v7x, if a profile shows a single TensorCore doing all
        # steps, switch this axis to pltpu.CORE_PARALLEL.
        compiler_params=pltpu.CompilerParams(
            dimension_semantics=("parallel",),
            vmem_limit_bytes=32 * 1024 * 1024,
        ),
        cost_estimate=cost,
    )(t_flat, inv_2d)

    if N_pad != N:                                      # fallback path only
        out = out[:, :N, :]
    # (2, N, D) -> (2, B, S, D) -> (2, B, 1, S, D): contiguous, metadata-only.
    return out.reshape(2, B, S, D)[:, :, None, :, :]


def _reference(t, inv_freq, sequence_scale):
    tt = (t + 0.5) * sequence_scale
    freqs = jnp.einsum("ij,k->ijk", tt, inv_freq)
    emb = jnp.concatenate([freqs, freqs], axis=-1)[:, None, :, :]
    return jnp.stack([jnp.cos(emb), jnp.sin(emb)], axis=0)


if __name__ == "__main__":
    base = 10000.0
    sequence_scale = 0.125
    key = jax.random.PRNGKey(0)

    # (dim, B, S, max_block_bytes): single-tile lane-dense case, tiny-dim concat
    # case, multi-step exact-divisor case, and the pad+slice fallback case.
    configs = (
        (256, 2, 200, 8 << 20),
        (8, 2, 16, 8 << 20),
        (256, 2, 512, 512 << 10),
        (256, 1, 328, 64 << 10),
    )
    for dim, B, S, mbb in configs:
        # inv_freq buffer exactly as in __init__: 1.0 / base ** arange(0, dim, 2)
        inv_freq = (1.0 / base ** jnp.arange(0, dim, 2, dtype=jnp.float32)).astype(
            jnp.float32)
        t = jax.random.uniform(key, (B, S), dtype=jnp.float32) * float(S)

        out = continuous_rotary_embedding(t, inv_freq, sequence_scale,
                                          max_block_bytes=mbb)
        out = jax.block_until_ready(out)

        ref = _reference(t, inv_freq, sequence_scale)
        assert out.shape == (2, B, 1, S, dim), out.shape
        assert jnp.allclose(out, ref, atol=1e-5, rtol=1e-5)

    print("KERNEL_OK")
</pallas_src>

<mosaic_0001>
module attributes {stable_mosaic.version = 11 : i64} {
  func.func @_rope_kernel(%arg0: i32, %arg1: memref<400x1xf32, #tpu.memory_space<vmem>>, %arg2: memref<1x128xf32, #tpu.memory_space<vmem>>, %arg3: memref<2x400x256xf32, #tpu.memory_space<vmem>>) attributes {dimension_semantics = [#tpu.dimension_semantics<parallel>], iteration_bounds = array<i64: 1>, scalar_prefetch = 0 : i64, scratch_operands = 0 : i64, tpu.core_type = #tpu.core_type<tc>, window_params = [{transform_indices = @transform_0, window_bounds = array<i64: 400, 1>}, {pipeline_mode = #tpu.pipeline_mode<synchronous>, transform_indices = @transform_1, window_bounds = array<i64: 1, 128>}, {transform_indices = @transform_2, window_bounds = array<i64: 2, 400, 256>}]} {
    %c0 = arith.constant 0 : index
    %c0_0 = arith.constant 0 : index
    %0 = vector.load %arg1[%c0, %c0_0] : memref<400x1xf32, #tpu.memory_space<vmem>>, vector<400x1xf32>
    %cst = arith.constant 5.000000e-01 : f32
    %1 = vector.broadcast %cst : f32 to vector<400x1xf32>
    %2 = arith.addf %0, %1 : vector<400x1xf32>
    %cst_1 = arith.constant 1.250000e-01 : f32
    %3 = vector.broadcast %cst_1 : f32 to vector<400x1xf32>
    %4 = arith.mulf %2, %3 : vector<400x1xf32>
    %c0_2 = arith.constant 0 : index
    %c0_3 = arith.constant 0 : index
    %5 = vector.load %arg2[%c0_2, %c0_3] : memref<1x128xf32, #tpu.memory_space<vmem>>, vector<1x128xf32>
    %6 = vector.broadcast %4 : vector<400x1xf32> to vector<400x128xf32>
    %7 = vector.broadcast %5 : vector<1x128xf32> to vector<400x128xf32>
    %8 = arith.mulf %6, %7 : vector<400x128xf32>
    %9 = math.cos %8 : vector<400x128xf32>
    %10 = math.sin %8 : vector<400x128xf32>
    %c0_4 = arith.constant 0 : index
    %c0_5 = arith.constant 0 : index
    %c0_6 = arith.constant 0 : index
    %11 = vector.load %arg3[%c0_4, %c0_5, %c0_6] : memref<2x400x256xf32, #tpu.memory_space<vmem>>, vector<1x400x128xf32>
    %12 = vector.shape_cast %11 : vector<1x400x128xf32> to vector<400x128xf32>
    %13 = vector.shape_cast %9 : vector<400x128xf32> to vector<1x400x128xf32>
    tpu.vector_store %arg3[%c0_4, %c0_5, %c0_6], %13 {strides = array<i32>} : memref<2x400x256xf32, #tpu.memory_space<vmem>>, vector<1x400x128xf32>,
    %c0_7 = arith.constant 0 : index
    %c0_8 = arith.constant 0 : index
    %c128 = arith.constant 128 : index
    %14 = vector.load %arg3[%c0_7, %c0_8, %c128] : memref<2x400x256xf32, #tpu.memory_space<vmem>>, vector<1x400x128xf32>
    %15 = vector.shape_cast %14 : vector<1x400x128xf32> to vector<400x128xf32>
    %16 = vector.shape_cast %9 : vector<400x128xf32> to vector<1x400x128xf32>
    tpu.vector_store %arg3[%c0_7, %c0_8, %c128], %16 {strides = array<i32>} : memref<2x400x256xf32, #tpu.memory_space<vmem>>, vector<1x400x128xf32>,
    %c1 = arith.constant 1 : index
    %c0_9 = arith.constant 0 : index
    %c0_10 = arith.constant 0 : index
    %17 = vector.load %arg3[%c1, %c0_9, %c0_10] : memref<2x400x256xf32, #tpu.memory_space<vmem>>, vector<1x400x128xf32>
    %18 = vector.shape_cast %17 : vector<1x400x128xf32> to vector<400x128xf32>
    %19 = vector.shape_cast %10 : vector<400x128xf32> to vector<1x400x128xf32>
    tpu.vector_store %arg3[%c1, %c0_9, %c0_10], %19 {strides = array<i32>} : memref<2x400x256xf32, #tpu.memory_space<vmem>>, vector<1x400x128xf32>,
    %c1_11 = arith.constant 1 : index
    %c0_12 = arith.constant 0 : index
    %c128_13 = arith.constant 128 : index
    %20 = vector.load %arg3[%c1_11, %c0_12, %c128_13] : memref<2x400x256xf32, #tpu.memory_space<vmem>>, vector<1x400x128xf32>
    %21 = vector.shape_cast %20 : vector<1x400x128xf32> to vector<400x128xf32>
    %22 = vector.shape_cast %10 : vector<400x128xf32> to vector<1x400x128xf32>
    tpu.vector_store %arg3[%c1_11, %c0_12, %c128_13], %22 {strides = array<i32>} : memref<2x400x256xf32, #tpu.memory_space<vmem>>, vector<1x400x128xf32>,
    return
  }
  func.func @transform_0(%arg0: i32) -> (i32, i32) {
    %c0_i32 = arith.constant 0 : i32
    %c0_i32_0 = arith.constant 0 : i32
    return %arg0, %c0_i32 : i32, i32
  }
  func.func @transform_1(%arg0: i32) -> (i32, i32) {
    %c0_i32 = arith.constant 0 : i32
    %c0_i32_0 = arith.constant 0 : i32
    %c0_i32_1 = arith.constant 0 : i32
    return %c0_i32, %c0_i32_0 : i32, i32
  }
  func.func @transform_2(%arg0: i32) -> (i32, i32, i32) {
    %c0_i32 = arith.constant 0 : i32
    %c0_i32_0 = arith.constant 0 : i32
    %c0_i32_1 = arith.constant 0 : i32
    return %c0_i32, %arg0, %c0_i32_0 : i32, i32, i32
  }
}

</mosaic_0001>

<bundles_post_ra>
// kernel: tpu_custom_call.1
= control target key start
LH: loop header
LB: loop body
LE: loop exit
PB: predicated region body
PF: predicated region fallthrough
CT: control target
= control target key end

     0   :  { %v11882_v3 = vmov 0   ;;  %s17027_s0 = inlined_call_operand.vmem [shape: f32[400,1], index: 0, kind: input, shape index: {}]   ;;  %s17028_s1 = inlined_call_operand.vmem [shape: f32[1,128], index: 1, kind: input, shape index: {}]   ;;  %s17029_s2 = inlined_call_operand.hbm [shape: f32[2,400,256], index: 2, kind: output, shape index: {}]  }
   0x1   :  { %v14_v0 = vld [vmem:[%s17027_s0 + $0x10] sm:$0xff]  ;;  %v12_v1 = vld [vmem:[%s17027_s0] sm:$0xff]  ;;  %v15_v2 = vld [vmem:[%s17027_s0 + $0x18] sm:$0xff]  ;;  %11648 = vset.pattern.permute.xlu1 %v11882_v3  ;;  %11647 = vset.pattern.permute.xlu0 %v11882_v3 }
   0x2   :  { %v64_v4 = vadd.f32 0.5, %v14_v0  ;;  %v62_v5 = vadd.f32 0.5, %v12_v1  ;;  %v65_v6 = vadd.f32 0.5, %v15_v2  ;;  %v13_v7 = vld [vmem:[%s17027_s0 + $0x8] sm:$0xff]  ;;  %v16_v10 = vld [vmem:[%s17027_s0 + $0x20] sm:$0xff]  ;;  %v19_v17 = vld [vmem:[%s17027_s0 + $0x38] sm:$0xff] }
   0x3   :  { %v63_v8 = vadd.f32 0.5, %v13_v7  ;;  %v17_v9 = vld [vmem:[%s17027_s0 + $0x28] sm:$0xff]  ;;  %v66_v16 = vadd.f32 0.5, %v16_v10  ;;  %v18_v18 = vld [vmem:[%s17027_s0 + $0x30] sm:$0xff]  ;;  %v69_v21 = vadd.f32 0.5, %v19_v17  ;;  %v20_v24 = vld [vmem:[%s17027_s0 + $0x40] sm:$0xff] }
   0x4   :  { %v114_v11 = vmul.f32 0.125, %v64_v4  ;;  %v112_v12 = vmul.f32 0.125, %v62_v5  ;;  %v115_v13 = vmul.f32 0.125, %v65_v6  ;;  %v67_v15 = vadd.f32 0.5, %v17_v9  ;;  %v21_v23 = vld [vmem:[%s17027_s0 + $0x48] sm:$0xff]  ;;  %v23_v29 = vld [vmem:[%s17027_s0 + $0x58] sm:$0xff] }
   0x5   :  { %v113_v14 = vmul.f32 0.125, %v63_v8  ;;  %v116_v20 = vmul.f32 0.125, %v66_v16  ;;  %v68_v22 = vadd.f32 0.5, %v18_v18  ;;  %v119_v25 = vmul.f32 0.125, %v69_v21  ;;  %v22_v30 = vld [vmem:[%s17027_s0 + $0x50] sm:$0xff]  ;;  %v25_v35 = vld [vmem:[%s17027_s0 + $0x68] sm:$0xff] }
   0x6   :  { %175 = vperm.xlu1 %11648, %v114_v11   ;;  %165 = vperm.xlu0 %11647, %v112_v12   ;;  %v117_v19 = vmul.f32 0.125, %v67_v15  ;;  %v71_v27 = vadd.f32 0.5, %v21_v23  ;;  %v70_v28 = vadd.f32 0.5, %v20_v24  ;;  %v73_v33 = vadd.f32 0.5, %v23_v29  ;;  %v24_v36 = vld [vmem:[%s17027_s0 + $0x60] sm:$0xff]  ;;  %v27_v41 = vld [vmem:[%s17027_s0 + $0x78] sm:$0xff] }
   0x7   :  { %v118_v26 = vmul.f32 0.125, %v68_v22  ;;  %v72_v34 = vadd.f32 0.5, %v22_v30  ;;  %v75_v39 = vadd.f32 0.5, %v25_v35  ;;  %v74_v40 = vadd.f32 0.5, %v24_v36  ;;  %v26_v42 = vld [vmem:[%s17027_s0 + $0x70] sm:$0xff]  ;;  %v29_v47 = vld [vmem:[%s17027_s0 + $0x88] sm:$0xff] }
   0x8   :  { %v121_v31 = vmul.f32 0.125, %v71_v27  ;;  %v120_v32 = vmul.f32 0.125, %v70_v28  ;;  %v123_v37 = vmul.f32 0.125, %v73_v33  ;;  %v77_v45 = vadd.f32 0.5, %v27_v41  ;;  %v28_v48 = vld [vmem:[%s17027_s0 + $0x80] sm:$0xff] }
   0x9   :  { %v122_v38 = vmul.f32 0.125, %v72_v34  ;;  %v125_v43 = vmul.f32 0.125, %v75_v39  ;;  %v124_v44 = vmul.f32 0.125, %v74_v40  ;;  %v76_v46 = vadd.f32 0.5, %v26_v42 }
   0xa   :  { %180 = vperm.xlu1 %11648, %v115_v13   ;;  %170 = vperm.xlu0 %11647, %v113_v14  }
   0xe   :  { %190 = vperm.xlu1 %11648, %v117_v19   ;;  %185 = vperm.xlu0 %11647, %v116_v20  }
  0x12   :  { %200 = vperm.xlu1 %11648, %v119_v25   ;;  %195 = vperm.xlu0 %11647, %v118_v26  }
  0x16   :  { %210 = vperm.xlu1 %11648, %v121_v31   ;;  %205 = vperm.xlu0 %11647, %v120_v32  }
  0x1a   :  { %220 = vperm.xlu1 %11648, %v123_v37   ;;  %215 = vperm.xlu0 %11647, %v122_v38  }
  0x1b   :  { %7 = vsyncpa [#allocation3], 0  ;;  %v127_v49 = vmul.f32 0.125, %v77_v45  ;;  %v126_v50 = vmul.f32 0.125, %v76_v46  ;;  %v79_v51 = vadd.f32 0.5, %v29_v47  ;;  %v78_v52 = vadd.f32 0.5, %v28_v48 }
  0x1c   :  { %v31_v53 = vld [vmem:[%s17027_s0 + $0x98] sm:$0xff]  ;;  %v30_v54 = vld [vmem:[%s17027_s0 + $0x90] sm:$0xff]  ;;  %v33_v59 = vld [vmem:[%s17027_s0 + $0xa8] sm:$0xff] }
  0x1d   :  { %v129_v55 = vmul.f32 0.125, %v79_v51  ;;  %v128_v56 = vmul.f32 0.125, %v78_v52  ;;  %v81_v57 = vadd.f32 0.5, %v31_v53  ;;  %v80_v58 = vadd.f32 0.5, %v30_v54  ;;  %v32_v60 = vld [vmem:[%s17027_s0 + $0xa0] sm:$0xff]  ;;  %v35_v1 = vld [vmem:[%s17027_s0 + $0xb8] sm:$0xff] }
  0x1e   :  { %230 = vperm.xlu1 %11648, %v125_v43   ;;  %225 = vperm.xlu0 %11647, %v124_v44   ;;  %v83_v63 = vadd.f32 0.5, %v33_v59  ;;  %v82_v0 = vadd.f32 0.5, %v32_v60  ;;  %v34_v2 = vld [vmem:[%s17027_s0 + $0xb0] sm:$0xff]  ;;  %v85_v5 = vadd.f32 0.5, %v35_v1  ;;  %v37_v7 = vld [vmem:[%s17027_s0 + $0xc8] sm:$0xff]  ;;  %v36_v8 = vld [vmem:[%s17027_s0 + $0xc0] sm:$0xff] }
  0x1f   :  { %v131_v61 = vmul.f32 0.125, %v81_v57  ;;  %v130_v62 = vmul.f32 0.125, %v80_v58  ;;  %v84_v6 = vadd.f32 0.5, %v34_v2  ;;  %v87_v11 = vadd.f32 0.5, %v37_v7  ;;  %v39_v13 = vld [vmem:[%s17027_s0 + $0xd8] sm:$0xff]  ;;  %v38_v14 = vld [vmem:[%s17027_s0 + $0xd0] sm:$0xff] }
  0x20   :  { %v133_v3 = vmul.f32 0.125, %v83_v63  ;;  %v132_v4 = vmul.f32 0.125, %v82_v0  ;;  %v135_v9 = vmul.f32 0.125, %v85_v5  ;;  %v86_v12 = vadd.f32 0.5, %v36_v8  ;;  %v41_v19 = vld [vmem:[%s17027_s0 + $0xe8] sm:$0xff]  ;;  %v40_v20 = vld [vmem:[%s17027_s0 + $0xe0] sm:$0xff] }
  0x21   :  { %v134_v10 = vmul.f32 0.125, %v84_v6  ;;  %v137_v15 = vmul.f32 0.125, %v87_v11  ;;  %v89_v17 = vadd.f32 0.5, %v39_v13  ;;  %v88_v18 = vadd.f32 0.5, %v38_v14  ;;  %v43_v25 = vld [vmem:[%s17027_s0 + $0xf8] sm:$0xff]  ;;  %v42_v26 = vld [vmem:[%s17027_s0 + $0xf0] sm:$0xff] }
  0x22   :  { %240 = vperm.xlu1 %11648, %v127_v49   ;;  %235 = vperm.xlu0 %11647, %v126_v50   ;;  %v136_v16 = vmul.f32 0.125, %v86_v12  ;;  %v91_v23 = vadd.f32 0.5, %v41_v19  ;;  %v90_v24 = vadd.f32 0.5, %v40_v20  ;;  %v93_v29 = vadd.f32 0.5, %v43_v25  ;;  %v45_v31 = vld [vmem:[%s17027_s0 + $0x108] sm:$0xff]  ;;  %v44_v32 = vld [vmem:[%s17027_s0 + $0x100] sm:$0xff] }
  0x23   :  { %v139_v21 = vmul.f32 0.125, %v89_v17  ;;  %v138_v22 = vmul.f32 0.125, %v88_v18  ;;  %v92_v30 = vadd.f32 0.5, %v42_v26  ;;  %v95_v35 = vadd.f32 0.5, %v45_v31  ;;  %v47_v37 = vld [vmem:[%s17027_s0 + $0x118] sm:$0xff]  ;;  %v46_v38 = vld [vmem:[%s17027_s0 + $0x110] sm:$0xff] }
  0x24   :  { %v141_v27 = vmul.f32 0.125, %v91_v23  ;;  %v140_v28 = vmul.f32 0.125, %v90_v24  ;;  %v143_v33 = vmul.f32 0.125, %v93_v29  ;;  %v94_v36 = vadd.f32 0.5, %v44_v32  ;;  %v49_v43 = vld [vmem:[%s17027_s0 + $0x128] sm:$0xff]  ;;  %v48_v44 = vld [vmem:[%s17027_s0 + $0x120] sm:$0xff] }
  0x25   :  { %v142_v34 = vmul.f32 0.125, %v92_v30  ;;  %v145_v39 = vmul.f32 0.125, %v95_v35  ;;  %v97_v41 = vadd.f32 0.5, %v47_v37  ;;  %v96_v42 = vadd.f32 0.5, %v46_v38  ;;  %v51_v49 = vld [vmem:[%s17027_s0 + $0x138] sm:$0xff]  ;;  %v50_v50 = vld [vmem:[%s17027_s0 + $0x130] sm:$0xff] }
  0x26   :  { %250 = vperm.xlu1 %11648, %v129_v55   ;;  %245 = vperm.xlu0 %11647, %v128_v56   ;;  %v144_v40 = vmul.f32 0.125, %v94_v36  ;;  %v99_v47 = vadd.f32 0.5, %v49_v43  ;;  %v98_v48 = vadd.f32 0.5, %v48_v44  ;;  %v101_v53 = vadd.f32 0.5, %v51_v49  ;;  %v53_v55 = vld [vmem:[%s17027_s0 + $0x148] sm:$0xff]  ;;  %v52_v56 = vld [vmem:[%s17027_s0 + $0x140] sm:$0xff] }
  0x27   :  { %v147_v45 = vmul.f32 0.125, %v97_v41  ;;  %v146_v46 = vmul.f32 0.125, %v96_v42  ;;  %v100_v54 = vadd.f32 0.5, %v50_v50  ;;  %v103_v59 = vadd.f32 0.5, %v53_v55  ;;  %v12060_v23 = vld [vmem:[%s17028_s1] ss:$0 sm:$0xff] }
  0x28   :  { %v149_v51 = vmul.f32 0.125, %v99_v47  ;;  %v148_v52 = vmul.f32 0.125, %v98_v48  ;;  %v151_v57 = vmul.f32 0.125, %v101_v53  ;;  %v102_v60 = vadd.f32 0.5, %v52_v56 }
  0x29   :  { %v150_v58 = vmul.f32 0.125, %v100_v54  ;;  %v153_v63 = vmul.f32 0.125, %v103_v59  ;;  %v11883_v56 = vmov 683565275  }
  0x2a   :  { %260 = vperm.xlu1 %11648, %v131_v61   ;;  %255 = vperm.xlu0 %11647, %v130_v62   ;;  %v55_v61 = vld [vmem:[%s17027_s0 + $0x158] sm:$0xff]  ;;  %v54_v62 = vld [vmem:[%s17027_s0 + $0x150] sm:$0xff]  ;;  %v152_v0 = vmul.f32 0.125, %v102_v60  ;;  %v11884_v60 = vmov 2475754826  }
  0x2b   :  { %v105_v1 = vadd.f32 0.5, %v55_v61  ;;  %v104_v2 = vadd.f32 0.5, %v54_v62  ;;  %v11885_v62 = vmov 2131351028  }
  0x2d   :  { %v155_v5 = vmul.f32 0.125, %v105_v1  ;;  %v154_v6 = vmul.f32 0.125, %v104_v2  ;;  %v11887_v2 = vmov 920167782  }
  0x2e   :  { %270 = vperm.xlu1 %11648, %v133_v3   ;;  %265 = vperm.xlu0 %11647, %v132_v4   ;;  %v57_v3 = vld [vmem:[%s17027_s0 + $0x168] sm:$0xff]  ;;  %v56_v4 = vld [vmem:[%s17027_s0 + $0x160] sm:$0xff] }
  0x2f   :  { %v107_v7 = vadd.f32 0.5, %v57_v3  ;;  %v106_v8 = vadd.f32 0.5, %v56_v4 }
  0x31   :  { %v157_v11 = vmul.f32 0.125, %v107_v7  ;;  %v156_v12 = vmul.f32 0.125, %v106_v8 }
  0x32   :  { %280 = vperm.xlu1 %11648, %v135_v9   ;;  %275 = vperm.xlu0 %11647, %v134_v10   ;;  %v59_v9 = vld [vmem:[%s17027_s0 + $0x178] sm:$0xff]  ;;  %v58_v10 = vld [vmem:[%s17027_s0 + $0x170] sm:$0xff] }
  0x33   :  { %v109_v13 = vadd.f32 0.5, %v59_v9  ;;  %v108_v14 = vadd.f32 0.5, %v58_v10  ;;  %v11888_v9 = vmov 1326507024  }
  0x35   :  { %v159_v17 = vmul.f32 0.125, %v109_v13  ;;  %v158_v18 = vmul.f32 0.125, %v108_v14 }
  0x36   :  { %290 = vperm.xlu1 %11648, %v137_v15   ;;  %285 = vperm.xlu0 %11647, %v136_v16   ;;  %v61_v15 = vld [vmem:[%s17027_s0 + $0x188] sm:$0xff]  ;;  %v60_v16 = vld [vmem:[%s17027_s0 + $0x180] sm:$0xff] }
  0x37   :  { %v111_v19 = vadd.f32 0.5, %v61_v15  ;;  %v110_v20 = vadd.f32 0.5, %v60_v16 }
  0x3a   :  { %300 = vperm.xlu1 %11648, %v139_v21   ;;  %295 = vperm.xlu0 %11647, %v138_v22   ;;  %v161_v21 = vmul.f32 0.125, %v111_v19  ;;  %v160_v22 = vmul.f32 0.125, %v110_v20 }
  0x3e   :  { %310 = vperm.xlu1 %11648, %v141_v27   ;;  %305 = vperm.xlu0 %11647, %v140_v28  }
  0x42   :  { %320 = vperm.xlu1 %11648, %v143_v33   ;;  %315 = vperm.xlu0 %11647, %v142_v34  }
  0x46   :  { %330 = vperm.xlu1 %11648, %v145_v39   ;;  %325 = vperm.xlu0 %11647, %v144_v40  }
  0x4a   :  { %340 = vperm.xlu1 %11648, %v147_v45   ;;  %335 = vperm.xlu0 %11647, %v146_v46  }
  0x4e   :  { %350 = vperm.xlu1 %11648, %v149_v51   ;;  %345 = vperm.xlu0 %11647, %v148_v52  }
  0x52   :  { %360 = vperm.xlu1 %11648, %v151_v57   ;;  %355 = vperm.xlu0 %11647, %v150_v58  }
  0x56   :  { %370 = vperm.xlu1 %11648, %v153_v63   ;;  %365 = vperm.xlu0 %11647, %v152_v0   ;;  %v11886_v0 = vmov 2102212464  }
  0x5a   :  { %380 = vperm.xlu1 %11648, %v155_v5   ;;  %375 = vperm.xlu0 %11647, %v154_v6  }
  0x5e   :  { %390 = vperm.xlu1 %11648, %v157_v11   ;;  %385 = vperm.xlu0 %11647, %v156_v12  }
  0x62   :  { %400 = vperm.xlu1 %11648, %v159_v17   ;;  %395 = vperm.xlu0 %11647, %v158_v18  }
  0x66   :  { %410 = vperm.xlu1 %11648, %v161_v21   ;;  %405 = vperm.xlu0 %11647, %v160_v22  }
  0x85   :  { %v176_v24 = vpop.permute.xlu1 %175  ;;  %v166_v25 = vpop.permute.xlu0 %165 }
  0x86   :  { %v12063_v26 = vmul.f32 %v12060_v23, %v176_v24  ;;  %v12066_v27 = vmul.f32 %v12060_v23, %v166_v25 }
  0x88   :  { %v675_v28 = vand.u32 2147483647, %v12063_v26  ;;  %v678_v29 = vand.u32 2139095040, %v12063_v26  ;;  %v469_v30 = vand.u32 2147483647, %v12066_v27  ;;  %v472_v31 = vand.u32 2139095040, %v12066_v27 }
  0x89   :  { %v181_v32 = vpop.permute.xlu1 %180  ;;  %vm677_vm14 = vcmp.lt.s32.totalorder %v12063_v26, 0 }
  0x8a   :  { %v679_v33 = vshrl.u32 %v678_v29, 23  ;;  %v12073_v34 = vmul.f32 %v12060_v23, %v181_v32  ;;  %v682_v35 = vand.u32 8388607, %v675_v28  ;;  %v473_v36 = vshrl.u32 %v472_v31, 23 }
  0x8b   :  { %v476_v37 = vand.u32 8388607, %v469_v30  ;;  %vm12163_vm13 = vcmp.le.f32.partialorder %v675_v28, 0.7853982 }
  0x8c   :  { %v11045_v38 = vadd.s32 4294967169, %v679_v33  ;;  %v11037_v39 = vadd.s32 4294967169, %v473_v36  ;;  %v781_v40 = vand.u32 2139095040, %v12073_v34  ;;  %v683_v42 = vor.u32 8388608, %v682_v35 }
  0x8d   :  { %v477_v43 = vor.u32 8388608, %v476_v37  ;;  %v778_v54 = vand.u32 2147483647, %v12073_v34 }
  0x8e   :  { %v685_v41 = vadd.s32 1, %v11045_v38  ;;  %v479_v44 = vadd.s32 1, %v11037_v39  ;;  %v782_v45 = vshrl.u32 %v781_v40, 23  ;;  %v12080_v51 = vshll.u32 %v683_v42, 8 }
  0x8f   :  { %v12084_v53 = vshll.u32 %v477_v43, 8 }
  0x90   :  { %vm686_vm0 = vcmp.gt.s32.totalorder %v685_v41, 0  ;;  %vm480_vm1 = vcmp.gt.s32.totalorder %v479_v44, 0  ;;  %v11049_v47 = vadd.s32 4294967169, %v782_v45 }
  0x91   :  { %v687_v46 = vsel %vm686_vm0, %v685_v41, 0  ;;  %v481_v50 = vsel %vm480_vm1, %v479_v44, 0  ;;  %vm471_vm0 = vcmp.lt.s32.totalorder %v12066_v27, 0 }
  0x92   :  { %v688_v48 = vshrl.u32 %v687_v46, 5  ;;  %v689_v49 = vand.u32 31, %v687_v46  ;;  %v12082_v52 = vshrl.u32 %v481_v50, 5  ;;  %v483_v58 = vand.u32 31, %v481_v50 }
  0x93   :  { %v12088_v59 = vadd.s32 1, %v11049_v47 }
  0x94   :  { %v690_v55 = vsub.s32 32, %v689_v49  ;;  %v692_v57 = vshll.u32 %v11883_v56, %v689_v49  ;;  %v695_v61 = vshll.u32 %v11884_v60, %v689_v49  ;;  %v698_v63 = vshll.u32 %v11885_v62, %v689_v49 }
  0x95   :  { %v701_v1 = vshll.u32 %v11886_v0, %v689_v49  ;;  %v704_v3 = vshll.u32 %v11887_v2, %v689_v49  ;;  %vm707_vm2 = vcmp.lt.s32.totalorder %v688_v48, 1  ;;  %vm708_vm3 = vcmp.lt.s32.totalorder %v688_v48, 2 }
  0x96   :  { %v693_v4 = vshrl.u32 %v11884_v60, %v690_v55  ;;  %v696_v5 = vshrl.u32 %v11885_v62, %v690_v55  ;;  %v699_v6 = vshrl.u32 %v11886_v0, %v690_v55  ;;  %v691_v7 = vshrl.u32 %v11883_v56, %v690_v55 }
  0x97   :  { %v702_v8 = vshrl.u32 %v11887_v2, %v690_v55  ;;  %v705_v10 = vshrl.u32 %v11888_v9, %v690_v55  ;;  %v484_v14 = vsub.s32 32, %v483_v58  ;;  %vm709_vm4 = vcmp.lt.s32.totalorder %v688_v48, 3 }
  0x98   :  { %v694_v11 = vor.u32 %v693_v4, %v692_v57  ;;  %v697_v12 = vor.u32 %v696_v5, %v695_v61  ;;  %v700_v13 = vor.u32 %v699_v6, %v698_v63  ;;  %vm710_vm5 = vcmp.lt.s32.totalorder %v688_v48, 4 }
  0x99   :  { %v703_v15 = vor.u32 %v702_v8, %v701_v1  ;;  %v706_v16 = vor.u32 %v705_v10, %v704_v3  ;;  %v486_v25 = vshll.u32 %v11883_v56, %v483_v58  ;;  %v487_v32 = vshrl.u32 %v11884_v60, %v484_v14 }
  0x9a   :  { %v711_v17 = vsel %vm707_vm2, %v691_v7, %v694_v11  ;;  %v712_v18 = vsel %vm710_vm5, %v700_v13, 2102212464  ;;  %v715_v19 = vsel %vm707_vm2, %v694_v11, %v697_v12  ;;  %v719_v20 = vsel %vm707_vm2, %v697_v12, %v700_v13 }
  0x9b   :  { %v713_v21 = vsel %vm709_vm4, %v697_v12, %v712_v18  ;;  %v716_v22 = vsel %vm710_vm5, %v703_v15, 920167782  ;;  %v720_v24 = vsel %vm710_vm5, %v706_v16, 1326507024  ;;  %v489_v33 = vshll.u32 %v11884_v60, %v483_v58  ;;  %v171_v12 = vpop.permute.xlu0 %170 }
  0x9c   :  { %v717_v29 = vsel %vm709_vm4, %v700_v13, %v716_v22  ;;  %v721_v31 = vsel %vm709_vm4, %v703_v15, %v720_v24  ;;  %v714_v35 = vsel %vm708_vm3, %v711_v17, %v713_v21  ;;  %v490_v38 = vshrl.u32 %v11885_v62, %v484_v14 }
  0x9d   :  { %v718_v36 = vsel %vm708_vm3, %v715_v19, %v717_v29  ;;  %v722_v37 = vsel %vm708_vm3, %v719_v20, %v721_v31  ;;  %v488_v43 = vor.u32 %v487_v32, %v486_v25  ;;  %v492_v45 = vshll.u32 %v11885_v62, %v483_v58 }
  0x9e   :  { %v12111_v39 = vmul.u32.u64.low %v12080_v51, %v722_v37  ;;  %v12112_v40 = vmul.u32.u64.high %v12080_v51, %v722_v37, %v12111_v39  ;;  %v12115_v41 = vmul.u32.u64.low %v12080_v51, %v718_v36  ;;  %v12116_v42 = vmul.u32.u64.high %v12080_v51, %v718_v36, %v12115_v41 }
  0x9f   :  { %v491_v44 = vor.u32 %v490_v38, %v489_v33  ;;  %v493_v46 = vshrl.u32 %v11886_v0, %v484_v14  ;;  %v485_v47 = vshrl.u32 %v11883_v56, %v484_v14  ;;  %v495_v48 = vshll.u32 %v11886_v0, %v483_v58 }
  0xa0   :  { %v496_v49 = vshrl.u32 %v11887_v2, %v484_v14  ;;  %v499_v50 = vshrl.u32 %v11888_v9, %v484_v14  ;;  %v730_v55 = vmul.u32 %v12080_v51, %v714_v35  ;;  %v498_v61 = vshll.u32 %v11887_v2, %v483_v58 }
  0xa1   :  { %v494_v57 = vor.u32 %v493_v46, %v492_v45  ;;  %vm501_vm6 = vcmp.lt.s32.totalorder %v12082_v52, 1  ;;  %vm732_vm7 = vc.u32 %v12112_v40, %v12115_v41  ;;  %v733_v63 = vadd.s32 1, %v12116_v42 }
  0xa2   :  { %v497_v1 = vor.u32 %v496_v49, %v495_v48  ;;  %vm502_vm8 = vcmp.lt.s32.totalorder %v12082_v52, 2  ;;  %v500_v3 = vor.u32 %v499_v50, %v498_v61  ;;  %vm503_vm9 = vcmp.lt.s32.totalorder %v12082_v52, 3 }
  0xa3   :  { %vm504_vm10 = vcmp.lt.s32.totalorder %v12082_v52, 4  ;;  %v509_v4 = vsel %vm501_vm6, %v488_v43, %v491_v44  ;;  %v734_v51 = vsel %vm732_vm7, %v733_v63, %v12116_v42  ;;  %v513_v6 = vsel %vm501_vm6, %v491_v44, %v494_v57 }
  0xa4   :  { %v506_v5 = vsel %vm504_vm10, %v494_v57, 2102212464  ;;  %v510_v58 = vsel %vm504_vm10, %v497_v1, 920167782  ;;  %v735_v7 = vadd.s32 %v734_v51, %v730_v55  ;;  %v505_v8 = vsel %vm501_vm6, %v485_v47, %v488_v43 }
  0xa5   :  { %v511_v10 = vsel %vm503_vm9, %v494_v57, %v510_v58  ;;  %v514_v11 = vsel %vm504_vm10, %v500_v3, 1326507024  ;;  %v507_v13 = vsel %vm503_vm9, %v491_v44, %v506_v5  ;;  %vm789_vm11 = vcmp.gt.s32.totalorder %v12088_v59, 0 }
  0xa6   :  { %v512_v14 = vsel %vm502_vm8, %v509_v4, %v511_v10  ;;  %v515_v15 = vsel %vm503_vm9, %v497_v1, %v514_v11  ;;  %v736_v16 = vadd.s32 536870912, %v735_v7  ;;  %v12149_v22 = vmul.f32 %v12060_v23, %v171_v12 }
  0xa7   :  { %v516_v17 = vsel %vm502_vm8, %v513_v6, %v515_v15  ;;  %v12141_v18 = vmul.u32.u64.low %v12084_v53, %v512_v14  ;;  %v12142_v19 = vmul.u32.u64.high %v12084_v53, %v512_v14, %v12141_v18  ;;  %v508_v25 = vsel %vm502_vm8, %v505_v8, %v507_v13 }
  0xa8   :  { %v12145_v20 = vmul.u32.u64.low %v12084_v53, %v516_v17  ;;  %v12146_v21 = vmul.u32.u64.high %v12084_v53, %v516_v17, %v12145_v20  ;;  %v737_v24 = vshrl.u32 %v736_v16, 30  ;;  %v790_v29 = vsel %vm789_vm11, %v12088_v59, 0 }
  0xa9   :  { %v527_v32 = vadd.s32 1, %v12142_v19  ;;  %v785_v33 = vand.u32 8388607, %v778_v54  ;;  %v524_v35 = vmul.u32 %v12084_v53, %v508_v25  ;;  %v575_v36 = vand.u32 2139095040, %v12149_v22 }
  0xaa   :  { %v738_v31 = vshll.u32 %v737_v24, 30  ;;  %vm526_vm12 = vc.u32 %v12146_v21, %v12141_v18  ;;  %v792_v39 = vand.u32 31, %v790_v29  ;;  %v761_v46 = vsub.s32 4, %v737_v24 }
  0xab   :  { %v528_v38 = vsel %vm526_vm12, %v527_v32, %v12142_v19  ;;  %v786_v43 = vor.u32 8388608, %v785_v33  ;;  %v576_v44 = vshrl.u32 %v575_v36, 23  ;;  %v572_v49 = vand.u32 2147483647, %v12149_v22 }
  0xac   :  { %v739_v37 = vsub.s32 %v735_v7, %v738_v31  ;;  %v529_v52 = vadd.s32 %v528_v38, %v524_v35  ;;  %v793_v47 = vsub.s32 32, %v792_v39  ;;  %v731_v50 = vadd.s32 %v12115_v41, %v12112_v40 }
  0xad   :  { %v12173_v57 = vshrl.u32 %v790_v29, 5  ;;  %v12175_v61 = vshll.u32 %v786_v43, 8  ;;  %v12178_v63 = vadd.s32 %v12141_v18, %v12146_v21  ;;  %v795_v1 = vshll.u32 %v11883_v56, %v792_v39 }
  0xae   :  { %v741_v42 = vsub.s32 0, %v739_v37  ;;  %v530_v59 = vadd.s32 536870912, %v529_v52  ;;  %v11041_v3 = vadd.s32 4294967169, %v576_v44  ;;  %v762_v51 = vsel %vm677_vm14, %v761_v46, %v737_v24 }
  0xaf   :  { %v798_v5 = vshll.u32 %v11884_v60, %v792_v39  ;;  %v805_v40 = vshrl.u32 %v11887_v2, %v793_v47  ;;  %v796_v58 = vshrl.u32 %v11884_v60, %v793_v47  ;;  %v799_v6 = vshrl.u32 %v11885_v62, %v793_v47 }
  0xb0   :  { %v11046_v45 = vmin.u32 %v741_v42, %v739_v37  ;;  %v12168_v48 = vshrl.u32 %v530_v59, 30  ;;  %v802_v7 = vshrl.u32 %v11886_v0, %v793_v47  ;;  %v794_v8 = vshrl.u32 %v11883_v56, %v793_v47 }
  0xb1   :  { %v804_v10 = vshll.u32 %v11886_v0, %v792_v39  ;;  %v808_v11 = vshrl.u32 %v11888_v9, %v793_v47  ;;  %v12196_v13 = vsel %vm12163_vm13, 0, %v762_v51  ;;  %v801_v15 = vshll.u32 %v11885_v62, %v792_v39 }
  0xb2   :  { %v743_v55 = vclz %v11046_v45  ;;  %v532_v28 = vshll.u32 %v12168_v48, 30  ;;  %v807_v19 = vshll.u32 %v11887_v2, %v792_v39  ;;  %v797_v21 = vor.u32 %v796_v58, %v795_v1 }
  0xb3   :  { %v806_v18 = vor.u32 %v805_v40, %v804_v10  ;;  %v800_v24 = vor.u32 %v799_v6, %v798_v5  ;;  %v803_v25 = vor.u32 %v802_v7, %v801_v15  ;;  %v555_v36 = vsub.s32 4, %v12168_v48 }
  0xb4   :  { %v11047_v4 = vadd.s32 4294967294, %v743_v55  ;;  %v12186_v41 = vsub.s32 %v529_v52, %v532_v28  ;;  %v809_v33 = vor.u32 %v808_v11, %v807_v19  ;;  %vm810_vm1 = vcmp.lt.s32.totalorder %v12173_v57, 1 }
  0xb5   :  { %vm813_vm2 = vcmp.lt.s32.totalorder %v12173_v57, 4  ;;  %vm811_vm3 = vcmp.lt.s32.totalorder %v12173_v57, 2  ;;  %vm812_vm4 = vcmp.lt.s32.totalorder %v12173_v57, 3  ;;  %v822_v43 = vsel %vm810_vm1, %v800_v24, %v803_v25 }
  0xb6   :  { %vm11048_vm15 = vcmp.lt.s32.totalorder %v11047_v4, 0  ;;  %v535_v14 = vsub.s32 0, %v12186_v41  ;;  %v819_v52 = vsel %vm813_vm2, %v806_v18, 920167782  ;;  %vm12214_vm5 = vcmp.le.f32.partialorder %v469_v30, 0.7853982 }
  0xb7   :  { %v746_v12 = vsel %vm11048_vm15, 0, %v11047_v4  ;;  %v815_v45 = vsel %vm813_vm2, %v803_v25, 2102212464  ;;  %v820_v46 = vsel %vm812_vm4, %v803_v25, %v819_v52  ;;  %v823_v47 = vsel %vm813_vm2, %v809_v33, 1326507024 }
  0xb8   :  { %v747_v16 = vsub.s32 32, %v746_v12  ;;  %v751_v17 = vsub.s32 4294967266, %v746_v12  ;;  %v11038_v20 = vmin.u32 %v535_v14, %v12186_v41  ;;  %v748_v29 = vshll.u32 %v739_v37, %v746_v12 }
  0xb9   :  { %v818_v37 = vsel %vm810_vm1, %v797_v21, %v800_v24  ;;  %v814_v55 = vsel %vm810_vm1, %v794_v8, %v797_v21  ;;  %v824_v28 = vsel %vm812_vm4, %v806_v18, %v823_v47  ;;  %v816_v58 = vsel %vm812_vm4, %v800_v24, %v815_v45 }
  0xba   :  { %v749_v31 = vshrl.u32 %v731_v50, %v747_v16  ;;  %v752_v32 = vadd.s32 127, %v751_v17  ;;  %v537_v35 = vclz %v11038_v20  ;;  %v821_v30 = vsel %vm811_vm3, %v818_v37, %v820_v46 }
  0xbb   :  { %v825_v51 = vsel %vm811_vm3, %v822_v43, %v824_v28  ;;  %v582_v6 = vadd.s32 1, %v11041_v3  ;;  %v12237_v15 = vmul.u32.u64.low %v12175_v61, %v821_v30  ;;  %v12238_v16 = vmul.u32.u64.high %v12175_v61, %v821_v30, %v12237_v15 }
  0xbc   :  { %v750_v38 = vor.u32 %v749_v31, %v748_v29  ;;  %v753_v39 = vshll.u32 %v752_v32, 23  ;;  %v11039_v42 = vadd.s32 4294967294, %v537_v35  ;;  %v5920_v18 = vadd.s32 3, %v12196_v13  ;;  %v191_v32 = vpop.permute.xlu1 %190 }
  0xbd   :  { %v12232_v10 = vmul.u32.u64.low %v12175_v61, %v825_v51  ;;  %v12233_v11 = vmul.u32.u64.high %v12175_v61, %v825_v51, %v12232_v10  ;;  %v556_v3 = vsel %vm471_vm0, %v555_v36, %v12168_v48  ;;  %vm583_vm7 = vcmp.gt.s32.totalorder %v582_v6, 0 }
  0xbe   :  { %v754_v59 = vor.u32 4788187, %v753_v39  ;;  %v757_v50 = vcvt.s32.f32 %v750_v38  ;;  %vm11040_vm6 = vcmp.lt.s32.totalorder %v11039_v42, 0  ;;  %v817_v20 = vsel %vm811_vm3, %v814_v55, %v816_v58 }
  0xbf   :  { %v540_v4 = vsel %vm11040_vm6, 0, %v11039_v42  ;;  %v12250_v24 = vand.u32 3, %v12196_v13  ;;  %vm835_vm8 = vc.u32 %v12233_v11, %v12237_v15  ;;  %v12256_v25 = vand.u32 8388607, %v572_v49 }
  0xc0   :  { %v755_v1 = vand.u32 2147483647, %v754_v59  ;;  %v541_v5 = vsub.s32 32, %v540_v4  ;;  %v545_v40 = vsub.s32 4294967266, %v540_v4  ;;  %v542_v8 = vshll.u32 %v12186_v41, %v540_v4 }
  0xc1   :  { %v558_v29 = vsel %vm12214_vm5, 0, %v556_v3  ;;  %v836_v31 = vadd.s32 1, %v12238_v16  ;;  %v12264_v13 = vand.u32 3, %v5920_v18  ;;  %v833_v33 = vmul.u32 %v12175_v61, %v817_v20 }
  0xc2   :  { %v758_v7 = vmul.f32 %v757_v50, %v755_v1  ;;  %v543_v12 = vshrl.u32 %v12178_v63, %v541_v5  ;;  %v546_v14 = vadd.s32 127, %v545_v40  ;;  %v584_v63 = vsel %vm583_vm7, %v582_v6, 0 }
  0xc3   :  { %v586_v35 = vand.u32 31, %v584_v63  ;;  %v837_v39 = vsel %vm835_vm8, %v836_v31, %v12238_v16  ;;  %v5712_v53 = vadd.s32 3, %v558_v29  ;;  %v12271_v37 = vmul.f32 %v12060_v23, %v191_v32 }
  0xc4   :  { %v759_v17 = vxor.u32 2147483648, %v758_v7  ;;  %v544_v41 = vor.u32 %v543_v12, %v542_v8  ;;  %v547_v19 = vshll.u32 %v546_v14, 23  ;;  %v838_v52 = vadd.s32 %v837_v39, %v833_v33 }
  0xc5   :  { %v12268_v42 = vsub.s32 32, %v586_v35  ;;  %v12273_v59 = vshrl.u32 %v584_v63, 5  ;;  %v589_v45 = vshll.u32 %v11883_v56, %v586_v35  ;;  %v592_v61 = vshll.u32 %v11884_v60, %v586_v35 }
  0xc6   :  { %v760_v21 = vsel %vm677_vm14, %v759_v17, %v758_v7  ;;  %v548_v57 = vor.u32 4788187, %v547_v19  ;;  %v551_v38 = vcvt.s32.f32 %v544_v41  ;;  %vm773_vm9 = vcmp.eq.s32.totalorder %v12250_v24, 2 }
  0xc7   :  { %v763_v48 = vsel %vm12163_vm13, %v12063_v26, %v760_v21  ;;  %v839_v46 = vadd.s32 536870912, %v838_v52  ;;  %v590_v47 = vshrl.u32 %v11884_v60, %v12268_v42  ;;  %v593_v50 = vshrl.u32 %v11885_v62, %v12268_v42 }
  0xc8   :  { %11649 = vcosq.f32 %v763_v48  ;;  %v549_v36 = vand.u32 2147483647, %v548_v57  ;;  %v595_v55 = vshll.u32 %v11885_v62, %v586_v35  ;;  %vm770_vm10 = vcmp.eq.s32.totalorder %v12250_v24, 0 }
  0xc9   :  { %11651 = vsinq.f32 %v763_v48  ;;  %vm5923_vm11 = vcmp.eq.s32.totalorder %v12264_v13, 0  ;;  %v596_v1 = vshrl.u32 %v11886_v0, %v12268_v42  ;;  %v598_v4 = vshll.u32 %v11886_v0, %v586_v35 }
  0xca   :  { %v552_v43 = vmul.f32 %v551_v38, %v549_v36  ;;  %v599_v30 = vshrl.u32 %v11887_v2, %v12268_v42  ;;  %vm769_vm12 = vcmp.lt.s32.totalorder %v12250_v24, 2  ;;  %vm5922_vm13 = vcmp.lt.s32.totalorder %v12264_v13, 2 }
  0xcb   :  { %vm5926_vm14 = vcmp.eq.s32.totalorder %v12264_v13, 2  ;;  %v12293_v51 = vand.u32 3, %v558_v29  ;;  %v12295_v5 = vshrl.u32 %v839_v46, 30  ;;  %v12297_v40 = vor.u32 %v590_v47, %v589_v45 }
  0xcc   :  { %v553_v28 = vxor.u32 2147483648, %v552_v43  ;;  %vm767_vm15 = vweird.f32 %v12063_v26  ;;  %v12302_v6 = vor.u32 %v593_v50, %v592_v61  ;;  %v597_v7 = vor.u32 %v596_v1, %v595_v55 }
  0xcd   :  { %v600_v8 = vor.u32 %v599_v30, %v598_v4  ;;  %v841_v12 = vshll.u32 %v12295_v5, 30  ;;  %v580_v14 = vor.u32 8388608, %v12256_v25  ;;  %vm607_vm1 = vcmp.lt.s32.totalorder %v12273_v59, 4 }
  0xce   :  { %v554_v58 = vsel %vm471_vm0, %v553_v28, %v552_v43  ;;  %v12310_v16 = vand.u32 3, %v5712_v53  ;;  %v602_v17 = vshrl.u32 %v11888_v9, %v12268_v42  ;;  %vm780_vm0 = vcmp.lt.s32.totalorder %v12073_v34, 0 }
  0xcf   :  { %v557_v10 = vsel %vm12214_vm5, %v12066_v27, %v554_v58  ;;  %v613_v18 = vsel %vm607_vm1, %v600_v8, 920167782  ;;  %v12317_v44 = vsub.s32 %v838_v52, %v841_v12  ;;  %vm604_vm2 = vcmp.lt.s32.totalorder %v12273_v59, 1 }
  0xd0   :  { %11653 = vcosq.f32 %v557_v10  ;;  %vm606_vm3 = vcmp.lt.s32.totalorder %v12273_v59, 3  ;;  %v601_v20 = vshll.u32 %v11887_v2, %v586_v35  ;;  %v612_v63 = vsel %vm604_vm2, %v12297_v40, %v12302_v6 }
  0xd1   :  { %11655 = vsinq.f32 %v557_v10  ;;  %v614_v21 = vsel %vm606_vm3, %v597_v7, %v613_v18  ;;  %v844_v48 = vsub.s32 0, %v12317_v44  ;;  %v12329_v57 = vshll.u32 %v580_v14, 8 }
  0xd2   :  { %v11650_v3 = vpop.eup %11649  ;;  %v987_v29 = vand.u32 2139095040, %v12271_v37  ;;  %vm567_vm4 = vcmp.eq.s32.totalorder %v12293_v51, 2  ;;  %v603_v33 = vor.u32 %v602_v17, %v601_v20  ;;  %vm605_vm5 = vcmp.lt.s32.totalorder %v12273_v59, 2 }
  0xd3   :  { %v11652_v41 = vpop.eup %11651  ;;  %v774_v19 = vxor.u32 2147483648, %v11650_v3  ;;  %vm564_vm6 = vcmp.eq.s32.totalorder %v12293_v51, 0  ;;  %v11050_v38 = vmin.u32 %v844_v48, %v12317_v44  ;;  %v615_v39 = vsel %vm605_vm5, %v612_v63, %v614_v21 }
  0xd4   :  { %v771_v25 = vxor.u32 2147483648, %v11652_v41  ;;  %vm563_vm7 = vcmp.lt.s32.totalorder %v12293_v51, 2  ;;  %vm5714_vm8 = vcmp.lt.s32.totalorder %v12310_v16, 2  ;;  %v864_v43 = vsub.s32 4, %v12295_v5 }
  0xd5   :  { %v775_v31 = vsel %vm773_vm9, %v774_v19, %v11652_v41  ;;  %v5928_v32 = vsel %vm5926_vm14, %v774_v19, %v11652_v41  ;;  %v588_v45 = vshrl.u32 %v11883_v56, %v12268_v42  ;;  %vm561_vm9 = vweird.f32 %v12066_v27 }
  0xd6   :  { %v772_v35 = vsel %vm770_vm10, %v11650_v3, %v771_v25  ;;  %v5925_v36 = vsel %vm5923_vm11, %v11650_v3, %v771_v25  ;;  %v846_v24 = vclz %v11050_v38  ;;  %v609_v13 = vsel %vm607_vm1, %v597_v7, 2102212464 }
  0xd7   :  { %v776_v53 = vsel %vm769_vm12, %v772_v35, %v775_v31  ;;  %v5929_v52 = vsel %vm5922_vm13, %v5925_v36, %v5928_v32  ;;  %v616_v42 = vsel %vm604_vm2, %v12302_v6, %v597_v7  ;;  %v617_v47 = vsel %vm607_vm1, %v603_v33, 1326507024 }
  0xd8   :  { %v777_v61 = vsel %vm767_vm15, nan, %v776_v53  ;;  %v5930_v46 = vsel %vm767_vm15, nan, %v5929_v52  ;;  %v12368_v26 = vmul.u32.u64.low %v12329_v57, %v615_v39  ;;  %v12369_v50 = vmul.u32.u64.high %v12329_v57, %v615_v39, %v12368_v26  ;;  %v186_v53 = vpop.permute.xlu0 %185 }
  0xd9   :  { %10821 = vst [vmem:[#allocation2 + $0x20] sm:$0xff] %v777_v61  ;;  %10871 = vst [vmem:[#allocation2 + $0x28] sm:$0xff] %v777_v61  ;;  %vm5715_vm10 = vcmp.eq.s32.totalorder %v12310_v16, 0  ;;  %vm5718_vm11 = vcmp.eq.s32.totalorder %v12310_v16, 2  ;;  %vm12376_vm12 = vcmp.le.f32.partialorder %v778_v54, 0.7853982  ;;  %v834_v28 = vadd.s32 %v12237_v15, %v12233_v11 }
  0xda   :  { %10922 = vst [vmem:[#allocation2 + $0x340] sm:$0xff] %v5930_v46  ;;  %10972 = vst [vmem:[#allocation2 + $0x348] sm:$0xff] %v5930_v46  ;;  %v11051_v1 = vadd.s32 4294967294, %v846_v24  ;;  %v11654_v4 = vpop.eup %11653  ;;  %v865_v30 = vsel %vm780_vm0, %v864_v43, %v12295_v5  ;;  %v608_v58 = vsel %vm604_vm2, %v588_v45, %v12297_v40  ;;  %v610_v54 = vsel %vm606_vm3, %v12302_v6, %v609_v13 }
  0xdb   :  { %v618_v7 = vsel %vm606_vm3, %v600_v8, %v617_v47  ;;  %v11656_v10 = vpop.eup %11655  ;;  %v568_v12 = vxor.u32 2147483648, %v11654_v4  ;;  %v988_v15 = vshrl.u32 %v987_v29, 23  ;;  %v611_v3 = vsel %vm605_vm5, %v608_v58, %v610_v54 }
  0xdc   :  { %vm11052_vm13 = vcmp.lt.s32.totalorder %v11051_v1, 0  ;;  %v619_v11 = vsel %vm605_vm5, %v616_v42, %v618_v7  ;;  %v565_v14 = vxor.u32 2147483648, %v11656_v10  ;;  %v630_v63 = vadd.s32 1, %v12369_v50 }
  0xdd   :  { %v849_v5 = vsel %vm11052_vm13, 0, %v11051_v1  ;;  %v12396_v17 = vmul.u32.u64.low %v12329_v57, %v619_v11  ;;  %v12397_v18 = vmul.u32.u64.high %v12329_v57, %v619_v11, %v12396_v17  ;;  %v569_v40 = vsel %vm567_vm4, %v568_v12, %v11656_v10 }
  0xde   :  { %v5720_v6 = vsel %vm5718_vm11, %v568_v12, %v11656_v10  ;;  %v850_v8 = vsub.s32 32, %v849_v5  ;;  %v566_v41 = vsel %vm564_vm6, %v11654_v4, %v565_v14  ;;  %v5717_v19 = vsel %vm5715_vm10, %v11654_v4, %v565_v14 }
  0xdf   :  { %v854_v20 = vsub.s32 4294967266, %v849_v5  ;;  %v570_v21 = vsel %vm563_vm7, %v566_v41, %v569_v40  ;;  %v5721_v25 = vsel %vm5714_vm8, %v5717_v19, %v5720_v6  ;;  %v11057_v29 = vadd.s32 4294967169, %v988_v15 }
  0xe0   :  { %v852_v48 = vshrl.u32 %v834_v28, %v850_v8  ;;  %v571_v59 = vsel %vm561_vm9, nan, %v570_v21  ;;  %v5722_v31 = vsel %vm561_vm9, nan, %v5721_v25  ;;  %v851_v32 = vshll.u32 %v12317_v44, %v849_v5 }
  0xe1   :  { %v855_v33 = vadd.s32 127, %v854_v20  ;;  %10819 = vst [vmem:[#allocation2] sm:$0xff] %v571_v59  ;;  %10869 = vst [vmem:[#allocation2 + $0x8] sm:$0xff] %v571_v59  ;;  %v627_v51 = vmul.u32 %v12329_v57, %v611_v3  ;;  %vm629_vm14 = vc.u32 %v12397_v18, %v12368_v26  ;;  %v984_v16 = vand.u32 2147483647, %v12271_v37 }
  0xe2   :  { %10920 = vst [vmem:[#allocation2 + $0x320] sm:$0xff] %v5722_v31  ;;  %10970 = vst [vmem:[#allocation2 + $0x328] sm:$0xff] %v5722_v31  ;;  %v994_v35 = vadd.s32 1, %v11057_v29  ;;  %v853_v36 = vor.u32 %v852_v48, %v851_v32  ;;  %v867_v27 = vsel %vm12376_vm12, 0, %v865_v30  ;;  %v631_v44 = vsel %vm629_vm14, %v630_v63, %v12369_v50 }
  0xe3   :  { %v856_v38 = vshll.u32 %v855_v33, 23  ;;  %v632_v39 = vadd.s32 %v631_v44, %v627_v51  ;;  %v6024_v45 = vadd.s32 3, %v867_v27  ;;  %v991_v61 = vand.u32 8388607, %v984_v16 }
  0xe4   :  { %vm995_vm15 = vcmp.gt.s32.totalorder %v994_v35, 0  ;;  %v860_v13 = vcvt.s32.f32 %v853_v36  ;;  %v12429_v42 = vmul.f32 %v12060_v23, %v186_v53  ;;  %v12431_v50 = vand.u32 3, %v867_v27 }
  0xe5   :  { %v857_v52 = vor.u32 4788187, %v856_v38  ;;  %v996_v43 = vsel %vm995_vm15, %v994_v35, 0  ;;  %v633_v57 = vadd.s32 536870912, %v632_v39  ;;  %v12433_v4 = vand.u32 3, %v6024_v45 }
  0xe6   :  { %v998_v46 = vand.u32 31, %v996_v43  ;;  %v992_v58 = vor.u32 8388608, %v991_v61  ;;  %v884_v12 = vand.u32 2139095040, %v12429_v42  ;;  %v12440_v15 = vshrl.u32 %v996_v43, 5 }
  0xe7   :  { %v858_v24 = vand.u32 2147483647, %v857_v52  ;;  %v634_v47 = vshrl.u32 %v633_v57, 30  ;;  %vm574_vm1 = vcmp.lt.s32.totalorder %v12149_v22, 0  ;;  %v628_v31 = vadd.s32 %v12368_v26, %v12397_v18 }
  0xe8   :  { %v999_v28 = vsub.s32 32, %v998_v46  ;;  %v1001_v40 = vshll.u32 %v11883_v56, %v998_v46  ;;  %v1004_v6 = vshll.u32 %v11884_v60, %v998_v46  ;;  %v1007_v19 = vshll.u32 %v11885_v62, %v998_v46 }
  0xe9   :  { %v861_v1 = vmul.f32 %v860_v13, %v858_v24  ;;  %v635_v30 = vshll.u32 %v634_v47, 30  ;;  %v1010_v20 = vshll.u32 %v11886_v0, %v998_v46  ;;  %v1013_v25 = vshll.u32 %v11887_v2, %v998_v46 }
  0xea   :  { %v1002_v7 = vshrl.u32 %v11884_v60, %v999_v28  ;;  %v1005_v10 = vshrl.u32 %v11885_v62, %v999_v28  ;;  %v1008_v14 = vshrl.u32 %v11886_v0, %v999_v28  ;;  %v1011_v5 = vshrl.u32 %v11887_v2, %v999_v28 }
  0xeb   :  { %v862_v54 = vxor.u32 2147483648, %v861_v1  ;;  %v12438_v11 = vsub.s32 %v632_v39, %v635_v30  ;;  %v1014_v8 = vshrl.u32 %v11888_v9, %v999_v28  ;;  %v881_v33 = vand.u32 2147483647, %v12429_v42 }
  0xec   :  { %v1003_v63 = vor.u32 %v1002_v7, %v1001_v40  ;;  %v1006_v21 = vor.u32 %v1005_v10, %v1004_v6  ;;  %v1009_v29 = vor.u32 %v1008_v14, %v1007_v19  ;;  %v1012_v59 = vor.u32 %v1011_v5, %v1010_v20 }
  0xed   :  { %v863_v17 = vsel %vm780_vm0, %v862_v54, %v861_v1  ;;  %v638_v41 = vsub.s32 0, %v12438_v11  ;;  %vm12459_vm0 = vcmp.le.f32.partialorder %v572_v49, 0.7853982  ;;  %v1015_v32 = vor.u32 %v1014_v8, %v1013_v25 }
  0xee   :  { %v866_v3 = vsel %vm12376_vm12, %v12073_v34, %v863_v17  ;;  %v885_v51 = vshrl.u32 %v884_v12, 23  ;;  %v658_v36 = vsub.s32 4, %v634_v47  ;;  %vm1016_vm2 = vcmp.lt.s32.totalorder %v12440_v15, 1 }
  0xef   :  { %11657 = vcosq.f32 %v866_v3  ;;  %v11042_v55 = vmin.u32 %v638_v41, %v12438_v11  ;;  %v12468_v38 = vshll.u32 %v992_v58, 8  ;;  %vm876_vm3 = vcmp.eq.s32.totalorder %v12431_v50, 2 }
  0xf0   :  { %11659 = vsinq.f32 %v866_v3  ;;  %vm6030_vm4 = vcmp.eq.s32.totalorder %v12433_v4, 2  ;;  %v1000_v49 = vshrl.u32 %v11883_v56, %v999_v28  ;;  %vm1017_vm5 = vcmp.lt.s32.totalorder %v12440_v15, 2 }
  0xf1   :  { %v640_v35 = vclz %v11042_v55  ;;  %vm1019_vm6 = vcmp.lt.s32.totalorder %v12440_v15, 4  ;;  %v1024_v26 = vsel %vm1016_vm2, %v1003_v63, %v1006_v21  ;;  %vm873_vm7 = vcmp.eq.s32.totalorder %v12431_v50, 0 }
  0xf2   :  { %vm6027_vm8 = vcmp.eq.s32.totalorder %v12433_v4, 0  ;;  %vm1018_vm9 = vcmp.lt.s32.totalorder %v12440_v15, 3  ;;  %v1025_v27 = vsel %vm1019_vm6, %v1012_v59, 920167782  ;;  %v1028_v44 = vsel %vm1016_vm2, %v1006_v21, %v1009_v29 }
  0xf3   :  { %v11043_v18 = vadd.s32 4294967294, %v640_v35  ;;  %vm872_vm10 = vcmp.lt.s32.totalorder %v12431_v50, 2  ;;  %vm6026_vm11 = vcmp.lt.s32.totalorder %v12433_v4, 2  ;;  %v1021_v39 = vsel %vm1019_vm6, %v1009_v29, 2102212464 }
  0xf4   :  { %v1026_v53 = vsel %vm1018_vm9, %v1009_v29, %v1025_v27  ;;  %v1029_v52 = vsel %vm1019_vm6, %v1015_v32, 1326507024  ;;  %v11053_v43 = vadd.s32 4294967169, %v885_v51  ;;  %vm870_vm12 = vweird.f32 %v12073_v34  ;;  %v201_v51 = vpop.permute.xlu1 %200 }
  0xf5   :  { %vm11044_vm13 = vcmp.lt.s32.totalorder %v11043_v18, 0  ;;  %v659_v45 = vsel %vm574_vm1, %v658_v36, %v634_v47  ;;  %v1027_v57 = vsel %vm1017_vm5, %v1024_v26, %v1026_v53  ;;  %v1030_v61 = vsel %vm1018_vm9, %v1012_v59, %v1029_v52 }
  0xf6   :  { %v643_v46 = vsel %vm11044_vm13, 0, %v11043_v18  ;;  %v1031_v24 = vsel %vm1017_vm5, %v1028_v44, %v1030_v61  ;;  %v12496_v13 = vmul.u32.u64.low %v12468_v38, %v1027_v57  ;;  %v12497_v28 = vmul.u32.u64.high %v12468_v38, %v1027_v57, %v12496_v13 }
  0xf7   :  { %v644_v1 = vsub.s32 32, %v643_v46  ;;  %v648_v30 = vsub.s32 4294967266, %v643_v46  ;;  %v1020_v47 = vsel %vm1016_vm2, %v1000_v49, %v1003_v63  ;;  %v1022_v58 = vsel %vm1018_vm9, %v1006_v21, %v1021_v39 }
  0xf8   :  { %v661_v7 = vsel %vm12459_vm0, 0, %v659_v45  ;;  %v12507_v10 = vmul.u32.u64.low %v12468_v38, %v1031_v24  ;;  %v12508_v12 = vmul.u32.u64.high %v12468_v38, %v1031_v24, %v12507_v10  ;;  %v891_v14 = vadd.s32 1, %v11053_v43 }
  0xf9   :  { %v11658_v54 = vpop.eup %11657  ;;  %v645_v40 = vshll.u32 %v12438_v11, %v643_v46  ;;  %v646_v6 = vshrl.u32 %v628_v31, %v644_v1  ;;  %v649_v8 = vadd.s32 127, %v648_v30  ;;  %v1023_v41 = vsel %vm1017_vm5, %v1020_v47, %v1022_v58 }
  0xfa   :  { %v11660_v5 = vpop.eup %11659  ;;  %v877_v17 = vxor.u32 2147483648, %v11658_v54  ;;  %v1042_v19 = vadd.s32 1, %v12497_v28  ;;  %vm892_vm14 = vcmp.gt.s32.totalorder %v891_v14, 0  ;;  %v5816_v29 = vadd.s32 3, %v661_v7 }
  0xfb   :  { %v874_v3 = vxor.u32 2147483648, %v11660_v5  ;;  %v647_v21 = vor.u32 %v646_v6, %v645_v40  ;;  %v650_v25 = vshll.u32 %v649_v8, 23  ;;  %vm1041_vm15 = vc.u32 %v12508_v12, %v12496_v13 }
  0xfc   :  { %v878_v20 = vsel %vm876_vm3, %v877_v17, %v11660_v5  ;;  %v6032_v63 = vsel %vm6030_vm4, %v877_v17, %v11660_v5  ;;  %v1039_v32 = vmul.u32 %v12468_v38, %v1023_v41  ;;  %v1043_v49 = vsel %vm1041_vm15, %v1042_v19, %v12497_v28 }
  0xfd   :  { %v875_v11 = vsel %vm873_vm7, %v11658_v54, %v874_v3  ;;  %v6029_v55 = vsel %vm6027_vm8, %v11658_v54, %v874_v3  ;;  %v651_v31 = vor.u32 4788187, %v650_v25  ;;  %v893_v26 = vsel %vm892_vm14, %v891_v14, 0 }
  0xfe   :  { %v879_v15 = vsel %vm872_vm10, %v875_v11, %v878_v20  ;;  %v6033_v59 = vsel %vm6026_vm11, %v6029_v55, %v6032_v63  ;;  %v654_v4 = vcvt.s32.f32 %v647_v21  ;;  %v1044_v18 = vadd.s32 %v1043_v49, %v1039_v32 }
  0xff   :  { %v880_v35 = vsel %vm870_vm12, nan, %v879_v15  ;;  %v6034_v36 = vsel %vm870_vm12, nan, %v6033_v59  ;;  %v652_v50 = vand.u32 2147483647, %v651_v31  ;;  %v895_v27 = vand.u32 31, %v893_v26 }
 0x100   :  { %10822 = vst [vmem:[#allocation2 + $0x30] sm:$0xff] %v880_v35  ;;  %10872 = vst [vmem:[#allocation2 + $0x38] sm:$0xff] %v880_v35  ;;  %v12536_v38 = vmul.f32 %v12060_v23, %v201_v51  ;;  %v1045_v39 = vadd.s32 536870912, %v1044_v18  ;;  %v12538_v34 = vand.u32 3, %v661_v7  ;;  %v12540_v52 = vand.u32 3, %v5816_v29 }
 0x101   :  { %10923 = vst [vmem:[#allocation2 + $0x350] sm:$0xff] %v6034_v36  ;;  %10973 = vst [vmem:[#allocation2 + $0x358] sm:$0xff] %v6034_v36  ;;  %v655_v44 = vmul.f32 %v654_v4, %v652_v50  ;;  %v896_v53 = vsub.s32 32, %v895_v27  ;;  %v888_v43 = vand.u32 8388607, %v881_v33  ;;  %v12544_v61 = vshrl.u32 %v893_v26, 5 }
 0x102   :  { %v1046_v57 = vshrl.u32 %v1045_v39, 30  ;;  %v1193_v1 = vand.u32 2139095040, %v12536_v38  ;;  %v898_v58 = vshll.u32 %v11883_v56, %v895_v27  ;;  %v901_v10 = vshll.u32 %v11884_v60, %v895_v27 }
 0x103   :  { %v656_v45 = vxor.u32 2147483648, %v655_v44  ;;  %v899_v46 = vshrl.u32 %v11884_v60, %v896_v53  ;;  %v902_v24 = vshrl.u32 %v11885_v62, %v896_v53  ;;  %v905_v23 = vshrl.u32 %v11886_v0, %v896_v53 }
 0x104   :  { %v908_v28 = vshrl.u32 %v11887_v2, %v896_v53  ;;  %v1047_v47 = vshll.u32 %v1046_v57, 30  ;;  %v911_v54 = vshrl.u32 %v11888_v9, %v896_v53  ;;  %v904_v14 = vshll.u32 %v11885_v62, %v895_v27 }
 0x105   :  { %v657_v30 = vsel %vm574_vm1, %v656_v45, %v655_v44  ;;  %v907_v5 = vshll.u32 %v11886_v0, %v895_v27  ;;  %v900_v40 = vor.u32 %v899_v46, %v898_v58  ;;  %v910_v6 = vshll.u32 %v11887_v2, %v895_v27 }
 0x106   :  { %v660_v7 = vsel %vm12459_vm0, %v12149_v22, %v657_v30  ;;  %v12561_v17 = vsub.s32 %v1044_v18, %v1047_v47  ;;  %v903_v8 = vor.u32 %v902_v24, %v901_v10  ;;  %v906_v3 = vor.u32 %v905_v23, %v904_v14 }
 0x107   :  { %11661 = vcosq.f32 %v660_v7  ;;  %v909_v41 = vor.u32 %v908_v28, %v907_v5  ;;  %v912_v48 = vor.u32 %v911_v54, %v910_v6  ;;  %vm986_vm1 = vcmp.lt.s32.totalorder %v12271_v37, 0 }
 0x108   :  { %11663 = vsinq.f32 %v660_v7  ;;  %v1050_v19 = vsub.s32 0, %v12561_v17  ;;  %v1070_v20 = vsub.s32 4, %v1046_v57  ;;  %v889_v63 = vor.u32 8388608, %v888_v43 }
 0x109   :  { %v897_v21 = vshrl.u32 %v11883_v56, %v896_v53  ;;  %vm670_vm0 = vcmp.eq.s32.totalorder %v12538_v34, 2  ;;  %vm5822_vm2 = vcmp.eq.s32.totalorder %v12540_v52, 2  ;;  %vm913_vm3 = vcmp.lt.s32.totalorder %v12544_v61, 1 }
 0x10a   :  { %v11058_v25 = vmin.u32 %v1050_v19, %v12561_v17  ;;  %vm915_vm4 = vcmp.lt.s32.totalorder %v12544_v61, 3  ;;  %vm916_vm5 = vcmp.lt.s32.totalorder %v12544_v61, 4  ;;  %vm667_vm6 = vcmp.eq.s32.totalorder %v12538_v34, 0 }
 0x10b   :  { %vm5819_vm7 = vcmp.eq.s32.totalorder %v12540_v52, 0  ;;  %v918_v11 = vsel %vm916_vm5, %v906_v3, 2102212464  ;;  %v921_v55 = vsel %vm913_vm3, %v900_v40, %v903_v8  ;;  %v922_v29 = vsel %vm916_vm5, %v909_v41, 920167782 }
 0x10c   :  { %v1194_v15 = vshrl.u32 %v1193_v1, 23  ;;  %vm666_vm8 = vcmp.lt.s32.totalorder %v12538_v34, 2  ;;  %vm5818_vm9 = vcmp.lt.s32.totalorder %v12540_v52, 2  ;;  %v1052_v59 = vclz %v11058_v25 }
 0x10d   :  { %v923_v31 = vsel %vm915_vm4, %v906_v3, %v922_v29  ;;  %v925_v32 = vsel %vm913_vm3, %v903_v8, %v906_v3  ;;  %v926_v51 = vsel %vm916_vm5, %v912_v48, 1326507024  ;;  %vm664_vm10 = vweird.f32 %v12149_v22 }
 0x10e   :  { %v1040_v35 = vadd.s32 %v12496_v13, %v12508_v12  ;;  %vm914_vm11 = vcmp.lt.s32.totalorder %v12544_v61, 2  ;;  %v917_v36 = vsel %vm913_vm3, %v897_v21, %v900_v40  ;;  %v929_v49 = vshll.u32 %v889_v63, 8 }
 0x10f   :  { %v11059_v26 = vadd.s32 4294967294, %v1052_v59  ;;  %v919_v50 = vsel %vm915_vm4, %v903_v8, %v918_v11  ;;  %v924_v4 = vsel %vm914_vm11, %v921_v55, %v923_v31  ;;  %v927_v18 = vsel %vm915_vm4, %v909_v41, %v926_v51  ;;  %v196_v55 = vpop.permute.xlu0 %195 }
 0x110   :  { %v928_v27 = vsel %vm914_vm11, %v925_v32, %v927_v18  ;;  %v12597_v13 = vmul.u32.u64.low %v929_v49, %v924_v4  ;;  %v12598_v12 = vmul.u32.u64.high %v929_v49, %v924_v4, %v12597_v13  ;;  %v11065_v44 = vadd.s32 4294967169, %v1194_v15 }
 0x111   :  { %v11662_v39 = vpop.eup %11661  ;;  %vm11060_vm12 = vcmp.lt.s32.totalorder %v11059_v26, 0  ;;  %v1071_v53 = vsel %vm986_vm1, %v1070_v20, %v1046_v57  ;;  %v12603_v43 = vmul.u32.u64.low %v929_v49, %v928_v27  ;;  %v12604_v45 = vmul.u32.u64.high %v929_v49, %v928_v27, %v12603_v43 }
 0x112   :  { %v11664_v46 = vpop.eup %11663  ;;  %v671_v24 = vxor.u32 2147483648, %v11662_v39  ;;  %v1055_v23 = vsel %vm11060_vm12, 0, %v11059_v26  ;;  %v920_v28 = vsel %vm914_vm11, %v917_v36, %v919_v50  ;;  %v1200_v1 = vadd.s32 1, %v11065_v44  ;;  %v12646_v36 = vld [vmem:[%s17028_s1] ss:$0 sm:$0xff] }
 0x113   :  { %v668_v30 = vxor.u32 2147483648, %v11664_v46  ;;  %v1056_v47 = vsub.s32 32, %v1055_v23  ;;  %v1057_v58 = vshll.u32 %v12561_v17, %v1055_v23  ;;  %v1060_v54 = vsub.s32 4294967266, %v1055_v23 }
 0x114   :  { %v672_v7 = vsel %vm670_vm0, %v671_v24, %v11664_v46  ;;  %v5824_v57 = vsel %vm5822_vm2, %v671_v24, %v11664_v46  ;;  %v939_v10 = vadd.s32 1, %v12598_v12  ;;  %vm1201_vm13 = vcmp.gt.s32.totalorder %v1200_v1, 0 }
 0x115   :  { %v669_v14 = vsel %vm667_vm6, %v11662_v39, %v668_v30  ;;  %v5821_v61 = vsel %vm5819_vm7, %v11662_v39, %v668_v30  ;;  %v1058_v5 = vshrl.u32 %v1040_v35, %v1056_v47  ;;  %v1061_v40 = vadd.s32 127, %v1060_v54 }
 0x116   :  { %v673_v17 = vsel %vm666_vm8, %v669_v14, %v672_v7  ;;  %v5825_v6 = vsel %vm5818_vm9, %v5821_v61, %v5824_v57  ;;  %v936_v8 = vmul.u32 %v929_v49, %v920_v28  ;;  %vm938_vm14 = vc.u32 %v12604_v45, %v12597_v13 }
 0x117   :  { %v674_v3 = vsel %vm664_vm10, nan, %v673_v17  ;;  %v5826_v41 = vsel %vm664_vm10, nan, %v5825_v6  ;;  %v1059_v19 = vor.u32 %v1058_v5, %v1057_v58  ;;  %v1062_v48 = vshll.u32 %v1061_v40, 23 }
 0x118   :  { %10820 = vst [vmem:[#allocation2 + $0x10] sm:$0xff] %v674_v3  ;;  %10870 = vst [vmem:[#allocation2 + $0x18] sm:$0xff] %v674_v3  ;;  %v940_v34 = vsel %vm938_vm14, %v939_v10, %v12598_v12  ;;  %v1190_v52 = vand.u32 2147483647, %v12536_v38  ;;  %v1202_v20 = vsel %vm1201_vm13, %v1200_v1, 0  ;;  %v12649_v49 = vmul.f32 %v12646_v36, %v196_v55 }
 0x119   :  { %10921 = vst [vmem:[#allocation2 + $0x330] sm:$0xff] %v5826_v41  ;;  %10971 = vst [vmem:[#allocation2 + $0x338] sm:$0xff] %v5826_v41  ;;  %vm12633_vm15 = vcmp.le.f32.partialorder %v984_v16, 0.7853982  ;;  %v1063_v22 = vor.u32 4788187, %v1062_v48  ;;  %v941_v21 = vadd.s32 %v940_v34, %v936_v8  ;;  %v1066_v15 = vcvt.s32.f32 %v1059_v19 }
 0x11a   :  { %v1073_v25 = vsel %vm12633_vm15, 0, %v1071_v53  ;;  %v1204_v11 = vand.u32 31, %v1202_v20  ;;  %v1197_v31 = vand.u32 8388607, %v1190_v52  ;;  %v1203_v26 = vshrl.u32 %v1202_v20, 5 }
 0x11b   :  { %v1064_v29 = vand.u32 2147483647, %v1063_v22  ;;  %v942_v59 = vadd.s32 536870912, %v941_v21  ;;  %v6232_v35 = vadd.s32 3, %v1073_v25  ;;  %v12669_v57 = vand.u32 3, %v1073_v25 }
 0x11c   :  { %v1205_v32 = vsub.s32 32, %v1204_v11  ;;  %v1207_v44 = vshll.u32 %v11883_v56, %v1204_v11  ;;  %v1210_v53 = vshll.u32 %v11884_v60, %v1204_v11  ;;  %v1213_v43 = vshll.u32 %v11885_v62, %v1204_v11 }
 0x11d   :  { %v1067_v51 = vmul.f32 %v1066_v15, %v1064_v29  ;;  %v12641_v16 = vshrl.u32 %v942_v59, 30  ;;  %v1216_v46 = vshll.u32 %v11886_v0, %v1204_v11  ;;  %v1219_v30 = vshll.u32 %v11887_v2, %v1204_v11 }
 0x11e   :  { %v1208_v50 = vshrl.u32 %v11884_v60, %v1205_v32  ;;  %v1211_v4 = vshrl.u32 %v11885_v62, %v1205_v32  ;;  %v1214_v18 = vshrl.u32 %v11886_v0, %v1205_v32  ;;  %v1217_v39 = vshrl.u32 %v11887_v2, %v1205_v32 }
 0x11f   :  { %v1068_v27 = vxor.u32 2147483648, %v1067_v51  ;;  %v944_v12 = vshll.u32 %v12641_v16, 30  ;;  %v1220_v24 = vshrl.u32 %v11888_v9, %v1205_v32  ;;  %v12672_v61 = vand.u32 3, %v6232_v35 }
 0x120   :  { %v1209_v1 = vor.u32 %v1208_v50, %v1207_v44  ;;  %v1212_v58 = vor.u32 %v1211_v4, %v1210_v53  ;;  %v1215_v54 = vor.u32 %v1214_v18, %v1213_v43  ;;  %v1218_v7 = vor.u32 %v1217_v39, %v1216_v46 }
 0x121   :  { %v1069_v23 = vsel %vm986_vm1, %v1068_v27, %v1067_v51  ;;  %v12663_v28 = vsub.s32 %v941_v21, %v944_v12  ;;  %v1221_v14 = vor.u32 %v1220_v24, %v1219_v30  ;;  %vm883_vm1 = vcmp.lt.s32.totalorder %v12429_v42, 0 }
 0x122   :  { %v1072_v47 = vsel %vm12633_vm15, %v12271_v37, %v1069_v23  ;;  %v1198_v5 = vor.u32 8388608, %v1197_v31  ;;  %v1090_v40 = vand.u32 2139095040, %v12649_v49  ;;  %v1206_v6 = vshrl.u32 %v11883_v56, %v1205_v32 }
 0x123   :  { %11665 = vcosq.f32 %v1072_v47  ;;  %v947_v10 = vsub.s32 0, %v12663_v28  ;;  %vm1222_vm0 = vcmp.lt.s32.totalorder %v1203_v26, 1  ;;  %vm1225_vm2 = vcmp.lt.s32.totalorder %v1203_v26, 4 }
 0x124   :  { %11667 = vsinq.f32 %v1072_v47  ;;  %vm1224_vm3 = vcmp.lt.s32.totalorder %v1203_v26, 3  ;;  %v1227_v8 = vsel %vm1225_vm2, %v1215_v54, 2102212464  ;;  %v1230_v3 = vsel %vm1222_vm0, %v1209_v1, %v1212_v58 }
 0x125   :  { %v11054_v17 = vmin.u32 %v947_v10, %v12663_v28  ;;  %v1231_v41 = vsel %vm1225_vm2, %v1218_v7, 920167782  ;;  %vm1082_vm4 = vcmp.eq.s32.totalorder %v12669_v57, 2  ;;  %v1234_v34 = vsel %vm1222_vm0, %v1212_v58, %v1215_v54  ;;  %v211_v10 = vpop.permute.xlu1 %210 }
 0x126   :  { %v1232_v48 = vsel %vm1224_vm3, %v1215_v54, %v1231_v41  ;;  %v1235_v20 = vsel %vm1225_vm2, %v1221_v14, 1326507024  ;;  %vm1079_vm5 = vcmp.eq.s32.totalorder %v12669_v57, 0  ;;  %vm1223_vm6 = vcmp.lt.s32.totalorder %v1203_v26, 2 }
 0x127   :  { %v949_v19 = vclz %v11054_v17  ;;  %v1226_v63 = vsel %vm1222_vm0, %v1206_v6, %v1209_v1  ;;  %v1228_v22 = vsel %vm1224_vm3, %v1212_v58, %v1227_v8  ;;  %v1238_v21 = vshll.u32 %v1198_v5, 8 }
 0x128   :  { %vm1078_vm7 = vcmp.lt.s32.totalorder %v12669_v57, 2  ;;  %vm6234_vm8 = vcmp.lt.s32.totalorder %v12672_v61, 2  ;;  %v967_v11 = vsub.s32 4, %v12641_v16  ;;  %v1233_v55 = vsel %vm1223_vm6, %v1230_v3, %v1232_v48 }
 0x129   :  { %v11055_v25 = vadd.s32 4294967294, %v949_v19  ;;  %v1236_v29 = vsel %vm1224_vm3, %v1218_v7, %v1235_v20  ;;  %vm1076_vm9 = vweird.f32 %v12271_v37  ;;  %v1091_v32 = vshrl.u32 %v1090_v40, 23 }
 0x12a   :  { %v1237_v15 = vsel %vm1223_vm6, %v1234_v34, %v1236_v29  ;;  %v12689_v59 = vmul.u32.u64.low %v1238_v21, %v1233_v55  ;;  %v12690_v31 = vmul.u32.u64.high %v1238_v21, %v1233_v55, %v12689_v59  ;;  %vm12695_vm10 = vcmp.le.f32.partialorder %v881_v33, 0.7853982 }
 0x12b   :  { %vm11056_vm11 = vcmp.lt.s32.totalorder %v11055_v25, 0  ;;  %v1229_v35 = vsel %vm1223_vm6, %v1226_v63, %v1228_v22  ;;  %v12700_v50 = vmul.u32.u64.low %v1238_v21, %v1237_v15  ;;  %v12701_v4 = vmul.u32.u64.high %v1238_v21, %v1237_v15, %v12700_v50 }
 0x12c   :  { %vm6235_vm12 = vcmp.eq.s32.totalorder %v12672_v61, 0  ;;  %vm6238_vm13 = vcmp.eq.s32.totalorder %v12672_v61, 2  ;;  %v952_v18 = vsel %vm11056_vm11, 0, %v11055_v25  ;;  %v11061_v27 = vadd.s32 4294967169, %v1091_v32 }
 0x12d   :  { %v11666_v12 = vpop.eup %11665  ;;  %v937_v44 = vadd.s32 %v12597_v13, %v12604_v45  ;;  %v953_v33 = vsub.s32 32, %v952_v18  ;;  %v957_v39 = vsub.s32 4294967266, %v952_v18  ;;  %v968_v26 = vsel %vm883_vm1, %v967_v11, %v12641_v16 }
 0x12e   :  { %v11668_v53 = vpop.eup %11667  ;;  %v1083_v43 = vxor.u32 2147483648, %v11666_v12  ;;  %v1245_v46 = vmul.u32 %v1238_v21, %v1229_v35  ;;  %v1248_v24 = vadd.s32 1, %v12690_v31  ;;  %v1097_v23 = vadd.s32 1, %v11061_v27 }
 0x12f   :  { %v1080_v1 = vxor.u32 2147483648, %v11668_v53  ;;  %v954_v30 = vshll.u32 %v12663_v28, %v952_v18  ;;  %v955_v47 = vshrl.u32 %v937_v44, %v953_v33  ;;  %v958_v58 = vadd.s32 127, %v957_v39 }
 0x130   :  { %v1084_v13 = vsel %vm1082_vm4, %v1083_v43, %v11668_v53  ;;  %v6240_v45 = vsel %vm6238_vm13, %v1083_v43, %v11668_v53  ;;  %vm1247_vm14 = vc.u32 %v12701_v4, %v12689_v59  ;;  %vm1098_vm15 = vcmp.gt.s32.totalorder %v1097_v23, 0 }
 0x131   :  { %v1081_v16 = vsel %vm1079_vm5, %v11666_v12, %v1080_v1  ;;  %v6237_v54 = vsel %vm6235_vm12, %v11666_v12, %v1080_v1  ;;  %v956_v7 = vor.u32 %v955_v47, %v954_v30  ;;  %v959_v28 = vshll.u32 %v958_v58, 23 }
 0x132   :  { %v1085_v14 = vsel %vm1078_vm7, %v1081_v16, %v1084_v13  ;;  %v6241_v5 = vsel %vm6234_vm8, %v6237_v54, %v6240_v45  ;;  %v1249_v40 = vsel %vm1247_vm14, %v1248_v24, %v12690_v31  ;;  %v1099_v17 = vsel %vm1098_vm15, %v1097_v23, 0 }
 0x133   :  { %v1086_v6 = vsel %vm1076_vm9, nan, %v1085_v14  ;;  %v6242_v8 = vsel %vm1076_vm9, nan, %v6241_v5  ;;  %v960_v3 = vor.u32 4788187, %v959_v28  ;;  %v1087_v41 = vand.u32 2147483647, %v12649_v49 }
 0x134   :  { %10824 = vst [vmem:[#allocation2 + $0x50] sm:$0xff] %v1086_v6  ;;  %10874 = vst [vmem:[#allocation2 + $0x58] sm:$0xff] %v1086_v6  ;;  %v970_v57 = vsel %vm12695_vm10, 0, %v968_v26  ;;  %v1250_v61 = vadd.s32 %v1249_v40, %v1245_v46  ;;  %v1101_v19 = vand.u32 31, %v1099_v17  ;;  %v12735_v48 = vmul.f32 %v12646_v36, %v211_v10 }
 0x135   :  { %10925 = vst [vmem:[#allocation2 + $0x370] sm:$0xff] %v6242_v8  ;;  %10975 = vst [vmem:[#allocation2 + $0x378] sm:$0xff] %v6242_v8  ;;  %v961_v34 = vand.u32 2147483647, %v960_v3  ;;  %v963_v20 = vcvt.s32.f32 %v956_v7  ;;  %vm1192_vm0 = vcmp.lt.s32.totalorder %v12536_v38, 0  ;;  %v12738_v21 = vand.u32 3, %v970_v57 }
 0x136   :  { %v1251_v37 = vadd.s32 536870912, %v1250_v61  ;;  %v1102_v63 = vsub.s32 32, %v1101_v19  ;;  %v6128_v25 = vadd.s32 3, %v970_v57  ;;  %v1094_v11 = vand.u32 8388607, %v1087_v41 }
 0x137   :  { %v964_v22 = vmul.f32 %v963_v20, %v961_v34  ;;  %v12742_v29 = vshrl.u32 %v1099_v17, 5  ;;  %v1399_v31 = vand.u32 2139095040, %v12735_v48  ;;  %v1104_v12 = vshll.u32 %v11883_v56, %v1101_v19 }
 0x138   :  { %v1252_v55 = vshrl.u32 %v1251_v37, 30  ;;  %v1105_v15 = vshrl.u32 %v11884_v60, %v1102_v63  ;;  %v1108_v35 = vshrl.u32 %v11885_v62, %v1102_v63  ;;  %v1111_v50 = vshrl.u32 %v11886_v0, %v1102_v63 }
 0x139   :  { %v965_v32 = vxor.u32 2147483648, %v964_v22  ;;  %v1114_v18 = vshrl.u32 %v11887_v2, %v1102_v63  ;;  %v1107_v44 = vshll.u32 %v11884_v60, %v1101_v19  ;;  %v1117_v33 = vshrl.u32 %v11888_v9, %v1102_v63 }
 0x13a   :  { %v1253_v27 = vshll.u32 %v1252_v55, 30  ;;  %v1276_v26 = vsub.s32 4, %v1252_v55  ;;  %v1110_v53 = vshll.u32 %v11885_v62, %v1101_v19  ;;  %v1113_v43 = vshll.u32 %v11886_v0, %v1101_v19 }
 0x13b   :  { %v966_v39 = vsel %vm883_vm1, %v965_v32, %v964_v22  ;;  %v1106_v23 = vor.u32 %v1105_v15, %v1104_v12  ;;  %v1116_v1 = vshll.u32 %v11887_v2, %v1101_v19  ;;  %v1109_v30 = vor.u32 %v1108_v35, %v1107_v44 }
 0x13c   :  { %v969_v46 = vsel %vm12695_vm10, %v12429_v42, %v966_v39  ;;  %v12759_v24 = vsub.s32 %v1250_v61, %v1253_v27  ;;  %v1112_v47 = vor.u32 %v1111_v50, %v1110_v53  ;;  %v1115_v58 = vor.u32 %v1114_v18, %v1113_v43 }
 0x13d   :  { %11669 = vcosq.f32 %v969_v46  ;;  %v12762_v13 = vand.u32 3, %v6128_v25  ;;  %v1118_v16 = vor.u32 %v1117_v33, %v1116_v1  ;;  %vm12767_vm1 = vcmp.le.f32.partialorder %v1190_v52, 0.7853982 }
 0x13e   :  { %11671 = vsinq.f32 %v969_v46  ;;  %v1256_v45 = vsub.s32 0, %v12759_v24  ;;  %v1277_v54 = vsel %vm1192_vm0, %v1276_v26, %v1252_v55  ;;  %v1095_v7 = vor.u32 8388608, %v1094_v11 }
 0x13f   :  { %v1103_v28 = vshrl.u32 %v11883_v56, %v1102_v63  ;;  %vm1119_vm2 = vcmp.lt.s32.totalorder %v12742_v29, 1  ;;  %vm1121_vm3 = vcmp.lt.s32.totalorder %v12742_v29, 3  ;;  %vm1122_vm4 = vcmp.lt.s32.totalorder %v12742_v29, 4 }
 0x140   :  { %v11066_v10 = vmin.u32 %v1256_v45, %v12759_v24  ;;  %vm979_vm5 = vcmp.eq.s32.totalorder %v12738_v21, 2  ;;  %v1124_v52 = vsel %vm1122_vm4, %v1112_v47, 2102212464  ;;  %v1127_v14 = vsel %vm1119_vm2, %v1106_v23, %v1109_v30 }
 0x141   :  { %v1128_v5 = vsel %vm1122_vm4, %v1115_v58, 920167782  ;;  %v1400_v40 = vshrl.u32 %v1399_v31, 23  ;;  %vm976_vm6 = vcmp.eq.s32.totalorder %v12738_v21, 0  ;;  %vm6131_vm7 = vcmp.eq.s32.totalorder %v12762_v13, 0 }
 0x142   :  { %v1258_v17 = vclz %v11066_v10  ;;  %v1129_v6 = vsel %vm1121_vm3, %v1112_v47, %v1128_v5  ;;  %v1131_v8 = vsel %vm1119_vm2, %v1109_v30, %v1112_v47  ;;  %v1132_v3 = vsel %vm1122_vm4, %v1118_v16, 1326507024  ;;  %v206_v5 = vpop.permute.xlu0 %205 }
 0x143   :  { %vm975_vm8 = vcmp.lt.s32.totalorder %v12738_v21, 2  ;;  %vm6130_vm9 = vcmp.lt.s32.totalorder %v12762_v13, 2  ;;  %v1279_v57 = vsel %vm12767_vm1, 0, %v1277_v54  ;;  %vm1120_vm10 = vcmp.lt.s32.totalorder %v12742_v29, 2 }
 0x144   :  { %v1123_v61 = vsel %vm1119_vm2, %v1103_v28, %v1106_v23  ;;  %v1135_v19 = vshll.u32 %v1095_v7, 8  ;;  %vm973_vm11 = vweird.f32 %v12429_v42  ;;  %v11067_v34 = vadd.s32 4294967294, %v1258_v17 }
 0x145   :  { %v1125_v20 = vsel %vm1121_vm3, %v1109_v30, %v1124_v52  ;;  %v1130_v37 = vsel %vm1120_vm10, %v1127_v14, %v1129_v6  ;;  %v1133_v63 = vsel %vm1121_vm3, %v1115_v58, %v1132_v3  ;;  %v11073_v55 = vadd.s32 4294967169, %v1400_v40 }
 0x146   :  { %v1134_v22 = vsel %vm1120_vm10, %v1131_v8, %v1133_v63  ;;  %v12803_v25 = vmul.u32.u64.low %v1135_v19, %v1130_v37  ;;  %v12804_v11 = vmul.u32.u64.high %v1135_v19, %v1130_v37, %v12803_v25  ;;  %vm6134_vm12 = vcmp.eq.s32.totalorder %v12762_v13, 2 }
 0x147   :  { %vm11068_vm13 = vcmp.lt.s32.totalorder %v11067_v34, 0  ;;  %v12808_v15 = vmul.u32.u64.low %v1135_v19, %v1134_v22  ;;  %v12809_v31 = vmul.u32.u64.high %v1135_v19, %v1134_v22, %v12808_v15  ;;  %v11670_v32 = vpop.eup %11669  ;;  %v1246_v35 = vadd.s32 %v12689_v59, %v12701_v4 }
 0x148   :  { %v1261_v50 = vsel %vm11068_vm13, 0, %v11067_v34  ;;  %v6440_v18 = vadd.s32 3, %v1279_v57  ;;  %v1406_v27 = vadd.s32 1, %v11073_v55  ;;  %v11672_v12 = vpop.eup %11671  ;;  %v980_v44 = vxor.u32 2147483648, %v11670_v32 }
 0x149   :  { %v1262_v33 = vsub.s32 32, %v1261_v50  ;;  %v1266_v39 = vsub.s32 4294967266, %v1261_v50  ;;  %v1126_v26 = vsel %vm1120_vm10, %v1123_v61, %v1125_v20  ;;  %v977_v53 = vxor.u32 2147483648, %v11672_v12 }
 0x14a   :  { %v1263_v43 = vshll.u32 %v12759_v24, %v1261_v50  ;;  %v1145_v46 = vadd.s32 1, %v12804_v11  ;;  %vm1407_vm14 = vcmp.gt.s32.totalorder %v1406_v27, 0  ;;  %v981_v23 = vsel %vm979_vm5, %v980_v44, %v11672_v12 }
 0x14b   :  { %v6136_v59 = vsel %vm6134_vm12, %v980_v44, %v11672_v12  ;;  %v1264_v4 = vshrl.u32 %v1246_v35, %v1262_v33  ;;  %v1267_v1 = vadd.s32 127, %v1266_v39  ;;  %v978_v30 = vsel %vm976_vm6, %v11670_v32, %v977_v53 }
 0x14c   :  { %v6133_v29 = vsel %vm6131_vm7, %v11670_v32, %v977_v53  ;;  %v1142_v47 = vmul.u32 %v1135_v19, %v1126_v26  ;;  %vm1144_vm15 = vc.u32 %v12809_v31, %v12803_v25  ;;  %v982_v24 = vsel %vm975_vm8, %v978_v30, %v981_v23 }
 0x14d   :  { %v6137_v58 = vsel %vm6130_vm9, %v6133_v29, %v6136_v59  ;;  %v1265_v45 = vor.u32 %v1264_v4, %v1263_v43  ;;  %v1268_v16 = vshll.u32 %v1267_v1, 23  ;;  %v983_v54 = vsel %vm973_vm11, nan, %v982_v24 }
 0x14e   :  { %v6138_v7 = vsel %vm973_vm11, nan, %v6137_v58  ;;  %v1146_v28 = vsel %vm1144_vm15, %v1145_v46, %v12804_v11  ;;  %v1408_v10 = vsel %vm1407_vm14, %v1406_v27, 0  ;;  %10823 = vst [vmem:[#allocation2 + $0x40] sm:$0xff] %v983_v54  ;;  %10873 = vst [vmem:[#allocation2 + $0x48] sm:$0xff] %v983_v54  ;;  %v1396_v13 = vand.u32 2147483647, %v12735_v48 }
 0x14f   :  { %10924 = vst [vmem:[#allocation2 + $0x360] sm:$0xff] %v6138_v7  ;;  %10974 = vst [vmem:[#allocation2 + $0x368] sm:$0xff] %v6138_v7  ;;  %v1269_v21 = vor.u32 4788187, %v1268_v16  ;;  %v1147_v52 = vadd.s32 %v1146_v28, %v1142_v47  ;;  %v1410_v14 = vand.u32 31, %v1408_v10  ;;  %v1272_v17 = vcvt.s32.f32 %v1265_v45 }
 0x150   :  { %v12838_v8 = vand.u32 3, %v1279_v57  ;;  %v12840_v42 = vand.u32 3, %v6440_v18  ;;  %v1403_v34 = vand.u32 8388607, %v1396_v13  ;;  %v12845_v20 = vmul.f32 %v12646_v36, %v206_v5 }
 0x151   :  { %v1270_v40 = vand.u32 2147483647, %v1269_v21  ;;  %v1148_v6 = vadd.s32 536870912, %v1147_v52  ;;  %v1411_v3 = vsub.s32 32, %v1410_v14  ;;  %v1409_v37 = vshrl.u32 %v1408_v10, 5 }
 0x152   :  { %v1413_v15 = vshll.u32 %v11883_v56, %v1410_v14  ;;  %vm1089_vm2 = vcmp.lt.s32.totalorder %v12649_v49, 0  ;;  %v1416_v35 = vshll.u32 %v11884_v60, %v1410_v14  ;;  %v1419_v50 = vshll.u32 %v11885_v62, %v1410_v14 }
 0x153   :  { %v1273_v61 = vmul.f32 %v1272_v17, %v1270_v40  ;;  %v1149_v19 = vshrl.u32 %v1148_v6, 30  ;;  %v1414_v63 = vshrl.u32 %v11884_v60, %v1411_v3  ;;  %v1417_v22 = vshrl.u32 %v11885_v62, %v1411_v3 }
 0x154   :  { %v1420_v11 = vshrl.u32 %v11886_v0, %v1411_v3  ;;  %v1423_v32 = vshrl.u32 %v11887_v2, %v1411_v3  ;;  %v1422_v18 = vshll.u32 %v11886_v0, %v1410_v14  ;;  %v1426_v27 = vshrl.u32 %v11888_v9, %v1411_v3 }
 0x155   :  { %v1274_v57 = vxor.u32 2147483648, %v1273_v61  ;;  %v1150_v55 = vshll.u32 %v1149_v19, 30  ;;  %v1415_v33 = vor.u32 %v1414_v63, %v1413_v15  ;;  %v1425_v39 = vshll.u32 %v11887_v2, %v1410_v14 }
 0x156   :  { %v1418_v53 = vor.u32 %v1417_v22, %v1416_v35  ;;  %v1421_v43 = vor.u32 %v1420_v11, %v1419_v50  ;;  %v1424_v46 = vor.u32 %v1423_v32, %v1422_v18  ;;  %v1412_v59 = vshrl.u32 %v11883_v56, %v1411_v3 }
 0x157   :  { %v1275_v12 = vsel %vm1192_vm0, %v1274_v57, %v1273_v61  ;;  %v12859_v44 = vsub.s32 %v1147_v52, %v1150_v55  ;;  %v1427_v4 = vor.u32 %v1426_v27, %v1425_v39  ;;  %v1173_v1 = vsub.s32 4, %v1149_v19 }
 0x158   :  { %v1278_v26 = vsel %vm12767_vm1, %v12536_v38, %v1275_v12  ;;  %v1404_v30 = vor.u32 8388608, %v1403_v34  ;;  %vm1428_vm0 = vcmp.lt.s32.totalorder %v1409_v37, 1  ;;  %vm12869_vm3 = vcmp.le.f32.partialorder %v1087_v41, 0.7853982 }
 0x159   :  { %11673 = vcosq.f32 %v1278_v26  ;;  %v1153_v23 = vsub.s32 0, %v12859_v44  ;;  %vm1430_vm1 = vcmp.lt.s32.totalorder %v1409_v37, 3  ;;  %vm1431_vm4 = vcmp.lt.s32.totalorder %v1409_v37, 4 }
 0x15a   :  { %11675 = vsinq.f32 %v1278_v26  ;;  %v1432_v47 = vsel %vm1428_vm0, %v1412_v59, %v1415_v33  ;;  %v1433_v24 = vsel %vm1431_vm4, %v1421_v43, 2102212464  ;;  %v1436_v58 = vsel %vm1428_vm0, %v1415_v33, %v1418_v53 }
 0x15b   :  { %v11062_v51 = vmin.u32 %v1153_v23, %v12859_v44  ;;  %v1437_v45 = vsel %vm1431_vm4, %v1424_v46, 920167782  ;;  %v1440_v16 = vsel %vm1428_vm0, %v1418_v53, %v1421_v43  ;;  %v1434_v7 = vsel %vm1430_vm1, %v1418_v53, %v1433_v24 }
 0x15c   :  { %v1438_v28 = vsel %vm1430_vm1, %v1421_v43, %v1437_v45  ;;  %v1441_v10 = vsel %vm1431_vm4, %v1427_v4, 1326507024  ;;  %vm1285_vm5 = vcmp.eq.s32.totalorder %v12838_v8, 0  ;;  %vm1288_vm6 = vcmp.eq.s32.totalorder %v12838_v8, 2 }
 0x15d   :  { %v1155_v54 = vclz %v11062_v51  ;;  %vm1429_vm7 = vcmp.lt.s32.totalorder %v1409_v37, 2  ;;  %v1444_v41 = vshll.u32 %v1404_v30, 8  ;;  %vm1284_vm8 = vcmp.lt.s32.totalorder %v12838_v8, 2 }
 0x15e   :  { %vm6442_vm9 = vcmp.lt.s32.totalorder %v12840_v42, 2  ;;  %v1174_v52 = vsel %vm1089_vm2, %v1173_v1, %v1149_v19  ;;  %v1439_v14 = vsel %vm1429_vm7, %v1436_v58, %v1438_v28  ;;  %v1442_v5 = vsel %vm1430_vm1, %v1424_v46, %v1441_v10  ;;  %v221_v58 = vpop.permute.xlu1 %220 }
 0x15f   :  { %v11063_v21 = vadd.s32 4294967294, %v1155_v54  ;;  %vm1282_vm10 = vweird.f32 %v12536_v38  ;;  %v1435_v40 = vsel %vm1429_vm7, %v1432_v47, %v1434_v7  ;;  %v1443_v17 = vsel %vm1429_vm7, %v1440_v16, %v1442_v5 }
 0x160   :  { %v12884_v6 = vmul.u32.u64.low %v1444_v41, %v1439_v14  ;;  %v12885_v3 = vmul.u32.u64.high %v1444_v41, %v1439_v14, %v12884_v6  ;;  %v12888_v61 = vmul.u32.u64.low %v1444_v41, %v1443_v17  ;;  %v12889_v34 = vmul.u32.u64.high %v1444_v41, %v1443_v17, %v12888_v61 }
 0x161   :  { %vm11064_vm11 = vcmp.lt.s32.totalorder %v11063_v21, 0  ;;  %v1296_v63 = vand.u32 2139095040, %v12845_v20  ;;  %vm6443_vm12 = vcmp.eq.s32.totalorder %v12840_v42, 0  ;;  %vm6446_vm13 = vcmp.eq.s32.totalorder %v12840_v42, 2 }
 0x162   :  { %v1143_v19 = vadd.s32 %v12803_v25, %v12809_v31  ;;  %v1158_v37 = vsel %vm11064_vm11, 0, %v11063_v21  ;;  %v1293_v55 = vand.u32 2147483647, %v12845_v20  ;;  %v1176_v50 = vsel %vm12869_vm3, 0, %v1174_v52 }
 0x163   :  { %v11674_v22 = vpop.eup %11673  ;;  %v1159_v11 = vsub.s32 32, %v1158_v37  ;;  %v1163_v57 = vsub.s32 4294967266, %v1158_v37  ;;  %v1297_v15 = vshrl.u32 %v1296_v63, 23  ;;  %v1451_v18 = vmul.u32 %v1444_v41, %v1435_v40 }
 0x164   :  { %v11676_v32 = vpop.eup %11675  ;;  %v1289_v35 = vxor.u32 2147483648, %v11674_v22  ;;  %v1454_v27 = vadd.s32 1, %v12885_v3  ;;  %v1160_v33 = vshll.u32 %v12859_v44, %v1158_v37  ;;  %vm1453_vm14 = vc.u32 %v12889_v34, %v12884_v6 }
 0x165   :  { %v1286_v12 = vxor.u32 2147483648, %v11676_v32  ;;  %v1161_v39 = vshrl.u32 %v1143_v19, %v1159_v11  ;;  %v1164_v25 = vadd.s32 127, %v1163_v57  ;;  %v11069_v53 = vadd.s32 4294967169, %v1297_v15 }
 0x166   :  { %v1290_v31 = vsel %vm1288_vm6, %v1289_v35, %v11676_v32  ;;  %v6448_v26 = vsel %vm6446_vm13, %v1289_v35, %v11676_v32  ;;  %v1455_v1 = vsel %vm1453_vm14, %v1454_v27, %v12885_v3  ;;  %v6336_v16 = vadd.s32 3, %v1176_v50 }
 0x167   :  { %v1287_v43 = vsel %vm1285_vm5, %v11674_v22, %v1286_v12  ;;  %v6445_v46 = vsel %vm6443_vm12, %v11674_v22, %v1286_v12  ;;  %v1162_v23 = vor.u32 %v1161_v39, %v1160_v33  ;;  %v1165_v44 = vshll.u32 %v1164_v25, 23 }
 0x168   :  { %v1291_v59 = vsel %vm1284_vm8, %v1287_v43, %v1290_v31  ;;  %v6449_v4 = vsel %vm6442_vm9, %v6445_v46, %v6448_v26  ;;  %v1303_v30 = vadd.s32 1, %v11069_v53  ;;  %v1456_v8 = vadd.s32 %v1455_v1, %v1451_v18 }
 0x169   :  { %v1292_v51 = vsel %vm1282_vm10, nan, %v1291_v59  ;;  %v6450_v47 = vsel %vm1282_vm10, nan, %v6449_v4  ;;  %v1166_v24 = vor.u32 4788187, %v1165_v44  ;;  %v1169_v42 = vcvt.s32.f32 %v1162_v23 }
 0x16a   :  { %10826 = vst [vmem:[#allocation2 + $0x70] sm:$0xff] %v1292_v51  ;;  %10876 = vst [vmem:[#allocation2 + $0x78] sm:$0xff] %v1292_v51  ;;  %vm1304_vm15 = vcmp.gt.s32.totalorder %v1303_v30, 0  ;;  %v1457_v7 = vadd.s32 536870912, %v1456_v8  ;;  %v1300_v28 = vand.u32 8388607, %v1293_v55  ;;  %v12923_v38 = vmul.f32 %v12646_v36, %v221_v58 }
 0x16b   :  { %10927 = vst [vmem:[#allocation2 + $0x390] sm:$0xff] %v6450_v47  ;;  %10977 = vst [vmem:[#allocation2 + $0x398] sm:$0xff] %v6450_v47  ;;  %v1167_v45 = vand.u32 2147483647, %v1166_v24  ;;  %v1305_v54 = vsel %vm1304_vm15, %v1303_v30, 0  ;;  %v12925_v5 = vand.u32 3, %v1176_v50  ;;  %v1452_v53 = vadd.s32 %v12884_v6, %v12889_v34 }
 0x16c   :  { %v1307_v10 = vand.u32 31, %v1305_v54  ;;  %v1458_v21 = vshrl.u32 %v1457_v7, 30  ;;  %v12927_v40 = vand.u32 3, %v6336_v16  ;;  %vm1398_vm0 = vcmp.lt.s32.totalorder %v12735_v48, 0 }
 0x16d   :  { %v1170_v41 = vmul.f32 %v1169_v42, %v1167_v45  ;;  %v1301_v3 = vor.u32 8388608, %v1300_v28  ;;  %v1306_v61 = vshrl.u32 %v1305_v54, 5  ;;  %v1605_v63 = vand.u32 2139095040, %v12923_v38 }
 0x16e   :  { %v1308_v52 = vsub.s32 32, %v1307_v10  ;;  %v1459_v17 = vshll.u32 %v1458_v21, 30  ;;  %vm12935_vm1 = vcmp.le.f32.partialorder %v1396_v13, 0.7853982  ;;  %v1316_v35 = vshll.u32 %v11885_v62, %v1307_v10 }
 0x16f   :  { %v1171_v14 = vxor.u32 2147483648, %v1170_v41  ;;  %v1482_v13 = vsub.s32 4, %v1458_v21  ;;  %v1310_v18 = vshll.u32 %v11883_v56, %v1307_v10  ;;  %v1313_v27 = vshll.u32 %v11884_v60, %v1307_v10 }
 0x170   :  { %v1311_v22 = vshrl.u32 %v11884_v60, %v1308_v52  ;;  %v1314_v11 = vshrl.u32 %v11885_v62, %v1308_v52  ;;  %v1317_v57 = vshrl.u32 %v11886_v0, %v1308_v52  ;;  %v12945_v32 = vsub.s32 %v1456_v8, %v1459_v17 }
 0x171   :  { %v1172_v19 = vsel %vm1089_vm2, %v1171_v14, %v1170_v41  ;;  %v1320_v50 = vshrl.u32 %v11887_v2, %v1308_v52  ;;  %v1319_v39 = vshll.u32 %v11886_v0, %v1307_v10  ;;  %v1322_v31 = vshll.u32 %v11887_v2, %v1307_v10 }
 0x172   :  { %v1175_v15 = vsel %vm12869_vm3, %v12649_v49, %v1172_v19  ;;  %v1462_v12 = vsub.s32 0, %v12945_v32  ;;  %v1318_v33 = vor.u32 %v1317_v57, %v1316_v35  ;;  %v1312_v29 = vor.u32 %v1311_v22, %v1310_v18 }
 0x173   :  { %11677 = vcosq.f32 %v1175_v15  ;;  %v1315_v25 = vor.u32 %v1314_v11, %v1313_v27  ;;  %v1323_v26 = vshrl.u32 %v11888_v9, %v1308_v52  ;;  %v1321_v46 = vor.u32 %v1320_v50, %v1319_v39 }
 0x174   :  { %11679 = vsinq.f32 %v1175_v15  ;;  %v11074_v43 = vmin.u32 %v1462_v12, %v12945_v32  ;;  %v1606_v23 = vshrl.u32 %v1605_v63, 23  ;;  %vm1185_vm2 = vcmp.eq.s32.totalorder %v12925_v5, 2 }
 0x175   :  { %vm6342_vm3 = vcmp.eq.s32.totalorder %v12927_v40, 2  ;;  %v1483_v44 = vsel %vm1398_vm0, %v1482_v13, %v1458_v21  ;;  %v1309_v59 = vshrl.u32 %v11883_v56, %v1308_v52  ;;  %v1324_v4 = vor.u32 %v1323_v26, %v1322_v31 }
 0x176   :  { %vm1328_vm4 = vcmp.lt.s32.totalorder %v1306_v61, 4  ;;  %vm1182_vm5 = vcmp.eq.s32.totalorder %v12925_v5, 0  ;;  %vm6339_vm6 = vcmp.eq.s32.totalorder %v12927_v40, 0  ;;  %v1464_v6 = vclz %v11074_v43 }
 0x177   :  { %vm1325_vm7 = vcmp.lt.s32.totalorder %v1306_v61, 1  ;;  %vm1327_vm8 = vcmp.lt.s32.totalorder %v1306_v61, 3  ;;  %v1330_v34 = vsel %vm1328_vm4, %v1318_v33, 2102212464  ;;  %vm1181_vm9 = vcmp.lt.s32.totalorder %v12925_v5, 2 }
 0x178   :  { %vm6338_vm10 = vcmp.lt.s32.totalorder %v12927_v40, 2  ;;  %v1329_v1 = vsel %vm1325_vm7, %v1309_v59, %v1312_v29  ;;  %v1331_v30 = vsel %vm1327_vm8, %v1315_v25, %v1330_v34  ;;  %v1333_v51 = vsel %vm1325_vm7, %v1312_v29, %v1315_v25 }
 0x179   :  { %v1341_v47 = vshll.u32 %v1301_v3, 8  ;;  %vm1179_vm11 = vweird.f32 %v12649_v49  ;;  %v11075_v24 = vadd.s32 4294967294, %v1464_v6  ;;  %v1485_v58 = vsel %vm12935_vm1, 0, %v1483_v44  ;;  %v216_v49 = vpop.permute.xlu0 %215 }
 0x17a   :  { %v1334_v8 = vsel %vm1328_vm4, %v1321_v46, 920167782  ;;  %v1337_v45 = vsel %vm1325_vm7, %v1315_v25, %v1318_v33  ;;  %vm1326_vm12 = vcmp.lt.s32.totalorder %v1306_v61, 2  ;;  %v1338_v16 = vsel %vm1328_vm4, %v1324_v4, 1326507024 }
 0x17b   :  { %v1335_v42 = vsel %vm1327_vm8, %v1318_v33, %v1334_v8  ;;  %v11081_v54 = vadd.s32 4294967169, %v1606_v23  ;;  %vm11076_vm13 = vcmp.lt.s32.totalorder %v11075_v24, 0  ;;  %v1332_v7 = vsel %vm1326_vm12, %v1329_v1, %v1331_v30 }
 0x17c   :  { %v1336_v28 = vsel %vm1326_vm12, %v1333_v51, %v1335_v42  ;;  %v1339_v10 = vsel %vm1327_vm8, %v1321_v46, %v1338_v16  ;;  %v1467_v21 = vsel %vm11076_vm13, 0, %v11075_v24  ;;  %v1348_v43 = vmul.u32 %v1341_v47, %v1332_v7 }
 0x17d   :  { %v11678_v41 = vpop.eup %11677  ;;  %v1340_v52 = vsel %vm1326_vm12, %v1337_v45, %v1339_v10  ;;  %v12976_v14 = vmul.u32.u64.low %v1341_v47, %v1336_v28  ;;  %v12977_v17 = vmul.u32.u64.high %v1341_v47, %v1336_v28, %v12976_v14  ;;  %v1468_v19 = vsub.s32 32, %v1467_v21 }
 0x17e   :  { %v11680_v3 = vpop.eup %11679  ;;  %v1186_v63 = vxor.u32 2147483648, %v11678_v41  ;;  %v1469_v22 = vshll.u32 %v12945_v32, %v1467_v21  ;;  %v1472_v11 = vsub.s32 4294967266, %v1467_v21  ;;  %v1612_v50 = vadd.s32 1, %v11081_v54 }
 0x17f   :  { %v1183_v57 = vxor.u32 2147483648, %v11680_v3  ;;  %v12981_v15 = vmul.u32.u64.low %v1341_v47, %v1340_v52  ;;  %v12982_v35 = vmul.u32.u64.high %v1341_v47, %v1340_v52, %v12981_v15  ;;  %v1470_v18 = vshrl.u32 %v1452_v53, %v1468_v19 }
 0x180   :  { %v1187_v61 = vsel %vm1185_vm2, %v1186_v63, %v11680_v3  ;;  %v6344_v13 = vsel %vm6342_vm3, %v1186_v63, %v11680_v3  ;;  %v1473_v27 = vadd.s32 127, %v1472_v11  ;;  %v1351_v33 = vadd.s32 1, %v12977_v17 }
 0x181   :  { %v1184_v12 = vsel %vm1182_vm5, %v11678_v41, %v1183_v57  ;;  %v6341_v32 = vsel %vm6339_vm6, %v11678_v41, %v1183_v57  ;;  %vm1613_vm14 = vcmp.gt.s32.totalorder %v1612_v50, 0  ;;  %v1471_v25 = vor.u32 %v1470_v18, %v1469_v22 }
 0x182   :  { %v1188_v39 = vsel %vm1181_vm9, %v1184_v12, %v1187_v61  ;;  %v6345_v29 = vsel %vm6338_vm10, %v6341_v32, %v6344_v13  ;;  %v1474_v31 = vshll.u32 %v1473_v27, 23  ;;  %vm1350_vm15 = vc.u32 %v12982_v35, %v12976_v14 }
 0x183   :  { %v1189_v26 = vsel %vm1179_vm11, nan, %v1188_v39  ;;  %v6346_v53 = vsel %vm1179_vm11, nan, %v6345_v29  ;;  %v1352_v40 = vsel %vm1350_vm15, %v1351_v33, %v12977_v17  ;;  %v1602_v46 = vand.u32 2147483647, %v12923_v38 }
 0x184   :  { %10825 = vst [vmem:[#allocation2 + $0x60] sm:$0xff] %v1189_v26  ;;  %10875 = vst [vmem:[#allocation2 + $0x68] sm:$0xff] %v1189_v26  ;;  %v1475_v5 = vor.u32 4788187, %v1474_v31  ;;  %v1614_v23 = vsel %vm1613_vm14, %v1612_v50, 0  ;;  %v6648_v44 = vadd.s32 3, %v1485_v58  ;;  %v1353_v59 = vadd.s32 %v1352_v40, %v1348_v43 }
 0x185   :  { %10926 = vst [vmem:[#allocation2 + $0x380] sm:$0xff] %v6346_v53  ;;  %10976 = vst [vmem:[#allocation2 + $0x388] sm:$0xff] %v6346_v53  ;;  %v1616_v4 = vand.u32 31, %v1614_v23  ;;  %v1478_v34 = vcvt.s32.f32 %v1471_v25  ;;  %v1609_v47 = vand.u32 8388607, %v1602_v46  ;;  %v13009_v24 = vmul.f32 %v12646_v36, %v216_v49 }
 0x186   :  { %v1476_v6 = vand.u32 2147483647, %v1475_v5  ;;  %v1354_v1 = vadd.s32 536870912, %v1353_v59  ;;  %v13011_v8 = vand.u32 3, %v1485_v58  ;;  %v13013_v45 = vand.u32 3, %v6648_v44 }
 0x187   :  { %v1617_v30 = vsub.s32 32, %v1616_v4  ;;  %vm1295_vm2 = vcmp.lt.s32.totalorder %v12845_v20, 0  ;;  %v13020_v21 = vshrl.u32 %v1614_v23, 5  ;;  %v1619_v36 = vshll.u32 %v11883_v56, %v1616_v4 }
 0x188   :  { %v1479_v51 = vmul.f32 %v1478_v34, %v1476_v6  ;;  %v1355_v42 = vshrl.u32 %v1354_v1, 30  ;;  %v1622_v17 = vshll.u32 %v11884_v60, %v1616_v4  ;;  %v1625_v3 = vshll.u32 %v11885_v62, %v1616_v4 }
 0x189   :  { %v1620_v16 = vshrl.u32 %v11884_v60, %v1617_v30  ;;  %v1623_v7 = vshrl.u32 %v11885_v62, %v1617_v30  ;;  %v1626_v28 = vshrl.u32 %v11886_v0, %v1617_v30  ;;  %v1629_v10 = vshrl.u32 %v11887_v2, %v1617_v30 }
 0x18a   :  { %v1480_v54 = vxor.u32 2147483648, %v1479_v51  ;;  %v1356_v41 = vshll.u32 %v1355_v42, 30  ;;  %v1632_v58 = vshrl.u32 %v11888_v9, %v1617_v30  ;;  %v1628_v63 = vshll.u32 %v11886_v0, %v1616_v4 }
 0x18b   :  { %v1621_v11 = vor.u32 %v1620_v16, %v1619_v36  ;;  %v1631_v57 = vshll.u32 %v11887_v2, %v1616_v4  ;;  %v1624_v15 = vor.u32 %v1623_v7, %v1622_v17  ;;  %v1627_v50 = vor.u32 %v1626_v28, %v1625_v3 }
 0x18c   :  { %v1481_v52 = vsel %vm1398_vm0, %v1480_v54, %v1479_v51  ;;  %v13032_v22 = vsub.s32 %v1353_v59, %v1356_v41  ;;  %v1630_v61 = vor.u32 %v1629_v10, %v1628_v63  ;;  %v1502_v27 = vand.u32 2139095040, %v13009_v24 }
 0x18d   :  { %v1484_v19 = vsel %vm12935_vm1, %v12735_v48, %v1481_v52  ;;  %v1633_v18 = vor.u32 %v1632_v58, %v1631_v57  ;;  %vm13039_vm0 = vcmp.le.f32.partialorder %v1293_v55, 0.7853982  ;;  %v1379_v12 = vsub.s32 4, %v1355_v42 }
 0x18e   :  { %11681 = vcosq.f32 %v1484_v19  ;;  %v1359_v13 = vsub.s32 0, %v13032_v22  ;;  %v1610_v32 = vor.u32 8388608, %v1609_v47  ;;  %v1618_v33 = vshrl.u32 %v11883_v56, %v1617_v30 }
 0x18f   :  { %11683 = vsinq.f32 %v1484_v19  ;;  %vm1634_vm1 = vcmp.lt.s32.totalorder %v13020_v21, 1  ;;  %vm1636_vm3 = vcmp.lt.s32.totalorder %v13020_v21, 3  ;;  %vm1637_vm4 = vcmp.lt.s32.totalorder %v13020_v21, 4 }
 0x190   :  { %v11070_v39 = vmin.u32 %v1359_v13, %v13032_v22  ;;  %vm1494_vm5 = vcmp.eq.s32.totalorder %v13011_v8, 2  ;;  %v1639_v29 = vsel %vm1637_vm4, %v1627_v50, 2102212464  ;;  %v1642_v55 = vsel %vm1634_vm1, %v1621_v11, %v1624_v15 }
 0x191   :  { %v1643_v25 = vsel %vm1637_vm4, %v1630_v61, 920167782  ;;  %v1646_v31 = vsel %vm1634_vm1, %v1624_v15, %v1627_v50  ;;  %vm1491_vm6 = vcmp.eq.s32.totalorder %v13011_v8, 0  ;;  %vm6651_vm7 = vcmp.eq.s32.totalorder %v13013_v45, 0 }
 0x192   :  { %v1361_v26 = vclz %v11070_v39  ;;  %v1644_v53 = vsel %vm1636_vm3, %v1627_v50, %v1643_v25  ;;  %v1647_v43 = vsel %vm1637_vm4, %v1633_v18, 1326507024  ;;  %v1503_v5 = vshrl.u32 %v1502_v27, 23 }
 0x193   :  { %vm1490_vm8 = vcmp.lt.s32.totalorder %v13011_v8, 2  ;;  %vm6650_vm9 = vcmp.lt.s32.totalorder %v13013_v45, 2  ;;  %vm6654_vm10 = vcmp.eq.s32.totalorder %v13013_v45, 2  ;;  %v1380_v40 = vsel %vm1295_vm2, %v1379_v12, %v1355_v42 }
 0x194   :  { %vm1635_vm11 = vcmp.lt.s32.totalorder %v13020_v21, 2  ;;  %v1650_v23 = vshll.u32 %v1610_v32, 8  ;;  %vm1488_vm12 = vweird.f32 %v12735_v48  ;;  %v11071_v44 = vadd.s32 4294967294, %v1361_v26  ;;  %v231_v48 = vpop.permute.xlu1 %230 }
 0x195   :  { %v1638_v59 = vsel %vm1634_vm1, %v1618_v33, %v1621_v11  ;;  %v1645_v4 = vsel %vm1635_vm11, %v1642_v55, %v1644_v53  ;;  %v1648_v49 = vsel %vm1636_vm3, %v1630_v61, %v1647_v43  ;;  %v1640_v6 = vsel %vm1636_vm3, %v1624_v15, %v1639_v29 }
 0x196   :  { %v1649_v34 = vsel %vm1635_vm11, %v1646_v31, %v1648_v49  ;;  %v13074_v1 = vmul.u32.u64.low %v1650_v23, %v1645_v4  ;;  %v13075_v30 = vmul.u32.u64.high %v1650_v23, %v1645_v4, %v13074_v1  ;;  %vm11072_vm13 = vcmp.lt.s32.totalorder %v11071_v44, 0 }
 0x197   :  { %v13078_v51 = vmul.u32.u64.low %v1650_v23, %v1649_v34  ;;  %v13079_v47 = vmul.u32.u64.high %v1650_v23, %v1649_v34, %v13078_v51  ;;  %v11077_v42 = vadd.s32 4294967169, %v1503_v5  ;;  %v1349_v54 = vadd.s32 %v12976_v14, %v12982_v35 }
 0x198   :  { %v11682_v16 = vpop.eup %11681  ;;  %v1364_v7 = vsel %vm11072_vm13, 0, %v11071_v44  ;;  %v1382_v28 = vsel %vm13039_vm0, 0, %v1380_v40  ;;  %v1499_v10 = vand.u32 2147483647, %v13009_v24  ;;  %v1641_v17 = vsel %vm1635_vm11, %v1638_v59, %v1640_v6  ;;  %v13120_v6 = vld [vmem:[%s17028_s1] ss:$0 sm:$0xff] }
 0x199   :  { %v11684_v41 = vpop.eup %11683  ;;  %v1495_v36 = vxor.u32 2147483648, %v11682_v16  ;;  %v1365_v58 = vsub.s32 32, %v1364_v7  ;;  %v1369_v52 = vsub.s32 4294967266, %v1364_v7  ;;  %v1366_v63 = vshll.u32 %v13032_v22, %v1364_v7 }
 0x19a   :  { %v1492_v3 = vxor.u32 2147483648, %v11684_v41  ;;  %v1660_v19 = vadd.s32 1, %v13075_v30  ;;  %v1509_v11 = vadd.s32 1, %v11077_v42  ;;  %v1657_v61 = vmul.u32 %v1650_v23, %v1641_v17 }
 0x19b   :  { %v1496_v14 = vsel %vm1494_vm5, %v1495_v36, %v11684_v41  ;;  %v6656_v35 = vsel %vm6654_vm10, %v1495_v36, %v11684_v41  ;;  %v1367_v57 = vshrl.u32 %v1349_v54, %v1365_v58  ;;  %v1370_v15 = vadd.s32 127, %v1369_v52 }
 0x19c   :  { %v1493_v50 = vsel %vm1491_vm6, %v11682_v16, %v1492_v3  ;;  %v6653_v21 = vsel %vm6651_vm7, %v11682_v16, %v1492_v3  ;;  %vm1659_vm14 = vc.u32 %v13079_v47, %v13074_v1  ;;  %vm1510_vm15 = vcmp.gt.s32.totalorder %v1509_v11, 0 }
 0x19d   :  { %v1497_v22 = vsel %vm1490_vm8, %v1493_v50, %v1496_v14  ;;  %v6657_v13 = vsel %vm6650_vm9, %v6653_v21, %v6656_v35  ;;  %v1368_v18 = vor.u32 %v1367_v57, %v1366_v63  ;;  %v1371_v27 = vshll.u32 %v1370_v15, 23 }
 0x19e   :  { %v1498_v12 = vsel %vm1488_vm12, nan, %v1497_v22  ;;  %v6658_v32 = vsel %vm1488_vm12, nan, %v6657_v13  ;;  %v1661_v33 = vsel %vm1659_vm14, %v1660_v19, %v13075_v30  ;;  %v6544_v39 = vadd.s32 3, %v1382_v28 }
 0x19f   :  { %10828 = vst [vmem:[#allocation2 + $0x90] sm:$0xff] %v1498_v12  ;;  %10878 = vst [vmem:[#allocation2 + $0x98] sm:$0xff] %v1498_v12  ;;  %v1372_v8 = vor.u32 4788187, %v1371_v27  ;;  %v1662_v29 = vadd.s32 %v1661_v33, %v1657_v61  ;;  %v1511_v45 = vsel %vm1510_vm15, %v1509_v11, 0  ;;  %v1375_v26 = vcvt.s32.f32 %v1368_v18 }
 0x1a0   :  { %10929 = vst [vmem:[#allocation2 + $0x3b0] sm:$0xff] %v6658_v32  ;;  %10979 = vst [vmem:[#allocation2 + $0x3b8] sm:$0xff] %v6658_v32  ;;  %v1506_v55 = vand.u32 8388607, %v1499_v10  ;;  %v1513_v25 = vand.u32 31, %v1511_v45  ;;  %v13111_v40 = vand.u32 3, %v1382_v28  ;;  %v13123_v34 = vmul.f32 %v13120_v6, %v231_v48 }
 0x1a1   :  { %v1373_v31 = vand.u32 2147483647, %v1372_v8  ;;  %v1663_v53 = vadd.s32 536870912, %v1662_v29  ;;  %v13113_v23 = vand.u32 3, %v6544_v39  ;;  %v13127_v54 = vshrl.u32 %v1511_v45, 5 }
 0x1a2   :  { %v1514_v43 = vsub.s32 32, %v1513_v25  ;;  %v1507_v59 = vor.u32 8388608, %v1506_v55  ;;  %v1516_v7 = vshll.u32 %v11883_v56, %v1513_v25  ;;  %v1519_v28 = vshll.u32 %v11884_v60, %v1513_v25 }
 0x1a3   :  { %v1376_v5 = vmul.f32 %v1375_v26, %v1373_v31  ;;  %v1664_v44 = vshrl.u32 %v1663_v53, 30  ;;  %v1522_v41 = vshll.u32 %v11885_v62, %v1513_v25  ;;  %v1525_v52 = vshll.u32 %v11886_v0, %v1513_v25 }
 0x1a4   :  { %v1517_v4 = vshrl.u32 %v11884_v60, %v1514_v43  ;;  %v1520_v49 = vshrl.u32 %v11885_v62, %v1514_v43  ;;  %v1523_v42 = vshrl.u32 %v11886_v0, %v1514_v43  ;;  %v1526_v16 = vshrl.u32 %v11887_v2, %v1514_v43 }
 0x1a5   :  { %v1377_v30 = vxor.u32 2147483648, %v1376_v5  ;;  %v1665_v51 = vshll.u32 %v1664_v44, 30  ;;  %v1529_v17 = vshrl.u32 %v11888_v9, %v1514_v43  ;;  %v1528_v11 = vshll.u32 %v11887_v2, %v1513_v25 }
 0x1a6   :  { %v1518_v63 = vor.u32 %v1517_v4, %v1516_v7  ;;  %v1521_v19 = vor.u32 %v1520_v49, %v1519_v28  ;;  %v1524_v35 = vor.u32 %v1523_v42, %v1522_v41  ;;  %v1527_v57 = vor.u32 %v1526_v16, %v1525_v52 }
 0x1a7   :  { %v1378_v36 = vsel %vm1295_vm2, %v1377_v30, %v1376_v5  ;;  %v13134_v58 = vsub.s32 %v1662_v29, %v1665_v51  ;;  %v1688_v15 = vsub.s32 4, %v1664_v44  ;;  %vm13145_vm2 = vcmp.le.f32.partialorder %v1602_v46, 0.7853982 }
 0x1a8   :  { %v1381_v3 = vsel %vm13039_vm0, %v12845_v20, %v1378_v36  ;;  %vm1604_vm1 = vcmp.lt.s32.totalorder %v12923_v38, 0  ;;  %v1530_v21 = vor.u32 %v1529_v17, %v1528_v11  ;;  %v13151_v61 = vshll.u32 %v1507_v59, 8 }
 0x1a9   :  { %11685 = vcosq.f32 %v1381_v3  ;;  %v1668_v14 = vsub.s32 0, %v13134_v58  ;;  %v1515_v22 = vshrl.u32 %v11883_v56, %v1514_v43  ;;  %vm1531_vm0 = vcmp.lt.s32.totalorder %v13127_v54, 1 }
 0x1aa   :  { %11687 = vsinq.f32 %v1381_v3  ;;  %vm1534_vm3 = vcmp.lt.s32.totalorder %v13127_v54, 4  ;;  %v1811_v13 = vand.u32 2139095040, %v13123_v34  ;;  %vm1391_vm4 = vcmp.eq.s32.totalorder %v13111_v40, 2 }
 0x1ab   :  { %v11082_v37 = vmin.u32 %v1668_v14, %v13134_v58  ;;  %vm6550_vm5 = vcmp.eq.s32.totalorder %v13113_v23, 2  ;;  %v1536_v18 = vsel %vm1534_vm3, %v1524_v35, 2102212464  ;;  %v1539_v27 = vsel %vm1531_vm0, %v1518_v63, %v1521_v19 }
 0x1ac   :  { %v1540_v12 = vsel %vm1534_vm3, %v1527_v57, 920167782  ;;  %vm1388_vm6 = vcmp.eq.s32.totalorder %v13111_v40, 0  ;;  %vm6547_vm7 = vcmp.eq.s32.totalorder %v13113_v23, 0  ;;  %v1689_v32 = vsel %vm1604_vm1, %v1688_v15, %v1664_v44 }
 0x1ad   :  { %v1670_v46 = vclz %v11082_v37  ;;  %vm1532_vm8 = vcmp.lt.s32.totalorder %v13127_v54, 2  ;;  %vm1533_vm9 = vcmp.lt.s32.totalorder %v13127_v54, 3  ;;  %v1543_v33 = vsel %vm1531_vm0, %v1521_v19, %v1524_v35 }
 0x1ae   :  { %vm1387_vm10 = vcmp.lt.s32.totalorder %v13111_v40, 2  ;;  %vm6546_vm11 = vcmp.lt.s32.totalorder %v13113_v23, 2  ;;  %v1535_v39 = vsel %vm1531_vm0, %v1515_v22, %v1518_v63  ;;  %v1541_v29 = vsel %vm1533_vm9, %v1524_v35, %v1540_v12 }
 0x1af   :  { %v11083_v8 = vadd.s32 4294967294, %v1670_v46  ;;  %v1544_v45 = vsel %vm1534_vm3, %v1530_v21, 1326507024  ;;  %vm1385_vm12 = vweird.f32 %v12845_v20  ;;  %v1537_v55 = vsel %vm1533_vm9, %v1521_v19, %v1536_v18  ;;  %v226_v18 = vpop.permute.xlu0 %225 }
 0x1b0   :  { %v1542_v25 = vsel %vm1532_vm8, %v1539_v27, %v1541_v29  ;;  %v1545_v31 = vsel %vm1533_vm9, %v1527_v57, %v1544_v45  ;;  %v1812_v26 = vshrl.u32 %v1811_v13, 23  ;;  %v1658_v30 = vadd.s32 %v13074_v1, %v13079_v47 }
 0x1b1   :  { %vm11084_vm13 = vcmp.lt.s32.totalorder %v11083_v8, 0  ;;  %v1546_v53 = vsel %vm1532_vm8, %v1543_v33, %v1545_v31  ;;  %v13185_v48 = vmul.u32.u64.low %v13151_v61, %v1542_v25  ;;  %v13186_v43 = vmul.u32.u64.high %v13151_v61, %v1542_v25, %v13185_v48 }
 0x1b2   :  { %v1673_v5 = vsel %vm11084_vm13, 0, %v11083_v8  ;;  %v13190_v44 = vmul.u32.u64.low %v13151_v61, %v1546_v53  ;;  %v13191_v59 = vmul.u32.u64.high %v13151_v61, %v1546_v53, %v13190_v44  ;;  %v11089_v4 = vadd.s32 4294967169, %v1812_v26 }
 0x1b3   :  { %v11686_v49 = vpop.eup %11685  ;;  %v1674_v51 = vsub.s32 32, %v1673_v5  ;;  %v1678_v42 = vsub.s32 4294967266, %v1673_v5  ;;  %v1808_v16 = vand.u32 2147483647, %v13123_v34  ;;  %v1675_v41 = vshll.u32 %v13134_v58, %v1673_v5 }
 0x1b4   :  { %v11688_v7 = vpop.eup %11687  ;;  %v1392_v28 = vxor.u32 2147483648, %v11686_v49  ;;  %v1691_v36 = vsel %vm13145_vm2, 0, %v1689_v32  ;;  %v1538_v52 = vsel %vm1532_vm8, %v1535_v39, %v1537_v55  ;;  %v1557_v19 = vadd.s32 1, %v13186_v43 }
 0x1b5   :  { %v1389_v17 = vxor.u32 2147483648, %v11688_v7  ;;  %v1676_v3 = vshrl.u32 %v1658_v30, %v1674_v51  ;;  %v1679_v63 = vadd.s32 127, %v1678_v42  ;;  %vm1556_vm14 = vc.u32 %v13191_v59, %v13185_v48 }
 0x1b6   :  { %v1393_v1 = vsel %vm1391_vm4, %v1392_v28, %v11688_v7  ;;  %v6552_v47 = vsel %vm6550_vm5, %v1392_v28, %v11688_v7  ;;  %v1818_v58 = vadd.s32 1, %v11089_v4  ;;  %v1554_v37 = vmul.u32 %v13151_v61, %v1538_v52 }
 0x1b7   :  { %v1390_v11 = vsel %vm1388_vm6, %v11686_v49, %v1389_v17  ;;  %v6549_v54 = vsel %vm6547_vm7, %v11686_v49, %v1389_v17  ;;  %v1677_v14 = vor.u32 %v1676_v3, %v1675_v41  ;;  %v1680_v35 = vshll.u32 %v1679_v63, 23 }
 0x1b8   :  { %v1394_v57 = vsel %vm1387_vm10, %v1390_v11, %v1393_v1  ;;  %v6553_v15 = vsel %vm6546_vm11, %v6549_v54, %v6552_v47  ;;  %v1558_v21 = vsel %vm1556_vm14, %v1557_v19, %v13186_v43  ;;  %vm1819_vm15 = vcmp.gt.s32.totalorder %v1818_v58, 0 }
 0x1b9   :  { %v1395_v22 = vsel %vm1385_vm12, nan, %v1394_v57  ;;  %v6554_v13 = vsel %vm1385_vm12, nan, %v6553_v15  ;;  %v1681_v46 = vor.u32 4788187, %v1680_v35  ;;  %v1559_v40 = vadd.s32 %v1558_v21, %v1554_v37 }
 0x1ba   :  { %10827 = vst [vmem:[#allocation2 + $0x80] sm:$0xff] %v1395_v22  ;;  %10877 = vst [vmem:[#allocation2 + $0x88] sm:$0xff] %v1395_v22  ;;  %v1684_v27 = vcvt.s32.f32 %v1677_v14  ;;  %v6856_v12 = vadd.s32 3, %v1691_v36  ;;  %v1820_v61 = vsel %vm1819_vm15, %v1818_v58, 0  ;;  %v1815_v33 = vand.u32 8388607, %v1808_v16 }
 0x1bb   :  { %10928 = vst [vmem:[#allocation2 + $0x3a0] sm:$0xff] %v6554_v13  ;;  %10978 = vst [vmem:[#allocation2 + $0x3a8] sm:$0xff] %v6554_v13  ;;  %v1682_v23 = vand.u32 2147483647, %v1681_v46  ;;  %v1560_v32 = vadd.s32 536870912, %v1559_v40  ;;  %v1822_v8 = vand.u32 31, %v1820_v61  ;;  %v13225_v20 = vmul.f32 %v13120_v6, %v226_v18 }
 0x1bc   :  { %v13227_v25 = vand.u32 3, %v1691_v36  ;;  %v13229_v31 = vand.u32 3, %v6856_v12  ;;  %v1816_v53 = vor.u32 8388608, %v1815_v33  ;;  %vm1501_vm0 = vcmp.lt.s32.totalorder %v13009_v24, 0 }
 0x1bd   :  { %v1685_v39 = vmul.f32 %v1684_v27, %v1682_v23  ;;  %v1561_v29 = vshrl.u32 %v1560_v32, 30  ;;  %v1823_v45 = vsub.s32 32, %v1822_v8  ;;  %v1708_v43 = vand.u32 2139095040, %v13225_v20 }
 0x1be   :  { %v1831_v42 = vshll.u32 %v11885_v62, %v1822_v8  ;;  %v1821_v28 = vshrl.u32 %v1820_v61, 5  ;;  %v1825_v41 = vshll.u32 %v11883_v56, %v1822_v8  ;;  %v1828_v36 = vshll.u32 %v11884_v60, %v1822_v8 }
 0x1bf   :  { %v1686_v55 = vxor.u32 2147483648, %v1685_v39  ;;  %v1562_v26 = vshll.u32 %v1561_v29, 30  ;;  %v1826_v44 = vshrl.u32 %v11884_v60, %v1823_v45  ;;  %v1829_v4 = vshrl.u32 %v11885_v62, %v1823_v45 }
 0x1c0   :  { %v1832_v49 = vshrl.u32 %v11886_v0, %v1823_v45  ;;  %v1835_v7 = vshrl.u32 %v11887_v2, %v1823_v45  ;;  %v1834_v3 = vshll.u32 %v11886_v0, %v1822_v8  ;;  %v1837_v19 = vshll.u32 %v11887_v2, %v1822_v8 }
 0x1c1   :  { %v1687_v5 = vsel %vm1604_vm1, %v1686_v55, %v1685_v39  ;;  %v13241_v51 = vsub.s32 %v1559_v40, %v1562_v26  ;;  %v1827_v50 = vor.u32 %v1826_v44, %v1825_v41  ;;  %v1830_v63 = vor.u32 %v1829_v4, %v1828_v36 }
 0x1c2   :  { %v1690_v30 = vsel %vm13145_vm2, %v12923_v38, %v1687_v5  ;;  %v1833_v17 = vor.u32 %v1832_v49, %v1831_v42  ;;  %v1838_v1 = vshrl.u32 %v11888_v9, %v1823_v45  ;;  %v1555_v47 = vadd.s32 %v13185_v48, %v13191_v59 }
 0x1c3   :  { %11689 = vcosq.f32 %v1690_v30  ;;  %v1565_v52 = vsub.s32 0, %v13241_v51  ;;  %v1585_v11 = vsub.s32 4, %v1561_v29  ;;  %v1836_v54 = vor.u32 %v1835_v7, %v1834_v3 }
 0x1c4   :  { %11691 = vsinq.f32 %v1690_v30  ;;  %vm1700_vm2 = vcmp.eq.s32.totalorder %v13227_v25, 2  ;;  %vm6862_vm1 = vcmp.eq.s32.totalorder %v13229_v31, 2  ;;  %v1824_v14 = vshrl.u32 %v11883_v56, %v1823_v45 }
 0x1c5   :  { %v11078_v58 = vmin.u32 %v1565_v52, %v13241_v51  ;;  %v1839_v35 = vor.u32 %v1838_v1, %v1837_v19  ;;  %vm1843_vm3 = vcmp.lt.s32.totalorder %v1821_v28, 4  ;;  %v1709_v57 = vshrl.u32 %v1708_v43, 23 }
 0x1c6   :  { %vm1697_vm4 = vcmp.eq.s32.totalorder %v13227_v25, 0  ;;  %vm6859_vm5 = vcmp.eq.s32.totalorder %v13229_v31, 0  ;;  %vm1840_vm6 = vcmp.lt.s32.totalorder %v1821_v28, 1  ;;  %vm1842_vm7 = vcmp.lt.s32.totalorder %v1821_v28, 3 }
 0x1c7   :  { %v1567_v15 = vclz %v11078_v58  ;;  %v1845_v48 = vsel %vm1843_vm3, %v1833_v17, 2102212464  ;;  %vm1696_vm8 = vcmp.lt.s32.totalorder %v13227_v25, 2  ;;  %vm6858_vm9 = vcmp.lt.s32.totalorder %v13229_v31, 2 }
 0x1c8   :  { %v1844_v59 = vsel %vm1840_vm6, %v1824_v14, %v1827_v50  ;;  %v1846_v37 = vsel %vm1842_vm7, %v1830_v63, %v1845_v48  ;;  %v1848_v21 = vsel %vm1840_vm6, %v1827_v50, %v1830_v63  ;;  %v1856_v22 = vshll.u32 %v1816_v53, 8 }
 0x1c9   :  { %vm1694_vm10 = vweird.f32 %v12923_v38  ;;  %v11079_v13 = vadd.s32 4294967294, %v1567_v15  ;;  %v1586_v46 = vsel %vm1501_vm0, %v1585_v11, %v1561_v29  ;;  %v1849_v18 = vsel %vm1843_vm3, %v1836_v54, 920167782 }
 0x1ca   :  { %v1852_v40 = vsel %vm1840_vm6, %v1830_v63, %v1833_v17  ;;  %vm1841_vm11 = vcmp.lt.s32.totalorder %v1821_v28, 2  ;;  %v1850_v23 = vsel %vm1842_vm7, %v1833_v17, %v1849_v18  ;;  %v1853_v27 = vsel %vm1843_vm3, %v1839_v35, 1326507024 }
 0x1cb   :  { %v11085_v12 = vadd.s32 4294967169, %v1709_v57  ;;  %vm11080_vm12 = vcmp.lt.s32.totalorder %v11079_v13, 0  ;;  %v1847_v61 = vsel %vm1841_vm11, %v1844_v59, %v1846_v37  ;;  %v1851_v32 = vsel %vm1841_vm11, %v1848_v21, %v1850_v23 }
 0x1cc   :  { %v1854_v33 = vsel %vm1842_vm7, %v1836_v54, %v1853_v27  ;;  %v1570_v39 = vsel %vm11080_vm12, 0, %v11079_v13  ;;  %v13270_v55 = vmul.u32.u64.low %v1856_v22, %v1851_v32  ;;  %v13271_v26 = vmul.u32.u64.high %v1856_v22, %v1851_v32, %v13270_v55 }
 0x1cd   :  { %v11690_v8 = vpop.eup %11689  ;;  %v1855_v45 = vsel %vm1841_vm11, %v1852_v40, %v1854_v33  ;;  %v1571_v43 = vsub.s32 32, %v1570_v39  ;;  %v1572_v5 = vshll.u32 %v13241_v51, %v1570_v39  ;;  %v1575_v44 = vsub.s32 4294967266, %v1570_v39 }
 0x1ce   :  { %v11692_v29 = vpop.eup %11691  ;;  %v1701_v53 = vxor.u32 2147483648, %v11690_v8  ;;  %v13275_v49 = vmul.u32.u64.low %v1856_v22, %v1855_v45  ;;  %v13276_v30 = vmul.u32.u64.high %v1856_v22, %v1855_v45, %v13275_v49  ;;  %v1715_v42 = vadd.s32 1, %v11085_v12 }
 0x1cf   :  { %v1698_v4 = vxor.u32 2147483648, %v11692_v29  ;;  %v1573_v41 = vshrl.u32 %v1555_v47, %v1571_v43  ;;  %v1576_v36 = vadd.s32 127, %v1575_v44  ;;  %v1866_v17 = vadd.s32 1, %v13271_v26 }
 0x1d0   :  { %v1702_v7 = vsel %vm1700_vm2, %v1701_v53, %v11692_v29  ;;  %v6864_v28 = vsel %vm6862_vm1, %v1701_v53, %v11692_v29  ;;  %vm1716_vm13 = vcmp.gt.s32.totalorder %v1715_v42, 0  ;;  %v1863_v58 = vmul.u32 %v1856_v22, %v1847_v61 }
 0x1d1   :  { %v1699_v52 = vsel %vm1697_vm4, %v11690_v8, %v1698_v4  ;;  %v6861_v51 = vsel %vm6859_vm5, %v11690_v8, %v1698_v4  ;;  %v1574_v63 = vor.u32 %v1573_v41, %v1572_v5  ;;  %v1577_v19 = vshll.u32 %v1576_v36, 23  ;;  %v241_v4 = vpop.permute.xlu1 %240 }
 0x1d2   :  { %v1703_v3 = vsel %vm1696_vm8, %v1699_v52, %v1702_v7  ;;  %v6865_v50 = vsel %vm6858_vm9, %v6861_v51, %v6864_v28  ;;  %vm1865_vm14 = vc.u32 %v13276_v30, %v13270_v55  ;;  %v1705_v11 = vand.u32 2147483647, %v13225_v20 }
 0x1d3   :  { %v1704_v1 = vsel %vm1694_vm10, nan, %v1703_v3  ;;  %v6866_v47 = vsel %vm1694_vm10, nan, %v6865_v50  ;;  %v1578_v25 = vor.u32 4788187, %v1577_v19  ;;  %v1867_v31 = vsel %vm1865_vm14, %v1866_v17, %v13271_v26 }
 0x1d4   :  { %10830 = vst [vmem:[#allocation2 + $0xb0] sm:$0xff] %v1704_v1  ;;  %10880 = vst [vmem:[#allocation2 + $0xb8] sm:$0xff] %v1704_v1  ;;  %v1717_v54 = vsel %vm1716_vm13, %v1715_v42, 0  ;;  %vm13302_vm15 = vcmp.le.f32.partialorder %v1499_v10, 0.7853982  ;;  %v1868_v14 = vadd.s32 %v1867_v31, %v1863_v58  ;;  %v1581_v15 = vcvt.s32.f32 %v1574_v63 }
 0x1d5   :  { %10931 = vst [vmem:[#allocation2 + $0x3d0] sm:$0xff] %v6866_v47  ;;  %10981 = vst [vmem:[#allocation2 + $0x3d8] sm:$0xff] %v6866_v47  ;;  %v1719_v35 = vand.u32 31, %v1717_v54  ;;  %v1579_v57 = vand.u32 2147483647, %v1578_v25  ;;  %v1588_v48 = vsel %vm13302_vm15, 0, %v1586_v46  ;;  %v13337_v51 = vmul.f32 %v13120_v6, %v241_v4 }
 0x1d6   :  { %v1869_v59 = vadd.s32 536870912, %v1868_v14  ;;  %v1712_v22 = vand.u32 8388607, %v1705_v11  ;;  %v13310_v13 = vand.u32 3, %v1588_v48  ;;  %v6752_v18 = vadd.s32 3, %v1588_v48 }
 0x1d7   :  { %v1720_v37 = vsub.s32 32, %v1719_v35  ;;  %v1582_v21 = vmul.f32 %v1581_v15, %v1579_v57  ;;  %v13319_v32 = vshrl.u32 %v1717_v54, 5  ;;  %v1722_v33 = vshll.u32 %v11883_v56, %v1719_v35 }
 0x1d8   :  { %v13312_v10 = vshrl.u32 %v1869_v59, 30  ;;  %v1725_v45 = vshll.u32 %v11884_v60, %v1719_v35  ;;  %v1728_v26 = vshll.u32 %v11885_v62, %v1719_v35  ;;  %v1731_v29 = vshll.u32 %v11886_v0, %v1719_v35 }
 0x1d9   :  { %v1723_v40 = vshrl.u32 %v11884_v60, %v1720_v37  ;;  %v1583_v23 = vxor.u32 2147483648, %v1582_v21  ;;  %v1726_v27 = vshrl.u32 %v11885_v62, %v1720_v37  ;;  %v1729_v12 = vshrl.u32 %v11886_v0, %v1720_v37 }
 0x1da   :  { %v1732_v46 = vshrl.u32 %v11887_v2, %v1720_v37  ;;  %v1871_v61 = vshll.u32 %v13312_v10, 30  ;;  %v1735_v8 = vshrl.u32 %v11888_v9, %v1720_v37  ;;  %v1734_v44 = vshll.u32 %v11887_v2, %v1719_v35 }
 0x1db   :  { %v1584_v39 = vsel %vm1501_vm0, %v1583_v23, %v1582_v21  ;;  %v1724_v5 = vor.u32 %v1723_v40, %v1722_v33  ;;  %v1727_v49 = vor.u32 %v1726_v27, %v1725_v45  ;;  %v1730_v42 = vor.u32 %v1729_v12, %v1728_v26 }
 0x1dc   :  { %v1587_v53 = vsel %vm13302_vm15, %v13009_v24, %v1584_v39  ;;  %v13331_v43 = vsub.s32 %v1868_v14, %v1871_v61  ;;  %v1733_v7 = vor.u32 %v1732_v46, %v1731_v29  ;;  %v1736_v41 = vor.u32 %v1735_v8, %v1734_v44 }
 0x1dd   :  { %11693 = vcosq.f32 %v1587_v53  ;;  %v6753_v36 = vand.u32 3, %v6752_v18  ;;  %vm1810_vm0 = vcmp.lt.s32.totalorder %v13123_v34, 0  ;;  %v1713_v52 = vor.u32 8388608, %v1712_v22 }
 0x1de   :  { %11695 = vsinq.f32 %v1587_v53  ;;  %v1874_v28 = vsub.s32 0, %v13331_v43  ;;  %v1721_v3 = vshrl.u32 %v11883_v56, %v1720_v37  ;;  %vm1737_vm2 = vcmp.lt.s32.totalorder %v13319_v32, 1 }
 0x1df   :  { %vm1740_vm1 = vcmp.lt.s32.totalorder %v13319_v32, 4  ;;  %vm1597_vm3 = vcmp.eq.s32.totalorder %v13310_v13, 2  ;;  %vm1739_vm4 = vcmp.lt.s32.totalorder %v13319_v32, 3  ;;  %v1745_v50 = vsel %vm1737_vm2, %v1724_v5, %v1727_v49 }
 0x1e0   :  { %v11090_v17 = vmin.u32 %v1874_v28, %v13331_v43  ;;  %v1746_v63 = vsel %vm1740_vm1, %v1733_v7, 920167782  ;;  %v1749_v19 = vsel %vm1737_vm2, %v1727_v49, %v1730_v42  ;;  %vm1594_vm5 = vcmp.eq.s32.totalorder %v13310_v13, 0 }
 0x1e1   :  { %v1742_v47 = vsel %vm1740_vm1, %v1730_v42, 2102212464  ;;  %v1747_v58 = vsel %vm1739_vm4, %v1730_v42, %v1746_v63  ;;  %v1750_v25 = vsel %vm1740_vm1, %v1736_v41, 1326507024  ;;  %vm1593_vm6 = vcmp.lt.s32.totalorder %v13310_v13, 2 }
 0x1e2   :  { %v1876_v1 = vclz %v11090_v17  ;;  %vm6754_vm7 = vcmp.lt.s32.totalorder %v6753_v36, 2  ;;  %vm6755_vm8 = vcmp.eq.s32.totalorder %v6753_v36, 0  ;;  %v1894_v31 = vsub.s32 4, %v13312_v10 }
 0x1e3   :  { %vm1738_vm9 = vcmp.lt.s32.totalorder %v13319_v32, 2  ;;  %v1753_v54 = vshll.u32 %v1713_v52, 8  ;;  %vm1591_vm10 = vweird.f32 %v13009_v24  ;;  %v1741_v14 = vsel %vm1737_vm2, %v1721_v3, %v1724_v5  ;;  %v236_v3 = vpop.permute.xlu0 %235 }
 0x1e4   :  { %v11091_v38 = vadd.s32 4294967294, %v1876_v1  ;;  %v1748_v35 = vsel %vm1738_vm9, %v1745_v50, %v1747_v58  ;;  %v1751_v57 = vsel %vm1739_vm4, %v1733_v7, %v1750_v25  ;;  %v1743_v15 = vsel %vm1739_vm4, %v1727_v49, %v1742_v47 }
 0x1e5   :  { %v1752_v48 = vsel %vm1738_vm9, %v1749_v19, %v1751_v57  ;;  %v13366_v59 = vmul.u32.u64.low %v1753_v54, %v1748_v35  ;;  %v13367_v37 = vmul.u32.u64.high %v1753_v54, %v1748_v35, %v13366_v59  ;;  %v2017_v18 = vand.u32 2139095040, %v13337_v51 }
 0x1e6   :  { %vm11092_vm11 = vcmp.lt.s32.totalorder %v11091_v38, 0  ;;  %v13370_v21 = vmul.u32.u64.low %v1753_v54, %v1752_v48  ;;  %v13371_v22 = vmul.u32.u64.high %v1753_v54, %v1752_v48, %v13370_v21  ;;  %vm6758_vm12 = vcmp.eq.s32.totalorder %v6753_v36, 2 }
 0x1e7   :  { %v11694_v40 = vpop.eup %11693  ;;  %v1864_v23 = vadd.s32 %v13270_v55, %v13276_v30  ;;  %v1879_v27 = vsel %vm11092_vm11, 0, %v11091_v38  ;;  %v1895_v12 = vsel %vm1810_vm0, %v1894_v31, %v13312_v10  ;;  %v1744_v39 = vsel %vm1738_vm9, %v1741_v14, %v1743_v15 }
 0x1e8   :  { %v11696_v46 = vpop.eup %11695  ;;  %v1598_v61 = vxor.u32 2147483648, %v11694_v40  ;;  %v1880_v33 = vsub.s32 32, %v1879_v27  ;;  %v1884_v8 = vsub.s32 4294967266, %v1879_v27  ;;  %v1881_v26 = vshll.u32 %v13331_v43, %v1879_v27 }
 0x1e9   :  { %v1595_v45 = vxor.u32 2147483648, %v11696_v46  ;;  %v1763_v29 = vadd.s32 1, %v13367_v37  ;;  %v2018_v53 = vshrl.u32 %v2017_v18, 23  ;;  %v1760_v32 = vmul.u32 %v1753_v54, %v1744_v39 }
 0x1ea   :  { %v1599_v55 = vsel %vm1597_vm3, %v1598_v61, %v11696_v46  ;;  %v6760_v30 = vsel %vm6758_vm12, %v1598_v61, %v11696_v46  ;;  %v1882_v5 = vshrl.u32 %v1864_v23, %v1880_v33  ;;  %v1885_v10 = vadd.s32 127, %v1884_v8 }
 0x1eb   :  { %v1596_v44 = vsel %vm1594_vm5, %v11694_v40, %v1595_v45  ;;  %v6757_v4 = vsel %vm6755_vm8, %v11694_v40, %v1595_v45  ;;  %vm1762_vm13 = vc.u32 %v13371_v22, %v13366_v59  ;;  %v11097_v17 = vadd.s32 4294967169, %v2018_v53 }
 0x1ec   :  { %v1600_v43 = vsel %vm1593_vm6, %v1596_v44, %v1599_v55  ;;  %v6761_v49 = vsel %vm6754_vm7, %v6757_v4, %v6760_v30  ;;  %v1883_v42 = vor.u32 %v1882_v5, %v1881_v26  ;;  %v1886_v7 = vshll.u32 %v1885_v10, 23 }
 0x1ed   :  { %v1601_v28 = vsel %vm1591_vm10, nan, %v1600_v43  ;;  %v6762_v41 = vsel %vm1591_vm10, nan, %v6761_v49  ;;  %v1764_v52 = vsel %vm1762_vm13, %v1763_v29, %v13367_v37  ;;  %vm13401_vm14 = vcmp.le.f32.partialorder %v1808_v16, 0.7853982 }
 0x1ee   :  { %10829 = vst [vmem:[#allocation2 + $0xa0] sm:$0xff] %v1601_v28  ;;  %10879 = vst [vmem:[#allocation2 + $0xa8] sm:$0xff] %v1601_v28  ;;  %v1887_v36 = vor.u32 4788187, %v1886_v7  ;;  %v1765_v50 = vadd.s32 %v1764_v52, %v1760_v32  ;;  %v1897_v24 = vsel %vm13401_vm14, 0, %v1895_v12  ;;  %v2024_v19 = vadd.s32 1, %v11097_v17 }
 0x1ef   :  { %10930 = vst [vmem:[#allocation2 + $0x3c0] sm:$0xff] %v6762_v41  ;;  %10980 = vst [vmem:[#allocation2 + $0x3c8] sm:$0xff] %v6762_v41  ;;  %v2014_v63 = vand.u32 2147483647, %v13337_v51  ;;  %v1890_v47 = vcvt.s32.f32 %v1883_v42  ;;  %v13409_v25 = vmul.f32 %v13120_v6, %v236_v3  ;;  %v7064_v16 = vadd.s32 3, %v1897_v24 }
 0x1f0   :  { %v1888_v1 = vand.u32 2147483647, %v1887_v36  ;;  %v1766_v58 = vadd.s32 536870912, %v1765_v50  ;;  %vm2025_vm15 = vcmp.gt.s32.totalorder %v2024_v19, 0  ;;  %vm1707_vm2 = vcmp.lt.s32.totalorder %v13225_v20, 0 }
 0x1f1   :  { %v2026_v38 = vsel %vm2025_vm15, %v2024_v19, 0  ;;  %v2021_v14 = vand.u32 8388607, %v2014_v63  ;;  %v1914_v48 = vand.u32 2139095040, %v13409_v25  ;;  %v13417_v18 = vand.u32 3, %v1897_v24 }
 0x1f2   :  { %v1891_v31 = vmul.f32 %v1890_v47, %v1888_v1  ;;  %v1767_v54 = vshrl.u32 %v1766_v58, 30  ;;  %v2028_v35 = vand.u32 31, %v2026_v38  ;;  %v13419_v40 = vand.u32 3, %v7064_v16 }
 0x1f3   :  { %v1761_v12 = vadd.s32 %v13366_v59, %v13371_v22  ;;  %v2022_v46 = vor.u32 8388608, %v2021_v14  ;;  %v1915_v39 = vshrl.u32 %v1914_v48, 23  ;;  %v13435_v59 = vshrl.u32 %v2026_v38, 5 }
 0x1f4   :  { %v1892_v57 = vxor.u32 2147483648, %v1891_v31  ;;  %v1768_v15 = vshll.u32 %v1767_v54, 30  ;;  %v2029_v37 = vsub.s32 32, %v2028_v35  ;;  %v2031_v8 = vshll.u32 %v11883_v56, %v2028_v35 }
 0x1f5   :  { %v2034_v45 = vshll.u32 %v11884_v60, %v2028_v35  ;;  %v1791_v55 = vsub.s32 4, %v1767_v54  ;;  %v2037_v22 = vshll.u32 %v11885_v62, %v2028_v35  ;;  %v2040_v10 = vshll.u32 %v11886_v0, %v2028_v35 }
 0x1f6   :  { %v1893_v21 = vsel %vm1810_vm0, %v1892_v57, %v1891_v31  ;;  %v13421_v23 = vsub.s32 %v1765_v50, %v1768_v15  ;;  %v2032_v61 = vshrl.u32 %v11884_v60, %v2029_v37  ;;  %v2035_v26 = vshrl.u32 %v11885_v62, %v2029_v37 }
 0x1f7   :  { %v1896_v27 = vsel %vm13401_vm14, %v13123_v34, %v1893_v21  ;;  %v2038_v29 = vshrl.u32 %v11886_v0, %v2029_v37  ;;  %v2041_v44 = vshrl.u32 %v11887_v2, %v2029_v37  ;;  %vm1906_vm0 = vcmp.eq.s32.totalorder %v13417_v18, 2 }
 0x1f8   :  { %11697 = vcosq.f32 %v1896_v27  ;;  %v1771_v33 = vsub.s32 0, %v13421_v23  ;;  %v2033_v30 = vor.u32 %v2032_v61, %v2031_v8  ;;  %v2036_v5 = vor.u32 %v2035_v26, %v2034_v45 }
 0x1f9   :  { %11699 = vsinq.f32 %v1896_v27  ;;  %vm7070_vm1 = vcmp.eq.s32.totalorder %v13419_v40, 2  ;;  %v2039_v32 = vor.u32 %v2038_v29, %v2037_v22  ;;  %v2043_v43 = vshll.u32 %v11887_v2, %v2028_v35 }
 0x1fa   :  { %v11086_v53 = vmin.u32 %v1771_v33, %v13421_v23  ;;  %v2044_v49 = vshrl.u32 %v11888_v9, %v2029_v37  ;;  %vm1903_vm3 = vcmp.eq.s32.totalorder %v13417_v18, 0  ;;  %vm7067_vm4 = vcmp.eq.s32.totalorder %v13419_v40, 0 }
 0x1fb   :  { %v2030_v42 = vshrl.u32 %v11883_v56, %v2029_v37  ;;  %v2042_v7 = vor.u32 %v2041_v44, %v2040_v10  ;;  %v13447_v28 = vshll.u32 %v2022_v46, 8  ;;  %v11093_v41 = vadd.s32 4294967169, %v1915_v39 }
 0x1fc   :  { %v1773_v4 = vclz %v11086_v53  ;;  %vm1902_vm5 = vcmp.lt.s32.totalorder %v13417_v18, 2  ;;  %vm7066_vm6 = vcmp.lt.s32.totalorder %v13419_v40, 2  ;;  %v1792_v17 = vsel %vm1707_vm2, %v1791_v55, %v1767_v54 }
 0x1fd   :  { %v2045_v3 = vor.u32 %v2044_v49, %v2043_v43  ;;  %vm2046_vm7 = vcmp.lt.s32.totalorder %v13435_v59, 1  ;;  %vm1900_vm8 = vweird.f32 %v13123_v34  ;;  %vm2047_vm9 = vcmp.lt.s32.totalorder %v13435_v59, 2 }
 0x1fe   :  { %v11087_v52 = vadd.s32 4294967294, %v1773_v4  ;;  %vm2048_vm10 = vcmp.lt.s32.totalorder %v13435_v59, 3  ;;  %vm2049_vm11 = vcmp.lt.s32.totalorder %v13435_v59, 4  ;;  %v2050_v13 = vsel %vm2046_vm7, %v2030_v42, %v2033_v30 }
 0x1ff   :  { %vm13460_vm12 = vcmp.le.f32.partialorder %v1705_v11, 0.7853982  ;;  %v2051_v50 = vsel %vm2049_vm11, %v2039_v32, 2102212464  ;;  %v2054_v24 = vsel %vm2046_vm7, %v2033_v30, %v2036_v5  ;;  %v2055_v19 = vsel %vm2049_vm11, %v2042_v7, 920167782 }
 0x200   :  { %vm11088_vm13 = vcmp.lt.s32.totalorder %v11087_v52, 0  ;;  %v2056_v47 = vsel %vm2048_vm10, %v2039_v32, %v2055_v19  ;;  %v2058_v58 = vsel %vm2046_vm7, %v2036_v5, %v2039_v32  ;;  %v2059_v31 = vsel %vm2049_vm11, %v2045_v3, 1326507024  ;;  %v251_v32 = vpop.permute.xlu1 %250 }
 0x201   :  { %v1776_v1 = vsel %vm11088_vm13, 0, %v11087_v52  ;;  %v2052_v14 = vsel %vm2048_vm10, %v2036_v5, %v2051_v50  ;;  %v1921_v11 = vadd.s32 1, %v11093_v41  ;;  %v2057_v48 = vsel %vm2047_vm9, %v2054_v24, %v2056_v47 }
 0x202   :  { %v11698_v16 = vpop.eup %11697  ;;  %v1777_v54 = vsub.s32 32, %v1776_v1  ;;  %v1781_v38 = vsub.s32 4294967266, %v1776_v1  ;;  %v1778_v15 = vshll.u32 %v13421_v23, %v1776_v1  ;;  %v2060_v37 = vsel %vm2048_vm10, %v2042_v7, %v2059_v31 }
 0x203   :  { %v11700_v35 = vpop.eup %11699  ;;  %v1907_v57 = vxor.u32 2147483648, %v11698_v16  ;;  %v2061_v61 = vsel %vm2047_vm9, %v2058_v58, %v2060_v37  ;;  %v13492_v22 = vmul.u32.u64.low %v13447_v28, %v2057_v48  ;;  %v13493_v30 = vmul.u32.u64.high %v13447_v28, %v2057_v48, %v13492_v22 }
 0x204   :  { %v1904_v21 = vxor.u32 2147483648, %v11700_v35  ;;  %v1779_v27 = vshrl.u32 %v1761_v12, %v1777_v54  ;;  %v1782_v46 = vadd.s32 127, %v1781_v38  ;;  %v1911_v4 = vand.u32 2147483647, %v13409_v25 }
 0x205   :  { %v1908_v33 = vsel %vm1906_vm0, %v1907_v57, %v11700_v35  ;;  %v7072_v8 = vsel %vm7070_vm1, %v1907_v57, %v11700_v35  ;;  %v13480_v23 = vmul.u32.u64.low %v13447_v28, %v2061_v61  ;;  %v13481_v39 = vmul.u32.u64.high %v13447_v28, %v2061_v61, %v13480_v23 }
 0x206   :  { %v1905_v45 = vsel %vm1903_vm3, %v11698_v16, %v1904_v21  ;;  %v7069_v12 = vsel %vm7067_vm4, %v11698_v16, %v1904_v21  ;;  %v1780_v26 = vor.u32 %v1779_v27, %v1778_v15  ;;  %v1783_v29 = vshll.u32 %v1782_v46, 23 }
 0x207   :  { %v1909_v53 = vsel %vm1902_vm5, %v1905_v45, %v1908_v33  ;;  %v7073_v55 = vsel %vm7066_vm6, %v7069_v12, %v7072_v8  ;;  %v1794_v18 = vsel %vm13460_vm12, 0, %v1792_v17  ;;  %v2053_v40 = vsel %vm2047_vm9, %v2050_v13, %v2052_v14 }
 0x208   :  { %v1910_v5 = vsel %vm1900_vm8, nan, %v1909_v53  ;;  %v7074_v10 = vsel %vm1900_vm8, nan, %v7073_v55  ;;  %v1784_v44 = vor.u32 4788187, %v1783_v29  ;;  %vm1922_vm14 = vcmp.gt.s32.totalorder %v1921_v11, 0 }
 0x209   :  { %10832 = vst [vmem:[#allocation2 + $0xd0] sm:$0xff] %v1910_v5  ;;  %10882 = vst [vmem:[#allocation2 + $0xd8] sm:$0xff] %v1910_v5  ;;  %v1787_v49 = vcvt.s32.f32 %v1780_v26  ;;  %vm2071_vm15 = vc.u32 %v13481_v39, %v13492_v22  ;;  %v1923_v34 = vsel %vm1922_vm14, %v1921_v11, 0  ;;  %v2072_v42 = vadd.s32 1, %v13493_v30 }
 0x20a   :  { %10933 = vst [vmem:[#allocation2 + $0x3f0] sm:$0xff] %v7074_v10  ;;  %10983 = vst [vmem:[#allocation2 + $0x3f8] sm:$0xff] %v7074_v10  ;;  %v1785_v43 = vand.u32 2147483647, %v1784_v44  ;;  %v1925_v7 = vand.u32 31, %v1923_v34  ;;  %v13509_v41 = vmul.f32 %v13120_v6, %v251_v32  ;;  %v6960_v3 = vadd.s32 3, %v1794_v18 }
 0x20b   :  { %v2069_v17 = vmul.u32 %v13447_v28, %v2053_v40  ;;  %v1918_v59 = vand.u32 8388607, %v1911_v4  ;;  %v2073_v13 = vsel %vm2071_vm15, %v2072_v42, %v13493_v30  ;;  %v13515_v50 = vshrl.u32 %v1923_v34, 5 }
 0x20c   :  { %v1788_v52 = vmul.f32 %v1787_v49, %v1785_v43  ;;  %v1926_v24 = vsub.s32 32, %v1925_v7  ;;  %v1928_v19 = vshll.u32 %v11883_v56, %v1925_v7  ;;  %v1931_v58 = vshll.u32 %v11884_v60, %v1925_v7 }
 0x20d   :  { %v2074_v47 = vadd.s32 %v2073_v13, %v2069_v17  ;;  %v1934_v6 = vshll.u32 %v11885_v62, %v1925_v7  ;;  %v1937_v54 = vshll.u32 %v11886_v0, %v1925_v7  ;;  %v1940_v35 = vshll.u32 %v11887_v2, %v1925_v7 }
 0x20e   :  { %v1789_v1 = vxor.u32 2147483648, %v1788_v52  ;;  %v1929_v31 = vshrl.u32 %v11884_v60, %v1926_v24  ;;  %v1932_v28 = vshrl.u32 %v11885_v62, %v1926_v24  ;;  %v1935_v16 = vshrl.u32 %v11886_v0, %v1926_v24 }
 0x20f   :  { %v2075_v14 = vadd.s32 536870912, %v2074_v47  ;;  %v1938_v11 = vshrl.u32 %v11887_v2, %v1926_v24  ;;  %v1941_v46 = vshrl.u32 %v11888_v9, %v1926_v24  ;;  %v13532_v61 = vand.u32 3, %v1794_v18 }
 0x210   :  { %v1790_v38 = vsel %vm1707_vm2, %v1789_v1, %v1788_v52  ;;  %v1930_v15 = vor.u32 %v1929_v31, %v1928_v19  ;;  %v1933_v48 = vor.u32 %v1932_v28, %v1931_v58  ;;  %v1936_v37 = vor.u32 %v1935_v16, %v1934_v6 }
 0x211   :  { %v1793_v57 = vsel %vm13460_vm12, %v13225_v20, %v1790_v38  ;;  %v2076_v21 = vshrl.u32 %v2075_v14, 30  ;;  %v1939_v27 = vor.u32 %v1938_v11, %v1937_v54  ;;  %v1919_v33 = vor.u32 8388608, %v1918_v59 }
 0x212   :  { %11701 = vcosq.f32 %v1793_v57  ;;  %v2223_v8 = vand.u32 2139095040, %v13509_v41  ;;  %vm2016_vm2 = vcmp.lt.s32.totalorder %v13337_v51, 0  ;;  %v1942_v45 = vor.u32 %v1941_v46, %v1940_v35 }
 0x213   :  { %11703 = vsinq.f32 %v1793_v57  ;;  %v2077_v23 = vshll.u32 %v2076_v21, 30  ;;  %vm1943_vm0 = vcmp.lt.s32.totalorder %v13515_v50, 1  ;;  %vm1946_vm1 = vcmp.lt.s32.totalorder %v13515_v50, 4 }
 0x214   :  { %vm1945_vm3 = vcmp.lt.s32.totalorder %v13515_v50, 3  ;;  %v1951_v36 = vsel %vm1943_vm0, %v1930_v15, %v1933_v48  ;;  %v1952_v12 = vsel %vm1946_vm1, %v1939_v27, 920167782  ;;  %v2220_v26 = vand.u32 2147483647, %v13509_v41 }
 0x215   :  { %v6961_v29 = vand.u32 3, %v6960_v3  ;;  %v13544_v53 = vsub.s32 %v2074_v47, %v2077_v23  ;;  %vm1944_vm4 = vcmp.lt.s32.totalorder %v13515_v50, 2  ;;  %v1953_v55 = vsel %vm1945_vm3, %v1936_v37, %v1952_v12 }
 0x216   :  { %vm13551_vm5 = vcmp.le.f32.partialorder %v2014_v63, 0.7853982  ;;  %v1927_v5 = vshrl.u32 %v11883_v56, %v1926_v24  ;;  %v1954_v10 = vsel %vm1944_vm4, %v1951_v36, %v1953_v55  ;;  %v1959_v44 = vshll.u32 %v1919_v33, 8 }
 0x217   :  { %v2224_v32 = vshrl.u32 %v2223_v8, 23  ;;  %vm1799_vm6 = vcmp.lt.s32.totalorder %v13532_v61, 2  ;;  %v2080_v18 = vsub.s32 0, %v13544_v53  ;;  %v1948_v40 = vsel %vm1946_vm1, %v1936_v37, 2102212464 }
 0x218   :  { %v1955_v63 = vsel %vm1943_vm0, %v1933_v48, %v1936_v37  ;;  %v1956_v43 = vsel %vm1946_vm1, %v1942_v45, 1326507024  ;;  %vm1797_vm7 = vweird.f32 %v13225_v20  ;;  %v2100_v49 = vsub.s32 4, %v2076_v21  ;;  %v246_v45 = vpop.permute.xlu0 %245 }
 0x219   :  { %v1957_v34 = vsel %vm1945_vm3, %v1939_v27, %v1956_v43  ;;  %v13569_v42 = vmul.u32.u64.low %v1959_v44, %v1954_v10  ;;  %v13570_v7 = vmul.u32.u64.high %v1959_v44, %v1954_v10, %v13569_v42  ;;  %vm1800_vm8 = vcmp.eq.s32.totalorder %v13532_v61, 0 }
 0x21a   :  { %vm1803_vm9 = vcmp.eq.s32.totalorder %v13532_v61, 2  ;;  %vm6962_vm10 = vcmp.lt.s32.totalorder %v6961_v29, 2  ;;  %v11098_v52 = vmin.u32 %v2080_v18, %v13544_v53  ;;  %v1947_v3 = vsel %vm1943_vm0, %v1927_v5, %v1930_v15 }
 0x21b   :  { %v1949_v17 = vsel %vm1945_vm3, %v1933_v48, %v1948_v40  ;;  %v1958_v59 = vsel %vm1944_vm4, %v1955_v63, %v1957_v34  ;;  %v11105_v13 = vadd.s32 4294967169, %v2224_v32  ;;  %vm6963_vm11 = vcmp.eq.s32.totalorder %v6961_v29, 0 }
 0x21c   :  { %v11702_v24 = vpop.eup %11701  ;;  %v2082_v19 = vclz %v11098_v52  ;;  %v13582_v1 = vmul.u32.u64.low %v1959_v44, %v1958_v59  ;;  %v13583_v47 = vmul.u32.u64.high %v1959_v44, %v1958_v59, %v13582_v1  ;;  %vm6966_vm12 = vcmp.eq.s32.totalorder %v6961_v29, 2 }
 0x21d   :  { %v11704_v58 = vpop.eup %11703  ;;  %v1804_v6 = vxor.u32 2147483648, %v11702_v24  ;;  %v2070_v31 = vadd.s32 %v13492_v22, %v13481_v39  ;;  %v2101_v28 = vsel %vm2016_vm2, %v2100_v49, %v2076_v21  ;;  %v1950_v38 = vsel %vm1944_vm4, %v1947_v3, %v1949_v17 }
 0x21e   :  { %v1801_v16 = vxor.u32 2147483648, %v11704_v58  ;;  %v11099_v54 = vadd.s32 4294967294, %v2082_v19  ;;  %v2227_v14 = vand.u32 8388607, %v2220_v26  ;;  %v1969_v57 = vadd.s32 1, %v13570_v7 }
 0x21f   :  { %v1805_v11 = vsel %vm1803_vm9, %v1804_v6, %v11704_v58  ;;  %v6968_v35 = vsel %vm6966_vm12, %v1804_v6, %v11704_v58  ;;  %v2230_v15 = vadd.s32 1, %v11105_v13  ;;  %v2103_v50 = vsel %vm13551_vm5, 0, %v2101_v28 }
 0x220   :  { %v1802_v39 = vsel %vm1800_vm8, %v11702_v24, %v1801_v16  ;;  %v6965_v22 = vsel %vm6963_vm11, %v11702_v24, %v1801_v16  ;;  %vm11100_vm13 = vcmp.lt.s32.totalorder %v11099_v54, 0  ;;  %vm1968_vm14 = vc.u32 %v13583_v47, %v13569_v42 }
 0x221   :  { %v1806_v48 = vsel %vm1799_vm6, %v1802_v39, %v1805_v11  ;;  %v6969_v37 = vsel %vm6962_vm10, %v6965_v22, %v6968_v35  ;;  %v2085_v21 = vsel %vm11100_vm13, 0, %v11099_v54  ;;  %v1966_v8 = vmul.u32 %v1959_v44, %v1950_v38  ;;  %v13615_v44 = vld [vmem:[%s17028_s1] ss:$0 sm:$0xff] }
 0x222   :  { %v1807_v27 = vsel %vm1797_vm7, nan, %v1806_v48  ;;  %v6970_v46 = vsel %vm1797_vm7, nan, %v6969_v37  ;;  %v2086_v33 = vsub.s32 32, %v2085_v21  ;;  %v2090_v61 = vsub.s32 4294967266, %v2085_v21 }
 0x223   :  { %10831 = vst [vmem:[#allocation2 + $0xc0] sm:$0xff] %v1807_v27  ;;  %10881 = vst [vmem:[#allocation2 + $0xc8] sm:$0xff] %v1807_v27  ;;  %v1970_v23 = vsel %vm1968_vm14, %v1969_v57, %v13570_v7  ;;  %vm2231_vm15 = vcmp.gt.s32.totalorder %v2230_v15, 0  ;;  %v2087_v55 = vshll.u32 %v13544_v53, %v2085_v21  ;;  %v7272_v10 = vadd.s32 3, %v2103_v50 }
 0x224   :  { %10932 = vst [vmem:[#allocation2 + $0x3e0] sm:$0xff] %v6970_v46  ;;  %10982 = vst [vmem:[#allocation2 + $0x3e8] sm:$0xff] %v6970_v46  ;;  %v2088_v36 = vshrl.u32 %v2070_v31, %v2086_v33  ;;  %v1971_v12 = vadd.s32 %v1970_v23, %v1966_v8  ;;  %v2232_v29 = vsel %vm2231_vm15, %v2230_v15, 0  ;;  %v2091_v5 = vadd.s32 127, %v2090_v61 }
 0x225   :  { %v2234_v20 = vand.u32 31, %v2232_v29  ;;  %v2228_v18 = vor.u32 8388608, %v2227_v14  ;;  %v13618_v40 = vmul.f32 %v13615_v44, %v246_v45  ;;  %v13622_v53 = vand.u32 3, %v2103_v50 }
 0x226   :  { %v1972_v32 = vadd.s32 536870912, %v1971_v12  ;;  %v2089_v63 = vor.u32 %v2088_v36, %v2087_v55  ;;  %v2092_v43 = vshll.u32 %v2091_v5, 23  ;;  %v13624_v52 = vand.u32 3, %v7272_v10 }
 0x227   :  { %v2235_v49 = vsub.s32 32, %v2234_v20  ;;  %v13628_v59 = vshll.u32 %v2228_v18, 8  ;;  %v2120_v13 = vand.u32 2139095040, %v13618_v40  ;;  %v2233_v31 = vshrl.u32 %v2232_v29, 5 }
 0x228   :  { %v13620_v34 = vshrl.u32 %v1972_v32, 30  ;;  %v2093_v7 = vor.u32 4788187, %v2092_v43  ;;  %v2096_v19 = vcvt.s32.f32 %v2089_v63  ;;  %v2243_v28 = vshll.u32 %v11885_v62, %v2234_v20 }
 0x229   :  { %v2244_v17 = vshrl.u32 %v11886_v0, %v2235_v49  ;;  %v2238_v1 = vshrl.u32 %v11884_v60, %v2235_v49  ;;  %v2241_v58 = vshrl.u32 %v11885_v62, %v2235_v49  ;;  %v2247_v16 = vshrl.u32 %v11887_v2, %v2235_v49 }
 0x22a   :  { %v1974_v3 = vshll.u32 %v13620_v34, 30  ;;  %v2094_v24 = vand.u32 2147483647, %v2093_v7  ;;  %v2237_v38 = vshll.u32 %v11883_v56, %v2234_v20  ;;  %v2240_v14 = vshll.u32 %v11884_v60, %v2234_v20 }
 0x22b   :  { %v2250_v11 = vshrl.u32 %v11888_v9, %v2235_v49  ;;  %v2245_v57 = vor.u32 %v2244_v17, %v2243_v28  ;;  %v2246_v15 = vshll.u32 %v11886_v0, %v2234_v20  ;;  %v2117_v39 = vand.u32 2147483647, %v13618_v40 }
 0x22c   :  { %v13633_v6 = vsub.s32 %v1971_v12, %v1974_v3  ;;  %v2097_v54 = vmul.f32 %v2096_v19, %v2094_v24  ;;  %v2239_v50 = vor.u32 %v2238_v1, %v2237_v38  ;;  %v2242_v48 = vor.u32 %v2241_v58, %v2240_v14 }
 0x22d   :  { %v2249_v37 = vshll.u32 %v11887_v2, %v2234_v20  ;;  %vm1913_vm0 = vcmp.lt.s32.totalorder %v13409_v25, 0  ;;  %v2236_v27 = vshrl.u32 %v11883_v56, %v2235_v49  ;;  %v2248_v46 = vor.u32 %v2247_v16, %v2246_v15 }
 0x22e   :  { %v1977_v35 = vsub.s32 0, %v13633_v6  ;;  %v2098_v22 = vxor.u32 2147483648, %v2097_v54  ;;  %v2121_v33 = vshrl.u32 %v2120_v13, 23  ;;  %v1997_v61 = vsub.s32 4, %v13620_v34 }
 0x22f   :  { %v2251_v23 = vor.u32 %v2250_v11, %v2249_v37  ;;  %vm2255_vm1 = vcmp.lt.s32.totalorder %v2233_v31, 4  ;;  %vm2252_vm3 = vcmp.lt.s32.totalorder %v2233_v31, 1  ;;  %vm13656_vm4 = vcmp.le.f32.partialorder %v1911_v4, 0.7853982 }
 0x230   :  { %v11094_v21 = vmin.u32 %v1977_v35, %v13633_v6  ;;  %v2099_v8 = vsel %vm2016_vm2, %v2098_v22, %v2097_v54  ;;  %v2257_v12 = vsel %vm2255_vm1, %v2245_v57, 2102212464  ;;  %vm2253_vm2 = vcmp.lt.s32.totalorder %v2233_v31, 2 }
 0x231   :  { %v2102_v45 = vsel %vm13551_vm5, %v13337_v51, %v2099_v8  ;;  %vm2254_vm6 = vcmp.lt.s32.totalorder %v2233_v31, 3  ;;  %v2260_v55 = vsel %vm2252_vm3, %v2239_v50, %v2242_v48  ;;  %v2256_v10 = vsel %vm2252_vm3, %v2236_v27, %v2239_v50 }
 0x232   :  { %v1979_v36 = vclz %v11094_v21  ;;  %11705 = vcosq.f32 %v2102_v45  ;;  %v2261_v30 = vsel %vm2255_vm1, %v2248_v46, 920167782  ;;  %v2258_v20 = vsel %vm2254_vm6, %v2242_v48, %v2257_v12 }
 0x233   :  { %11707 = vsinq.f32 %v2102_v45  ;;  %v2262_v32 = vsel %vm2254_vm6, %v2245_v57, %v2261_v30  ;;  %v2264_v18 = vsel %vm2252_vm3, %v2242_v48, %v2245_v57  ;;  %v2265_v63 = vsel %vm2255_vm1, %v2251_v23, 1326507024 }
 0x234   :  { %v11095_v5 = vadd.s32 4294967294, %v1979_v36  ;;  %v2263_v43 = vsel %vm2253_vm2, %v2260_v55, %v2262_v32  ;;  %v2266_v4 = vsel %vm2254_vm6, %v2248_v46, %v2265_v63  ;;  %v11101_v49 = vadd.s32 4294967169, %v2121_v33 }
 0x235   :  { %v2267_v3 = vsel %vm2253_vm2, %v2264_v18, %v2266_v4  ;;  %v13665_v17 = vmul.u32.u64.low %v13628_v59, %v2263_v43  ;;  %v13666_v13 = vmul.u32.u64.high %v13628_v59, %v2263_v43, %v13665_v17  ;;  %v1967_v24 = vadd.s32 %v13569_v42, %v13583_v47  ;;  %v261_v18 = vpop.permute.xlu1 %260 }
 0x236   :  { %vm11096_vm5 = vcmp.lt.s32.totalorder %v11095_v5, 0  ;;  %v2127_v58 = vadd.s32 1, %v11101_v49  ;;  %vm2108_vm7 = vcmp.lt.s32.totalorder %v13622_v53, 2  ;;  %v1998_v28 = vsel %vm1913_vm0, %v1997_v61, %v13620_v34 }
 0x237   :  { %v1982_v7 = vsel %vm11096_vm5, 0, %v11095_v5  ;;  %v2259_v16 = vsel %vm2253_vm2, %v2256_v10, %v2258_v20  ;;  %v13677_v54 = vmul.u32.u64.low %v13628_v59, %v2267_v3  ;;  %v13678_v38 = vmul.u32.u64.high %v13628_v59, %v2267_v3, %v13677_v54 }
 0x238   :  { %v1983_v19 = vsub.s32 32, %v1982_v7  ;;  %v1987_v1 = vsub.s32 4294967266, %v1982_v7  ;;  %vm2106_vm8 = vweird.f32 %v13337_v51  ;;  %v1984_v14 = vshll.u32 %v13633_v6, %v1982_v7 }
 0x239   :  { %vm2128_vm9 = vcmp.gt.s32.totalorder %v2127_v58, 0  ;;  %vm2109_vm10 = vcmp.eq.s32.totalorder %v13622_v53, 0  ;;  %vm2112_vm11 = vcmp.eq.s32.totalorder %v13622_v53, 2  ;;  %v2278_v11 = vadd.s32 1, %v13666_v13 }
 0x23a   :  { %v1985_v42 = vshrl.u32 %v1967_v24, %v1983_v19  ;;  %v1988_v47 = vadd.s32 127, %v1987_v1  ;;  %v2129_v34 = vsel %vm2128_vm9, %v2127_v58, 0  ;;  %v2000_v57 = vsel %vm13656_vm4, 0, %v1998_v28 }
 0x23b   :  { %v2131_v15 = vand.u32 31, %v2129_v34  ;;  %vm7275_vm12 = vcmp.eq.s32.totalorder %v13624_v52, 0  ;;  %vm7278_vm13 = vcmp.eq.s32.totalorder %v13624_v52, 2  ;;  %v2275_v6 = vmul.u32 %v13628_v59, %v2259_v16 }
 0x23c   :  { %v1986_v31 = vor.u32 %v1985_v42, %v1984_v14  ;;  %v1989_v35 = vshll.u32 %v1988_v47, 23  ;;  %v11706_v22 = vpop.eup %11705  ;;  %vm2277_vm14 = vc.u32 %v13678_v38, %v13665_v17  ;;  %v2124_v27 = vand.u32 8388607, %v2117_v39 }
 0x23d   :  { %v11708_v50 = vpop.eup %11707  ;;  %v2113_v48 = vxor.u32 2147483648, %v11706_v22  ;;  %v2279_v21 = vsel %vm2277_vm14, %v2278_v11, %v13666_v13  ;;  %v7168_v8 = vadd.s32 3, %v2000_v57  ;;  %v2132_v36 = vsub.s32 32, %v2131_v15 }
 0x23e   :  { %v1990_v37 = vor.u32 4788187, %v1989_v35  ;;  %v2110_v46 = vxor.u32 2147483648, %v11708_v50  ;;  %v1993_v33 = vcvt.s32.f32 %v1986_v31  ;;  %v2280_v61 = vadd.s32 %v2279_v21, %v2275_v6 }
 0x23f   :  { %v2114_v23 = vsel %vm2112_vm11, %v2113_v48, %v11708_v50  ;;  %v7280_v45 = vsel %vm7278_vm13, %v2113_v48, %v11708_v50  ;;  %vm7274_vm15 = vcmp.lt.s32.totalorder %v13624_v52, 2  ;;  %v2125_v32 = vor.u32 8388608, %v2124_v27 }
 0x240   :  { %v1991_v59 = vand.u32 2147483647, %v1990_v37  ;;  %v2111_v12 = vsel %vm2109_vm10, %v11706_v22, %v2110_v46  ;;  %v7277_v55 = vsel %vm7275_vm12, %v11706_v22, %v2110_v46  ;;  %v2281_v5 = vadd.s32 536870912, %v2280_v61 }
 0x241   :  { %v2115_v10 = vsel %vm2108_vm7, %v2111_v12, %v2114_v23  ;;  %v7281_v30 = vsel %vm7274_vm15, %v7277_v55, %v7280_v45  ;;  %v13708_v4 = vand.u32 3, %v2000_v57  ;;  %v13712_v52 = vand.u32 3, %v7168_v8 }
 0x242   :  { %v1994_v20 = vmul.f32 %v1993_v33, %v1991_v59  ;;  %v2116_v63 = vsel %vm2106_vm8, nan, %v2115_v10  ;;  %v7282_v43 = vsel %vm2106_vm8, nan, %v7281_v30  ;;  %v13710_v49 = vshrl.u32 %v2281_v5, 30 }
 0x243   :  { %10834 = vst [vmem:[#allocation2 + $0xf0] sm:$0xff] %v2116_v63  ;;  %10884 = vst [vmem:[#allocation2 + $0xf8] sm:$0xff] %v2116_v63  ;;  %v2135_v7 = vshrl.u32 %v11884_v60, %v2132_v36  ;;  %v2138_v3 = vshrl.u32 %v11885_v62, %v2132_v36  ;;  %v13717_v24 = vshrl.u32 %v2129_v34, 5  ;;  %v2134_v51 = vshll.u32 %v11883_v56, %v2131_v15 }
 0x244   :  { %10935 = vst [vmem:[#allocation2 + $0x410] sm:$0xff] %v7282_v43  ;;  %10985 = vst [vmem:[#allocation2 + $0x418] sm:$0xff] %v7282_v43  ;;  %v1995_v53 = vxor.u32 2147483648, %v1994_v20  ;;  %v2283_v13 = vshll.u32 %v13710_v49, 30  ;;  %v13721_v19 = vmul.f32 %v13615_v44, %v261_v18  ;;  %v2137_v58 = vshll.u32 %v11884_v60, %v2131_v15 }
 0x245   :  { %v2141_v28 = vshrl.u32 %v11886_v0, %v2132_v36  ;;  %v2144_v16 = vshrl.u32 %v11887_v2, %v2132_v36  ;;  %v2143_v42 = vshll.u32 %v11886_v0, %v2131_v15  ;;  %v2147_v47 = vshrl.u32 %v11888_v9, %v2132_v36 }
 0x246   :  { %v1996_v1 = vsel %vm1913_vm0, %v1995_v53, %v1994_v20  ;;  %v13731_v14 = vsub.s32 %v2280_v61, %v2283_v13  ;;  %v2136_v11 = vor.u32 %v2135_v7, %v2134_v51  ;;  %v2139_v34 = vor.u32 %v2138_v3, %v2137_v58 }
 0x247   :  { %v1999_v54 = vsel %vm13656_vm4, %v13409_v25, %v1996_v1  ;;  %v2140_v31 = vshll.u32 %v11885_v62, %v2131_v15  ;;  %v2145_v57 = vor.u32 %v2144_v16, %v2143_v42  ;;  %v2146_v22 = vshll.u32 %v11887_v2, %v2131_v15 }
 0x248   :  { %11709 = vcosq.f32 %v1999_v54  ;;  %v2286_v35 = vsub.s32 0, %v13731_v14  ;;  %vm2222_vm0 = vcmp.lt.s32.totalorder %v13509_v41, 0  ;;  %v13740_v48 = vshll.u32 %v2125_v32, 8 }
 0x249   :  { %11711 = vsinq.f32 %v1999_v54  ;;  %v2142_v6 = vor.u32 %v2141_v28, %v2140_v31  ;;  %v2148_v50 = vor.u32 %v2147_v47, %v2146_v22  ;;  %v2426_v37 = vand.u32 2147483647, %v13721_v19 }
 0x24a   :  { %v11106_v29 = vmin.u32 %v2286_v35, %v13731_v14  ;;  %vm2009_vm1 = vcmp.eq.s32.totalorder %v13708_v4, 2  ;;  %vm7174_vm3 = vcmp.eq.s32.totalorder %v13712_v52, 2  ;;  %v2276_v21 = vadd.s32 %v13665_v17, %v13678_v38 }
 0x24b   :  { %vm2149_vm4 = vcmp.lt.s32.totalorder %v13717_v24, 1  ;;  %vm2152_vm2 = vcmp.lt.s32.totalorder %v13717_v24, 4  ;;  %v2429_v15 = vand.u32 2139095040, %v13721_v19  ;;  %vm2006_vm6 = vcmp.eq.s32.totalorder %v13708_v4, 0 }
 0x24c   :  { %vm7171_vm5 = vcmp.eq.s32.totalorder %v13712_v52, 0  ;;  %v2288_v27 = vclz %v11106_v29  ;;  %v2133_v46 = vshrl.u32 %v11883_v56, %v2132_v36  ;;  %v2157_v33 = vsel %vm2149_vm4, %v2136_v11, %v2139_v34 }
 0x24d   :  { %v2158_v8 = vsel %vm2152_vm2, %v2145_v57, 920167782  ;;  %vm2005_vm7 = vcmp.lt.s32.totalorder %v13708_v4, 2  ;;  %vm7170_vm8 = vcmp.lt.s32.totalorder %v13712_v52, 2  ;;  %v2306_v17 = vsub.s32 4, %v13710_v49 }
 0x24e   :  { %vm2150_vm9 = vcmp.lt.s32.totalorder %v13717_v24, 2  ;;  %vm2151_vm10 = vcmp.lt.s32.totalorder %v13717_v24, 3  ;;  %v2161_v38 = vsel %vm2149_vm4, %v2139_v34, %v2142_v6  ;;  %vm2003_vm11 = vweird.f32 %v13409_v25 }
 0x24f   :  { %v11107_v61 = vadd.s32 4294967294, %v2288_v27  ;;  %v2153_v23 = vsel %vm2149_vm4, %v2133_v46, %v2136_v11  ;;  %v2159_v45 = vsel %vm2151_vm10, %v2142_v6, %v2158_v8  ;;  %v2162_v59 = vsel %vm2152_vm2, %v2148_v50, 1326507024 }
 0x250   :  { %v2154_v36 = vsel %vm2152_vm2, %v2142_v6, 2102212464  ;;  %v2160_v12 = vsel %vm2150_vm9, %v2157_v33, %v2159_v45  ;;  %v2163_v55 = vsel %vm2151_vm10, %v2145_v57, %v2162_v59  ;;  %v2430_v5 = vshrl.u32 %v2429_v15, 23 }
 0x251   :  { %vm13779_vm12 = vcmp.le.f32.partialorder %v2220_v26, 0.7853982  ;;  %vm11108_vm13 = vcmp.lt.s32.totalorder %v11107_v61, 0  ;;  %v2164_v30 = vsel %vm2150_vm9, %v2161_v38, %v2163_v55  ;;  %v2155_v1 = vsel %vm2151_vm10, %v2139_v34, %v2154_v36 }
 0x252   :  { %v13786_v20 = vmul.u32.u64.low %v13740_v48, %v2160_v12  ;;  %v13787_v32 = vmul.u32.u64.high %v13740_v48, %v2160_v12, %v13786_v20  ;;  %v11710_v18 = vpop.eup %11709  ;;  %v2291_v63 = vsel %vm11108_vm13, 0, %v11107_v61  ;;  %v11113_v7 = vadd.s32 4294967169, %v2430_v5 }
 0x253   :  { %v13791_v43 = vmul.u32.u64.low %v13740_v48, %v2164_v30  ;;  %v13792_v53 = vmul.u32.u64.high %v13740_v48, %v2164_v30, %v13791_v43  ;;  %v11712_v26 = vpop.eup %11711  ;;  %v2010_v3 = vxor.u32 2147483648, %v11710_v18  ;;  %v2292_v13 = vsub.s32 32, %v2291_v63 }
 0x254   :  { %v2296_v51 = vsub.s32 4294967266, %v2291_v63  ;;  %v2007_v58 = vxor.u32 2147483648, %v11712_v26  ;;  %v2293_v28 = vshll.u32 %v13731_v14, %v2291_v63  ;;  %v2307_v16 = vsel %vm2222_vm0, %v2306_v17, %v13710_v49 }
 0x255   :  { %v2436_v54 = vadd.s32 1, %v11113_v7  ;;  %v2011_v42 = vsel %vm2009_vm1, %v2010_v3, %v11712_v26  ;;  %v7176_v47 = vsel %vm7174_vm3, %v2010_v3, %v11712_v26  ;;  %v2294_v11 = vshrl.u32 %v2276_v21, %v2292_v13  ;;  %v256_v3 = vpop.permute.xlu0 %255 }
 0x256   :  { %v2297_v31 = vadd.s32 127, %v2296_v51  ;;  %v2008_v35 = vsel %vm2006_vm6, %v11710_v18, %v2007_v58  ;;  %v7173_v34 = vsel %vm7171_vm5, %v11710_v18, %v2007_v58  ;;  %v2156_v14 = vsel %vm2150_vm9, %v2153_v23, %v2155_v1 }
 0x257   :  { %vm2174_vm14 = vc.u32 %v13792_v53, %v13786_v20  ;;  %v2012_v49 = vsel %vm2005_vm7, %v2008_v35, %v2011_v42  ;;  %v7177_v57 = vsel %vm7170_vm8, %v7173_v34, %v7176_v47  ;;  %v2295_v22 = vor.u32 %v2294_v11, %v2293_v28 }
 0x258   :  { %v2298_v6 = vshll.u32 %v2297_v31, 23  ;;  %v2013_v29 = vsel %vm2003_vm11, nan, %v2012_v49  ;;  %v7178_v50 = vsel %vm2003_vm11, nan, %v7177_v57  ;;  %v2175_v24 = vadd.s32 1, %v13787_v32 }
 0x259   :  { %vm2437_vm15 = vcmp.gt.s32.totalorder %v2436_v54, 0  ;;  %10833 = vst [vmem:[#allocation2 + $0xe0] sm:$0xff] %v2013_v29  ;;  %10883 = vst [vmem:[#allocation2 + $0xe8] sm:$0xff] %v2013_v29  ;;  %v2172_v21 = vmul.u32 %v13740_v48, %v2156_v14  ;;  %v2433_v52 = vand.u32 8388607, %v2426_v37  ;;  %v2309_v27 = vsel %vm13779_vm12, 0, %v2307_v16 }
 0x25a   :  { %10934 = vst [vmem:[#allocation2 + $0x400] sm:$0xff] %v7178_v50  ;;  %10984 = vst [vmem:[#allocation2 + $0x408] sm:$0xff] %v7178_v50  ;;  %v2299_v4 = vor.u32 4788187, %v2298_v6  ;;  %v2438_v15 = vsel %vm2437_vm15, %v2436_v54, 0  ;;  %v2176_v25 = vsel %vm2174_vm14, %v2175_v24, %v13787_v32  ;;  %v2302_v8 = vcvt.s32.f32 %v2295_v22 }
 0x25b   :  { %v2440_v46 = vand.u32 31, %v2438_v15  ;;  %v2177_v17 = vadd.s32 %v2176_v25, %v2172_v21  ;;  %v7480_v23 = vadd.s32 3, %v2309_v27  ;;  %v2434_v45 = vor.u32 8388608, %v2433_v52 }
 0x25c   :  { %v2300_v33 = vand.u32 2147483647, %v2299_v4  ;;  %v13830_v59 = vshrl.u32 %v2438_v15, 5  ;;  %vm2119_vm1 = vcmp.lt.s32.totalorder %v13618_v40, 0  ;;  %v13848_v47 = vand.u32 3, %v2309_v27 }
 0x25d   :  { %v2441_v38 = vsub.s32 32, %v2440_v46  ;;  %v2178_v48 = vadd.s32 536870912, %v2177_v17  ;;  %v2443_v32 = vshll.u32 %v11883_v56, %v2440_v46  ;;  %v2446_v63 = vshll.u32 %v11884_v60, %v2440_v46 }
 0x25e   :  { %v2303_v61 = vmul.f32 %v2302_v8, %v2300_v33  ;;  %v2449_v43 = vshll.u32 %v11885_v62, %v2440_v46  ;;  %v2452_v7 = vshll.u32 %v11886_v0, %v2440_v46  ;;  %v2455_v58 = vshll.u32 %v11887_v2, %v2440_v46 }
 0x25f   :  { %v2444_v36 = vshrl.u32 %v11884_v60, %v2441_v38  ;;  %v2447_v12 = vshrl.u32 %v11885_v62, %v2441_v38  ;;  %v2450_v55 = vshrl.u32 %v11886_v0, %v2441_v38  ;;  %v2179_v30 = vshrl.u32 %v2178_v48, 30 }
 0x260   :  { %v2304_v5 = vxor.u32 2147483648, %v2303_v61  ;;  %v2453_v18 = vshrl.u32 %v11887_v2, %v2441_v38  ;;  %v2456_v26 = vshrl.u32 %v11888_v9, %v2441_v38  ;;  %v13853_v31 = vmul.f32 %v13615_v44, %v256_v3 }
 0x261   :  { %v2180_v51 = vshll.u32 %v2179_v30, 30  ;;  %v2445_v1 = vor.u32 %v2444_v36, %v2443_v32  ;;  %v2448_v16 = vor.u32 %v2447_v12, %v2446_v63  ;;  %v2451_v54 = vor.u32 %v2450_v55, %v2449_v43 }
 0x262   :  { %v2305_v13 = vsel %vm2222_vm0, %v2304_v5, %v2303_v61  ;;  %v2454_v42 = vor.u32 %v2453_v18, %v2452_v7  ;;  %v13855_v35 = vand.u32 3, %v7480_v23  ;;  %v2457_v34 = vor.u32 %v2456_v26, %v2455_v58 }
 0x263   :  { %v2308_v28 = vsel %vm13779_vm12, %v13509_v41, %v2305_v13  ;;  %v13850_v11 = vsub.s32 %v2177_v17, %v2180_v51  ;;  %v13857_v14 = vshll.u32 %v2434_v45, 8  ;;  %vm13861_vm0 = vcmp.le.f32.partialorder %v2117_v39, 0.7853982 }
 0x264   :  { %11713 = vcosq.f32 %v2308_v28  ;;  %v2442_v57 = vshrl.u32 %v11883_v56, %v2441_v38  ;;  %vm2458_vm3 = vcmp.lt.s32.totalorder %v13830_v59, 1  ;;  %vm2461_vm4 = vcmp.lt.s32.totalorder %v13830_v59, 4 }
 0x265   :  { %11715 = vsinq.f32 %v2308_v28  ;;  %v2183_v49 = vsub.s32 0, %v13850_v11  ;;  %v2203_v22 = vsub.s32 4, %v2179_v30  ;;  %v2463_v6 = vsel %vm2461_vm4, %v2451_v54, 2102212464 }
 0x266   :  { %v2466_v29 = vsel %vm2458_vm3, %v2445_v1, %v2448_v16  ;;  %v2467_v50 = vsel %vm2461_vm4, %v2454_v42, 920167782  ;;  %vm2460_vm2 = vcmp.lt.s32.totalorder %v13830_v59, 3  ;;  %v2470_v39 = vsel %vm2458_vm3, %v2448_v16, %v2451_v54 }
 0x267   :  { %v11102_v24 = vmin.u32 %v2183_v49, %v13850_v11  ;;  %v2326_v4 = vand.u32 2139095040, %v13853_v31  ;;  %vm2315_vm6 = vcmp.eq.s32.totalorder %v13848_v47, 0  ;;  %vm2459_vm5 = vcmp.lt.s32.totalorder %v13830_v59, 2 }
 0x268   :  { %v2462_v21 = vsel %vm2458_vm3, %v2442_v57, %v2445_v1  ;;  %v2468_v52 = vsel %vm2460_vm2, %v2451_v54, %v2467_v50  ;;  %v2471_v15 = vsel %vm2461_vm4, %v2457_v34, 1326507024  ;;  %vm2314_vm7 = vcmp.lt.s32.totalorder %v13848_v47, 2 }
 0x269   :  { %v2185_v27 = vclz %v11102_v24  ;;  %v2464_v25 = vsel %vm2460_vm2, %v2448_v16, %v2463_v6  ;;  %v2469_v46 = vsel %vm2459_vm5, %v2466_v29, %v2468_v52  ;;  %v2472_v33 = vsel %vm2460_vm2, %v2454_v42, %v2471_v15  ;;  %v271_v52 = vpop.permute.xlu1 %270 }
 0x26a   :  { %vm2312_vm8 = vweird.f32 %v13509_v41  ;;  %vm2318_vm9 = vcmp.eq.s32.totalorder %v13848_v47, 2  ;;  %vm7482_vm10 = vcmp.lt.s32.totalorder %v13855_v35, 2  ;;  %v2204_v8 = vsel %vm2119_vm1, %v2203_v22, %v2179_v30 }
 0x26b   :  { %v2473_v17 = vsel %vm2459_vm5, %v2470_v39, %v2472_v33  ;;  %v11103_v38 = vadd.s32 4294967294, %v2185_v27  ;;  %v2327_v48 = vshrl.u32 %v2326_v4, 23  ;;  %vm7483_vm11 = vcmp.eq.s32.totalorder %v13855_v35, 0 }
 0x26c   :  { %v13885_v61 = vmul.u32.u64.low %v13857_v14, %v2473_v17  ;;  %v13886_v23 = vmul.u32.u64.high %v13857_v14, %v2473_v17, %v13885_v61  ;;  %v2465_v45 = vsel %vm2459_vm5, %v2462_v21, %v2464_v25  ;;  %vm7486_vm12 = vcmp.eq.s32.totalorder %v13855_v35, 2 }
 0x26d   :  { %v13892_v36 = vmul.u32.u64.low %v13857_v14, %v2469_v46  ;;  %v13893_v12 = vmul.u32.u64.high %v13857_v14, %v2469_v46, %v13892_v36  ;;  %v2173_v5 = vadd.s32 %v13786_v20, %v13792_v53  ;;  %vm11104_vm13 = vcmp.lt.s32.totalorder %v11103_v38, 0 }
 0x26e   :  { %v11714_v55 = vpop.eup %11713  ;;  %v2323_v30 = vand.u32 2147483647, %v13853_v31  ;;  %v2188_v63 = vsel %vm11104_vm13, 0, %v11103_v38  ;;  %v2206_v59 = vsel %vm13861_vm0, 0, %v2204_v8  ;;  %v11109_v43 = vadd.s32 4294967169, %v2327_v48 }
 0x26f   :  { %v11716_v32 = vpop.eup %11715  ;;  %v2319_v18 = vxor.u32 2147483648, %v11714_v55  ;;  %v2189_v26 = vsub.s32 32, %v2188_v63  ;;  %v2193_v3 = vsub.s32 4294967266, %v2188_v63  ;;  %v2481_v13 = vmul.u32 %v13857_v14, %v2465_v45 }
 0x270   :  { %v2316_v7 = vxor.u32 2147483648, %v11716_v32  ;;  %v2190_v53 = vshll.u32 %v13850_v11, %v2188_v63  ;;  %vm2483_vm14 = vc.u32 %v13886_v23, %v13892_v36  ;;  %v2484_v34 = vadd.s32 1, %v13893_v12 }
 0x271   :  { %v2320_v51 = vsel %vm2318_vm9, %v2319_v18, %v11716_v32  ;;  %v7488_v20 = vsel %vm7486_vm12, %v2319_v18, %v11716_v32  ;;  %v2191_v28 = vshrl.u32 %v2173_v5, %v2189_v26  ;;  %v2194_v16 = vadd.s32 127, %v2193_v3 }
 0x272   :  { %v2317_v1 = vsel %vm2315_vm6, %v11714_v55, %v2316_v7  ;;  %v7485_v58 = vsel %vm7483_vm11, %v11714_v55, %v2316_v7  ;;  %v2333_v11 = vadd.s32 1, %v11109_v43  ;;  %v2485_v47 = vsel %vm2483_vm14, %v2484_v34, %v13893_v12 }
 0x273   :  { %v2321_v54 = vsel %vm2314_vm7, %v2317_v1, %v2320_v51  ;;  %v7489_v42 = vsel %vm7482_vm10, %v7485_v58, %v7488_v20  ;;  %v2192_v57 = vor.u32 %v2191_v28, %v2190_v53  ;;  %v2195_v22 = vshll.u32 %v2194_v16, 23 }
 0x274   :  { %v2322_v14 = vsel %vm2312_vm8, nan, %v2321_v54  ;;  %v7490_v49 = vsel %vm2312_vm8, nan, %v7489_v42  ;;  %vm2334_vm15 = vcmp.gt.s32.totalorder %v2333_v11, 0  ;;  %v7376_v6 = vadd.s32 3, %v2206_v59 }
 0x275   :  { %10836 = vst [vmem:[#allocation2 + $0x110] sm:$0xff] %v2322_v14  ;;  %10886 = vst [vmem:[#allocation2 + $0x118] sm:$0xff] %v2322_v14  ;;  %v2196_v35 = vor.u32 4788187, %v2195_v22  ;;  %v2486_v29 = vadd.s32 %v2485_v47, %v2481_v13  ;;  %v2335_v50 = vsel %vm2334_vm15, %v2333_v11, 0  ;;  %v2199_v4 = vcvt.s32.f32 %v2192_v57 }
 0x276   :  { %10937 = vst [vmem:[#allocation2 + $0x430] sm:$0xff] %v7490_v49  ;;  %10987 = vst [vmem:[#allocation2 + $0x438] sm:$0xff] %v7490_v49  ;;  %v2330_v41 = vand.u32 8388607, %v2323_v30  ;;  %v2337_v24 = vand.u32 31, %v2335_v50  ;;  %v13929_v25 = vand.u32 3, %v2206_v59  ;;  %v13936_v61 = vmul.f32 %v13615_v44, %v271_v52 }
 0x277   :  { %v2197_v39 = vand.u32 2147483647, %v2196_v35  ;;  %v2487_v21 = vadd.s32 536870912, %v2486_v29  ;;  %v13931_v46 = vand.u32 3, %v7376_v6  ;;  %v2336_v5 = vshrl.u32 %v2335_v50, 5 }
 0x278   :  { %v2338_v15 = vsub.s32 32, %v2337_v24  ;;  %v2331_v8 = vor.u32 8388608, %v2330_v41  ;;  %v2340_v32 = vshll.u32 %v11883_v56, %v2337_v24  ;;  %v2343_v18 = vshll.u32 %v11884_v60, %v2337_v24 }
 0x279   :  { %v2200_v27 = vmul.f32 %v2199_v4, %v2197_v39  ;;  %v2488_v33 = vshrl.u32 %v2487_v21, 30  ;;  %v2346_v63 = vshll.u32 %v11885_v62, %v2337_v24  ;;  %v2349_v7 = vshll.u32 %v11886_v0, %v2337_v24 }
 0x27a   :  { %v2341_v17 = vshrl.u32 %v11884_v60, %v2338_v15  ;;  %v2344_v38 = vshrl.u32 %v11885_v62, %v2338_v15  ;;  %v2347_v12 = vshrl.u32 %v11886_v0, %v2338_v15  ;;  %v2350_v55 = vshrl.u32 %v11887_v2, %v2338_v15 }
 0x27b   :  { %v2201_v48 = vxor.u32 2147483648, %v2200_v27  ;;  %v2489_v45 = vshll.u32 %v2488_v33, 30  ;;  %v2353_v26 = vshrl.u32 %v11888_v9, %v2338_v15  ;;  %v2352_v20 = vshll.u32 %v11887_v2, %v2337_v24 }
 0x27c   :  { %v2342_v13 = vor.u32 %v2341_v17, %v2340_v32  ;;  %v2345_v51 = vor.u32 %v2344_v38, %v2343_v18  ;;  %v2348_v1 = vor.u32 %v2347_v12, %v2346_v63  ;;  %v2351_v58 = vor.u32 %v2350_v55, %v2349_v7 }
 0x27d   :  { %v2202_v59 = vsel %vm2119_vm1, %v2201_v48, %v2200_v27  ;;  %v13945_v43 = vsub.s32 %v2486_v29, %v2489_v45  ;;  %vm2428_vm1 = vcmp.lt.s32.totalorder %v13721_v19, 0  ;;  %v2512_v28 = vsub.s32 4, %v2488_v33 }
 0x27e   :  { %v2205_v3 = vsel %vm13861_vm0, %v13618_v40, %v2202_v59  ;;  %vm13957_vm3 = vcmp.le.f32.partialorder %v2426_v37, 0.7853982  ;;  %v2482_v10 = vadd.s32 %v13892_v36, %v13886_v23  ;;  %v2354_v42 = vor.u32 %v2353_v26, %v2352_v20 }
 0x27f   :  { %11717 = vcosq.f32 %v2205_v3  ;;  %v2492_v53 = vsub.s32 0, %v13945_v43  ;;  %v13964_v34 = vshll.u32 %v2331_v8, 8  ;;  %v2339_v11 = vshrl.u32 %v11883_v56, %v2338_v15 }
 0x280   :  { %11719 = vsinq.f32 %v2205_v3  ;;  %vm2355_vm0 = vcmp.lt.s32.totalorder %v2336_v5, 1  ;;  %vm2358_vm4 = vcmp.lt.s32.totalorder %v2336_v5, 4  ;;  %v2635_v14 = vand.u32 2139095040, %v13936_v61 }
 0x281   :  { %v11114_v54 = vmin.u32 %v2492_v53, %v13945_v43  ;;  %vm2215_vm2 = vcmp.eq.s32.totalorder %v13929_v25, 2  ;;  %vm7382_vm6 = vcmp.eq.s32.totalorder %v13931_v46, 2  ;;  %v2360_v49 = vsel %vm2358_vm4, %v2348_v1, 2102212464 }
 0x282   :  { %v2363_v23 = vsel %vm2355_vm0, %v2342_v13, %v2345_v51  ;;  %v2364_v36 = vsel %vm2358_vm4, %v2351_v58, 920167782  ;;  %vm2212_vm5 = vcmp.eq.s32.totalorder %v13929_v25, 0  ;;  %vm7379_vm7 = vcmp.eq.s32.totalorder %v13931_v46, 0 }
 0x283   :  { %v2494_v37 = vclz %v11114_v54  ;;  %v2513_v57 = vsel %vm2428_vm1, %v2512_v28, %v2488_v33  ;;  %vm2356_vm8 = vcmp.lt.s32.totalorder %v2336_v5, 2  ;;  %vm2357_vm9 = vcmp.lt.s32.totalorder %v2336_v5, 3 }
 0x284   :  { %v2367_v22 = vsel %vm2355_vm0, %v2345_v51, %v2348_v1  ;;  %vm2211_vm10 = vcmp.lt.s32.totalorder %v13929_v25, 2  ;;  %vm7378_vm11 = vcmp.lt.s32.totalorder %v13931_v46, 2  ;;  %v2359_v35 = vsel %vm2355_vm0, %v2339_v11, %v2342_v13 }
 0x285   :  { %v11115_v47 = vadd.s32 4294967294, %v2494_v37  ;;  %v2365_v6 = vsel %vm2357_vm9, %v2348_v1, %v2364_v36  ;;  %v2368_v29 = vsel %vm2358_vm4, %v2354_v42, 1326507024  ;;  %vm2209_vm12 = vweird.f32 %v13618_v40 }
 0x286   :  { %v2361_v50 = vsel %vm2357_vm9, %v2345_v51, %v2360_v49  ;;  %v2366_v41 = vsel %vm2356_vm8, %v2363_v23, %v2365_v6  ;;  %v2369_v24 = vsel %vm2357_vm9, %v2351_v58, %v2368_v29  ;;  %v2636_v39 = vshrl.u32 %v2635_v14, 23 }
 0x287   :  { %vm11116_vm13 = vcmp.lt.s32.totalorder %v11115_v47, 0  ;;  %v2370_v4 = vsel %vm2356_vm8, %v2367_v22, %v2369_v24  ;;  %v13986_v21 = vmul.u32.u64.low %v13964_v34, %v2366_v41  ;;  %v13987_v52 = vmul.u32.u64.high %v13964_v34, %v2366_v41, %v13986_v21 }
 0x288   :  { %v2497_v15 = vsel %vm11116_vm13, 0, %v11115_v47  ;;  %v13991_v27 = vmul.u32.u64.low %v13964_v34, %v2370_v4  ;;  %v13992_v33 = vmul.u32.u64.high %v13964_v34, %v2370_v4, %v13991_v27  ;;  %v11121_v8 = vadd.s32 4294967169, %v2636_v39 }
 0x289   :  { %v11718_v17 = vpop.eup %11717  ;;  %v2498_v38 = vsub.s32 32, %v2497_v15  ;;  %v2502_v48 = vsub.s32 4294967266, %v2497_v15  ;;  %v2362_v45 = vsel %vm2356_vm8, %v2359_v35, %v2361_v50  ;;  %v2632_v12 = vand.u32 2147483647, %v13936_v61 }
 0x28a   :  { %v11720_v55 = vpop.eup %11719  ;;  %v2216_v32 = vxor.u32 2147483648, %v11718_v17  ;;  %v2499_v18 = vshll.u32 %v13945_v43, %v2497_v15  ;;  %v2515_v63 = vsel %vm13957_vm3, 0, %v2513_v57  ;;  %v2642_v59 = vadd.s32 1, %v11121_v8  ;;  %v266_v57 = vpop.permute.xlu0 %265 }
 0x28b   :  { %v2213_v7 = vxor.u32 2147483648, %v11720_v55  ;;  %v2500_v26 = vshrl.u32 %v2482_v10, %v2498_v38  ;;  %v2503_v3 = vadd.s32 127, %v2502_v48  ;;  %v2381_v13 = vadd.s32 1, %v13987_v52 }
 0x28c   :  { %v2217_v51 = vsel %vm2215_vm2, %v2216_v32, %v11720_v55  ;;  %v7384_v5 = vsel %vm7382_vm6, %v2216_v32, %v11720_v55  ;;  %v2378_v20 = vmul.u32 %v13964_v34, %v2362_v45  ;;  %vm2380_vm14 = vc.u32 %v13992_v33, %v13986_v21 }
 0x28d   :  { %v2214_v43 = vsel %vm2212_vm5, %v11718_v17, %v2213_v7  ;;  %v7381_v53 = vsel %vm7379_vm7, %v11718_v17, %v2213_v7  ;;  %v2501_v1 = vor.u32 %v2500_v26, %v2499_v18  ;;  %v2504_v58 = vshll.u32 %v2503_v3, 23 }
 0x28e   :  { %v2218_v28 = vsel %vm2211_vm10, %v2214_v43, %v2217_v51  ;;  %v7385_v10 = vsel %vm7378_vm11, %v7381_v53, %v7384_v5  ;;  %v2382_v54 = vsel %vm2380_vm14, %v2381_v13, %v13987_v52  ;;  %vm2643_vm15 = vcmp.gt.s32.totalorder %v2642_v59, 0 }
 0x28f   :  { %v2219_v42 = vsel %vm2209_vm12, nan, %v2218_v28  ;;  %v7386_v34 = vsel %vm2209_vm12, nan, %v7385_v10  ;;  %v2505_v11 = vor.u32 4788187, %v2504_v58  ;;  %v2383_v14 = vadd.s32 %v2382_v54, %v2378_v20 }
 0x290   :  { %10835 = vst [vmem:[#allocation2 + $0x100] sm:$0xff] %v2219_v42  ;;  %10885 = vst [vmem:[#allocation2 + $0x108] sm:$0xff] %v2219_v42  ;;  %v2639_v25 = vand.u32 8388607, %v2632_v12  ;;  %v2644_v46 = vsel %vm2643_vm15, %v2642_v59, 0  ;;  %v2508_v49 = vcvt.s32.f32 %v2501_v1  ;;  %v7688_v23 = vadd.s32 3, %v2515_v63 }
 0x291   :  { %10936 = vst [vmem:[#allocation2 + $0x420] sm:$0xff] %v7386_v34  ;;  %10986 = vst [vmem:[#allocation2 + $0x428] sm:$0xff] %v7386_v34  ;;  %v2506_v37 = vand.u32 2147483647, %v2505_v11  ;;  %v2646_v36 = vand.u32 31, %v2644_v46  ;;  %v2384_v22 = vadd.s32 536870912, %v2383_v14  ;;  %v14027_v29 = vmul.f32 %v13615_v44, %v266_v57 }
 0x292   :  { %v14022_v40 = vand.u32 3, %v2515_v63  ;;  %v14029_v41 = vand.u32 3, %v7688_v23  ;;  %v2640_v24 = vor.u32 8388608, %v2639_v25  ;;  %v14033_v52 = vshrl.u32 %v2644_v46, 5 }
 0x293   :  { %v2509_v47 = vmul.f32 %v2508_v49, %v2506_v37  ;;  %v2647_v35 = vsub.s32 32, %v2646_v36  ;;  %v14024_v6 = vshrl.u32 %v2384_v22, 30  ;;  %v2649_v44 = vshll.u32 %v11883_v56, %v2646_v36 }
 0x294   :  { %v2652_v17 = vshll.u32 %v11884_v60, %v2646_v36  ;;  %v2658_v55 = vshll.u32 %v11886_v0, %v2646_v36  ;;  %v2655_v63 = vshll.u32 %v11885_v62, %v2646_v36  ;;  %v2661_v59 = vshll.u32 %v11887_v2, %v2646_v36 }
 0x295   :  { %v2510_v50 = vxor.u32 2147483648, %v2509_v47  ;;  %v2650_v39 = vshrl.u32 %v11884_v60, %v2647_v35  ;;  %v2386_v4 = vshll.u32 %v14024_v6, 30  ;;  %v2653_v15 = vshrl.u32 %v11885_v62, %v2647_v35 }
 0x296   :  { %v2659_v27 = vshrl.u32 %v11887_v2, %v2647_v35  ;;  %v2656_v38 = vshrl.u32 %v11886_v0, %v2647_v35  ;;  %v2662_v32 = vshrl.u32 %v11888_v9, %v2647_v35  ;;  %v14054_v5 = vshll.u32 %v2640_v24, 8 }
 0x297   :  { %v2511_v8 = vsel %vm2428_vm1, %v2510_v50, %v2509_v47  ;;  %v14045_v45 = vsub.s32 %v2383_v14, %v2386_v4  ;;  %v2651_v18 = vor.u32 %v2650_v39, %v2649_v44  ;;  %v2654_v26 = vor.u32 %v2653_v15, %v2652_v17 }
 0x298   :  { %v2514_v48 = vsel %vm13957_vm3, %v13721_v19, %v2511_v8  ;;  %v2660_v3 = vor.u32 %v2659_v27, %v2658_v55  ;;  %v2657_v13 = vor.u32 %v2656_v38, %v2655_v63  ;;  %vm2325_vm1 = vcmp.lt.s32.totalorder %v13853_v31, 0 }
 0x299   :  { %11721 = vcosq.f32 %v2514_v48  ;;  %v2389_v7 = vsub.s32 0, %v14045_v45  ;;  %v2663_v51 = vor.u32 %v2662_v32, %v2661_v59  ;;  %v2529_v20 = vand.u32 2147483647, %v14027_v29 }
 0x29a   :  { %11723 = vsinq.f32 %v2514_v48  ;;  %vm2524_vm3 = vcmp.eq.s32.totalorder %v14022_v40, 2  ;;  %vm7694_vm0 = vcmp.eq.s32.totalorder %v14029_v41, 2  ;;  %v2379_v43 = vadd.s32 %v13986_v21, %v13992_v33 }
 0x29b   :  { %v11110_v16 = vmin.u32 %v2389_v7, %v14045_v45  ;;  %vm2664_vm4 = vcmp.lt.s32.totalorder %v14033_v52, 1  ;;  %vm2667_vm2 = vcmp.lt.s32.totalorder %v14033_v52, 4  ;;  %v2532_v53 = vand.u32 2139095040, %v14027_v29 }
 0x29c   :  { %vm2521_vm6 = vcmp.eq.s32.totalorder %v14022_v40, 0  ;;  %vm7691_vm5 = vcmp.eq.s32.totalorder %v14029_v41, 0  ;;  %v2648_v58 = vshrl.u32 %v11883_v56, %v2647_v35  ;;  %v2672_v28 = vsel %vm2664_vm4, %v2651_v18, %v2654_v26 }
 0x29d   :  { %v2391_v1 = vclz %v11110_v16  ;;  %v2673_v10 = vsel %vm2667_vm2, %v2660_v3, 920167782  ;;  %vm2520_vm7 = vcmp.lt.s32.totalorder %v14022_v40, 2  ;;  %vm7690_vm8 = vcmp.lt.s32.totalorder %v14029_v41, 2 }
 0x29e   :  { %v2409_v21 = vsub.s32 4, %v14024_v6  ;;  %vm2665_vm9 = vcmp.lt.s32.totalorder %v14033_v52, 2  ;;  %vm2666_vm10 = vcmp.lt.s32.totalorder %v14033_v52, 3  ;;  %v2676_v33 = vsel %vm2664_vm4, %v2654_v26, %v2657_v13 }
 0x29f   :  { %vm2518_vm11 = vweird.f32 %v13721_v19  ;;  %v11111_v54 = vadd.s32 4294967294, %v2391_v1  ;;  %v2668_v42 = vsel %vm2664_vm4, %v2648_v58, %v2651_v18  ;;  %v2674_v34 = vsel %vm2666_vm10, %v2657_v13, %v2673_v10 }
 0x2a0   :  { %v2677_v11 = vsel %vm2667_vm2, %v2663_v51, 1326507024  ;;  %v2669_v14 = vsel %vm2667_vm2, %v2657_v13, 2102212464  ;;  %v2675_v25 = vsel %vm2665_vm9, %v2672_v28, %v2674_v34  ;;  %v2533_v37 = vshrl.u32 %v2532_v53, 23  ;;  %v281_v53 = vpop.permute.xlu1 %280 }
 0x2a1   :  { %v2678_v46 = vsel %vm2666_vm10, %v2660_v3, %v2677_v11  ;;  %vm14093_vm12 = vcmp.le.f32.partialorder %v2323_v30, 0.7853982  ;;  %vm11112_vm13 = vcmp.lt.s32.totalorder %v11111_v54, 0  ;;  %v2670_v27 = vsel %vm2666_vm10, %v2654_v26, %v2669_v14 }
 0x2a2   :  { %v2679_v23 = vsel %vm2665_vm9, %v2676_v33, %v2678_v46  ;;  %v14100_v36 = vmul.u32.u64.low %v14054_v5, %v2675_v25  ;;  %v14101_v57 = vmul.u32.u64.high %v14054_v5, %v2675_v25, %v14100_v36  ;;  %v2394_v47 = vsel %vm11112_vm13, 0, %v11111_v54 }
 0x2a3   :  { %v11722_v22 = vpop.eup %11721  ;;  %v14105_v35 = vmul.u32.u64.low %v14054_v5, %v2679_v23  ;;  %v14106_v50 = vmul.u32.u64.high %v14054_v5, %v2679_v23, %v14105_v35  ;;  %v11117_v24 = vadd.s32 4294967169, %v2533_v37  ;;  %v2395_v4 = vsub.s32 32, %v2394_v47 }
 0x2a4   :  { %v11724_v30 = vpop.eup %11723  ;;  %v2525_v39 = vxor.u32 2147483648, %v11722_v22  ;;  %v2399_v15 = vsub.s32 4294967266, %v2394_v47  ;;  %v2396_v44 = vshll.u32 %v14045_v45, %v2394_v47  ;;  %v2410_v17 = vsel %vm2325_vm1, %v2409_v21, %v14024_v6 }
 0x2a5   :  { %v2522_v8 = vxor.u32 2147483648, %v11724_v30  ;;  %v2539_v38 = vadd.s32 1, %v11117_v24  ;;  %v2397_v32 = vshrl.u32 %v2379_v43, %v2395_v4  ;;  %v2671_v45 = vsel %vm2665_vm9, %v2668_v42, %v2670_v27 }
 0x2a6   :  { %v2526_v48 = vsel %vm2524_vm3, %v2525_v39, %v11724_v30  ;;  %v7696_v55 = vsel %vm7694_vm0, %v2525_v39, %v11724_v30  ;;  %v2400_v18 = vadd.s32 127, %v2399_v15  ;;  %vm2689_vm14 = vc.u32 %v14106_v50, %v14100_v36 }
 0x2a7   :  { %v2523_v63 = vsel %vm2521_vm6, %v11722_v22, %v2522_v8  ;;  %v7693_v59 = vsel %vm7691_vm5, %v11722_v22, %v2522_v8  ;;  %v2398_v26 = vor.u32 %v2397_v32, %v2396_v44  ;;  %v2690_v52 = vadd.s32 1, %v14101_v57 }
 0x2a8   :  { %v2527_v6 = vsel %vm2520_vm7, %v2523_v63, %v2526_v48  ;;  %v7697_v7 = vsel %vm7690_vm8, %v7693_v59, %v7696_v55  ;;  %v2401_v3 = vshll.u32 %v2400_v18, 23  ;;  %vm2540_vm15 = vcmp.gt.s32.totalorder %v2539_v38, 0 }
 0x2a9   :  { %v2528_v13 = vsel %vm2518_vm11, nan, %v2527_v6  ;;  %v7698_v16 = vsel %vm2518_vm11, nan, %v7697_v7  ;;  %v2687_v51 = vmul.u32 %v14054_v5, %v2671_v45  ;;  %v2536_v41 = vand.u32 8388607, %v2529_v20  ;;  %v14147_v5 = vld [vmem:[%s17028_s1] ss:$0 sm:$0xff] }
 0x2aa   :  { %10838 = vst [vmem:[#allocation2 + $0x130] sm:$0xff] %v2528_v13  ;;  %10888 = vst [vmem:[#allocation2 + $0x138] sm:$0xff] %v2528_v13  ;;  %v2402_v40 = vor.u32 4788187, %v2401_v3  ;;  %v2541_v43 = vsel %vm2540_vm15, %v2539_v38, 0  ;;  %v2412_v1 = vsel %vm14093_vm12, 0, %v2410_v17  ;;  %v2691_v19 = vsel %vm2689_vm14, %v2690_v52, %v14101_v57 }
 0x2ab   :  { %10939 = vst [vmem:[#allocation2 + $0x450] sm:$0xff] %v7698_v16  ;;  %10989 = vst [vmem:[#allocation2 + $0x458] sm:$0xff] %v7698_v16  ;;  %v2543_v58 = vand.u32 31, %v2541_v43  ;;  %v2405_v10 = vcvt.s32.f32 %v2398_v26  ;;  %v2692_v21 = vadd.s32 %v2691_v19, %v2687_v51  ;;  %v14150_v54 = vmul.f32 %v14147_v5, %v281_v53 }
 0x2ac   :  { %v2403_v28 = vand.u32 2147483647, %v2402_v40  ;;  %v7584_v34 = vadd.s32 3, %v2412_v1  ;;  %v2537_v14 = vor.u32 8388608, %v2536_v41  ;;  %v2542_v25 = vshrl.u32 %v2541_v43, 5 }
 0x2ad   :  { %v2544_v33 = vsub.s32 32, %v2543_v58  ;;  %v2693_v11 = vadd.s32 536870912, %v2692_v21  ;;  %v2552_v47 = vshll.u32 %v11885_v62, %v2543_v58  ;;  %v2546_v24 = vshll.u32 %v11883_v56, %v2543_v58 }
 0x2ae   :  { %v2406_v42 = vmul.f32 %v2405_v10, %v2403_v28  ;;  %v2549_v30 = vshll.u32 %v11884_v60, %v2543_v58  ;;  %v2555_v39 = vshll.u32 %v11886_v0, %v2543_v58  ;;  %v2558_v44 = vshll.u32 %v11887_v2, %v2543_v58 }
 0x2af   :  { %v2547_v46 = vshrl.u32 %v11884_v60, %v2544_v33  ;;  %v2550_v37 = vshrl.u32 %v11885_v62, %v2544_v33  ;;  %v2553_v23 = vshrl.u32 %v11886_v0, %v2544_v33  ;;  %v14155_v22 = vshrl.u32 %v2693_v11, 30 }
 0x2b0   :  { %v2407_v57 = vxor.u32 2147483648, %v2406_v42  ;;  %v2556_v35 = vshrl.u32 %v11887_v2, %v2544_v33  ;;  %v2559_v4 = vshrl.u32 %v11888_v9, %v2544_v33  ;;  %v14170_v32 = vand.u32 3, %v2412_v1 }
 0x2b1   :  { %v2695_v27 = vshll.u32 %v14155_v22, 30  ;;  %v2554_v8 = vor.u32 %v2553_v23, %v2552_v47  ;;  %v2548_v38 = vor.u32 %v2547_v46, %v2546_v24  ;;  %v2551_v48 = vor.u32 %v2550_v37, %v2549_v30 }
 0x2b2   :  { %v2408_v15 = vsel %vm2325_vm1, %v2407_v57, %v2406_v42  ;;  %v2557_v55 = vor.u32 %v2556_v35, %v2555_v39  ;;  %v14174_v63 = vand.u32 3, %v7584_v34  ;;  %v2560_v59 = vor.u32 %v2559_v4, %v2558_v44 }
 0x2b3   :  { %v2411_v17 = vsel %vm14093_vm12, %v13853_v31, %v2408_v15  ;;  %v14172_v18 = vsub.s32 %v2692_v21, %v2695_v27  ;;  %vm2564_vm1 = vcmp.lt.s32.totalorder %v2542_v25, 4  ;;  %vm2634_vm3 = vcmp.lt.s32.totalorder %v13936_v61, 0 }
 0x2b4   :  { %11725 = vcosq.f32 %v2411_v17  ;;  %vm2561_vm0 = vcmp.lt.s32.totalorder %v2542_v25, 1  ;;  %v2566_v49 = vsel %vm2564_vm1, %v2554_v8, 2102212464  ;;  %v2841_v6 = vand.u32 2139095040, %v14150_v54 }
 0x2b5   :  { %11727 = vsinq.f32 %v2411_v17  ;;  %v2698_v45 = vsub.s32 0, %v14172_v18  ;;  %v2545_v7 = vshrl.u32 %v11883_v56, %v2544_v33  ;;  %v2569_v26 = vsel %vm2561_vm0, %v2548_v38, %v2551_v48 }
 0x2b6   :  { %v2570_v3 = vsel %vm2564_vm1, %v2557_v55, 920167782  ;;  %v14182_v13 = vshll.u32 %v2537_v14, 8  ;;  %vm2562_vm4 = vcmp.lt.s32.totalorder %v2542_v25, 2  ;;  %vm2563_vm2 = vcmp.lt.s32.totalorder %v2542_v25, 3 }
 0x2b7   :  { %v11122_v16 = vmin.u32 %v2698_v45, %v14172_v18  ;;  %v2573_v52 = vsel %vm2561_vm0, %v2551_v48, %v2554_v8  ;;  %v2565_v40 = vsel %vm2561_vm0, %v2545_v7, %v2548_v38  ;;  %v2567_v51 = vsel %vm2563_vm2, %v2551_v48, %v2566_v49 }
 0x2b8   :  { %v2571_v41 = vsel %vm2563_vm2, %v2554_v8, %v2570_v3  ;;  %v2574_v43 = vsel %vm2564_vm1, %v2560_v59, 1326507024  ;;  %vm2417_vm6 = vcmp.lt.s32.totalorder %v14170_v32, 2  ;;  %v2842_v58 = vshrl.u32 %v2841_v6, 23 }
 0x2b9   :  { %v2700_v53 = vclz %v11122_v16  ;;  %v2572_v1 = vsel %vm2562_vm4, %v2569_v26, %v2571_v41  ;;  %v2575_v19 = vsel %vm2563_vm2, %v2557_v55, %v2574_v43  ;;  %vm2415_vm5 = vweird.f32 %v13853_v31  ;;  %v276_v16 = vpop.permute.xlu0 %275 }
 0x2ba   :  { %vm2418_vm7 = vcmp.eq.s32.totalorder %v14170_v32, 0  ;;  %vm2421_vm8 = vcmp.eq.s32.totalorder %v14170_v32, 2  ;;  %v2718_v28 = vsub.s32 4, %v14155_v22  ;;  %v2576_v10 = vsel %vm2562_vm4, %v2573_v52, %v2575_v19 }
 0x2bb   :  { %v11123_v21 = vadd.s32 4294967294, %v2700_v53  ;;  %v14194_v33 = vmul.u32.u64.low %v14182_v13, %v2576_v10  ;;  %v14195_v42 = vmul.u32.u64.high %v14182_v13, %v2576_v10, %v14194_v33  ;;  %v11129_v34 = vadd.s32 4294967169, %v2842_v58 }
 0x2bc   :  { %vm7586_vm9 = vcmp.lt.s32.totalorder %v14174_v63, 2  ;;  %v2568_v11 = vsel %vm2562_vm4, %v2565_v40, %v2567_v51  ;;  %v14200_v14 = vmul.u32.u64.low %v14182_v13, %v2572_v1  ;;  %v14201_v46 = vmul.u32.u64.high %v14182_v13, %v2572_v1, %v14200_v14 }
 0x2bd   :  { %vm7587_vm10 = vcmp.eq.s32.totalorder %v14174_v63, 0  ;;  %vm7590_vm11 = vcmp.eq.s32.totalorder %v14174_v63, 2  ;;  %v2688_v23 = vadd.s32 %v14100_v36, %v14106_v50  ;;  %vm11124_vm12 = vcmp.lt.s32.totalorder %v11123_v21, 0 }
 0x2be   :  { %v11726_v37 = vpop.eup %11725  ;;  %v2703_v35 = vsel %vm11124_vm12, 0, %v11123_v21  ;;  %v2719_v25 = vsel %vm2634_vm3, %v2718_v28, %v14155_v22  ;;  %v2848_v24 = vadd.s32 1, %v11129_v34  ;;  %v2584_v15 = vmul.u32 %v14182_v13, %v2568_v11 }
 0x2bf   :  { %v11728_v57 = vpop.eup %11727  ;;  %v2422_v47 = vxor.u32 2147483648, %v11726_v37  ;;  %v2704_v39 = vsub.s32 32, %v2703_v35  ;;  %v2708_v4 = vsub.s32 4294967266, %v2703_v35  ;;  %v2705_v36 = vshll.u32 %v14172_v18, %v2703_v35 }
 0x2c0   :  { %v2419_v30 = vxor.u32 2147483648, %v11728_v57  ;;  %vm2586_vm13 = vc.u32 %v14195_v42, %v14200_v14  ;;  %v2587_v55 = vadd.s32 1, %v14201_v46  ;;  %vm2849_vm14 = vcmp.gt.s32.totalorder %v2848_v24, 0 }
 0x2c1   :  { %v2423_v27 = vsel %vm2421_vm8, %v2422_v47, %v11728_v57  ;;  %v7592_v8 = vsel %vm7590_vm11, %v2422_v47, %v11728_v57  ;;  %v2706_v44 = vshrl.u32 %v2688_v23, %v2704_v39  ;;  %v2709_v17 = vadd.s32 127, %v2708_v4 }
 0x2c2   :  { %v2420_v50 = vsel %vm2418_vm7, %v11726_v37, %v2419_v30  ;;  %v7589_v22 = vsel %vm7587_vm10, %v11726_v37, %v2419_v30  ;;  %v2588_v32 = vsel %vm2586_vm13, %v2587_v55, %v14201_v46  ;;  %v2838_v63 = vand.u32 2147483647, %v14150_v54 }
 0x2c3   :  { %v2424_v38 = vsel %vm2417_vm6, %v2420_v50, %v2423_v27  ;;  %v7593_v48 = vsel %vm7586_vm9, %v7589_v22, %v7592_v8  ;;  %v2707_v45 = vor.u32 %v2706_v44, %v2705_v36  ;;  %v2710_v49 = vshll.u32 %v2709_v17, 23 }
 0x2c4   :  { %v2425_v18 = vsel %vm2415_vm5, nan, %v2424_v38  ;;  %v7594_v59 = vsel %vm2415_vm5, nan, %v7593_v48  ;;  %v2850_v6 = vsel %vm2849_vm14, %v2848_v24, 0  ;;  %vm14237_vm15 = vcmp.le.f32.partialorder %v2632_v12, 0.7853982 }
 0x2c5   :  { %10837 = vst [vmem:[#allocation2 + $0x120] sm:$0xff] %v2425_v18  ;;  %10887 = vst [vmem:[#allocation2 + $0x128] sm:$0xff] %v2425_v18  ;;  %v2711_v31 = vor.u32 4788187, %v2710_v49  ;;  %v2589_v26 = vadd.s32 %v2588_v32, %v2584_v15  ;;  %v2721_v3 = vsel %vm14237_vm15, 0, %v2719_v25  ;;  %v2852_v13 = vand.u32 31, %v2850_v6 }
 0x2c6   :  { %10938 = vst [vmem:[#allocation2 + $0x440] sm:$0xff] %v7594_v59  ;;  %10988 = vst [vmem:[#allocation2 + $0x448] sm:$0xff] %v7594_v59  ;;  %v2714_v40 = vcvt.s32.f32 %v2707_v45  ;;  %v2845_v41 = vand.u32 8388607, %v2838_v63  ;;  %v7896_v1 = vadd.s32 3, %v2721_v3  ;;  %v14248_v19 = vmul.f32 %v14147_v5, %v276_v16 }
 0x2c7   :  { %v2712_v52 = vand.u32 2147483647, %v2711_v31  ;;  %v2590_v51 = vadd.s32 536870912, %v2589_v26  ;;  %v2853_v43 = vsub.s32 32, %v2852_v13  ;;  %v2851_v58 = vshrl.u32 %v2850_v6, 5 }
 0x2c8   :  { %v2855_v11 = vshll.u32 %v11883_v56, %v2852_v13  ;;  %v2858_v37 = vshll.u32 %v11884_v60, %v2852_v13  ;;  %v2861_v23 = vshll.u32 %v11885_v62, %v2852_v13  ;;  %v2864_v57 = vshll.u32 %v11886_v0, %v2852_v13 }
 0x2c9   :  { %v2715_v53 = vmul.f32 %v2714_v40, %v2712_v52  ;;  %v14245_v12 = vshrl.u32 %v2590_v51, 30  ;;  %v2856_v28 = vshrl.u32 %v11884_v60, %v2853_v43  ;;  %v2859_v10 = vshrl.u32 %v11885_v62, %v2853_v43 }
 0x2ca   :  { %v2862_v21 = vshrl.u32 %v11886_v0, %v2853_v43  ;;  %v2865_v46 = vshrl.u32 %v11887_v2, %v2853_v43  ;;  %v2868_v47 = vshrl.u32 %v11888_v9, %v2853_v43  ;;  %v2867_v30 = vshll.u32 %v11887_v2, %v2852_v13 }
 0x2cb   :  { %v2716_v33 = vxor.u32 2147483648, %v2715_v53  ;;  %v2592_v34 = vshll.u32 %v14245_v12, 30  ;;  %v2857_v24 = vor.u32 %v2856_v28, %v2855_v11  ;;  %v2860_v4 = vor.u32 %v2859_v10, %v2858_v37 }
 0x2cc   :  { %v2863_v15 = vor.u32 %v2862_v21, %v2861_v23  ;;  %v2866_v27 = vor.u32 %v2865_v46, %v2864_v57  ;;  %v14268_v8 = vand.u32 3, %v2721_v3  ;;  %v2869_v50 = vor.u32 %v2868_v47, %v2867_v30 }
 0x2cd   :  { %v2717_v35 = vsel %vm2634_vm3, %v2716_v33, %v2715_v53  ;;  %v14262_v25 = vsub.s32 %v2589_v26, %v2592_v34  ;;  %v14271_v22 = vand.u32 3, %v7896_v1  ;;  %vm2531_vm1 = vcmp.lt.s32.totalorder %v14027_v29, 0 }
 0x2ce   :  { %v2720_v39 = vsel %vm14237_vm15, %v13936_v61, %v2717_v35  ;;  %v2846_v44 = vor.u32 8388608, %v2845_v41  ;;  %v2738_v17 = vand.u32 2139095040, %v14248_v19  ;;  %v2854_v48 = vshrl.u32 %v11883_v56, %v2853_v43 }
 0x2cf   :  { %11729 = vcosq.f32 %v2720_v39  ;;  %v2595_v36 = vsub.s32 0, %v14262_v25  ;;  %vm2870_vm3 = vcmp.lt.s32.totalorder %v2851_v58, 1  ;;  %vm2873_vm0 = vcmp.lt.s32.totalorder %v2851_v58, 4 }
 0x2d0   :  { %11731 = vsinq.f32 %v2720_v39  ;;  %vm2872_vm4 = vcmp.lt.s32.totalorder %v2851_v58, 3  ;;  %v2875_v55 = vsel %vm2873_vm0, %v2863_v15, 2102212464  ;;  %v2878_v18 = vsel %vm2870_vm3, %v2857_v24, %v2860_v4 }
 0x2d1   :  { %v11118_v38 = vmin.u32 %v2595_v36, %v14262_v25  ;;  %v2879_v59 = vsel %vm2873_vm0, %v2866_v27, 920167782  ;;  %vm2730_vm2 = vcmp.eq.s32.totalorder %v14268_v8, 2  ;;  %v2882_v32 = vsel %vm2870_vm3, %v2860_v4, %v2863_v15 }
 0x2d2   :  { %v2880_v49 = vsel %vm2872_vm4, %v2863_v15, %v2879_v59  ;;  %v2883_v6 = vsel %vm2873_vm0, %v2869_v50, 1326507024  ;;  %vm2727_vm6 = vcmp.eq.s32.totalorder %v14268_v8, 0  ;;  %vm2871_vm5 = vcmp.lt.s32.totalorder %v2851_v58, 2  ;;  %v291_v59 = vpop.permute.xlu1 %290 }
 0x2d3   :  { %v2597_v45 = vclz %v11118_v38  ;;  %v2874_v7 = vsel %vm2870_vm3, %v2854_v48, %v2857_v24  ;;  %v2876_v31 = vsel %vm2872_vm4, %v2860_v4, %v2875_v55  ;;  %v2886_v26 = vshll.u32 %v2846_v44, 8 }
 0x2d4   :  { %vm2726_vm7 = vcmp.lt.s32.totalorder %v14268_v8, 2  ;;  %vm7898_vm8 = vcmp.lt.s32.totalorder %v14271_v22, 2  ;;  %v2615_v13 = vsub.s32 4, %v14245_v12  ;;  %v2881_v16 = vsel %vm2871_vm5, %v2878_v18, %v2880_v49 }
 0x2d5   :  { %v11119_v3 = vadd.s32 4294967294, %v2597_v45  ;;  %v2884_v52 = vsel %vm2872_vm4, %v2866_v27, %v2883_v6  ;;  %vm2724_vm9 = vweird.f32 %v13936_v61  ;;  %v2739_v43 = vshrl.u32 %v2738_v17, 23 }
 0x2d6   :  { %v2885_v40 = vsel %vm2871_vm5, %v2882_v32, %v2884_v52  ;;  %v14288_v51 = vmul.u32.u64.low %v2886_v26, %v2881_v16  ;;  %v14289_v41 = vmul.u32.u64.high %v2886_v26, %v2881_v16, %v14288_v51  ;;  %vm14294_vm10 = vcmp.le.f32.partialorder %v2529_v20, 0.7853982 }
 0x2d7   :  { %vm11120_vm11 = vcmp.lt.s32.totalorder %v11119_v3, 0  ;;  %v2877_v1 = vsel %vm2871_vm5, %v2874_v7, %v2876_v31  ;;  %v14299_v28 = vmul.u32.u64.low %v2886_v26, %v2885_v40  ;;  %v14300_v10 = vmul.u32.u64.high %v2886_v26, %v2885_v40, %v14299_v28 }
 0x2d8   :  { %vm7899_vm12 = vcmp.eq.s32.totalorder %v14271_v22, 0  ;;  %vm7902_vm13 = vcmp.eq.s32.totalorder %v14271_v22, 2  ;;  %v2600_v21 = vsel %vm11120_vm11, 0, %v11119_v3  ;;  %v11125_v33 = vadd.s32 4294967169, %v2739_v43 }
 0x2d9   :  { %v11730_v34 = vpop.eup %11729  ;;  %v2585_v11 = vadd.s32 %v14200_v14, %v14195_v42  ;;  %v2601_v20 = vsub.s32 32, %v2600_v21  ;;  %v2605_v46 = vsub.s32 4294967266, %v2600_v21  ;;  %v2616_v58 = vsel %vm2531_vm1, %v2615_v13, %v14245_v12 }
 0x2da   :  { %v11732_v37 = vpop.eup %11731  ;;  %v2731_v23 = vxor.u32 2147483648, %v11730_v34  ;;  %v2893_v57 = vmul.u32 %v2886_v26, %v2877_v1  ;;  %v2896_v47 = vadd.s32 1, %v14289_v41  ;;  %v2745_v35 = vadd.s32 1, %v11125_v33 }
 0x2db   :  { %v2728_v24 = vxor.u32 2147483648, %v11732_v37  ;;  %v2602_v30 = vshll.u32 %v14262_v25, %v2600_v21  ;;  %v2603_v39 = vshrl.u32 %v2585_v11, %v2601_v20  ;;  %v2606_v4 = vadd.s32 127, %v2605_v46 }
 0x2dc   :  { %v2732_v42 = vsel %vm2730_vm2, %v2731_v23, %v11732_v37  ;;  %v7904_v14 = vsel %vm7902_vm13, %v2731_v23, %v11732_v37  ;;  %vm2895_vm14 = vc.u32 %v14300_v10, %v14288_v51  ;;  %vm2746_vm15 = vcmp.gt.s32.totalorder %v2745_v35, 0 }
 0x2dd   :  { %v2729_v12 = vsel %vm2727_vm6, %v11730_v34, %v2728_v24  ;;  %v7901_v15 = vsel %vm7899_vm12, %v11730_v34, %v2728_v24  ;;  %v2604_v27 = vor.u32 %v2603_v39, %v2602_v30  ;;  %v2607_v25 = vshll.u32 %v2606_v4, 23 }
 0x2de   :  { %v2733_v36 = vsel %vm2726_vm7, %v2729_v12, %v2732_v42  ;;  %v7905_v50 = vsel %vm7898_vm8, %v7901_v15, %v7904_v14  ;;  %v2897_v44 = vsel %vm2895_vm14, %v2896_v47, %v14289_v41  ;;  %v2747_v17 = vsel %vm2746_vm15, %v2745_v35, 0 }
 0x2df   :  { %v2734_v38 = vsel %vm2724_vm9, nan, %v2733_v36  ;;  %v7906_v48 = vsel %vm2724_vm9, nan, %v7905_v50  ;;  %v2608_v55 = vor.u32 4788187, %v2607_v25  ;;  %v2735_v18 = vand.u32 2147483647, %v14248_v19 }
 0x2e0   :  { %10840 = vst [vmem:[#allocation2 + $0x150] sm:$0xff] %v2734_v38  ;;  %10890 = vst [vmem:[#allocation2 + $0x158] sm:$0xff] %v2734_v38  ;;  %v2618_v8 = vsel %vm14294_vm10, 0, %v2616_v58  ;;  %v2898_v22 = vadd.s32 %v2897_v44, %v2893_v57  ;;  %v2749_v45 = vand.u32 31, %v2747_v17  ;;  %v2611_v32 = vcvt.s32.f32 %v2604_v27 }
 0x2e1   :  { %10941 = vst [vmem:[#allocation2 + $0x470] sm:$0xff] %v7906_v48  ;;  %10991 = vst [vmem:[#allocation2 + $0x478] sm:$0xff] %v7906_v48  ;;  %v2609_v49 = vand.u32 2147483647, %v2608_v55  ;;  %v14334_v61 = vmul.f32 %v14147_v5, %v291_v59  ;;  %v14336_v26 = vand.u32 3, %v2618_v8  ;;  %v7792_v13 = vadd.s32 3, %v2618_v8 }
 0x2e2   :  { %v2899_v6 = vadd.s32 536870912, %v2898_v22  ;;  %v2750_v7 = vsub.s32 32, %v2749_v45  ;;  %v2742_v3 = vand.u32 8388607, %v2735_v18  ;;  %v14342_v52 = vshrl.u32 %v2747_v17, 5 }
 0x2e3   :  { %v2612_v31 = vmul.f32 %v2611_v32, %v2609_v49  ;;  %v2752_v33 = vshll.u32 %v11883_v56, %v2749_v45  ;;  %v3047_v11 = vand.u32 2139095040, %v14334_v61  ;;  %v2755_v46 = vshll.u32 %v11884_v60, %v2749_v45 }
 0x2e4   :  { %v14340_v16 = vshrl.u32 %v2899_v6, 30  ;;  %v2753_v40 = vshrl.u32 %v11884_v60, %v2750_v7  ;;  %v2756_v43 = vshrl.u32 %v11885_v62, %v2750_v7  ;;  %v2759_v1 = vshrl.u32 %v11886_v0, %v2750_v7 }
 0x2e5   :  { %v2613_v41 = vxor.u32 2147483648, %v2612_v31  ;;  %v2762_v28 = vshrl.u32 %v11887_v2, %v2750_v7  ;;  %v2765_v34 = vshrl.u32 %v11888_v9, %v2750_v7  ;;  %v2758_v58 = vshll.u32 %v11885_v62, %v2749_v45 }
 0x2e6   :  { %v2901_v21 = vshll.u32 %v14340_v16, 30  ;;  %v2761_v37 = vshll.u32 %v11886_v0, %v2749_v45  ;;  %v2754_v47 = vor.u32 %v2753_v40, %v2752_v33  ;;  %v2764_v35 = vshll.u32 %v11887_v2, %v2749_v45 }
 0x2e7   :  { %v2614_v20 = vsel %vm2531_vm1, %v2613_v41, %v2612_v31  ;;  %v2757_v24 = vor.u32 %v2756_v43, %v2755_v46  ;;  %v2760_v30 = vor.u32 %v2759_v1, %v2758_v58  ;;  %v14363_v4 = vand.u32 3, %v7792_v13 }
 0x2e8   :  { %v2617_v23 = vsel %vm14294_vm10, %v14027_v29, %v2614_v20  ;;  %v14360_v57 = vsub.s32 %v2898_v22, %v2901_v21  ;;  %v2763_v39 = vor.u32 %v2762_v28, %v2761_v37  ;;  %v2766_v14 = vor.u32 %v2765_v34, %v2764_v35 }
 0x2e9   :  { %11733 = vcosq.f32 %v2617_v23  ;;  %vm2840_vm1 = vcmp.lt.s32.totalorder %v14150_v54, 0  ;;  %v2743_v12 = vor.u32 8388608, %v2742_v3  ;;  %v2751_v53 = vshrl.u32 %v11883_v56, %v2750_v7 }
 0x2ea   :  { %11735 = vsinq.f32 %v2617_v23  ;;  %v2904_v42 = vsub.s32 0, %v14360_v57  ;;  %vm2767_vm3 = vcmp.lt.s32.totalorder %v14342_v52, 1  ;;  %vm2769_vm0 = vcmp.lt.s32.totalorder %v14342_v52, 3 }
 0x2eb   :  { %vm2770_vm4 = vcmp.lt.s32.totalorder %v14342_v52, 4  ;;  %vm2627_vm2 = vcmp.eq.s32.totalorder %v14336_v26, 2  ;;  %v2775_v25 = vsel %vm2767_vm3, %v2754_v47, %v2757_v24  ;;  %v3048_v50 = vshrl.u32 %v3047_v11, 23 }
 0x2ec   :  { %v11130_v15 = vmin.u32 %v2904_v42, %v14360_v57  ;;  %v2772_v27 = vsel %vm2770_vm4, %v2760_v30, 2102212464  ;;  %v2776_v36 = vsel %vm2770_vm4, %v2763_v39, 920167782  ;;  %vm2624_vm6 = vcmp.eq.s32.totalorder %v14336_v26, 0 }
 0x2ed   :  { %vm7795_vm5 = vcmp.eq.s32.totalorder %v14363_v4, 0  ;;  %v2777_v17 = vsel %vm2769_vm0, %v2760_v30, %v2776_v36  ;;  %v2779_v38 = vsel %vm2767_vm3, %v2757_v24, %v2760_v30  ;;  %v2780_v48 = vsel %vm2770_vm4, %v2766_v14, 1326507024 }
 0x2ee   :  { %v2906_v44 = vclz %v11130_v15  ;;  %vm2623_vm7 = vcmp.lt.s32.totalorder %v14336_v26, 2  ;;  %vm7794_vm8 = vcmp.lt.s32.totalorder %v14363_v4, 2  ;;  %v2924_v55 = vsub.s32 4, %v14340_v16 }
 0x2ef   :  { %vm2768_vm9 = vcmp.lt.s32.totalorder %v14342_v52, 2  ;;  %v2771_v59 = vsel %vm2767_vm3, %v2751_v53, %v2754_v47  ;;  %v2783_v8 = vshll.u32 %v2743_v12, 8  ;;  %vm2621_vm10 = vweird.f32 %v14027_v29  ;;  %v286_v29 = vpop.permute.xlu0 %285 }
 0x2f0   :  { %v11131_v22 = vadd.s32 4294967294, %v2906_v44  ;;  %v2773_v45 = vsel %vm2769_vm0, %v2757_v24, %v2772_v27  ;;  %v2778_v49 = vsel %vm2768_vm9, %v2775_v25, %v2777_v17  ;;  %v2781_v32 = vsel %vm2769_vm0, %v2763_v39, %v2780_v48 }
 0x2f1   :  { %v2782_v6 = vsel %vm2768_vm9, %v2779_v38, %v2781_v32  ;;  %v14396_v7 = vmul.u32.u64.low %v2783_v8, %v2778_v49  ;;  %v14397_v31 = vmul.u32.u64.high %v2783_v8, %v2778_v49, %v14396_v7  ;;  %v11137_v3 = vadd.s32 4294967169, %v3048_v50 }
 0x2f2   :  { %vm7798_vm11 = vcmp.eq.s32.totalorder %v14363_v4, 2  ;;  %vm11132_vm12 = vcmp.lt.s32.totalorder %v11131_v22, 0  ;;  %v14401_v13 = vmul.u32.u64.low %v2783_v8, %v2782_v6  ;;  %v14402_v40 = vmul.u32.u64.high %v2783_v8, %v2782_v6, %v14401_v13 }
 0x2f3   :  { %v11734_v41 = vpop.eup %11733  ;;  %v2894_v43 = vadd.s32 %v14288_v51, %v14300_v10  ;;  %v2909_v1 = vsel %vm11132_vm12, 0, %v11131_v22  ;;  %v2925_v28 = vsel %vm2840_vm1, %v2924_v55, %v14340_v16  ;;  %v3054_v21 = vadd.s32 1, %v11137_v3 }
 0x2f4   :  { %v11736_v33 = vpop.eup %11735  ;;  %v2628_v34 = vxor.u32 2147483648, %v11734_v41  ;;  %v2910_v11 = vsub.s32 32, %v2909_v1  ;;  %v2914_v20 = vsub.s32 4294967266, %v2909_v1  ;;  %v2774_v46 = vsel %vm2768_vm9, %v2771_v59, %v2773_v45 }
 0x2f5   :  { %v2625_v58 = vxor.u32 2147483648, %v11736_v33  ;;  %v2911_v37 = vshll.u32 %v14360_v57, %v2909_v1  ;;  %v2793_v23 = vadd.s32 1, %v14397_v31  ;;  %vm3055_vm13 = vcmp.gt.s32.totalorder %v3054_v21, 0 }
 0x2f6   :  { %v2629_v51 = vsel %vm2627_vm2, %v2628_v34, %v11736_v33  ;;  %v7800_v10 = vsel %vm7798_vm11, %v2628_v34, %v11736_v33  ;;  %v2912_v16 = vshrl.u32 %v2894_v43, %v2910_v11  ;;  %v2915_v47 = vadd.s32 127, %v2914_v20 }
 0x2f7   :  { %v2626_v35 = vsel %vm2624_vm6, %v11734_v41, %v2625_v58  ;;  %v7797_v52 = vsel %vm7795_vm5, %v11734_v41, %v2625_v58  ;;  %v2790_v24 = vmul.u32 %v2783_v8, %v2774_v46  ;;  %vm2792_vm14 = vc.u32 %v14402_v40, %v14396_v7 }
 0x2f8   :  { %v2630_v57 = vsel %vm2623_vm7, %v2626_v35, %v2629_v51  ;;  %v7801_v30 = vsel %vm7794_vm8, %v7797_v52, %v7800_v10  ;;  %v2913_v39 = vor.u32 %v2912_v16, %v2911_v37  ;;  %v2916_v42 = vshll.u32 %v2915_v47, 23 }
 0x2f9   :  { %v2631_v14 = vsel %vm2621_vm10, nan, %v2630_v57  ;;  %v7802_v12 = vsel %vm2621_vm10, nan, %v7801_v30  ;;  %v2794_v53 = vsel %vm2792_vm14, %v2793_v23, %v14397_v31  ;;  %v3056_v15 = vsel %vm3055_vm13, %v3054_v21, 0 }
 0x2fa   :  { %10839 = vst [vmem:[#allocation2 + $0x140] sm:$0xff] %v2631_v14  ;;  %10889 = vst [vmem:[#allocation2 + $0x148] sm:$0xff] %v2631_v14  ;;  %vm14435_vm15 = vcmp.le.f32.partialorder %v2838_v63, 0.7853982  ;;  %v2917_v4 = vor.u32 4788187, %v2916_v42  ;;  %v2795_v27 = vadd.s32 %v2794_v53, %v2790_v24  ;;  %v2920_v17 = vcvt.s32.f32 %v2913_v39 }
 0x2fb   :  { %10940 = vst [vmem:[#allocation2 + $0x460] sm:$0xff] %v7802_v12  ;;  %10990 = vst [vmem:[#allocation2 + $0x468] sm:$0xff] %v7802_v12  ;;  %v3044_v25 = vand.u32 2147483647, %v14334_v61  ;;  %v2927_v36 = vsel %vm14435_vm15, 0, %v2925_v28  ;;  %v3058_v50 = vand.u32 31, %v3056_v15  ;;  %v14443_v55 = vmul.f32 %v14147_v5, %v286_v29 }
 0x2fc   :  { %v2918_v44 = vand.u32 2147483647, %v2917_v4  ;;  %v2796_v38 = vadd.s32 536870912, %v2795_v27  ;;  %v8104_v59 = vadd.s32 3, %v2927_v36  ;;  %v3057_v45 = vshrl.u32 %v3056_v15, 5 }
 0x2fd   :  { %v3059_v48 = vsub.s32 32, %v3058_v50  ;;  %v3051_v22 = vand.u32 8388607, %v3044_v25  ;;  %v3061_v13 = vshll.u32 %v11883_v56, %v3058_v50  ;;  %v3064_v43 = vshll.u32 %v11884_v60, %v3058_v50 }
 0x2fe   :  { %v2921_v63 = vmul.f32 %v2920_v17, %v2918_v44  ;;  %v14445_v8 = vshrl.u32 %v2796_v38, 30  ;;  %v3067_v1 = vshll.u32 %v11885_v62, %v3058_v50  ;;  %v3070_v28 = vshll.u32 %v11886_v0, %v3058_v50 }
 0x2ff   :  { %v3062_v49 = vshrl.u32 %v11884_v60, %v3059_v48  ;;  %v3065_v32 = vshrl.u32 %v11885_v62, %v3059_v48  ;;  %v3068_v6 = vshrl.u32 %v11886_v0, %v3059_v48  ;;  %v3071_v41 = vshrl.u32 %v11887_v2, %v3059_v48 }
 0x300   :  { %v2922_v31 = vxor.u32 2147483648, %v2921_v63  ;;  %v2798_v3 = vshll.u32 %v14445_v8, 30  ;;  %v3074_v21 = vshrl.u32 %v11888_v9, %v3059_v48  ;;  %v3073_v20 = vshll.u32 %v11887_v2, %v3058_v50 }
 0x301   :  { %v3063_v11 = vor.u32 %v3062_v49, %v3061_v13  ;;  %v3066_v58 = vor.u32 %v3065_v32, %v3064_v43  ;;  %v3069_v37 = vor.u32 %v3068_v6, %v3067_v1  ;;  %v3072_v23 = vor.u32 %v3071_v41, %v3070_v28 }
 0x302   :  { %v2923_v33 = vsel %vm2840_vm1, %v2922_v31, %v2921_v63  ;;  %v14461_v34 = vsub.s32 %v2795_v27, %v2798_v3  ;;  %v14467_v51 = vand.u32 3, %v2927_v36  ;;  %v3075_v16 = vor.u32 %v3074_v21, %v3073_v20 }
 0x303   :  { %v2926_v46 = vsel %vm14435_vm15, %v14150_v54, %v2923_v33  ;;  %v14470_v47 = vand.u32 3, %v8104_v59  ;;  %vm2737_vm1 = vcmp.lt.s32.totalorder %v14248_v19, 0  ;;  %v3052_v35 = vor.u32 8388608, %v3051_v22 }
 0x304   :  { %11737 = vcosq.f32 %v2926_v46  ;;  %v2801_v10 = vsub.s32 0, %v14461_v34  ;;  %v2944_v52 = vand.u32 2139095040, %v14443_v55  ;;  %v3060_v57 = vshrl.u32 %v11883_v56, %v3059_v48 }
 0x305   :  { %11739 = vsinq.f32 %v2926_v46  ;;  %vm3076_vm3 = vcmp.lt.s32.totalorder %v3057_v45, 1  ;;  %vm3079_vm0 = vcmp.lt.s32.totalorder %v3057_v45, 4  ;;  %vm3078_vm4 = vcmp.lt.s32.totalorder %v3057_v45, 3 }
 0x306   :  { %v11126_v24 = vmin.u32 %v2801_v10, %v14461_v34  ;;  %v3081_v30 = vsel %vm3079_vm0, %v3069_v37, 2102212464  ;;  %v3084_v39 = vsel %vm3076_vm3, %v3063_v11, %v3066_v58  ;;  %v3085_v42 = vsel %vm3079_vm0, %v3072_v23, 920167782 }
 0x307   :  { %vm2936_vm2 = vcmp.eq.s32.totalorder %v14467_v51, 2  ;;  %v3086_v12 = vsel %vm3078_vm4, %v3069_v37, %v3085_v42  ;;  %v3088_v53 = vsel %vm3076_vm3, %v3066_v58, %v3069_v37  ;;  %v3089_v15 = vsel %vm3079_vm0, %v3075_v16, 1326507024  ;;  %v301_v42 = vpop.permute.xlu1 %300 }
 0x308   :  { %v2803_v14 = vclz %v11126_v24  ;;  %vm2933_vm6 = vcmp.eq.s32.totalorder %v14467_v51, 0  ;;  %vm3077_vm5 = vcmp.lt.s32.totalorder %v3057_v45, 2  ;;  %v3080_v26 = vsel %vm3076_vm3, %v3060_v57, %v3063_v11 }
 0x309   :  { %v3082_v4 = vsel %vm3078_vm4, %v3066_v58, %v3081_v30  ;;  %v3092_v27 = vshll.u32 %v3052_v35, 8  ;;  %vm2932_vm7 = vcmp.lt.s32.totalorder %v14467_v51, 2  ;;  %vm8106_vm8 = vcmp.lt.s32.totalorder %v14470_v47, 2 }
 0x30a   :  { %v11127_v29 = vadd.s32 4294967294, %v2803_v14  ;;  %v2821_v36 = vsub.s32 4, %v14445_v8  ;;  %v3087_v50 = vsel %vm3077_vm5, %v3084_v39, %v3086_v12  ;;  %v3090_v44 = vsel %vm3078_vm4, %v3072_v23, %v3089_v15 }
 0x30b   :  { %vm2930_vm9 = vweird.f32 %v14150_v54  ;;  %v3091_v17 = vsel %vm3077_vm5, %v3088_v53, %v3090_v44  ;;  %v14487_v38 = vmul.u32.u64.low %v3092_v27, %v3087_v50  ;;  %v14488_v48 = vmul.u32.u64.high %v3092_v27, %v3087_v50, %v14487_v38 }
 0x30c   :  { %v2945_v63 = vshrl.u32 %v2944_v52, 23  ;;  %vm14493_vm10 = vcmp.le.f32.partialorder %v2735_v18, 0.7853982  ;;  %vm11128_vm11 = vcmp.lt.s32.totalorder %v11127_v29, 0  ;;  %v3083_v22 = vsel %vm3077_vm5, %v3080_v26, %v3082_v4 }
 0x30d   :  { %v14498_v49 = vmul.u32.u64.low %v3092_v27, %v3091_v17  ;;  %v14499_v32 = vmul.u32.u64.high %v3092_v27, %v3091_v17, %v14498_v49  ;;  %vm8107_vm12 = vcmp.eq.s32.totalorder %v14470_v47, 0  ;;  %vm8110_vm13 = vcmp.eq.s32.totalorder %v14470_v47, 2 }
 0x30e   :  { %v2806_v6 = vsel %vm11128_vm11, 0, %v11127_v29  ;;  %v11133_v31 = vadd.s32 4294967169, %v2945_v63  ;;  %v11738_v3 = vpop.eup %11737  ;;  %v2791_v13 = vadd.s32 %v14396_v7, %v14402_v40  ;;  %v2822_v45 = vsel %vm2737_vm1, %v2821_v36, %v14445_v8 }
 0x30f   :  { %v2807_v18 = vsub.s32 32, %v2806_v6  ;;  %v2811_v41 = vsub.s32 4294967266, %v2806_v6  ;;  %v11740_v43 = vpop.eup %11739  ;;  %v2937_v1 = vxor.u32 2147483648, %v11738_v3  ;;  %v3099_v28 = vmul.u32 %v3092_v27, %v3083_v22 }
 0x310   :  { %v3102_v21 = vadd.s32 1, %v14488_v48  ;;  %v2951_v33 = vadd.s32 1, %v11133_v31  ;;  %v2934_v11 = vxor.u32 2147483648, %v11740_v43  ;;  %v2808_v20 = vshll.u32 %v14461_v34, %v2806_v6 }
 0x311   :  { %v2809_v46 = vshrl.u32 %v2791_v13, %v2807_v18  ;;  %v2812_v58 = vadd.s32 127, %v2811_v41  ;;  %v2938_v7 = vsel %vm2936_vm2, %v2937_v1, %v11740_v43  ;;  %v8112_v40 = vsel %vm8110_vm13, %v2937_v1, %v11740_v43 }
 0x312   :  { %vm3101_vm14 = vc.u32 %v14499_v32, %v14487_v38  ;;  %vm2952_vm15 = vcmp.gt.s32.totalorder %v2951_v33, 0  ;;  %v2935_v8 = vsel %vm2933_vm6, %v11738_v3, %v2934_v11  ;;  %v8109_v37 = vsel %vm8107_vm12, %v11738_v3, %v2934_v11 }
 0x313   :  { %v2810_v23 = vor.u32 %v2809_v46, %v2808_v20  ;;  %v2813_v34 = vshll.u32 %v2812_v58, 23  ;;  %v2939_v10 = vsel %vm2932_vm7, %v2935_v8, %v2938_v7  ;;  %v8113_v16 = vsel %vm8106_vm8, %v8109_v37, %v8112_v40 }
 0x314   :  { %v3103_v35 = vsel %vm3101_vm14, %v3102_v21, %v14488_v48  ;;  %v2953_v52 = vsel %vm2952_vm15, %v2951_v33, 0  ;;  %v2940_v24 = vsel %vm2930_vm9, nan, %v2939_v10  ;;  %v8114_v57 = vsel %vm2930_vm9, nan, %v8113_v16 }
 0x315   :  { %v2814_v30 = vor.u32 4788187, %v2813_v34  ;;  %v2941_v39 = vand.u32 2147483647, %v14443_v55  ;;  %10842 = vst [vmem:[#allocation2 + $0x170] sm:$0xff] %v2940_v24  ;;  %10892 = vst [vmem:[#allocation2 + $0x178] sm:$0xff] %v2940_v24  ;;  %v3104_v47 = vadd.s32 %v3103_v35, %v3099_v28  ;;  %v2817_v53 = vcvt.s32.f32 %v2810_v23 }
 0x316   :  { %10943 = vst [vmem:[#allocation2 + $0x490] sm:$0xff] %v8114_v57  ;;  %10993 = vst [vmem:[#allocation2 + $0x498] sm:$0xff] %v8114_v57  ;;  %v2824_v51 = vsel %vm14493_vm10, 0, %v2822_v45  ;;  %v2955_v14 = vand.u32 31, %v2953_v52  ;;  %v14533_v54 = vmul.f32 %v14147_v5, %v301_v42  ;;  %v14541_v44 = vshrl.u32 %v2953_v52, 5 }
 0x317   :  { %v2815_v12 = vand.u32 2147483647, %v2814_v30  ;;  %v3105_v15 = vadd.s32 536870912, %v3104_v47  ;;  %v14535_v27 = vand.u32 3, %v2824_v51  ;;  %v2948_v29 = vand.u32 8388607, %v2941_v39 }
 0x318   :  { %v2956_v26 = vsub.s32 32, %v2955_v14  ;;  %v8000_v36 = vadd.s32 3, %v2824_v51  ;;  %v2958_v6 = vshll.u32 %v11883_v56, %v2955_v14  ;;  %v3253_v3 = vand.u32 2139095040, %v14533_v54 }
 0x319   :  { %v2818_v4 = vmul.f32 %v2817_v53, %v2815_v12  ;;  %v14539_v50 = vshrl.u32 %v3105_v15, 30  ;;  %v2961_v18 = vshll.u32 %v11884_v60, %v2955_v14  ;;  %v2964_v41 = vshll.u32 %v11885_v62, %v2955_v14 }
 0x31a   :  { %v2959_v17 = vshrl.u32 %v11884_v60, %v2956_v26  ;;  %v2962_v63 = vshrl.u32 %v11885_v62, %v2956_v26  ;;  %v2965_v22 = vshrl.u32 %v11886_v0, %v2956_v26  ;;  %v2968_v5 = vshrl.u32 %v11887_v2, %v2956_v26 }
 0x31b   :  { %v2819_v48 = vxor.u32 2147483648, %v2818_v4  ;;  %v3107_v49 = vshll.u32 %v14539_v50, 30  ;;  %v2971_v31 = vshrl.u32 %v11888_v9, %v2956_v26  ;;  %v2967_v45 = vshll.u32 %v11886_v0, %v2955_v14 }
 0x31c   :  { %v2960_v28 = vor.u32 %v2959_v17, %v2958_v6  ;;  %v2970_v21 = vshll.u32 %v11887_v2, %v2955_v14  ;;  %v2963_v33 = vor.u32 %v2962_v63, %v2961_v18  ;;  %v2966_v11 = vor.u32 %v2965_v22, %v2964_v41 }
 0x31d   :  { %v2820_v13 = vsel %vm2737_vm1, %v2819_v48, %v2818_v4  ;;  %v14559_v1 = vsub.s32 %v3104_v47, %v3107_v49  ;;  %v2969_v20 = vor.u32 %v2968_v5, %v2967_v45  ;;  %v14562_v46 = vand.u32 3, %v8000_v36 }
 0x31e   :  { %v2823_v43 = vsel %vm14493_vm10, %v14248_v19, %v2820_v13  ;;  %v2972_v7 = vor.u32 %v2971_v31, %v2970_v21  ;;  %vm3046_vm1 = vcmp.lt.s32.totalorder %v14334_v61, 0  ;;  %v2949_v40 = vor.u32 8388608, %v2948_v29 }
 0x31f   :  { %11741 = vcosq.f32 %v2823_v43  ;;  %v3110_v58 = vsub.s32 0, %v14559_v1  ;;  %v2957_v59 = vshrl.u32 %v11883_v56, %v2956_v26  ;;  %vm2973_vm3 = vcmp.lt.s32.totalorder %v14541_v44, 1 }
 0x320   :  { %11743 = vsinq.f32 %v2823_v43  ;;  %vm2975_vm0 = vcmp.lt.s32.totalorder %v14541_v44, 3  ;;  %vm2976_vm4 = vcmp.lt.s32.totalorder %v14541_v44, 4  ;;  %vm2833_vm2 = vcmp.eq.s32.totalorder %v14535_v27, 2 }
 0x321   :  { %v11138_v8 = vmin.u32 %v3110_v58, %v14559_v1  ;;  %v2978_v37 = vsel %vm2976_vm4, %v2966_v11, 2102212464  ;;  %v2981_v23 = vsel %vm2973_vm3, %v2960_v28, %v2963_v33  ;;  %v2982_v34 = vsel %vm2976_vm4, %v2969_v20, 920167782 }
 0x322   :  { %v3254_v10 = vshrl.u32 %v3253_v3, 23  ;;  %vm2830_vm6 = vcmp.eq.s32.totalorder %v14535_v27, 0  ;;  %vm8003_vm5 = vcmp.eq.s32.totalorder %v14562_v46, 0  ;;  %v2983_v35 = vsel %vm2975_vm0, %v2966_v11, %v2982_v34 }
 0x323   :  { %v3112_v16 = vclz %v11138_v8  ;;  %v2985_v52 = vsel %vm2973_vm3, %v2963_v33, %v2966_v11  ;;  %v2986_v24 = vsel %vm2976_vm4, %v2972_v7, 1326507024  ;;  %vm2829_vm7 = vcmp.lt.s32.totalorder %v14535_v27, 2 }
 0x324   :  { %vm8002_vm8 = vcmp.lt.s32.totalorder %v14562_v46, 2  ;;  %v3130_v57 = vsub.s32 4, %v14539_v50  ;;  %vm2974_vm9 = vcmp.lt.s32.totalorder %v14541_v44, 2  ;;  %v2977_v30 = vsel %vm2973_vm3, %v2957_v59, %v2960_v28 }
 0x325   :  { %v2989_v42 = vshll.u32 %v2949_v40, 8  ;;  %vm2827_vm10 = vweird.f32 %v14248_v19  ;;  %v11139_v51 = vadd.s32 4294967294, %v3112_v16  ;;  %v2979_v47 = vsel %vm2975_vm0, %v2963_v33, %v2978_v37  ;;  %v296_v19 = vpop.permute.xlu0 %295 }
 0x326   :  { %v2984_v14 = vsel %vm2974_vm9, %v2981_v23, %v2983_v35  ;;  %v2987_v12 = vsel %vm2975_vm0, %v2969_v20, %v2986_v24  ;;  %v11145_v4 = vadd.s32 4294967169, %v3254_v10  ;;  %vm8006_vm11 = vcmp.eq.s32.totalorder %v14562_v46, 2 }
 0x327   :  { %v2988_v53 = vsel %vm2974_vm9, %v2985_v52, %v2987_v12  ;;  %v14595_v15 = vmul.u32.u64.low %v2989_v42, %v2984_v14  ;;  %v14596_v26 = vmul.u32.u64.high %v2989_v42, %v2984_v14, %v14595_v15  ;;  %vm11140_vm12 = vcmp.lt.s32.totalorder %v11139_v51, 0 }
 0x328   :  { %v14600_v29 = vmul.u32.u64.low %v2989_v42, %v2988_v53  ;;  %v14601_v36 = vmul.u32.u64.high %v2989_v42, %v2988_v53, %v14600_v29  ;;  %v3100_v48 = vadd.s32 %v14487_v38, %v14499_v32  ;;  %v3115_v63 = vsel %vm11140_vm12, 0, %v11139_v51 }
 0x329   :  { %v11742_v17 = vpop.eup %11741  ;;  %v3131_v22 = vsel %vm3046_vm1, %v3130_v57, %v14539_v50  ;;  %v3260_v5 = vadd.s32 1, %v11145_v4  ;;  %v3116_v31 = vsub.s32 32, %v3115_v63  ;;  %v3120_v3 = vsub.s32 4294967266, %v3115_v63 }
 0x32a   :  { %v11744_v49 = vpop.eup %11743  ;;  %v2834_v6 = vxor.u32 2147483648, %v11742_v17  ;;  %v2980_v13 = vsel %vm2974_vm9, %v2977_v30, %v2979_v47  ;;  %v3117_v41 = vshll.u32 %v14559_v1, %v3115_v63  ;;  %v2999_v45 = vadd.s32 1, %v14596_v26 }
 0x32b   :  { %v2831_v18 = vxor.u32 2147483648, %v11744_v49  ;;  %vm3261_vm13 = vcmp.gt.s32.totalorder %v3260_v5, 0  ;;  %v3118_v50 = vshrl.u32 %v3100_v48, %v3116_v31  ;;  %v3121_v43 = vadd.s32 127, %v3120_v3 }
 0x32c   :  { %v2835_v38 = vsel %vm2833_vm2, %v2834_v6, %v11744_v49  ;;  %v8008_v32 = vsel %vm8006_vm11, %v2834_v6, %v11744_v49  ;;  %v2996_v21 = vmul.u32 %v2989_v42, %v2980_v13  ;;  %vm2998_vm14 = vc.u32 %v14601_v36, %v14595_v15 }
 0x32d   :  { %v2832_v28 = vsel %vm2830_vm6, %v11742_v17, %v2831_v18  ;;  %v8005_v44 = vsel %vm8003_vm5, %v11742_v17, %v2831_v18  ;;  %v3119_v11 = vor.u32 %v3118_v50, %v3117_v41  ;;  %v3122_v20 = vshll.u32 %v3121_v43, 23 }
 0x32e   :  { %v2836_v1 = vsel %vm2829_vm7, %v2832_v28, %v2835_v38  ;;  %v8009_v33 = vsel %vm8002_vm8, %v8005_v44, %v8008_v32  ;;  %v3000_v40 = vsel %vm2998_vm14, %v2999_v45, %v14596_v26  ;;  %v3262_v59 = vsel %vm3261_vm13, %v3260_v5, 0 }
 0x32f   :  { %v2837_v58 = vsel %vm2827_vm10, nan, %v2836_v1  ;;  %v8010_v7 = vsel %vm2827_vm10, nan, %v8009_v33  ;;  %vm14634_vm15 = vcmp.le.f32.partialorder %v3044_v25, 0.7853982  ;;  %v3123_v46 = vor.u32 4788187, %v3122_v20 }
 0x330   :  { %10841 = vst [vmem:[#allocation2 + $0x160] sm:$0xff] %v2837_v58  ;;  %10891 = vst [vmem:[#allocation2 + $0x168] sm:$0xff] %v2837_v58  ;;  %v3001_v8 = vadd.s32 %v3000_v40, %v2996_v21  ;;  %v3250_v37 = vand.u32 2147483647, %v14533_v54  ;;  %v3133_v23 = vsel %vm14634_vm15, 0, %v3131_v22  ;;  %v3264_v34 = vand.u32 31, %v3262_v59 }
 0x331   :  { %10942 = vst [vmem:[#allocation2 + $0x480] sm:$0xff] %v8010_v7  ;;  %10992 = vst [vmem:[#allocation2 + $0x488] sm:$0xff] %v8010_v7  ;;  %v3124_v10 = vand.u32 2147483647, %v3123_v46  ;;  %v3126_v16 = vcvt.s32.f32 %v3119_v11  ;;  %v14644_v25 = vld [vmem:[%s17028_s1] ss:$0 sm:$0xff]  ;;  %vm3136_vm9 = vweird.f32 %v14334_v61 }
 0x332   :  { %v3002_v35 = vadd.s32 536870912, %v3001_v8  ;;  %v3265_v52 = vsub.s32 32, %v3264_v34  ;;  %v14647_v24 = vmul.f32 %v14644_v25, %v296_v19  ;;  %v8312_v30 = vadd.s32 3, %v3133_v23 }
 0x333   :  { %v3127_v57 = vmul.f32 %v3126_v16, %v3124_v10  ;;  %v3257_v51 = vand.u32 8388607, %v3250_v37  ;;  %v3263_v47 = vshrl.u32 %v3262_v59, 5  ;;  %v3267_v29 = vshll.u32 %v11883_v56, %v3264_v34 }
 0x334   :  { %v14649_v42 = vshrl.u32 %v3002_v35, 30  ;;  %v3268_v14 = vshrl.u32 %v11884_v60, %v3265_v52  ;;  %v3271_v12 = vshrl.u32 %v11885_v62, %v3265_v52  ;;  %v3274_v53 = vshrl.u32 %v11886_v0, %v3265_v52 }
 0x335   :  { %v3128_v26 = vxor.u32 2147483648, %v3127_v57  ;;  %v3277_v17 = vshrl.u32 %v11887_v2, %v3265_v52  ;;  %v3270_v48 = vshll.u32 %v11884_v60, %v3264_v34  ;;  %v3273_v63 = vshll.u32 %v11885_v62, %v3264_v34 }
 0x336   :  { %v3004_v4 = vshll.u32 %v14649_v42, 30  ;;  %v3276_v22 = vshll.u32 %v11886_v0, %v3264_v34  ;;  %v3280_v5 = vshrl.u32 %v11888_v9, %v3265_v52  ;;  %v3269_v31 = vor.u32 %v3268_v14, %v3267_v29 }
 0x337   :  { %v3129_v49 = vsel %vm3046_vm1, %v3128_v26, %v3127_v57  ;;  %v3279_v3 = vshll.u32 %v11887_v2, %v3264_v34  ;;  %v3272_v18 = vor.u32 %v3271_v12, %v3270_v48  ;;  %v3275_v41 = vor.u32 %v3274_v53, %v3273_v63 }
 0x338   :  { %v14665_v6 = vsub.s32 %v3001_v8, %v3004_v4  ;;  %v3132_v13 = vsel %vm14634_vm15, %v14334_v61, %v3129_v49  ;;  %v3278_v45 = vor.u32 %v3277_v17, %v3276_v22  ;;  %v14671_v38 = vand.u32 3, %v3133_v23 }
 0x339   :  { %11745 = vcosq.f32 %v3132_v13  ;;  %v3281_v50 = vor.u32 %v3280_v5, %v3279_v3  ;;  %v14674_v43 = vand.u32 3, %v8312_v30  ;;  %vm2943_vm1 = vcmp.lt.s32.totalorder %v14443_v55, 0 }
 0x33a   :  { %v3007_v32 = vsub.s32 0, %v14665_v6  ;;  %11747 = vsinq.f32 %v3132_v13  ;;  %v3258_v28 = vor.u32 8388608, %v3257_v51  ;;  %v3150_v44 = vand.u32 2139095040, %v14647_v24 }
 0x33b   :  { %v3266_v1 = vshrl.u32 %v11883_v56, %v3265_v52  ;;  %vm3282_vm3 = vcmp.lt.s32.totalorder %v3263_v47, 1  ;;  %vm3285_vm0 = vcmp.lt.s32.totalorder %v3263_v47, 4  ;;  %vm3284_vm4 = vcmp.lt.s32.totalorder %v3263_v47, 3 }
 0x33c   :  { %v11134_v21 = vmin.u32 %v3007_v32, %v14665_v6  ;;  %v3287_v33 = vsel %vm3285_vm0, %v3275_v41, 2102212464  ;;  %v3290_v11 = vsel %vm3282_vm3, %v3269_v31, %v3272_v18  ;;  %v3291_v20 = vsel %vm3285_vm0, %v3278_v45, 920167782  ;;  %v311_v32 = vpop.permute.xlu1 %310 }
 0x33d   :  { %vm3142_vm2 = vcmp.eq.s32.totalorder %v14671_v38, 2  ;;  %v3292_v7 = vsel %vm3284_vm4, %v3275_v41, %v3291_v20  ;;  %v3294_v40 = vsel %vm3282_vm3, %v3272_v18, %v3275_v41  ;;  %v3295_v59 = vsel %vm3285_vm0, %v3281_v50, 1326507024 }
 0x33e   :  { %v3009_v58 = vclz %v11134_v21  ;;  %vm3139_vm6 = vcmp.eq.s32.totalorder %v14671_v38, 0  ;;  %vm3283_vm5 = vcmp.lt.s32.totalorder %v3263_v47, 2  ;;  %v3286_v27 = vsel %vm3282_vm3, %v3266_v1, %v3269_v31 }
 0x33f   :  { %v3288_v46 = vsel %vm3284_vm4, %v3272_v18, %v3287_v33  ;;  %v3298_v8 = vshll.u32 %v3258_v28, 8  ;;  %vm3138_vm7 = vcmp.lt.s32.totalorder %v14671_v38, 2  ;;  %vm8314_vm8 = vcmp.lt.s32.totalorder %v14674_v43, 2 }
 0x340   :  { %v11135_v19 = vadd.s32 4294967294, %v3009_v58  ;;  %v3027_v23 = vsub.s32 4, %v14649_v42  ;;  %v3293_v34 = vsel %vm3283_vm5, %v3290_v11, %v3292_v7  ;;  %v3296_v10 = vsel %vm3284_vm4, %v3278_v45, %v3295_v59 }
 0x341   :  { %v3297_v16 = vsel %vm3283_vm5, %v3294_v40, %v3296_v10  ;;  %v14691_v35 = vmul.u32.u64.low %v3298_v8, %v3293_v34  ;;  %v14692_v52 = vmul.u32.u64.high %v3298_v8, %v3293_v34, %v14691_v35  ;;  %v3151_v57 = vshrl.u32 %v3150_v44, 23 }
 0x342   :  { %vm14697_vm10 = vcmp.le.f32.partialorder %v2941_v39, 0.7853982  ;;  %vm11136_vm11 = vcmp.lt.s32.totalorder %v11135_v19, 0  ;;  %v3289_v51 = vsel %vm3283_vm5, %v3286_v27, %v3288_v46  ;;  %vm8315_vm12 = vcmp.eq.s32.totalorder %v14674_v43, 0 }
 0x343   :  { %v14702_v14 = vmul.u32.u64.low %v3298_v8, %v3297_v16  ;;  %v14703_v12 = vmul.u32.u64.high %v3298_v8, %v3297_v16, %v14702_v14  ;;  %vm8318_vm13 = vcmp.eq.s32.totalorder %v14674_v43, 2  ;;  %v3012_v53 = vsel %vm11136_vm11, 0, %v11135_v19  ;;  %v11746_v4 = vpop.eup %11745 }
 0x344   :  { %v11141_v26 = vadd.s32 4294967169, %v3151_v57  ;;  %v2997_v29 = vadd.s32 %v14595_v15, %v14601_v36  ;;  %v3013_v39 = vsub.s32 32, %v3012_v53  ;;  %v3017_v17 = vsub.s32 4294967266, %v3012_v53  ;;  %v11748_v48 = vpop.eup %11747 }
 0x345   :  { %v3028_v47 = vsel %vm2943_vm1, %v3027_v23, %v14649_v42  ;;  %v3143_v63 = vxor.u32 2147483648, %v11746_v4  ;;  %v3305_v22 = vmul.u32 %v3298_v8, %v3289_v51  ;;  %v3308_v5 = vadd.s32 1, %v14692_v52 }
 0x346   :  { %v3157_v49 = vadd.s32 1, %v11141_v26  ;;  %v3140_v31 = vxor.u32 2147483648, %v11748_v48  ;;  %v3014_v3 = vshll.u32 %v14665_v6, %v3012_v53  ;;  %v3015_v13 = vshrl.u32 %v2997_v29, %v3013_v39 }
 0x347   :  { %v3018_v18 = vadd.s32 127, %v3017_v17  ;;  %v3144_v15 = vsel %vm3142_vm2, %v3143_v63, %v11748_v48  ;;  %v8320_v36 = vsel %vm8318_vm13, %v3143_v63, %v11748_v48  ;;  %vm3307_vm14 = vc.u32 %v14703_v12, %v14691_v35 }
 0x348   :  { %vm3158_vm15 = vcmp.gt.s32.totalorder %v3157_v49, 0  ;;  %v3141_v42 = vsel %vm3139_vm6, %v11746_v4, %v3140_v31  ;;  %v8317_v41 = vsel %vm8315_vm12, %v11746_v4, %v3140_v31  ;;  %v3016_v45 = vor.u32 %v3015_v13, %v3014_v3 }
 0x349   :  { %v3019_v6 = vshll.u32 %v3018_v18, 23  ;;  %v3145_v50 = vsel %vm3138_vm7, %v3141_v42, %v3144_v15  ;;  %v8321_v28 = vsel %vm8314_vm8, %v8317_v41, %v8320_v36  ;;  %v3309_v44 = vsel %vm3307_vm14, %v3308_v5, %v14692_v52 }
 0x34a   :  { %v3159_v21 = vsel %vm3158_vm15, %v3157_v49, 0  ;;  %v3146_v1 = vsel %vm3136_vm9, nan, %v3145_v50  ;;  %v8322_v33 = vsel %vm3136_vm9, nan, %v8321_v28  ;;  %v3147_v20 = vand.u32 2147483647, %v14647_v24 }
 0x34b   :  { %v3020_v11 = vor.u32 4788187, %v3019_v6  ;;  %10844 = vst [vmem:[#allocation2 + $0x190] sm:$0xff] %v3146_v1  ;;  %10894 = vst [vmem:[#allocation2 + $0x198] sm:$0xff] %v3146_v1  ;;  %v3030_v38 = vsel %vm14697_vm10, 0, %v3028_v47  ;;  %v3310_v43 = vadd.s32 %v3309_v44, %v3305_v22  ;;  %v3161_v58 = vand.u32 31, %v3159_v21 }
 0x34c   :  { %10945 = vst [vmem:[#allocation2 + $0x4b0] sm:$0xff] %v8322_v33  ;;  %10995 = vst [vmem:[#allocation2 + $0x4b8] sm:$0xff] %v8322_v33  ;;  %v14737_v7 = vmul.f32 %v14644_v25, %v311_v32  ;;  %v3023_v59 = vcvt.s32.f32 %v3016_v45  ;;  %vm3252_vm3 = vcmp.lt.s32.totalorder %v14533_v54, 0  ;;  %v14740_v8 = vand.u32 3, %v3030_v38 }
 0x34d   :  { %v3021_v40 = vand.u32 2147483647, %v3020_v11  ;;  %v3311_v61 = vadd.s32 536870912, %v3310_v43  ;;  %v3162_v27 = vsub.s32 32, %v3161_v58  ;;  %v8208_v19 = vadd.s32 3, %v3030_v38 }
 0x34e   :  { %v3154_v23 = vand.u32 8388607, %v3147_v20  ;;  %v14744_v10 = vshrl.u32 %v3159_v21, 5  ;;  %v3459_v52 = vand.u32 2139095040, %v14737_v7  ;;  %v3164_v4 = vshll.u32 %v11883_v56, %v3161_v58 }
 0x34f   :  { %v3024_v46 = vmul.f32 %v3023_v59, %v3021_v40  ;;  %v3312_v34 = vshrl.u32 %v3311_v61, 30  ;;  %v3165_v16 = vshrl.u32 %v11884_v60, %v3162_v27  ;;  %v3168_v51 = vshrl.u32 %v11885_v62, %v3162_v27 }
 0x350   :  { %v3171_v14 = vshrl.u32 %v11886_v0, %v3162_v27  ;;  %v3174_v53 = vshrl.u32 %v11887_v2, %v3162_v27  ;;  %v3167_v29 = vshll.u32 %v11884_v60, %v3161_v58  ;;  %v3177_v39 = vshrl.u32 %v11888_v9, %v3162_v27 }
 0x351   :  { %v3025_v57 = vxor.u32 2147483648, %v3024_v46  ;;  %v3313_v26 = vshll.u32 %v3312_v34, 30  ;;  %v3336_v47 = vsub.s32 4, %v3312_v34  ;;  %v3170_v48 = vshll.u32 %v11885_v62, %v3161_v58 }
 0x352   :  { %v3173_v63 = vshll.u32 %v11886_v0, %v3161_v58  ;;  %v3166_v49 = vor.u32 %v3165_v16, %v3164_v4  ;;  %v3176_v31 = vshll.u32 %v11887_v2, %v3161_v58  ;;  %v3169_v3 = vor.u32 %v3168_v51, %v3167_v29 }
 0x353   :  { %v3026_v17 = vsel %vm2943_vm1, %v3025_v57, %v3024_v46  ;;  %v14761_v5 = vsub.s32 %v3310_v43, %v3313_v26  ;;  %v3172_v13 = vor.u32 %v3171_v14, %v3170_v48  ;;  %v14764_v15 = vand.u32 3, %v8208_v19 }
 0x354   :  { %v3029_v22 = vsel %vm14697_vm10, %v14443_v55, %v3026_v17  ;;  %v3175_v18 = vor.u32 %v3174_v53, %v3173_v63  ;;  %v3178_v42 = vor.u32 %v3177_v39, %v3176_v31  ;;  %vm14769_vm1 = vcmp.le.f32.partialorder %v3250_v37, 0.7853982 }
 0x355   :  { %11749 = vcosq.f32 %v3029_v22  ;;  %v3316_v36 = vsub.s32 0, %v14761_v5  ;;  %v3337_v41 = vsel %vm3252_vm3, %v3336_v47, %v3312_v34  ;;  %v3155_v45 = vor.u32 8388608, %v3154_v23 }
 0x356   :  { %11751 = vsinq.f32 %v3029_v22  ;;  %v3163_v6 = vshrl.u32 %v11883_v56, %v3162_v27  ;;  %vm3179_vm0 = vcmp.lt.s32.totalorder %v14744_v10, 1  ;;  %vm3181_vm4 = vcmp.lt.s32.totalorder %v14744_v10, 3 }
 0x357   :  { %v11146_v32 = vmin.u32 %v3316_v36, %v14761_v5  ;;  %vm3182_vm2 = vcmp.lt.s32.totalorder %v14744_v10, 4  ;;  %vm3039_vm6 = vcmp.eq.s32.totalorder %v14740_v8, 2  ;;  %v3187_v50 = vsel %vm3179_vm0, %v3166_v49, %v3169_v3 }
 0x358   :  { %v3184_v37 = vsel %vm3182_vm2, %v3172_v13, 2102212464  ;;  %v3188_v28 = vsel %vm3182_vm2, %v3175_v18, 920167782  ;;  %v3460_v44 = vshrl.u32 %v3459_v52, 23  ;;  %vm3036_vm5 = vcmp.eq.s32.totalorder %v14740_v8, 0 }
 0x359   :  { %vm8211_vm7 = vcmp.eq.s32.totalorder %v14764_v15, 0  ;;  %v3318_v21 = vclz %v11146_v32  ;;  %v3189_v1 = vsel %vm3181_vm4, %v3172_v13, %v3188_v28  ;;  %v3191_v33 = vsel %vm3179_vm0, %v3169_v3, %v3172_v13  ;;  %v306_v28 = vpop.permute.xlu0 %305 }
 0x35a   :  { %v3192_v11 = vsel %vm3182_vm2, %v3178_v42, 1326507024  ;;  %vm3035_vm8 = vcmp.lt.s32.totalorder %v14740_v8, 2  ;;  %vm8210_vm9 = vcmp.lt.s32.totalorder %v14764_v15, 2  ;;  %v3339_v38 = vsel %vm14769_vm1, 0, %v3337_v41 }
 0x35b   :  { %vm3180_vm10 = vcmp.lt.s32.totalorder %v14744_v10, 2  ;;  %v3183_v43 = vsel %vm3179_vm0, %v3163_v6, %v3166_v49  ;;  %v3195_v58 = vshll.u32 %v3155_v45, 8  ;;  %vm3033_vm11 = vweird.f32 %v14443_v55 }
 0x35c   :  { %v11147_v40 = vadd.s32 4294967294, %v3318_v21  ;;  %v3185_v59 = vsel %vm3181_vm4, %v3169_v3, %v3184_v37  ;;  %v3190_v61 = vsel %vm3180_vm10, %v3187_v50, %v3189_v1  ;;  %v3193_v27 = vsel %vm3181_vm4, %v3175_v18, %v3192_v11 }
 0x35d   :  { %v3194_v46 = vsel %vm3180_vm10, %v3191_v33, %v3193_v27  ;;  %v14805_v19 = vmul.u32.u64.low %v3195_v58, %v3190_v61  ;;  %v14806_v23 = vmul.u32.u64.high %v3195_v58, %v3190_v61, %v14805_v19  ;;  %v11153_v34 = vadd.s32 4294967169, %v3460_v44 }
 0x35e   :  { %vm8214_vm12 = vcmp.eq.s32.totalorder %v14764_v15, 2  ;;  %vm11148_vm13 = vcmp.lt.s32.totalorder %v11147_v40, 0  ;;  %v14810_v16 = vmul.u32.u64.low %v3195_v58, %v3194_v46  ;;  %v14811_v52 = vmul.u32.u64.high %v3195_v58, %v3194_v46, %v14810_v16 }
 0x35f   :  { %v11750_v57 = vpop.eup %11749  ;;  %v3306_v51 = vadd.s32 %v14691_v35, %v14703_v12  ;;  %v3321_v14 = vsel %vm11148_vm13, 0, %v11147_v40  ;;  %v8520_v53 = vadd.s32 3, %v3339_v38  ;;  %v3466_v26 = vadd.s32 1, %v11153_v34 }
 0x360   :  { %v11752_v4 = vpop.eup %11751  ;;  %v3040_v29 = vxor.u32 2147483648, %v11750_v57  ;;  %v3322_v39 = vsub.s32 32, %v3321_v14  ;;  %v3326_v17 = vsub.s32 4294967266, %v3321_v14  ;;  %v3186_v47 = vsel %vm3180_vm10, %v3183_v43, %v3185_v59 }
 0x361   :  { %v3037_v48 = vxor.u32 2147483648, %v11752_v4  ;;  %v3323_v63 = vshll.u32 %v14761_v5, %v3321_v14  ;;  %v3205_v22 = vadd.s32 1, %v14806_v23  ;;  %vm3467_vm14 = vcmp.gt.s32.totalorder %v3466_v26, 0 }
 0x362   :  { %v3041_v49 = vsel %vm3039_vm6, %v3040_v29, %v11752_v4  ;;  %v8216_v35 = vsel %vm8214_vm12, %v3040_v29, %v11752_v4  ;;  %v3324_v12 = vshrl.u32 %v3306_v51, %v3322_v39  ;;  %v3327_v31 = vadd.s32 127, %v3326_v17 }
 0x363   :  { %v3038_v3 = vsel %vm3036_vm5, %v11750_v57, %v3037_v48  ;;  %v8213_v10 = vsel %vm8211_vm7, %v11750_v57, %v3037_v48  ;;  %v3202_v13 = vmul.u32 %v3195_v58, %v3186_v47  ;;  %vm3204_vm15 = vc.u32 %v14811_v52, %v14805_v19 }
 0x364   :  { %v3042_v5 = vsel %vm3035_vm8, %v3038_v3, %v3041_v49  ;;  %v8217_v18 = vsel %vm8210_vm9, %v8213_v10, %v8216_v35  ;;  %v3325_v36 = vor.u32 %v3324_v12, %v3323_v63  ;;  %v3328_v42 = vshll.u32 %v3327_v31, 23 }
 0x365   :  { %v3043_v41 = vsel %vm3033_vm11, nan, %v3042_v5  ;;  %v8218_v45 = vsel %vm3033_vm11, nan, %v8217_v18  ;;  %v3206_v6 = vsel %vm3204_vm15, %v3205_v22, %v14806_v23  ;;  %v3468_v32 = vsel %vm3467_vm14, %v3466_v26, 0 }
 0x366   :  { %10843 = vst [vmem:[#allocation2 + $0x180] sm:$0xff] %v3043_v41  ;;  %10893 = vst [vmem:[#allocation2 + $0x188] sm:$0xff] %v3043_v41  ;;  %v3329_v8 = vor.u32 4788187, %v3328_v42  ;;  %v3207_v37 = vadd.s32 %v3206_v6, %v3202_v13  ;;  %v3456_v15 = vand.u32 2147483647, %v14737_v7  ;;  %v3332_v21 = vcvt.s32.f32 %v3325_v36 }
 0x367   :  { %10944 = vst [vmem:[#allocation2 + $0x4a0] sm:$0xff] %v8218_v45  ;;  %10994 = vst [vmem:[#allocation2 + $0x4a8] sm:$0xff] %v8218_v45  ;;  %v3470_v50 = vand.u32 31, %v3468_v32  ;;  %v14840_v33 = vand.u32 3, %v3339_v38  ;;  %v14842_v55 = vand.u32 3, %v8520_v53  ;;  %v14847_v59 = vmul.f32 %v14644_v25, %v306_v28 }
 0x368   :  { %v3330_v44 = vand.u32 2147483647, %v3329_v8  ;;  %v3208_v1 = vadd.s32 536870912, %v3207_v37  ;;  %v3463_v40 = vand.u32 8388607, %v3456_v15  ;;  %v3469_v61 = vshrl.u32 %v3468_v32, 5 }
 0x369   :  { %v3471_v11 = vsub.s32 32, %v3470_v50  ;;  %v3473_v16 = vshll.u32 %v11883_v56, %v3470_v50  ;;  %vm3149_vm0 = vcmp.lt.s32.totalorder %v14647_v24, 0  ;;  %v3476_v51 = vshll.u32 %v11884_v60, %v3470_v50 }
 0x36a   :  { %v3333_v43 = vmul.f32 %v3332_v21, %v3330_v44  ;;  %v3209_v58 = vshrl.u32 %v3208_v1, 30  ;;  %v3479_v14 = vshll.u32 %v11885_v62, %v3470_v50  ;;  %v3482_v53 = vshll.u32 %v11886_v0, %v3470_v50 }
 0x36b   :  { %v3474_v27 = vshrl.u32 %v11884_v60, %v3471_v11  ;;  %v3477_v46 = vshrl.u32 %v11885_v62, %v3471_v11  ;;  %v3480_v23 = vshrl.u32 %v11886_v0, %v3471_v11  ;;  %v3483_v57 = vshrl.u32 %v11887_v2, %v3471_v11 }
 0x36c   :  { %v3334_v38 = vxor.u32 2147483648, %v3333_v43  ;;  %v3210_v34 = vshll.u32 %v3209_v58, 30  ;;  %v3486_v26 = vshrl.u32 %v11888_v9, %v3471_v11  ;;  %v3485_v17 = vshll.u32 %v11887_v2, %v3470_v50 }
 0x36d   :  { %v3475_v39 = vor.u32 %v3474_v27, %v3473_v16  ;;  %v3478_v48 = vor.u32 %v3477_v46, %v3476_v51  ;;  %v3481_v63 = vor.u32 %v3480_v23, %v3479_v14  ;;  %v3484_v22 = vor.u32 %v3483_v57, %v3482_v53 }
 0x36e   :  { %v3335_v4 = vsel %vm3252_vm3, %v3334_v38, %v3333_v43  ;;  %v14861_v29 = vsub.s32 %v3207_v37, %v3210_v34  ;;  %v3472_v35 = vshrl.u32 %v11883_v56, %v3471_v11  ;;  %v3487_v12 = vor.u32 %v3486_v26, %v3485_v17 }
 0x36f   :  { %v3338_v47 = vsel %vm14769_vm1, %v14533_v54, %v3335_v4  ;;  %v3233_v31 = vsub.s32 4, %v3209_v58  ;;  %v3464_v3 = vor.u32 8388608, %v3463_v40  ;;  %vm3488_vm3 = vcmp.lt.s32.totalorder %v3469_v61, 1 }
 0x370   :  { %11753 = vcosq.f32 %v3338_v47  ;;  %v3213_v49 = vsub.s32 0, %v14861_v29  ;;  %vm14871_vm4 = vcmp.le.f32.partialorder %v3147_v20, 0.7853982  ;;  %vm3490_vm1 = vcmp.lt.s32.totalorder %v3469_v61, 3 }
 0x371   :  { %11755 = vsinq.f32 %v3338_v47  ;;  %vm3491_vm2 = vcmp.lt.s32.totalorder %v3469_v61, 4  ;;  %v3492_v13 = vsel %vm3488_vm3, %v3472_v35, %v3475_v39  ;;  %v3496_v18 = vsel %vm3488_vm3, %v3475_v39, %v3478_v48 }
 0x372   :  { %v11142_v30 = vmin.u32 %v3213_v49, %v14861_v29  ;;  %v3493_v5 = vsel %vm3491_vm2, %v3481_v63, 2102212464  ;;  %v3497_v36 = vsel %vm3491_vm2, %v3484_v22, 920167782  ;;  %v3500_v42 = vsel %vm3488_vm3, %v3478_v48, %v3481_v63 }
 0x373   :  { %v3494_v45 = vsel %vm3490_vm1, %v3478_v48, %v3493_v5  ;;  %v3498_v6 = vsel %vm3490_vm1, %v3481_v63, %v3497_v36  ;;  %v3501_v32 = vsel %vm3491_vm2, %v3487_v12, 1326507024  ;;  %vm3345_vm6 = vcmp.eq.s32.totalorder %v14840_v33, 0 }
 0x374   :  { %v3215_v41 = vclz %v11142_v30  ;;  %vm3348_vm5 = vcmp.eq.s32.totalorder %v14840_v33, 2  ;;  %vm3489_vm7 = vcmp.lt.s32.totalorder %v3469_v61, 2  ;;  %v3504_v20 = vshll.u32 %v3464_v3, 8 }
 0x375   :  { %vm3344_vm8 = vcmp.lt.s32.totalorder %v14840_v33, 2  ;;  %vm8522_vm9 = vcmp.lt.s32.totalorder %v14842_v55, 2  ;;  %v3234_v37 = vsel %vm3149_vm0, %v3233_v31, %v3209_v58  ;;  %v3499_v50 = vsel %vm3489_vm7, %v3496_v18, %v3498_v6  ;;  %v321_v18 = vpop.permute.xlu1 %320 }
 0x376   :  { %v11143_v8 = vadd.s32 4294967294, %v3215_v41  ;;  %v3502_v28 = vsel %vm3490_vm1, %v3484_v22, %v3501_v32  ;;  %vm3342_vm10 = vweird.f32 %v14533_v54  ;;  %v3495_v44 = vsel %vm3489_vm7, %v3492_v13, %v3494_v45 }
 0x377   :  { %v3503_v21 = vsel %vm3489_vm7, %v3500_v42, %v3502_v28  ;;  %v14886_v1 = vmul.u32.u64.low %v3504_v20, %v3499_v50  ;;  %v14887_v11 = vmul.u32.u64.high %v3504_v20, %v3499_v50, %v14886_v1  ;;  %v3356_v27 = vand.u32 2139095040, %v14847_v59 }
 0x378   :  { %vm11144_vm11 = vcmp.lt.s32.totalorder %v11143_v8, 0  ;;  %v14890_v43 = vmul.u32.u64.low %v3504_v20, %v3503_v21  ;;  %v14891_v40 = vmul.u32.u64.high %v3504_v20, %v3503_v21, %v14890_v43  ;;  %vm8523_vm12 = vcmp.eq.s32.totalorder %v14842_v55, 0 }
 0x379   :  { %vm8526_vm13 = vcmp.eq.s32.totalorder %v14842_v55, 2  ;;  %v3203_v58 = vadd.s32 %v14805_v19, %v14811_v52  ;;  %v3218_v61 = vsel %vm11144_vm11, 0, %v11143_v8  ;;  %v3353_v34 = vand.u32 2147483647, %v14847_v59 }
 0x37a   :  { %v11754_v46 = vpop.eup %11753  ;;  %v3219_v23 = vsub.s32 32, %v3218_v61  ;;  %v3223_v38 = vsub.s32 4294967266, %v3218_v61  ;;  %v3357_v16 = vshrl.u32 %v3356_v27, 23  ;;  %v3236_v14 = vsel %vm14871_vm4, 0, %v3234_v37 }
 0x37b   :  { %v11756_v57 = vpop.eup %11755  ;;  %v3349_v51 = vxor.u32 2147483648, %v11754_v46  ;;  %v3511_v53 = vmul.u32 %v3504_v20, %v3495_v44  ;;  %v3514_v26 = vadd.s32 1, %v14887_v11  ;;  %v3220_v39 = vshll.u32 %v14861_v29, %v3218_v61 }
 0x37c   :  { %v3346_v4 = vxor.u32 2147483648, %v11756_v57  ;;  %v3221_v17 = vshrl.u32 %v3203_v58, %v3219_v23  ;;  %v3224_v19 = vadd.s32 127, %v3223_v38  ;;  %vm3513_vm14 = vc.u32 %v14891_v40, %v14886_v1 }
 0x37d   :  { %v3350_v52 = vsel %vm3348_vm5, %v3349_v51, %v11756_v57  ;;  %v8528_v47 = vsel %vm8526_vm13, %v3349_v51, %v11756_v57  ;;  %v11149_v48 = vadd.s32 4294967169, %v3357_v16  ;;  %v3515_v31 = vsel %vm3513_vm14, %v3514_v26, %v14887_v11 }
 0x37e   :  { %v3347_v63 = vsel %vm3345_vm6, %v11754_v46, %v3346_v4  ;;  %v8525_v22 = vsel %vm8523_vm12, %v11754_v46, %v3346_v4  ;;  %v3222_v49 = vor.u32 %v3221_v17, %v3220_v39  ;;  %v3225_v29 = vshll.u32 %v3224_v19, 23 }
 0x37f   :  { %v3351_v35 = vsel %vm3344_vm8, %v3347_v63, %v3350_v52  ;;  %v8529_v12 = vsel %vm8522_vm9, %v8525_v22, %v8528_v47  ;;  %v3363_v3 = vadd.s32 1, %v11149_v48  ;;  %v3516_v33 = vadd.s32 %v3515_v31, %v3511_v53 }
 0x380   :  { %v3352_v30 = vsel %vm3342_vm10, nan, %v3351_v35  ;;  %v8530_v13 = vsel %vm3342_vm10, nan, %v8529_v12  ;;  %v3226_v5 = vor.u32 4788187, %v3225_v29  ;;  %v3229_v55 = vcvt.s32.f32 %v3222_v49 }
 0x381   :  { %10846 = vst [vmem:[#allocation2 + $0x1b0] sm:$0xff] %v3352_v30  ;;  %10896 = vst [vmem:[#allocation2 + $0x1b8] sm:$0xff] %v3352_v30  ;;  %vm3364_vm15 = vcmp.gt.s32.totalorder %v3363_v3, 0  ;;  %v8416_v42 = vadd.s32 3, %v3236_v14  ;;  %v3517_v45 = vadd.s32 536870912, %v3516_v33  ;;  %v14925_v54 = vmul.f32 %v14644_v25, %v321_v18 }
 0x382   :  { %10947 = vst [vmem:[#allocation2 + $0x4d0] sm:$0xff] %v8530_v13  ;;  %10997 = vst [vmem:[#allocation2 + $0x4d8] sm:$0xff] %v8530_v13  ;;  %v3227_v36 = vand.u32 2147483647, %v3226_v5  ;;  %v3365_v41 = vsel %vm3364_vm15, %v3363_v3, 0  ;;  %v14927_v28 = vand.u32 3, %v3236_v14  ;;  %v3512_v48 = vadd.s32 %v14886_v1, %v14891_v40 }
 0x383   :  { %v3360_v6 = vand.u32 8388607, %v3353_v34  ;;  %v3367_v32 = vand.u32 31, %v3365_v41  ;;  %v3518_v8 = vshrl.u32 %v3517_v45, 30  ;;  %v14929_v44 = vand.u32 3, %v8416_v42 }
 0x384   :  { %v3230_v20 = vmul.f32 %v3229_v55, %v3227_v36  ;;  %vm3458_vm3 = vcmp.lt.s32.totalorder %v14737_v7, 0  ;;  %v3366_v43 = vshrl.u32 %v3365_v41, 5  ;;  %v3665_v27 = vand.u32 2139095040, %v14925_v54 }
 0x385   :  { %v3368_v37 = vsub.s32 32, %v3367_v32  ;;  %v3519_v21 = vshll.u32 %v3518_v8, 30  ;;  %v3361_v11 = vor.u32 8388608, %v3360_v6  ;;  %vm14937_vm1 = vcmp.le.f32.partialorder %v3456_v15, 0.7853982 }
 0x386   :  { %v3231_v50 = vxor.u32 2147483648, %v3230_v20  ;;  %v3376_v51 = vshll.u32 %v11885_v62, %v3367_v32  ;;  %v3542_v15 = vsub.s32 4, %v3518_v8  ;;  %v3370_v53 = vshll.u32 %v11883_v56, %v3367_v32 }
 0x387   :  { %v3371_v46 = vshrl.u32 %v11884_v60, %v3368_v37  ;;  %v3374_v23 = vshrl.u32 %v11885_v62, %v3368_v37  ;;  %v3377_v38 = vshrl.u32 %v11886_v0, %v3368_v37  ;;  %v14947_v57 = vsub.s32 %v3516_v33, %v3519_v21 }
 0x388   :  { %v3232_v58 = vsel %vm3149_vm0, %v3231_v50, %v3230_v20  ;;  %v3380_v14 = vshrl.u32 %v11887_v2, %v3368_v37  ;;  %v3373_v26 = vshll.u32 %v11884_v60, %v3367_v32  ;;  %v3379_v17 = vshll.u32 %v11886_v0, %v3367_v32 }
 0x389   :  { %v3235_v16 = vsel %vm14871_vm4, %v14647_v24, %v3232_v58  ;;  %v3522_v4 = vsub.s32 0, %v14947_v57  ;;  %v3378_v39 = vor.u32 %v3377_v38, %v3376_v51  ;;  %v3372_v10 = vor.u32 %v3371_v46, %v3370_v53 }
 0x38a   :  { %11757 = vcosq.f32 %v3235_v16  ;;  %v3375_v19 = vor.u32 %v3374_v23, %v3373_v26  ;;  %v3382_v52 = vshll.u32 %v11887_v2, %v3367_v32  ;;  %v3383_v47 = vshrl.u32 %v11888_v9, %v3368_v37 }
 0x38b   :  { %11759 = vsinq.f32 %v3235_v16  ;;  %v11154_v63 = vmin.u32 %v3522_v4, %v14947_v57  ;;  %v3381_v22 = vor.u32 %v3380_v14, %v3379_v17  ;;  %v3666_v49 = vshrl.u32 %v3665_v27, 23 }
 0x38c   :  { %vm3245_vm0 = vcmp.eq.s32.totalorder %v14927_v28, 2  ;;  %vm8422_vm4 = vcmp.eq.s32.totalorder %v14929_v44, 2  ;;  %v3543_v29 = vsel %vm3458_vm3, %v3542_v15, %v3518_v8  ;;  %v3369_v35 = vshrl.u32 %v11883_v56, %v3368_v37 }
 0x38d   :  { %v3384_v12 = vor.u32 %v3383_v47, %v3382_v52  ;;  %vm3388_vm2 = vcmp.lt.s32.totalorder %v3366_v43, 4  ;;  %vm3242_vm6 = vcmp.eq.s32.totalorder %v14927_v28, 0  ;;  %vm8419_vm5 = vcmp.eq.s32.totalorder %v14929_v44, 0 }
 0x38e   :  { %v3524_v1 = vclz %v11154_v63  ;;  %vm3385_vm7 = vcmp.lt.s32.totalorder %v3366_v43, 1  ;;  %vm3387_vm8 = vcmp.lt.s32.totalorder %v3366_v43, 3  ;;  %v3390_v40 = vsel %vm3388_vm2, %v3378_v39, 2102212464 }
 0x38f   :  { %vm3241_vm9 = vcmp.lt.s32.totalorder %v14927_v28, 2  ;;  %vm8418_vm10 = vcmp.lt.s32.totalorder %v14929_v44, 2  ;;  %v3389_v31 = vsel %vm3385_vm7, %v3369_v35, %v3372_v10  ;;  %v3391_v3 = vsel %vm3387_vm8, %v3375_v19, %v3390_v40 }
 0x390   :  { %v3393_v30 = vsel %vm3385_vm7, %v3372_v10, %v3375_v19  ;;  %v3401_v13 = vshll.u32 %v3361_v11, 8  ;;  %vm3239_vm11 = vweird.f32 %v14647_v24  ;;  %v11155_v5 = vadd.s32 4294967294, %v3524_v1  ;;  %v316_v24 = vpop.permute.xlu0 %315 }
 0x391   :  { %v3545_v18 = vsel %vm14937_vm1, 0, %v3543_v29  ;;  %v3394_v33 = vsel %vm3388_vm2, %v3381_v22, 920167782  ;;  %v3397_v36 = vsel %vm3385_vm7, %v3375_v19, %v3378_v39  ;;  %vm3386_vm12 = vcmp.lt.s32.totalorder %v3366_v43, 2 }
 0x392   :  { %v3395_v55 = vsel %vm3387_vm8, %v3378_v39, %v3394_v33  ;;  %v3398_v42 = vsel %vm3388_vm2, %v3384_v12, 1326507024  ;;  %v11161_v41 = vadd.s32 4294967169, %v3666_v49  ;;  %vm11156_vm13 = vcmp.lt.s32.totalorder %v11155_v5, 0 }
 0x393   :  { %v3392_v45 = vsel %vm3386_vm12, %v3389_v31, %v3391_v3  ;;  %v3396_v6 = vsel %vm3386_vm12, %v3393_v30, %v3395_v55  ;;  %v3399_v32 = vsel %vm3387_vm8, %v3381_v22, %v3398_v42  ;;  %v3527_v8 = vsel %vm11156_vm13, 0, %v11155_v5 }
 0x394   :  { %v11758_v20 = vpop.eup %11757  ;;  %v3400_v37 = vsel %vm3386_vm12, %v3397_v36, %v3399_v32  ;;  %v14978_v50 = vmul.u32.u64.low %v3401_v13, %v3396_v6  ;;  %v14979_v21 = vmul.u32.u64.high %v3401_v13, %v3396_v6, %v14978_v50  ;;  %v3528_v58 = vsub.s32 32, %v3527_v8 }
 0x395   :  { %v11760_v11 = vpop.eup %11759  ;;  %v3246_v27 = vxor.u32 2147483648, %v11758_v20  ;;  %v3529_v46 = vshll.u32 %v14947_v57, %v3527_v8  ;;  %v3532_v23 = vsub.s32 4294967266, %v3527_v8  ;;  %v3672_v14 = vadd.s32 1, %v11161_v41 }
 0x396   :  { %v3243_v38 = vxor.u32 2147483648, %v11760_v11  ;;  %v14983_v16 = vmul.u32.u64.low %v3401_v13, %v3400_v37  ;;  %v14984_v51 = vmul.u32.u64.high %v3401_v13, %v3400_v37, %v14983_v16  ;;  %v3530_v53 = vshrl.u32 %v3512_v48, %v3528_v58 }
 0x397   :  { %v3247_v43 = vsel %vm3245_vm0, %v3246_v27, %v11760_v11  ;;  %v8424_v15 = vsel %vm8422_vm4, %v3246_v27, %v11760_v11  ;;  %v3533_v26 = vadd.s32 127, %v3532_v23  ;;  %v3411_v39 = vadd.s32 1, %v14979_v21 }
 0x398   :  { %v3244_v4 = vsel %vm3242_vm6, %v11758_v20, %v3243_v38  ;;  %v8421_v57 = vsel %vm8419_vm5, %v11758_v20, %v3243_v38  ;;  %vm3673_vm14 = vcmp.gt.s32.totalorder %v3672_v14, 0  ;;  %v3531_v19 = vor.u32 %v3530_v53, %v3529_v46 }
 0x399   :  { %v3248_v17 = vsel %vm3241_vm9, %v3244_v4, %v3247_v43  ;;  %v8425_v10 = vsel %vm8418_vm10, %v8421_v57, %v8424_v15  ;;  %v3534_v52 = vshll.u32 %v3533_v26, 23  ;;  %v3408_v63 = vmul.u32 %v3401_v13, %v3392_v45 }
 0x39a   :  { %v3249_v47 = vsel %vm3239_vm11, nan, %v3248_v17  ;;  %v8426_v48 = vsel %vm3239_vm11, nan, %v8425_v10  ;;  %vm3410_vm15 = vc.u32 %v14984_v51, %v14978_v50  ;;  %v3662_v22 = vand.u32 2147483647, %v14925_v54 }
 0x39b   :  { %10845 = vst [vmem:[#allocation2 + $0x1a0] sm:$0xff] %v3249_v47  ;;  %10895 = vst [vmem:[#allocation2 + $0x1a8] sm:$0xff] %v3249_v47  ;;  %v3535_v28 = vor.u32 4788187, %v3534_v52  ;;  %v3412_v44 = vsel %vm3410_vm15, %v3411_v39, %v14979_v21  ;;  %v3674_v49 = vsel %vm3673_vm14, %v3672_v14, 0  ;;  %v8728_v29 = vadd.s32 3, %v3545_v18 }
 0x39c   :  { %10946 = vst [vmem:[#allocation2 + $0x4c0] sm:$0xff] %v8426_v48  ;;  %10996 = vst [vmem:[#allocation2 + $0x4c8] sm:$0xff] %v8426_v48  ;;  %v3413_v35 = vadd.s32 %v3412_v44, %v3408_v63  ;;  %v3676_v12 = vand.u32 31, %v3674_v49  ;;  %v3538_v40 = vcvt.s32.f32 %v3531_v19  ;;  %v3669_v13 = vand.u32 8388607, %v3662_v22 }
 0x39d   :  { %v3536_v1 = vand.u32 2147483647, %v3535_v28  ;;  %v15011_v5 = vmul.f32 %v14644_v25, %v316_v24  ;;  %v15013_v33 = vand.u32 3, %v3545_v18  ;;  %v15015_v36 = vand.u32 3, %v8728_v29 }
 0x39e   :  { %v3414_v31 = vadd.s32 536870912, %v3413_v35  ;;  %v3677_v3 = vsub.s32 32, %v3676_v12  ;;  %vm3355_vm0 = vcmp.lt.s32.totalorder %v14847_v59, 0  ;;  %v15022_v8 = vshrl.u32 %v3674_v49, 5 }
 0x39f   :  { %v3539_v30 = vmul.f32 %v3538_v40, %v3536_v1  ;;  %v3679_v25 = vshll.u32 %v11883_v56, %v3676_v12  ;;  %v3682_v21 = vshll.u32 %v11884_v60, %v3676_v12  ;;  %v3685_v11 = vshll.u32 %v11885_v62, %v3676_v12 }
 0x3a0   :  { %v3415_v55 = vshrl.u32 %v3414_v31, 30  ;;  %v3680_v42 = vshrl.u32 %v11884_v60, %v3677_v3  ;;  %v3683_v45 = vshrl.u32 %v11885_v62, %v3677_v3  ;;  %v3686_v6 = vshrl.u32 %v11886_v0, %v3677_v3 }
 0x3a1   :  { %v3540_v41 = vxor.u32 2147483648, %v3539_v30  ;;  %v3689_v32 = vshrl.u32 %v11887_v2, %v3677_v3  ;;  %v3692_v18 = vshrl.u32 %v11888_v9, %v3677_v3  ;;  %v3688_v27 = vshll.u32 %v11886_v0, %v3676_v12 }
 0x3a2   :  { %v3416_v20 = vshll.u32 %v3415_v55, 30  ;;  %v3681_v23 = vor.u32 %v3680_v42, %v3679_v25  ;;  %v3691_v38 = vshll.u32 %v11887_v2, %v3676_v12  ;;  %v3684_v16 = vor.u32 %v3683_v45, %v3682_v21 }
 0x3a3   :  { %v3541_v37 = vsel %vm3458_vm3, %v3540_v41, %v3539_v30  ;;  %v3687_v14 = vor.u32 %v3686_v6, %v3685_v11  ;;  %v3690_v43 = vor.u32 %v3689_v32, %v3688_v27  ;;  %v3562_v26 = vand.u32 2139095040, %v15011_v5 }
 0x3a4   :  { %v3544_v58 = vsel %vm14937_vm1, %v14737_v7, %v3541_v37  ;;  %v15034_v46 = vsub.s32 %v3413_v35, %v3416_v20  ;;  %v3693_v53 = vor.u32 %v3692_v18, %v3691_v38  ;;  %vm15041_vm3 = vcmp.le.f32.partialorder %v3353_v34, 0.7853982 }
 0x3a5   :  { %11761 = vcosq.f32 %v3544_v58  ;;  %v3439_v4 = vsub.s32 4, %v3415_v55  ;;  %v3670_v57 = vor.u32 8388608, %v3669_v13  ;;  %v3678_v39 = vshrl.u32 %v11883_v56, %v3677_v3 }
 0x3a6   :  { %11763 = vsinq.f32 %v3544_v58  ;;  %v3419_v15 = vsub.s32 0, %v15034_v46  ;;  %vm3694_vm1 = vcmp.lt.s32.totalorder %v15022_v8, 1  ;;  %vm3696_vm4 = vcmp.lt.s32.totalorder %v15022_v8, 3 }
 0x3a7   :  { %vm3697_vm2 = vcmp.lt.s32.totalorder %v15022_v8, 4  ;;  %vm3554_vm6 = vcmp.eq.s32.totalorder %v15013_v33, 2  ;;  %v3702_v34 = vsel %vm3694_vm1, %v3681_v23, %v3684_v16  ;;  %v3706_v52 = vsel %vm3694_vm1, %v3684_v16, %v3687_v14 }
 0x3a8   :  { %v11150_v17 = vmin.u32 %v3419_v15, %v15034_v46  ;;  %v3699_v10 = vsel %vm3697_vm2, %v3687_v14, 2102212464  ;;  %v3703_v19 = vsel %vm3697_vm2, %v3690_v43, 920167782  ;;  %vm3551_vm5 = vcmp.eq.s32.totalorder %v15013_v33, 0 }
 0x3a9   :  { %vm8731_vm7 = vcmp.eq.s32.totalorder %v15015_v36, 0  ;;  %v3704_v48 = vsel %vm3696_vm4, %v3687_v14, %v3703_v19  ;;  %v3707_v63 = vsel %vm3697_vm2, %v3693_v53, 1326507024  ;;  %v3563_v28 = vshrl.u32 %v3562_v26, 23 }
 0x3aa   :  { %v3421_v47 = vclz %v11150_v17  ;;  %vm3550_vm8 = vcmp.lt.s32.totalorder %v15013_v33, 2  ;;  %vm8730_vm9 = vcmp.lt.s32.totalorder %v15015_v36, 2  ;;  %vm8734_vm10 = vcmp.eq.s32.totalorder %v15015_v36, 2 }
 0x3ab   :  { %v3440_v44 = vsel %vm3355_vm0, %v3439_v4, %v3415_v55  ;;  %vm3695_vm11 = vcmp.lt.s32.totalorder %v15022_v8, 2  ;;  %v3710_v49 = vshll.u32 %v3670_v57, 8  ;;  %vm3548_vm12 = vweird.f32 %v14737_v7  ;;  %v331_v7 = vpop.permute.xlu1 %330 }
 0x3ac   :  { %v11151_v29 = vadd.s32 4294967294, %v3421_v47  ;;  %v3698_v35 = vsel %vm3694_vm1, %v3678_v39, %v3681_v23  ;;  %v3705_v12 = vsel %vm3695_vm11, %v3702_v34, %v3704_v48  ;;  %v3708_v24 = vsel %vm3696_vm4, %v3690_v43, %v3707_v63 }
 0x3ad   :  { %v3700_v1 = vsel %vm3696_vm4, %v3684_v16, %v3699_v10  ;;  %v3709_v40 = vsel %vm3695_vm11, %v3706_v52, %v3708_v24  ;;  %v15076_v31 = vmul.u32.u64.low %v3710_v49, %v3705_v12  ;;  %v15077_v3 = vmul.u32.u64.high %v3710_v49, %v3705_v12, %v15076_v31 }
 0x3ae   :  { %vm11152_vm13 = vcmp.lt.s32.totalorder %v11151_v29, 0  ;;  %v15080_v30 = vmul.u32.u64.low %v3710_v49, %v3709_v40  ;;  %v15081_v13 = vmul.u32.u64.high %v3710_v49, %v3709_v40, %v15080_v30  ;;  %v11157_v55 = vadd.s32 4294967169, %v3563_v28 }
 0x3af   :  { %v11762_v42 = vpop.eup %11761  ;;  %v3409_v41 = vadd.s32 %v14978_v50, %v14984_v51  ;;  %v3424_v45 = vsel %vm11152_vm13, 0, %v11151_v29  ;;  %v3442_v6 = vsel %vm15041_vm3, 0, %v3440_v44  ;;  %v3559_v32 = vand.u32 2147483647, %v15011_v5 }
 0x3b0   :  { %v11764_v20 = vpop.eup %11763  ;;  %v3555_v25 = vxor.u32 2147483648, %v11762_v42  ;;  %v3425_v18 = vsub.s32 32, %v3424_v45  ;;  %v3429_v37 = vsub.s32 4294967266, %v3424_v45  ;;  %v3701_v21 = vsel %vm3695_vm11, %v3698_v35, %v3700_v1  ;;  %v15122_v1 = vld [vmem:[%s17028_s1] ss:$0 sm:$0xff] }
 0x3b1   :  { %v3552_v11 = vxor.u32 2147483648, %v11764_v20  ;;  %v3426_v27 = vshll.u32 %v15034_v46, %v3424_v45  ;;  %v3720_v58 = vadd.s32 1, %v15077_v3  ;;  %v3569_v23 = vadd.s32 1, %v11157_v55 }
 0x3b2   :  { %v3556_v50 = vsel %vm3554_vm6, %v3555_v25, %v11764_v20  ;;  %v8736_v51 = vsel %vm8734_vm10, %v3555_v25, %v11764_v20  ;;  %v3427_v38 = vshrl.u32 %v3409_v41, %v3425_v18  ;;  %v3430_v16 = vadd.s32 127, %v3429_v37 }
 0x3b3   :  { %v3553_v14 = vsel %vm3551_vm5, %v11762_v42, %v3552_v11  ;;  %v8733_v8 = vsel %vm8731_vm7, %v11762_v42, %v3552_v11  ;;  %v3717_v43 = vmul.u32 %v3710_v49, %v3701_v21  ;;  %vm3719_vm14 = vc.u32 %v15081_v13, %v15076_v31 }
 0x3b4   :  { %v3557_v46 = vsel %vm3550_vm8, %v3553_v14, %v3556_v50  ;;  %v8737_v15 = vsel %vm8730_vm9, %v8733_v8, %v8736_v51  ;;  %v3428_v53 = vor.u32 %v3427_v38, %v3426_v27  ;;  %v3431_v26 = vshll.u32 %v3430_v16, 23 }
 0x3b5   :  { %v3558_v4 = vsel %vm3548_vm12, nan, %v3557_v46  ;;  %v8738_v57 = vsel %vm3548_vm12, nan, %v8737_v15  ;;  %v3721_v39 = vsel %vm3719_vm14, %v3720_v58, %v15077_v3  ;;  %vm3570_vm15 = vcmp.gt.s32.totalorder %v3569_v23, 0 }
 0x3b6   :  { %10848 = vst [vmem:[#allocation2 + $0x1d0] sm:$0xff] %v3558_v4  ;;  %10898 = vst [vmem:[#allocation2 + $0x1d8] sm:$0xff] %v3558_v4  ;;  %v3432_v33 = vor.u32 4788187, %v3431_v26  ;;  %v8624_v17 = vadd.s32 3, %v3442_v6  ;;  %v3722_v10 = vadd.s32 %v3721_v39, %v3717_v43  ;;  %v3571_v36 = vsel %vm3570_vm15, %v3569_v23, 0 }
 0x3b7   :  { %10949 = vst [vmem:[#allocation2 + $0x4f0] sm:$0xff] %v8738_v57  ;;  %10999 = vst [vmem:[#allocation2 + $0x4f8] sm:$0xff] %v8738_v57  ;;  %v3566_v34 = vand.u32 8388607, %v3559_v32  ;;  %v3573_v19 = vand.u32 31, %v3571_v36  ;;  %v3435_v47 = vcvt.s32.f32 %v3428_v53  ;;  %v15113_v44 = vand.u32 3, %v3442_v6 }
 0x3b8   :  { %v3433_v52 = vand.u32 2147483647, %v3432_v33  ;;  %v3723_v48 = vadd.s32 536870912, %v3722_v10  ;;  %v15115_v49 = vand.u32 3, %v8624_v17  ;;  %v15125_v40 = vmul.f32 %v15122_v1, %v331_v7 }
 0x3b9   :  { %v3574_v63 = vsub.s32 32, %v3573_v19  ;;  %v3567_v35 = vor.u32 8388608, %v3566_v34  ;;  %v15129_v41 = vshrl.u32 %v3571_v36, 5  ;;  %v3576_v45 = vshll.u32 %v11883_v56, %v3573_v19 }
 0x3ba   :  { %v3436_v28 = vmul.f32 %v3435_v47, %v3433_v52  ;;  %v3724_v29 = vshrl.u32 %v3723_v48, 30  ;;  %v3579_v6 = vshll.u32 %v11884_v60, %v3573_v19  ;;  %v3582_v20 = vshll.u32 %v11885_v62, %v3573_v19 }
 0x3bb   :  { %v3577_v12 = vshrl.u32 %v11884_v60, %v3574_v63  ;;  %v3580_v24 = vshrl.u32 %v11885_v62, %v3574_v63  ;;  %v3583_v55 = vshrl.u32 %v11886_v0, %v3574_v63  ;;  %v3586_v42 = vshrl.u32 %v11887_v2, %v3574_v63 }
 0x3bc   :  { %v3437_v3 = vxor.u32 2147483648, %v3436_v28  ;;  %v3725_v30 = vshll.u32 %v3724_v29, 30  ;;  %v3585_v37 = vshll.u32 %v11886_v0, %v3573_v19  ;;  %v3589_v21 = vshrl.u32 %v11888_v9, %v3574_v63 }
 0x3bd   :  { %v3578_v27 = vor.u32 %v3577_v12, %v3576_v45  ;;  %v3581_v58 = vor.u32 %v3580_v24, %v3579_v6  ;;  %v3588_v23 = vshll.u32 %v11887_v2, %v3573_v19  ;;  %v3584_v51 = vor.u32 %v3583_v55, %v3582_v20 }
 0x3be   :  { %v3438_v25 = vsel %vm3355_vm0, %v3437_v3, %v3436_v28  ;;  %v15136_v18 = vsub.s32 %v3722_v10, %v3725_v30  ;;  %v3587_v38 = vor.u32 %v3586_v42, %v3585_v37  ;;  %v3748_v16 = vsub.s32 4, %v3724_v29 }
 0x3bf   :  { %v3441_v11 = vsel %vm15041_vm3, %v14847_v59, %v3438_v25  ;;  %vm15147_vm0 = vcmp.le.f32.partialorder %v3662_v22, 0.7853982  ;;  %vm3664_vm1 = vcmp.lt.s32.totalorder %v14925_v54, 0  ;;  %v3590_v8 = vor.u32 %v3589_v21, %v3588_v23 }
 0x3c0   :  { %11765 = vcosq.f32 %v3441_v11  ;;  %v3728_v50 = vsub.s32 0, %v15136_v18  ;;  %v15153_v43 = vshll.u32 %v3567_v35, 8  ;;  %v3575_v46 = vshrl.u32 %v11883_v56, %v3574_v63 }
 0x3c1   :  { %11767 = vsinq.f32 %v3441_v11  ;;  %vm3591_vm3 = vcmp.lt.s32.totalorder %v15129_v41, 1  ;;  %vm3594_vm4 = vcmp.lt.s32.totalorder %v15129_v41, 4  ;;  %v3871_v15 = vand.u32 2139095040, %v15125_v40 }
 0x3c2   :  { %v11162_v61 = vmin.u32 %v3728_v50, %v15136_v18  ;;  %vm3451_vm2 = vcmp.eq.s32.totalorder %v15113_v44, 2  ;;  %vm8630_vm6 = vcmp.eq.s32.totalorder %v15115_v49, 2  ;;  %v3596_v53 = vsel %vm3594_vm4, %v3584_v51, 2102212464 }
 0x3c3   :  { %v3599_v26 = vsel %vm3591_vm3, %v3578_v27, %v3581_v58  ;;  %v3600_v4 = vsel %vm3594_vm4, %v3587_v38, 920167782  ;;  %vm3448_vm5 = vcmp.eq.s32.totalorder %v15113_v44, 0  ;;  %vm8627_vm7 = vcmp.eq.s32.totalorder %v15115_v49, 0 }
 0x3c4   :  { %v3730_v22 = vclz %v11162_v61  ;;  %v3749_v57 = vsel %vm3664_vm1, %v3748_v16, %v3724_v29  ;;  %vm3592_vm8 = vcmp.lt.s32.totalorder %v15129_v41, 2  ;;  %vm3593_vm9 = vcmp.lt.s32.totalorder %v15129_v41, 3 }
 0x3c5   :  { %v3603_v39 = vsel %vm3591_vm3, %v3581_v58, %v3584_v51  ;;  %vm3447_vm10 = vcmp.lt.s32.totalorder %v15113_v44, 2  ;;  %vm8626_vm11 = vcmp.lt.s32.totalorder %v15115_v49, 2  ;;  %v3595_v17 = vsel %vm3591_vm3, %v3575_v46, %v3578_v27 }
 0x3c6   :  { %v11163_v33 = vadd.s32 4294967294, %v3730_v22  ;;  %v3601_v10 = vsel %vm3593_vm9, %v3584_v51, %v3600_v4  ;;  %v3604_v36 = vsel %vm3594_vm4, %v3590_v8, 1326507024  ;;  %vm3445_vm12 = vweird.f32 %v14847_v59 }
 0x3c7   :  { %v3597_v34 = vsel %vm3593_vm9, %v3581_v58, %v3596_v53  ;;  %v3602_v19 = vsel %vm3592_vm8, %v3599_v26, %v3601_v10  ;;  %v3605_v52 = vsel %vm3593_vm9, %v3587_v38, %v3604_v36  ;;  %v3872_v47 = vshrl.u32 %v3871_v15, 23  ;;  %v326_v53 = vpop.permute.xlu0 %325 }
 0x3c8   :  { %vm11164_vm13 = vcmp.lt.s32.totalorder %v11163_v33, 0  ;;  %v3606_v48 = vsel %vm3592_vm8, %v3603_v39, %v3605_v52  ;;  %v15187_v7 = vmul.u32.u64.low %v15153_v43, %v3602_v19  ;;  %v15188_v63 = vmul.u32.u64.high %v15153_v43, %v3602_v19, %v15187_v7 }
 0x3c9   :  { %v3733_v28 = vsel %vm11164_vm13, 0, %v11163_v33  ;;  %v15192_v29 = vmul.u32.u64.low %v15153_v43, %v3606_v48  ;;  %v15193_v35 = vmul.u32.u64.high %v15153_v43, %v3606_v48, %v15192_v29  ;;  %v11169_v12 = vadd.s32 4294967169, %v3872_v47 }
 0x3ca   :  { %v11766_v24 = vpop.eup %11765  ;;  %v3718_v3 = vadd.s32 %v15076_v31, %v15081_v13  ;;  %v3734_v30 = vsub.s32 32, %v3733_v28  ;;  %v3738_v55 = vsub.s32 4294967266, %v3733_v28  ;;  %v3868_v42 = vand.u32 2147483647, %v15125_v40 }
 0x3cb   :  { %v11768_v45 = vpop.eup %11767  ;;  %v3452_v6 = vxor.u32 2147483648, %v11766_v24  ;;  %v3735_v20 = vshll.u32 %v15136_v18, %v3733_v28  ;;  %v3751_v25 = vsel %vm15147_vm0, 0, %v3749_v57  ;;  %v3598_v37 = vsel %vm3592_vm8, %v3595_v17, %v3597_v34 }
 0x3cc   :  { %v3449_v21 = vxor.u32 2147483648, %v11768_v45  ;;  %v3736_v11 = vshrl.u32 %v3718_v3, %v3734_v30  ;;  %v3739_v27 = vadd.s32 127, %v3738_v55  ;;  %v3617_v58 = vadd.s32 1, %v15188_v63 }
 0x3cd   :  { %v3453_v31 = vsel %vm3451_vm2, %v3452_v6, %v11768_v45  ;;  %v8632_v13 = vsel %vm8630_vm6, %v3452_v6, %v11768_v45  ;;  %vm3616_vm14 = vc.u32 %v15193_v35, %v15187_v7  ;;  %v3878_v18 = vadd.s32 1, %v11169_v12 }
 0x3ce   :  { %v3450_v23 = vsel %vm3448_vm5, %v11766_v24, %v3449_v21  ;;  %v8629_v41 = vsel %vm8627_vm7, %v11766_v24, %v3449_v21  ;;  %v3737_v50 = vor.u32 %v3736_v11, %v3735_v20  ;;  %v3740_v51 = vshll.u32 %v3739_v27, 23 }
 0x3cf   :  { %v3454_v38 = vsel %vm3447_vm10, %v3450_v23, %v3453_v31  ;;  %v8633_v16 = vsel %vm8626_vm11, %v8629_v41, %v8632_v13  ;;  %v3614_v61 = vmul.u32 %v15153_v43, %v3598_v37  ;;  %v3618_v8 = vsel %vm3616_vm14, %v3617_v58, %v15188_v63 }
 0x3d0   :  { %v3455_v46 = vsel %vm3445_vm12, nan, %v3454_v38  ;;  %v8634_v15 = vsel %vm3445_vm12, nan, %v8633_v16  ;;  %v3741_v22 = vor.u32 4788187, %v3740_v51  ;;  %vm3879_vm15 = vcmp.gt.s32.totalorder %v3878_v18, 0 }
 0x3d1   :  { %10847 = vst [vmem:[#allocation2 + $0x1c0] sm:$0xff] %v3455_v46  ;;  %10897 = vst [vmem:[#allocation2 + $0x1c8] sm:$0xff] %v3455_v46  ;;  %v3619_v44 = vadd.s32 %v3618_v8, %v3614_v61  ;;  %v3744_v26 = vcvt.s32.f32 %v3737_v50  ;;  %v8936_v4 = vadd.s32 3, %v3751_v25  ;;  %v3880_v43 = vsel %vm3879_vm15, %v3878_v18, 0 }
 0x3d2   :  { %10948 = vst [vmem:[#allocation2 + $0x4e0] sm:$0xff] %v8634_v15  ;;  %10998 = vst [vmem:[#allocation2 + $0x4e8] sm:$0xff] %v8634_v15  ;;  %v3742_v49 = vand.u32 2147483647, %v3741_v22  ;;  %v3875_v39 = vand.u32 8388607, %v3868_v42  ;;  %v15227_v59 = vmul.f32 %v15122_v1, %v326_v53  ;;  %v3615_v13 = vadd.s32 %v15187_v7, %v15193_v35 }
 0x3d3   :  { %v3620_v57 = vadd.s32 536870912, %v3619_v44  ;;  %v3882_v33 = vand.u32 31, %v3880_v43  ;;  %v15229_v19 = vand.u32 3, %v3751_v25  ;;  %v15231_v52 = vand.u32 3, %v8936_v4 }
 0x3d4   :  { %v3745_v17 = vmul.f32 %v3744_v26, %v3742_v49  ;;  %v3876_v48 = vor.u32 8388608, %v3875_v39  ;;  %v3768_v63 = vand.u32 2139095040, %v15227_v59  ;;  %vm3561_vm3 = vcmp.lt.s32.totalorder %v15011_v5, 0 }
 0x3d5   :  { %v3621_v10 = vshrl.u32 %v3620_v57, 30  ;;  %v3883_v36 = vsub.s32 32, %v3882_v33  ;;  %v3891_v55 = vshll.u32 %v11885_v62, %v3882_v33  ;;  %v3881_v6 = vshrl.u32 %v3880_v43, 5 }
 0x3d6   :  { %v3746_v34 = vxor.u32 2147483648, %v3745_v17  ;;  %v3885_v20 = vshll.u32 %v11883_v56, %v3882_v33  ;;  %v3888_v25 = vshll.u32 %v11884_v60, %v3882_v33  ;;  %v3894_v11 = vshll.u32 %v11886_v0, %v3882_v33 }
 0x3d7   :  { %v3622_v47 = vshll.u32 %v3621_v10, 30  ;;  %v3886_v29 = vshrl.u32 %v11884_v60, %v3883_v36  ;;  %v3889_v12 = vshrl.u32 %v11885_v62, %v3883_v36  ;;  %v3892_v24 = vshrl.u32 %v11886_v0, %v3883_v36 }
 0x3d8   :  { %v3747_v28 = vsel %vm3664_vm1, %v3746_v34, %v3745_v17  ;;  %v3895_v45 = vshrl.u32 %v11887_v2, %v3883_v36  ;;  %v3897_v58 = vshll.u32 %v11887_v2, %v3882_v33  ;;  %v3898_v31 = vshrl.u32 %v11888_v9, %v3883_v36 }
 0x3d9   :  { %v3750_v3 = vsel %vm15147_vm0, %v14925_v54, %v3747_v28  ;;  %v15243_v30 = vsub.s32 %v3619_v44, %v3622_v47  ;;  %v3893_v21 = vor.u32 %v3892_v24, %v3891_v55  ;;  %v3887_v14 = vor.u32 %v3886_v29, %v3885_v20 }
 0x3da   :  { %11769 = vcosq.f32 %v3750_v3  ;;  %v3890_v27 = vor.u32 %v3889_v12, %v3888_v25  ;;  %v3645_v23 = vsub.s32 4, %v3621_v10  ;;  %v3896_v41 = vor.u32 %v3895_v45, %v3894_v11 }
 0x3db   :  { %11771 = vsinq.f32 %v3750_v3  ;;  %v3625_v37 = vsub.s32 0, %v15243_v30  ;;  %vm3760_vm0 = vcmp.eq.s32.totalorder %v15229_v19, 2  ;;  %vm8942_vm1 = vcmp.eq.s32.totalorder %v15231_v52, 2 }
 0x3dc   :  { %v3884_v50 = vshrl.u32 %v11883_v56, %v3883_v36  ;;  %v3899_v51 = vor.u32 %v3898_v31, %v3897_v58  ;;  %vm3903_vm4 = vcmp.lt.s32.totalorder %v3881_v6, 4  ;;  %v3769_v38 = vshrl.u32 %v3768_v63, 23 }
 0x3dd   :  { %v11158_v18 = vmin.u32 %v3625_v37, %v15243_v30  ;;  %vm3757_vm2 = vcmp.eq.s32.totalorder %v15229_v19, 0  ;;  %vm8939_vm6 = vcmp.eq.s32.totalorder %v15231_v52, 0  ;;  %vm3900_vm5 = vcmp.lt.s32.totalorder %v3881_v6, 1 }
 0x3de   :  { %vm3902_vm7 = vcmp.lt.s32.totalorder %v3881_v6, 3  ;;  %v3905_v7 = vsel %vm3903_vm4, %v3893_v21, 2102212464  ;;  %vm3756_vm8 = vcmp.lt.s32.totalorder %v15229_v19, 2  ;;  %vm8938_vm9 = vcmp.lt.s32.totalorder %v15231_v52, 2 }
 0x3df   :  { %v3627_v16 = vclz %v11158_v18  ;;  %v3904_v35 = vsel %vm3900_vm5, %v3884_v50, %v3887_v14  ;;  %v3906_v61 = vsel %vm3902_vm7, %v3890_v27, %v3905_v7  ;;  %v3908_v8 = vsel %vm3900_vm5, %v3887_v14, %v3890_v27 }
 0x3e0   :  { %v3916_v46 = vshll.u32 %v3876_v48, 8  ;;  %vm3754_vm10 = vweird.f32 %v14925_v54  ;;  %v3646_v22 = vsel %vm3561_vm3, %v3645_v23, %v3621_v10  ;;  %v3909_v53 = vsel %vm3903_vm4, %v3896_v41, 920167782 }
 0x3e1   :  { %v11159_v15 = vadd.s32 4294967294, %v3627_v16  ;;  %v3912_v44 = vsel %vm3900_vm5, %v3890_v27, %v3893_v21  ;;  %vm3901_vm11 = vcmp.lt.s32.totalorder %v3881_v6, 2  ;;  %v3910_v49 = vsel %vm3902_vm7, %v3893_v21, %v3909_v53 }
 0x3e2   :  { %v3913_v26 = vsel %vm3903_vm4, %v3899_v51, 1326507024  ;;  %v11165_v4 = vadd.s32 4294967169, %v3769_v38  ;;  %v3907_v43 = vsel %vm3901_vm11, %v3904_v35, %v3906_v61  ;;  %v3911_v57 = vsel %vm3901_vm11, %v3908_v8, %v3910_v49 }
 0x3e3   :  { %vm11160_vm12 = vcmp.lt.s32.totalorder %v11159_v15, 0  ;;  %v3914_v39 = vsel %vm3902_vm7, %v3896_v41, %v3913_v26  ;;  %v15272_v34 = vmul.u32.u64.low %v3916_v46, %v3911_v57  ;;  %v15273_v47 = vmul.u32.u64.high %v3916_v46, %v3911_v57, %v15272_v34 }
 0x3e4   :  { %v11770_v33 = vpop.eup %11769  ;;  %v3630_v17 = vsel %vm11160_vm12, 0, %v11159_v15  ;;  %v3915_v36 = vsel %vm3901_vm11, %v3912_v44, %v3914_v39  ;;  %v3775_v55 = vadd.s32 1, %v11165_v4  ;;  %v3923_v18 = vmul.u32 %v3916_v46, %v3907_v43 }
 0x3e5   :  { %v11772_v10 = vpop.eup %11771  ;;  %v3761_v48 = vxor.u32 2147483648, %v11770_v33  ;;  %v3631_v63 = vsub.s32 32, %v3630_v17  ;;  %v3632_v28 = vshll.u32 %v15243_v30, %v3630_v17  ;;  %v3635_v29 = vsub.s32 4294967266, %v3630_v17 }
 0x3e6   :  { %v3758_v12 = vxor.u32 2147483648, %v11772_v10  ;;  %v15277_v24 = vmul.u32.u64.low %v3916_v46, %v3915_v36  ;;  %v15278_v3 = vmul.u32.u64.high %v3916_v46, %v3915_v36, %v15277_v24  ;;  %v3926_v21 = vadd.s32 1, %v15273_v47 }
 0x3e7   :  { %v3762_v45 = vsel %vm3760_vm0, %v3761_v48, %v11772_v10  ;;  %v8944_v6 = vsel %vm8942_vm1, %v3761_v48, %v11772_v10  ;;  %v3633_v20 = vshrl.u32 %v3615_v13, %v3631_v63  ;;  %v3636_v25 = vadd.s32 127, %v3635_v29 }
 0x3e8   :  { %v3759_v37 = vsel %vm3757_vm2, %v11770_v33, %v3758_v12  ;;  %v8941_v30 = vsel %vm8939_vm6, %v11770_v33, %v3758_v12  ;;  %vm3776_vm13 = vcmp.gt.s32.totalorder %v3775_v55, 0  ;;  %vm3925_vm14 = vc.u32 %v15278_v3, %v15272_v34  ;;  %v341_v12 = vpop.permute.xlu1 %340 }
 0x3e9   :  { %v3763_v11 = vsel %vm3756_vm8, %v3759_v37, %v3762_v45  ;;  %v8945_v14 = vsel %vm8938_vm9, %v8941_v30, %v8944_v6  ;;  %v3634_v27 = vor.u32 %v3633_v20, %v3632_v28  ;;  %v3637_v58 = vshll.u32 %v3636_v25, 23 }
 0x3ea   :  { %v3764_v31 = vsel %vm3754_vm10, nan, %v3763_v11  ;;  %v8946_v13 = vsel %vm3754_vm10, nan, %v8945_v14  ;;  %v3927_v52 = vsel %vm3925_vm14, %v3926_v21, %v15273_v47  ;;  %v3765_v23 = vand.u32 2147483647, %v15227_v59 }
 0x3eb   :  { %10850 = vst [vmem:[#allocation2 + $0x1f0] sm:$0xff] %v3764_v31  ;;  %10900 = vst [vmem:[#allocation2 + $0x1f8] sm:$0xff] %v3764_v31  ;;  %v3638_v19 = vor.u32 4788187, %v3637_v58  ;;  %v3777_v41 = vsel %vm3776_vm13, %v3775_v55, 0  ;;  %v3928_v50 = vadd.s32 %v3927_v52, %v3923_v18  ;;  %v3641_v16 = vcvt.s32.f32 %v3634_v27 }
 0x3ec   :  { %10951 = vst [vmem:[#allocation2 + $0x510] sm:$0xff] %v8946_v13  ;;  %11001 = vst [vmem:[#allocation2 + $0x518] sm:$0xff] %v8946_v13  ;;  %vm15304_vm15 = vcmp.le.f32.partialorder %v3559_v32, 0.7853982  ;;  %v3779_v51 = vand.u32 31, %v3777_v41  ;;  %v15321_v57 = vshrl.u32 %v3777_v41, 5  ;;  %v15339_v30 = vmul.f32 %v15122_v1, %v341_v12 }
 0x3ed   :  { %v3639_v38 = vand.u32 2147483647, %v3638_v19  ;;  %v3648_v7 = vsel %vm15304_vm15, 0, %v3646_v22  ;;  %v3929_v35 = vadd.s32 536870912, %v3928_v50  ;;  %v3772_v46 = vand.u32 8388607, %v3765_v23 }
 0x3ee   :  { %v3780_v61 = vsub.s32 32, %v3779_v51  ;;  %v15312_v15 = vand.u32 3, %v3648_v7  ;;  %v8832_v53 = vadd.s32 3, %v3648_v7  ;;  %v3782_v39 = vshll.u32 %v11883_v56, %v3779_v51 }
 0x3ef   :  { %v3642_v8 = vmul.f32 %v3641_v16, %v3639_v38  ;;  %v15314_v32 = vshrl.u32 %v3929_v35, 30  ;;  %v3785_v36 = vshll.u32 %v11884_v60, %v3779_v51  ;;  %v3788_v47 = vshll.u32 %v11885_v62, %v3779_v51 }
 0x3f0   :  { %v3783_v44 = vshrl.u32 %v11884_v60, %v3780_v61  ;;  %v3786_v26 = vshrl.u32 %v11885_v62, %v3780_v61  ;;  %v3789_v4 = vshrl.u32 %v11886_v0, %v3780_v61  ;;  %v3792_v22 = vshrl.u32 %v11887_v2, %v3780_v61 }
 0x3f1   :  { %v3643_v49 = vxor.u32 2147483648, %v3642_v8  ;;  %v3931_v43 = vshll.u32 %v15314_v32, 30  ;;  %v3795_v33 = vshrl.u32 %v11888_v9, %v3780_v61  ;;  %v3791_v10 = vshll.u32 %v11886_v0, %v3779_v51 }
 0x3f2   :  { %v3784_v28 = vor.u32 %v3783_v44, %v3782_v39  ;;  %v3794_v29 = vshll.u32 %v11887_v2, %v3779_v51  ;;  %v3787_v24 = vor.u32 %v3786_v26, %v3785_v36  ;;  %v3790_v55 = vor.u32 %v3789_v4, %v3788_v47 }
 0x3f3   :  { %v3644_v17 = vsel %vm3561_vm3, %v3643_v49, %v3642_v8  ;;  %v15333_v63 = vsub.s32 %v3928_v50, %v3931_v43  ;;  %v3793_v45 = vor.u32 %v3792_v22, %v3791_v10  ;;  %v8833_v25 = vand.u32 3, %v8832_v53 }
 0x3f4   :  { %v3647_v48 = vsel %vm15304_vm15, %v15011_v5, %v3644_v17  ;;  %v3796_v20 = vor.u32 %v3795_v33, %v3794_v29  ;;  %vm3870_vm3 = vcmp.lt.s32.totalorder %v15125_v40, 0  ;;  %v3773_v37 = vor.u32 8388608, %v3772_v46 }
 0x3f5   :  { %11773 = vcosq.f32 %v3647_v48  ;;  %v3934_v6 = vsub.s32 0, %v15333_v63  ;;  %v3781_v11 = vshrl.u32 %v11883_v56, %v3780_v61  ;;  %vm3797_vm0 = vcmp.lt.s32.totalorder %v15321_v57, 1 }
 0x3f6   :  { %11775 = vsinq.f32 %v3647_v48  ;;  %vm3800_vm1 = vcmp.lt.s32.totalorder %v15321_v57, 4  ;;  %vm3657_vm4 = vcmp.eq.s32.totalorder %v15312_v15, 2  ;;  %vm3799_vm2 = vcmp.lt.s32.totalorder %v15321_v57, 3 }
 0x3f7   :  { %v11170_v21 = vmin.u32 %v3934_v6, %v15333_v63  ;;  %v3805_v14 = vsel %vm3797_vm0, %v3784_v28, %v3787_v24  ;;  %v3806_v27 = vsel %vm3800_vm1, %v3793_v45, 920167782  ;;  %v3809_v58 = vsel %vm3797_vm0, %v3787_v24, %v3790_v55 }
 0x3f8   :  { %vm3654_vm6 = vcmp.eq.s32.totalorder %v15312_v15, 0  ;;  %v3802_v13 = vsel %vm3800_vm1, %v3790_v55, 2102212464  ;;  %v3807_v18 = vsel %vm3799_vm2, %v3790_v55, %v3806_v27  ;;  %v3810_v19 = vsel %vm3800_vm1, %v3796_v20, 1326507024 }
 0x3f9   :  { %v3936_v31 = vclz %v11170_v21  ;;  %vm3653_vm5 = vcmp.lt.s32.totalorder %v15312_v15, 2  ;;  %vm8834_vm7 = vcmp.lt.s32.totalorder %v8833_v25, 2  ;;  %vm8835_vm8 = vcmp.eq.s32.totalorder %v8833_v25, 0 }
 0x3fa   :  { %v3954_v52 = vsub.s32 4, %v15314_v32  ;;  %vm3798_vm9 = vcmp.lt.s32.totalorder %v15321_v57, 2  ;;  %v3813_v41 = vshll.u32 %v3773_v37, 8  ;;  %vm3651_vm10 = vweird.f32 %v15011_v5 }
 0x3fb   :  { %v11171_v54 = vadd.s32 4294967294, %v3936_v31  ;;  %v3801_v50 = vsel %vm3797_vm0, %v3781_v11, %v3784_v28  ;;  %v3808_v51 = vsel %vm3798_vm9, %v3805_v14, %v3807_v18  ;;  %v3811_v38 = vsel %vm3799_vm2, %v3793_v45, %v3810_v19  ;;  %v336_v11 = vpop.permute.xlu0 %335 }
 0x3fc   :  { %v3803_v16 = vsel %vm3799_vm2, %v3787_v24, %v3802_v13  ;;  %v3812_v7 = vsel %vm3798_vm9, %v3809_v58, %v3811_v38  ;;  %v15368_v35 = vmul.u32.u64.low %v3813_v41, %v3808_v51  ;;  %v15369_v61 = vmul.u32.u64.high %v3813_v41, %v3808_v51, %v15368_v35 }
 0x3fd   :  { %vm11172_vm11 = vcmp.lt.s32.totalorder %v11171_v54, 0  ;;  %v15372_v8 = vmul.u32.u64.low %v3813_v41, %v3812_v7  ;;  %v15373_v46 = vmul.u32.u64.high %v3813_v41, %v3812_v7, %v15372_v8  ;;  %v4077_v53 = vand.u32 2139095040, %v15339_v30 }
 0x3fe   :  { %vm8838_vm12 = vcmp.eq.s32.totalorder %v8833_v25, 2  ;;  %v3924_v49 = vadd.s32 %v15272_v34, %v15278_v3  ;;  %v3939_v26 = vsel %vm11172_vm11, 0, %v11171_v54  ;;  %v3955_v4 = vsel %vm3870_vm3, %v3954_v52, %v15314_v32 }
 0x3ff   :  { %v11774_v44 = vpop.eup %11773  ;;  %v3940_v39 = vsub.s32 32, %v3939_v26  ;;  %v3944_v33 = vsub.s32 4294967266, %v3939_v26  ;;  %v3804_v17 = vsel %vm3798_vm9, %v3801_v50, %v3803_v16  ;;  %v3941_v47 = vshll.u32 %v15333_v63, %v3939_v26 }
 0x400   :  { %v11776_v22 = vpop.eup %11775  ;;  %v3658_v43 = vxor.u32 2147483648, %v11774_v44  ;;  %v3823_v10 = vadd.s32 1, %v15369_v61  ;;  %v4078_v48 = vshrl.u32 %v4077_v53, 23  ;;  %v3820_v57 = vmul.u32 %v3813_v41, %v3804_v17 }
 0x401   :  { %v3655_v36 = vxor.u32 2147483648, %v11776_v22  ;;  %v3942_v28 = vshrl.u32 %v3924_v49, %v3940_v39  ;;  %v3945_v32 = vadd.s32 127, %v3944_v33  ;;  %vm3822_vm13 = vc.u32 %v15373_v46, %v15368_v35 }
 0x402   :  { %v3659_v34 = vsel %vm3657_vm4, %v3658_v43, %v11776_v22  ;;  %v8840_v3 = vsel %vm8838_vm12, %v3658_v43, %v11776_v22  ;;  %v3824_v37 = vsel %vm3822_vm13, %v3823_v10, %v15369_v61  ;;  %v11177_v21 = vadd.s32 4294967169, %v4078_v48 }
 0x403   :  { %v3656_v29 = vsel %vm3654_vm6, %v11774_v44, %v3655_v36  ;;  %v8837_v12 = vsel %vm8835_vm8, %v11774_v44, %v3655_v36  ;;  %v3943_v55 = vor.u32 %v3942_v28, %v3941_v47  ;;  %v3946_v45 = vshll.u32 %v3945_v32, 23 }
 0x404   :  { %v3660_v63 = vsel %vm3653_vm5, %v3656_v29, %v3659_v34  ;;  %v8841_v24 = vsel %vm8834_vm7, %v8837_v12, %v8840_v3  ;;  %vm15403_vm14 = vcmp.le.f32.partialorder %v3868_v42, 0.7853982  ;;  %v3825_v14 = vadd.s32 %v3824_v37, %v3820_v57 }
 0x405   :  { %v3661_v6 = vsel %vm3651_vm10, nan, %v3660_v63  ;;  %v8842_v20 = vsel %vm3651_vm10, nan, %v8841_v24  ;;  %v3947_v25 = vor.u32 4788187, %v3946_v45  ;;  %v3957_v5 = vsel %vm15403_vm14, 0, %v3955_v4 }
 0x406   :  { %10849 = vst [vmem:[#allocation2 + $0x1e0] sm:$0xff] %v3661_v6  ;;  %10899 = vst [vmem:[#allocation2 + $0x1e8] sm:$0xff] %v3661_v6  ;;  %v4074_v27 = vand.u32 2147483647, %v15339_v30  ;;  %v4084_v58 = vadd.s32 1, %v11177_v21  ;;  %v3950_v13 = vcvt.s32.f32 %v3943_v55  ;;  %v3826_v18 = vadd.s32 536870912, %v3825_v14 }
 0x407   :  { %10950 = vst [vmem:[#allocation2 + $0x500] sm:$0xff] %v8842_v20  ;;  %11000 = vst [vmem:[#allocation2 + $0x508] sm:$0xff] %v8842_v20  ;;  %v3948_v31 = vand.u32 2147483647, %v3947_v25  ;;  %v15411_v19 = vmul.f32 %v15122_v1, %v336_v11  ;;  %v9144_v42 = vadd.s32 3, %v3957_v5  ;;  %vm3767_vm0 = vcmp.lt.s32.totalorder %v15227_v59, 0 }
 0x408   :  { %vm4085_vm15 = vcmp.gt.s32.totalorder %v4084_v58, 0  ;;  %v3827_v41 = vshrl.u32 %v3826_v18, 30  ;;  %v4081_v50 = vand.u32 8388607, %v4074_v27  ;;  %v15419_v53 = vand.u32 3, %v3957_v5 }
 0x409   :  { %v3951_v52 = vmul.f32 %v3950_v13, %v3948_v31  ;;  %v4086_v54 = vsel %vm4085_vm15, %v4084_v58, 0  ;;  %v3974_v7 = vand.u32 2139095040, %v15411_v19  ;;  %v15421_v44 = vand.u32 3, %v9144_v42 }
 0x40a   :  { %v4088_v51 = vand.u32 31, %v4086_v54  ;;  %v3828_v16 = vshll.u32 %v3827_v41, 30  ;;  %v3821_v4 = vadd.s32 %v15368_v35, %v15373_v46  ;;  %v4082_v22 = vor.u32 8388608, %v4081_v50 }
 0x40b   :  { %v3952_v38 = vxor.u32 2147483648, %v3951_v52  ;;  %v3975_v17 = vshrl.u32 %v3974_v7, 23  ;;  %v3851_v34 = vsub.s32 4, %v3827_v41  ;;  %v15437_v35 = vshrl.u32 %v4086_v54, 5 }
 0x40c   :  { %v4089_v61 = vsub.s32 32, %v4088_v51  ;;  %v15423_v49 = vsub.s32 %v3825_v14, %v3828_v16  ;;  %v4091_v33 = vshll.u32 %v11883_v56, %v4088_v51  ;;  %v4094_v36 = vshll.u32 %v11884_v60, %v4088_v51 }
 0x40d   :  { %v3953_v8 = vsel %vm3870_vm3, %v3952_v38, %v3951_v52  ;;  %v4097_v46 = vshll.u32 %v11885_v62, %v4088_v51  ;;  %v4100_v32 = vshll.u32 %v11886_v0, %v4088_v51  ;;  %vm3966_vm3 = vcmp.eq.s32.totalorder %v15419_v53, 2 }
 0x40e   :  { %v3956_v26 = vsel %vm15403_vm14, %v15125_v40, %v3953_v8  ;;  %v4092_v43 = vshrl.u32 %v11884_v60, %v4089_v61  ;;  %v3831_v39 = vsub.s32 0, %v15423_v49  ;;  %v4095_v47 = vshrl.u32 %v11885_v62, %v4089_v61 }
 0x40f   :  { %11777 = vcosq.f32 %v3956_v26  ;;  %v4098_v10 = vshrl.u32 %v11886_v0, %v4089_v61  ;;  %v4101_v29 = vshrl.u32 %v11887_v2, %v4089_v61  ;;  %vm9150_vm1 = vcmp.eq.s32.totalorder %v15421_v44, 2 }
 0x410   :  { %11779 = vsinq.f32 %v3956_v26  ;;  %v11166_v48 = vmin.u32 %v3831_v39, %v15423_v49  ;;  %v4093_v3 = vor.u32 %v4092_v43, %v4091_v33  ;;  %v4096_v28 = vor.u32 %v4095_v47, %v4094_v36 }
 0x411   :  { %v4099_v57 = vor.u32 %v4098_v10, %v4097_v46  ;;  %v4103_v63 = vshll.u32 %v11887_v2, %v4088_v51  ;;  %v4104_v24 = vshrl.u32 %v11888_v9, %v4089_v61  ;;  %vm3963_vm4 = vcmp.eq.s32.totalorder %v15419_v53, 0 }
 0x412   :  { %v3833_v12 = vclz %v11166_v48  ;;  %vm9147_vm2 = vcmp.eq.s32.totalorder %v15421_v44, 0  ;;  %v4090_v55 = vshrl.u32 %v11883_v56, %v4089_v61  ;;  %v4102_v45 = vor.u32 %v4101_v29, %v4100_v32 }
 0x413   :  { %v15449_v6 = vshll.u32 %v4082_v22, 8  ;;  %v11173_v20 = vadd.s32 4294967169, %v3975_v17  ;;  %vm3962_vm6 = vcmp.lt.s32.totalorder %v15419_v53, 2  ;;  %vm9146_vm5 = vcmp.lt.s32.totalorder %v15421_v44, 2 }
 0x414   :  { %v11167_v37 = vadd.s32 4294967294, %v3833_v12  ;;  %v3852_v21 = vsel %vm3767_vm0, %v3851_v34, %v3827_v41  ;;  %v4105_v11 = vor.u32 %v4104_v24, %v4103_v63  ;;  %vm4106_vm7 = vcmp.lt.s32.totalorder %v15437_v35, 1 }
 0x415   :  { %vm3960_vm8 = vweird.f32 %v15125_v40  ;;  %vm4107_vm9 = vcmp.lt.s32.totalorder %v15437_v35, 2  ;;  %vm4108_vm10 = vcmp.lt.s32.totalorder %v15437_v35, 3  ;;  %vm4109_vm11 = vcmp.lt.s32.totalorder %v15437_v35, 4 }
 0x416   :  { %v4110_v15 = vsel %vm4106_vm7, %v4090_v55, %v4093_v3  ;;  %vm15462_vm12 = vcmp.le.f32.partialorder %v3765_v23, 0.7853982  ;;  %vm11168_vm13 = vcmp.lt.s32.totalorder %v11167_v37, 0  ;;  %v4111_v14 = vsel %vm4109_vm11, %v4099_v57, 2102212464 }
 0x417   :  { %v4114_v5 = vsel %vm4106_vm7, %v4093_v3, %v4096_v28  ;;  %v4115_v58 = vsel %vm4109_vm11, %v4102_v45, 920167782  ;;  %v3836_v31 = vsel %vm11168_vm13, 0, %v11167_v37  ;;  %v4118_v18 = vsel %vm4106_vm7, %v4096_v28, %v4099_v57 }
 0x418   :  { %v4116_v13 = vsel %vm4108_vm10, %v4099_v57, %v4115_v58  ;;  %v4119_v52 = vsel %vm4109_vm11, %v4105_v11, 1326507024  ;;  %v3837_v41 = vsub.s32 32, %v3836_v31  ;;  %v3841_v54 = vsub.s32 4294967266, %v3836_v31  ;;  %v351_v57 = vpop.permute.xlu1 %350 }
 0x419   :  { %v11778_v42 = vpop.eup %11777  ;;  %v4112_v50 = vsel %vm4108_vm10, %v4096_v28, %v4111_v14  ;;  %v3981_v23 = vadd.s32 1, %v11173_v20  ;;  %v3838_v16 = vshll.u32 %v15423_v49, %v3836_v31  ;;  %v4117_v7 = vsel %vm4107_vm9, %v4114_v5, %v4116_v13 }
 0x41a   :  { %v11780_v51 = vpop.eup %11779  ;;  %v3967_v38 = vxor.u32 2147483648, %v11778_v42  ;;  %v4120_v61 = vsel %vm4108_vm10, %v4102_v45, %v4119_v52  ;;  %v3839_v26 = vshrl.u32 %v3821_v4, %v3837_v41  ;;  %v3842_v22 = vadd.s32 127, %v3841_v54 }
 0x41b   :  { %v3964_v8 = vxor.u32 2147483648, %v11780_v51  ;;  %v4121_v43 = vsel %vm4107_vm9, %v4118_v18, %v4120_v61  ;;  %v15494_v46 = vmul.u32.u64.low %v15449_v6, %v4117_v7  ;;  %v15495_v3 = vmul.u32.u64.high %v15449_v6, %v4117_v7, %v15494_v46 }
 0x41c   :  { %v3968_v39 = vsel %vm3966_vm3, %v3967_v38, %v11780_v51  ;;  %v9152_v33 = vsel %vm9150_vm1, %v3967_v38, %v11780_v51  ;;  %v15482_v49 = vmul.u32.u64.low %v15449_v6, %v4121_v43  ;;  %v15483_v17 = vmul.u32.u64.high %v15449_v6, %v4121_v43, %v15482_v49 }
 0x41d   :  { %v3965_v36 = vsel %vm3963_vm4, %v11778_v42, %v3964_v8  ;;  %v9149_v4 = vsel %vm9147_vm2, %v11778_v42, %v3964_v8  ;;  %v3840_v47 = vor.u32 %v3839_v26, %v3838_v16  ;;  %v3843_v10 = vshll.u32 %v3842_v22, 23 }
 0x41e   :  { %v3969_v48 = vsel %vm3962_vm6, %v3965_v36, %v3968_v39  ;;  %v9153_v34 = vsel %vm9146_vm5, %v9149_v4, %v9152_v33  ;;  %v3971_v12 = vand.u32 2147483647, %v15411_v19  ;;  %v3854_v53 = vsel %vm15462_vm12, 0, %v3852_v21 }
 0x41f   :  { %v3970_v28 = vsel %vm3960_vm8, nan, %v3969_v48  ;;  %v9154_v32 = vsel %vm3960_vm8, nan, %v9153_v34  ;;  %v3844_v29 = vor.u32 4788187, %v3843_v10  ;;  %v4113_v44 = vsel %vm4107_vm9, %v4110_v15, %v4112_v50 }
 0x420   :  { %10852 = vst [vmem:[#allocation2 + $0x210] sm:$0xff] %v3970_v28  ;;  %10902 = vst [vmem:[#allocation2 + $0x218] sm:$0xff] %v3970_v28  ;;  %vm3982_vm14 = vcmp.gt.s32.totalorder %v3981_v23, 0  ;;  %v3847_v24 = vcvt.s32.f32 %v3840_v47  ;;  %vm4131_vm15 = vc.u32 %v15483_v17, %v15494_v46  ;;  %v4132_v55 = vadd.s32 1, %v15495_v3 }
 0x421   :  { %10953 = vst [vmem:[#allocation2 + $0x530] sm:$0xff] %v9154_v32  ;;  %11003 = vst [vmem:[#allocation2 + $0x538] sm:$0xff] %v9154_v32  ;;  %v3845_v63 = vand.u32 2147483647, %v3844_v29  ;;  %v3983_v40 = vsel %vm3982_vm14, %v3981_v23, 0  ;;  %v15511_v20 = vmul.f32 %v15122_v1, %v351_v57  ;;  %v9040_v11 = vadd.s32 3, %v3854_v53 }
 0x422   :  { %v3985_v45 = vand.u32 31, %v3983_v40  ;;  %v4129_v21 = vmul.u32 %v15449_v6, %v4113_v44  ;;  %v3978_v35 = vand.u32 8388607, %v3971_v12  ;;  %v4133_v15 = vsel %vm4131_vm15, %v4132_v55, %v15495_v3 }
 0x423   :  { %v3848_v37 = vmul.f32 %v3847_v24, %v3845_v63  ;;  %v15517_v14 = vshrl.u32 %v3983_v40, 5  ;;  %v15534_v43 = vand.u32 3, %v3854_v53  ;;  %v4283_v33 = vand.u32 2139095040, %v15511_v20 }
 0x424   :  { %v3986_v5 = vsub.s32 32, %v3985_v45  ;;  %v3988_v58 = vshll.u32 %v11883_v56, %v3985_v45  ;;  %v4134_v13 = vadd.s32 %v4133_v15, %v4129_v21  ;;  %v3991_v18 = vshll.u32 %v11884_v60, %v3985_v45 }
 0x425   :  { %v3849_v31 = vxor.u32 2147483648, %v3848_v37  ;;  %v3994_v1 = vshll.u32 %v11885_v62, %v3985_v45  ;;  %v3997_v41 = vshll.u32 %v11886_v0, %v3985_v45  ;;  %v4000_v51 = vshll.u32 %v11887_v2, %v3985_v45 }
 0x426   :  { %v3989_v52 = vshrl.u32 %v11884_v60, %v3986_v5  ;;  %v3992_v6 = vshrl.u32 %v11885_v62, %v3986_v5  ;;  %v3995_v42 = vshrl.u32 %v11886_v0, %v3986_v5  ;;  %v4135_v50 = vadd.s32 536870912, %v4134_v13 }
 0x427   :  { %v3850_v54 = vsel %vm3767_vm0, %v3849_v31, %v3848_v37  ;;  %v3998_v23 = vshrl.u32 %v11887_v2, %v3986_v5  ;;  %v4001_v22 = vshrl.u32 %v11888_v9, %v3986_v5  ;;  %v3979_v39 = vor.u32 8388608, %v3978_v35 }
 0x428   :  { %v3853_v38 = vsel %vm15462_vm12, %v15227_v59, %v3850_v54  ;;  %v3990_v16 = vor.u32 %v3989_v52, %v3988_v58  ;;  %v3993_v7 = vor.u32 %v3992_v6, %v3991_v18  ;;  %v3996_v61 = vor.u32 %v3995_v42, %v3994_v1 }
 0x429   :  { %11781 = vcosq.f32 %v3853_v38  ;;  %v4136_v8 = vshrl.u32 %v4135_v50, 30  ;;  %v3999_v26 = vor.u32 %v3998_v23, %v3997_v41  ;;  %vm4076_vm0 = vcmp.lt.s32.totalorder %v15339_v30, 0 }
 0x42a   :  { %11783 = vsinq.f32 %v3853_v38  ;;  %v4002_v36 = vor.u32 %v4001_v22, %v4000_v51  ;;  %vm4003_vm3 = vcmp.lt.s32.totalorder %v15517_v14, 1  ;;  %vm4006_vm1 = vcmp.lt.s32.totalorder %v15517_v14, 4 }
 0x42b   :  { %v4137_v49 = vshll.u32 %v4136_v8, 30  ;;  %vm4005_vm4 = vcmp.lt.s32.totalorder %v15517_v14, 3  ;;  %v4011_v25 = vsel %vm4003_vm3, %v3990_v16, %v3993_v7  ;;  %v4012_v4 = vsel %vm4006_vm1, %v3999_v26, 920167782 }
 0x42c   :  { %v4280_v47 = vand.u32 2147483647, %v15511_v20  ;;  %v9041_v10 = vand.u32 3, %v9040_v11  ;;  %vm4004_vm2 = vcmp.lt.s32.totalorder %v15517_v14, 2  ;;  %v4013_v34 = vsel %vm4005_vm4, %v3996_v61, %v4012_v4 }
 0x42d   :  { %v15546_v48 = vsub.s32 %v4134_v13, %v4137_v49  ;;  %vm15553_vm6 = vcmp.le.f32.partialorder %v4074_v27, 0.7853982  ;;  %v3987_v28 = vshrl.u32 %v11883_v56, %v3986_v5  ;;  %v4014_v32 = vsel %vm4004_vm2, %v4011_v25, %v4013_v34 }
 0x42e   :  { %v4019_v29 = vshll.u32 %v3979_v39, 8  ;;  %v4284_v57 = vshrl.u32 %v4283_v33, 23  ;;  %vm3859_vm5 = vcmp.lt.s32.totalorder %v15534_v43, 2  ;;  %v4008_v44 = vsel %vm4006_vm1, %v3996_v61, 2102212464 }
 0x42f   :  { %v4140_v53 = vsub.s32 0, %v15546_v48  ;;  %v4015_v27 = vsel %vm4003_vm3, %v3993_v7, %v3996_v61  ;;  %v4016_v63 = vsel %vm4006_vm1, %v4002_v36, 1326507024  ;;  %vm3857_vm7 = vweird.f32 %v15227_v59  ;;  %v346_v36 = vpop.permute.xlu0 %345 }
 0x430   :  { %v4160_v24 = vsub.s32 4, %v4136_v8  ;;  %v4017_v40 = vsel %vm4005_vm4, %v3999_v26, %v4016_v63  ;;  %v15571_v55 = vmul.u32.u64.low %v4019_v29, %v4014_v32  ;;  %v15572_v45 = vmul.u32.u64.high %v4019_v29, %v4014_v32, %v15571_v55 }
 0x431   :  { %vm3860_vm8 = vcmp.eq.s32.totalorder %v15534_v43, 0  ;;  %vm3863_vm9 = vcmp.eq.s32.totalorder %v15534_v43, 2  ;;  %vm9042_vm10 = vcmp.lt.s32.totalorder %v9041_v10, 2  ;;  %v11178_v37 = vmin.u32 %v4140_v53, %v15546_v48 }
 0x432   :  { %v4007_v11 = vsel %vm4003_vm3, %v3987_v28, %v3990_v16  ;;  %v4009_v21 = vsel %vm4005_vm4, %v3993_v7, %v4008_v44  ;;  %v4018_v35 = vsel %vm4004_vm2, %v4015_v27, %v4017_v40  ;;  %v11185_v15 = vadd.s32 4294967169, %v4284_v57 }
 0x433   :  { %v11782_v5 = vpop.eup %11781  ;;  %vm9043_vm11 = vcmp.eq.s32.totalorder %v9041_v10, 0  ;;  %v4142_v58 = vclz %v11178_v37  ;;  %v15584_v31 = vmul.u32.u64.low %v4019_v29, %v4018_v35  ;;  %v15585_v13 = vmul.u32.u64.high %v4019_v29, %v4018_v35, %v15584_v31 }
 0x434   :  { %v11784_v18 = vpop.eup %11783  ;;  %v3864_v1 = vxor.u32 2147483648, %v11782_v5  ;;  %vm9046_vm12 = vcmp.eq.s32.totalorder %v9041_v10, 2  ;;  %v4130_v52 = vadd.s32 %v15494_v46, %v15483_v17  ;;  %v4161_v6 = vsel %vm4076_vm0, %v4160_v24, %v4136_v8 }
 0x435   :  { %v3861_v42 = vxor.u32 2147483648, %v11784_v18  ;;  %v11179_v41 = vadd.s32 4294967294, %v4142_v58  ;;  %v4010_v54 = vsel %vm4004_vm2, %v4007_v11, %v4009_v21  ;;  %v4287_v50 = vand.u32 8388607, %v4280_v47 }
 0x436   :  { %v3865_v23 = vsel %vm3863_vm9, %v3864_v1, %v11784_v18  ;;  %v9048_v51 = vsel %vm9046_vm12, %v3864_v1, %v11784_v18  ;;  %v4029_v38 = vadd.s32 1, %v15572_v45  ;;  %v4290_v16 = vadd.s32 1, %v11185_v15 }
 0x437   :  { %v3862_v17 = vsel %vm3860_vm8, %v11782_v5, %v3861_v42  ;;  %v9045_v46 = vsel %vm9043_vm11, %v11782_v5, %v3861_v42  ;;  %vm11180_vm13 = vcmp.lt.s32.totalorder %v11179_v41, 0  ;;  %v4163_v14 = vsel %vm15553_vm6, 0, %v4161_v6 }
 0x438   :  { %v3866_v7 = vsel %vm3859_vm5, %v3862_v17, %v3865_v23  ;;  %v9049_v61 = vsel %vm9042_vm10, %v9045_v46, %v9048_v51  ;;  %v4145_v8 = vsel %vm11180_vm13, 0, %v11179_v41  ;;  %vm4028_vm14 = vc.u32 %v15585_v13, %v15571_v55 }
 0x439   :  { %v3867_v26 = vsel %vm3857_vm7, nan, %v3866_v7  ;;  %v9050_v22 = vsel %vm3857_vm7, nan, %v9049_v61  ;;  %v4146_v39 = vsub.s32 32, %v4145_v8  ;;  %v4026_v33 = vmul.u32 %v4019_v29, %v4010_v54  ;;  %v15617_v29 = vld [vmem:[%s17028_s1] ss:$0 sm:$0xff] }
 0x43a   :  { %10851 = vst [vmem:[#allocation2 + $0x200] sm:$0xff] %v3867_v26  ;;  %10901 = vst [vmem:[#allocation2 + $0x208] sm:$0xff] %v3867_v26  ;;  %v4150_v43 = vsub.s32 4294967266, %v4145_v8  ;;  %v4030_v49 = vsel %vm4028_vm14, %v4029_v38, %v15572_v45  ;;  %vm4291_vm15 = vcmp.gt.s32.totalorder %v4290_v16, 0  ;;  %v4147_v34 = vshll.u32 %v15546_v48, %v4145_v8 }
 0x43b   :  { %10952 = vst [vmem:[#allocation2 + $0x520] sm:$0xff] %v9050_v22  ;;  %11002 = vst [vmem:[#allocation2 + $0x528] sm:$0xff] %v9050_v22  ;;  %v4148_v25 = vshrl.u32 %v4130_v52, %v4146_v39  ;;  %v4031_v4 = vadd.s32 %v4030_v49, %v4026_v33  ;;  %v4292_v10 = vsel %vm4291_vm15, %v4290_v16, 0  ;;  %v9352_v32 = vadd.s32 3, %v4163_v14 }
 0x43c   :  { %v4151_v28 = vadd.s32 127, %v4150_v43  ;;  %v4294_v59 = vand.u32 31, %v4292_v10  ;;  %v4288_v53 = vor.u32 8388608, %v4287_v50  ;;  %v15620_v44 = vmul.f32 %v15617_v29, %v346_v36 }
 0x43d   :  { %v4032_v57 = vadd.s32 536870912, %v4031_v4  ;;  %v4149_v27 = vor.u32 %v4148_v25, %v4147_v34  ;;  %v15624_v48 = vand.u32 3, %v4163_v14  ;;  %v15626_v37 = vand.u32 3, %v9352_v32 }
 0x43e   :  { %v4152_v63 = vshll.u32 %v4151_v28, 23  ;;  %v4295_v24 = vsub.s32 32, %v4294_v59  ;;  %v15630_v35 = vshll.u32 %v4288_v53, 8  ;;  %v4180_v15 = vand.u32 2139095040, %v15620_v44 }
 0x43f   :  { %v15622_v40 = vshrl.u32 %v4032_v57, 30  ;;  %v4156_v58 = vcvt.s32.f32 %v4149_v27  ;;  %v4293_v52 = vshrl.u32 %v4292_v10, 5  ;;  %v4303_v6 = vshll.u32 %v11885_v62, %v4294_v59 }
 0x440   :  { %v4153_v45 = vor.u32 4788187, %v4152_v63  ;;  %v4304_v21 = vshrl.u32 %v11886_v0, %v4295_v24  ;;  %v4298_v31 = vshrl.u32 %v11884_v60, %v4295_v24  ;;  %v4301_v18 = vshrl.u32 %v11885_v62, %v4295_v24 }
 0x441   :  { %v4034_v11 = vshll.u32 %v15622_v40, 30  ;;  %v4307_v42 = vshrl.u32 %v11887_v2, %v4295_v24  ;;  %v4297_v54 = vshll.u32 %v11883_v56, %v4294_v59  ;;  %v4300_v50 = vshll.u32 %v11884_v60, %v4294_v59 }
 0x442   :  { %v4154_v5 = vand.u32 2147483647, %v4153_v45  ;;  %v4310_v23 = vshrl.u32 %v11888_v9, %v4295_v24  ;;  %v4305_v38 = vor.u32 %v4304_v21, %v4303_v6  ;;  %v4306_v16 = vshll.u32 %v11886_v0, %v4294_v59 }
 0x443   :  { %v15635_v1 = vsub.s32 %v4031_v4, %v4034_v11  ;;  %v4177_v17 = vand.u32 2147483647, %v15620_v44  ;;  %v4299_v14 = vor.u32 %v4298_v31, %v4297_v54  ;;  %v4302_v7 = vor.u32 %v4301_v18, %v4300_v50 }
 0x444   :  { %v4157_v41 = vmul.f32 %v4156_v58, %v4154_v5  ;;  %v4309_v61 = vshll.u32 %v11887_v2, %v4294_v59  ;;  %vm3973_vm3 = vcmp.lt.s32.totalorder %v15411_v19, 0  ;;  %v4296_v26 = vshrl.u32 %v11883_v56, %v4295_v24 }
 0x445   :  { %v4037_v51 = vsub.s32 0, %v15635_v1  ;;  %v4308_v22 = vor.u32 %v4307_v42, %v4306_v16  ;;  %v4181_v39 = vshrl.u32 %v4180_v15, 23  ;;  %v4057_v43 = vsub.s32 4, %v15622_v40 }
 0x446   :  { %v4158_v46 = vxor.u32 2147483648, %v4157_v41  ;;  %v4311_v49 = vor.u32 %v4310_v23, %v4309_v61  ;;  %vm4315_vm1 = vcmp.lt.s32.totalorder %v4293_v52, 4  ;;  %vm4312_vm4 = vcmp.lt.s32.totalorder %v4293_v52, 1 }
 0x447   :  { %v11174_v8 = vmin.u32 %v4037_v51, %v15635_v1  ;;  %v4317_v4 = vsel %vm4315_vm1, %v4305_v38, 2102212464  ;;  %vm15658_vm2 = vcmp.le.f32.partialorder %v3971_v12, 0.7853982  ;;  %vm4314_vm5 = vcmp.lt.s32.totalorder %v4293_v52, 3 }
 0x448   :  { %v4159_v33 = vsel %vm4076_vm0, %v4158_v46, %v4157_v41  ;;  %vm4313_vm0 = vcmp.lt.s32.totalorder %v4293_v52, 2  ;;  %v4320_v34 = vsel %vm4312_vm4, %v4299_v14, %v4302_v7  ;;  %v4316_v32 = vsel %vm4312_vm4, %v4296_v26, %v4299_v14 }
 0x449   :  { %v4162_v36 = vsel %vm15553_vm6, %v15339_v30, %v4159_v33  ;;  %v4039_v25 = vclz %v11174_v8  ;;  %v4321_v3 = vsel %vm4315_vm1, %v4308_v22, 920167782  ;;  %v4318_v59 = vsel %vm4314_vm5, %v4302_v7, %v4317_v4 }
 0x44a   :  { %11785 = vcosq.f32 %v4162_v36  ;;  %v4322_v57 = vsel %vm4314_vm5, %v4305_v38, %v4321_v3  ;;  %v4324_v53 = vsel %vm4312_vm4, %v4302_v7, %v4305_v38  ;;  %v4325_v27 = vsel %vm4315_vm1, %v4311_v49, 1326507024 }
 0x44b   :  { %11787 = vsinq.f32 %v4162_v36  ;;  %v11175_v28 = vadd.s32 4294967294, %v4039_v25  ;;  %v4323_v63 = vsel %vm4313_vm0, %v4320_v34, %v4322_v57  ;;  %v4326_v12 = vsel %vm4314_vm5, %v4308_v22, %v4325_v27 }
 0x44c   :  { %v11181_v24 = vadd.s32 4294967169, %v4181_v39  ;;  %v4327_v11 = vsel %vm4313_vm0, %v4324_v53, %v4326_v12  ;;  %v15667_v21 = vmul.u32.u64.low %v15630_v35, %v4323_v63  ;;  %v15668_v15 = vmul.u32.u64.high %v15630_v35, %v4323_v63, %v15667_v21  ;;  %v361_v53 = vpop.permute.xlu1 %360 }
 0x44d   :  { %vm11176_vm6 = vcmp.lt.s32.totalorder %v11175_v28, 0  ;;  %v4027_v5 = vadd.s32 %v15571_v55, %v15585_v13  ;;  %vm4168_vm7 = vcmp.lt.s32.totalorder %v15624_v48, 2  ;;  %v4058_v6 = vsel %vm3973_vm3, %v4057_v43, %v15622_v40 }
 0x44e   :  { %v4042_v45 = vsel %vm11176_vm6, 0, %v11175_v28  ;;  %v4187_v18 = vadd.s32 1, %v11181_v24  ;;  %v4319_v42 = vsel %vm4313_vm0, %v4316_v32, %v4318_v59  ;;  %vm4166_vm8 = vweird.f32 %v15339_v30 }
 0x44f   :  { %v4043_v58 = vsub.s32 32, %v4042_v45  ;;  %v4047_v31 = vsub.s32 4294967266, %v4042_v45  ;;  %v15679_v41 = vmul.u32.u64.low %v15630_v35, %v4327_v11  ;;  %v15680_v54 = vmul.u32.u64.high %v15630_v35, %v4327_v11, %v15679_v41 }
 0x450   :  { %v4044_v50 = vshll.u32 %v15635_v1, %v4042_v45  ;;  %vm4188_vm9 = vcmp.gt.s32.totalorder %v4187_v18, 0  ;;  %vm4169_vm10 = vcmp.eq.s32.totalorder %v15624_v48, 0  ;;  %vm4172_vm11 = vcmp.eq.s32.totalorder %v15624_v48, 2 }
 0x451   :  { %v4045_v55 = vshrl.u32 %v4027_v5, %v4043_v58  ;;  %v4048_v13 = vadd.s32 127, %v4047_v31  ;;  %v4338_v23 = vadd.s32 1, %v15668_v15  ;;  %v4189_v40 = vsel %vm4188_vm9, %v4187_v18, 0 }
 0x452   :  { %v4060_v38 = vsel %vm15658_vm2, 0, %v4058_v6  ;;  %v4191_v16 = vand.u32 31, %v4189_v40  ;;  %vm9355_vm12 = vcmp.eq.s32.totalorder %v15626_v37, 0  ;;  %vm9358_vm13 = vcmp.eq.s32.totalorder %v15626_v37, 2 }
 0x453   :  { %v4046_v52 = vor.u32 %v4045_v55, %v4044_v50  ;;  %v4049_v51 = vshll.u32 %v4048_v13, 23  ;;  %v4335_v1 = vmul.u32 %v15630_v35, %v4319_v42  ;;  %vm4337_vm14 = vc.u32 %v15680_v54, %v15667_v21 }
 0x454   :  { %v11786_v46 = vpop.eup %11785  ;;  %v4339_v8 = vsel %vm4337_vm14, %v4338_v23, %v15668_v15  ;;  %v4184_v26 = vand.u32 8388607, %v4177_v17  ;;  %v9248_v33 = vadd.s32 3, %v4060_v38  ;;  %v4192_v25 = vsub.s32 32, %v4191_v16 }
 0x455   :  { %v11788_v14 = vpop.eup %11787  ;;  %v4173_v7 = vxor.u32 2147483648, %v11786_v46  ;;  %v4050_v61 = vor.u32 4788187, %v4049_v51  ;;  %v4053_v39 = vcvt.s32.f32 %v4046_v52  ;;  %v4340_v43 = vadd.s32 %v4339_v8, %v4335_v1 }
 0x456   :  { %v4170_v22 = vxor.u32 2147483648, %v11788_v14  ;;  %vm9354_vm15 = vcmp.lt.s32.totalorder %v15626_v37, 2  ;;  %v4185_v57 = vor.u32 8388608, %v4184_v26  ;;  %v15710_v12 = vand.u32 3, %v4060_v38 }
 0x457   :  { %v4174_v49 = vsel %vm4172_vm11, %v4173_v7, %v11788_v14  ;;  %v9360_v36 = vsel %vm9358_vm13, %v4173_v7, %v11788_v14  ;;  %v4051_v35 = vand.u32 2147483647, %v4050_v61  ;;  %v4341_v28 = vadd.s32 536870912, %v4340_v43 }
 0x458   :  { %v4171_v4 = vsel %vm4169_vm10, %v11786_v46, %v4170_v22  ;;  %v9357_v34 = vsel %vm9355_vm12, %v11786_v46, %v4170_v22  ;;  %v15714_v37 = vand.u32 3, %v9248_v33  ;;  %v4195_v45 = vshrl.u32 %v11884_v60, %v4192_v25 }
 0x459   :  { %v4175_v32 = vsel %vm4168_vm7, %v4171_v4, %v4174_v49  ;;  %v9361_v3 = vsel %vm9354_vm15, %v9357_v34, %v9360_v36  ;;  %v4054_v59 = vmul.f32 %v4053_v39, %v4051_v35  ;;  %v15712_v24 = vshrl.u32 %v4341_v28, 30 }
 0x45a   :  { %v4176_v27 = vsel %vm4166_vm8, nan, %v4175_v32  ;;  %v9362_v63 = vsel %vm4166_vm8, nan, %v9361_v3  ;;  %v4198_v11 = vshrl.u32 %v11885_v62, %v4192_v25  ;;  %v15719_v5 = vshrl.u32 %v4189_v40, 5 }
 0x45b   :  { %10854 = vst [vmem:[#allocation2 + $0x230] sm:$0xff] %v4176_v27  ;;  %10904 = vst [vmem:[#allocation2 + $0x238] sm:$0xff] %v4176_v27  ;;  %v4055_v48 = vxor.u32 2147483648, %v4054_v59  ;;  %v4343_v15 = vshll.u32 %v15712_v24, 30  ;;  %v4194_v30 = vshll.u32 %v11883_v56, %v4191_v16  ;;  %v15723_v58 = vmul.f32 %v15617_v29, %v361_v53 }
 0x45c   :  { %10955 = vst [vmem:[#allocation2 + $0x550] sm:$0xff] %v9362_v63  ;;  %11005 = vst [vmem:[#allocation2 + $0x558] sm:$0xff] %v9362_v63  ;;  %v4197_v18 = vshll.u32 %v11884_v60, %v4191_v16  ;;  %v4201_v6 = vshrl.u32 %v11886_v0, %v4192_v25  ;;  %v4204_v42 = vshrl.u32 %v11887_v2, %v4192_v25  ;;  %v15742_v7 = vshll.u32 %v4185_v57, 8 }
 0x45d   :  { %v4056_v31 = vsel %vm3973_vm3, %v4055_v48, %v4054_v59  ;;  %v15733_v50 = vsub.s32 %v4340_v43, %v4343_v15  ;;  %v4203_v55 = vshll.u32 %v11886_v0, %v4191_v16  ;;  %v4207_v13 = vshrl.u32 %v11888_v9, %v4192_v25 }
 0x45e   :  { %v4059_v41 = vsel %vm15658_vm2, %v15411_v19, %v4056_v31  ;;  %v4196_v23 = vor.u32 %v4195_v45, %v4194_v30  ;;  %v4199_v40 = vor.u32 %v4198_v11, %v4197_v18  ;;  %v4200_v52 = vshll.u32 %v11885_v62, %v4191_v16 }
 0x45f   :  { %11789 = vcosq.f32 %v4059_v41  ;;  %v4346_v51 = vsub.s32 0, %v15733_v50  ;;  %v4205_v38 = vor.u32 %v4204_v42, %v4203_v55  ;;  %v4206_v46 = vshll.u32 %v11887_v2, %v4191_v16 }
 0x460   :  { %11791 = vsinq.f32 %v4059_v41  ;;  %v4202_v1 = vor.u32 %v4201_v6, %v4200_v52  ;;  %vm4282_vm3 = vcmp.lt.s32.totalorder %v15511_v20, 0  ;;  %v4486_v61 = vand.u32 2147483647, %v15723_v58 }
 0x461   :  { %v11186_v10 = vmin.u32 %v4346_v51, %v15733_v50  ;;  %v4208_v14 = vor.u32 %v4207_v13, %v4206_v46  ;;  %vm4069_vm1 = vcmp.eq.s32.totalorder %v15710_v12, 2  ;;  %vm9254_vm4 = vcmp.eq.s32.totalorder %v15714_v37, 2 }
 0x462   :  { %v4336_v8 = vadd.s32 %v15667_v21, %v15680_v54  ;;  %vm4209_vm2 = vcmp.lt.s32.totalorder %v15719_v5, 1  ;;  %vm4212_vm0 = vcmp.lt.s32.totalorder %v15719_v5, 4  ;;  %v4489_v16 = vand.u32 2139095040, %v15723_v58 }
 0x463   :  { %vm4066_vm5 = vcmp.eq.s32.totalorder %v15710_v12, 0  ;;  %vm9251_vm6 = vcmp.eq.s32.totalorder %v15714_v37, 0  ;;  %v4348_v26 = vclz %v11186_v10  ;;  %v4193_v22 = vshrl.u32 %v11883_v56, %v4192_v25 }
 0x464   :  { %v4217_v39 = vsel %vm4209_vm2, %v4196_v23, %v4199_v40  ;;  %v4218_v33 = vsel %vm4212_vm0, %v4205_v38, 920167782  ;;  %vm4065_vm7 = vcmp.lt.s32.totalorder %v15710_v12, 2  ;;  %vm9250_vm8 = vcmp.lt.s32.totalorder %v15714_v37, 2 }
 0x465   :  { %v4366_v21 = vsub.s32 4, %v15712_v24  ;;  %vm4210_vm9 = vcmp.lt.s32.totalorder %v15719_v5, 2  ;;  %vm4211_vm10 = vcmp.lt.s32.totalorder %v15719_v5, 3  ;;  %v4221_v54 = vsel %vm4209_vm2, %v4199_v40, %v4202_v1 }
 0x466   :  { %vm4063_vm11 = vweird.f32 %v15411_v19  ;;  %v11187_v43 = vadd.s32 4294967294, %v4348_v26  ;;  %v4213_v49 = vsel %vm4209_vm2, %v4193_v22, %v4196_v23  ;;  %v4219_v36 = vsel %vm4211_vm10, %v4202_v1, %v4218_v33 }
 0x467   :  { %v4222_v35 = vsel %vm4212_vm0, %v4208_v14, 1326507024  ;;  %v4214_v25 = vsel %vm4212_vm0, %v4202_v1, 2102212464  ;;  %v4220_v4 = vsel %vm4210_vm9, %v4217_v39, %v4219_v36  ;;  %v4490_v28 = vshrl.u32 %v4489_v16, 23 }
 0x468   :  { %v4223_v34 = vsel %vm4211_vm10, %v4205_v38, %v4222_v35  ;;  %vm15781_vm12 = vcmp.le.f32.partialorder %v4280_v47, 0.7853982  ;;  %vm11188_vm13 = vcmp.lt.s32.totalorder %v11187_v43, 0  ;;  %v4215_v31 = vsel %vm4211_vm10, %v4199_v40, %v4214_v25 }
 0x469   :  { %v4224_v3 = vsel %vm4210_vm9, %v4221_v54, %v4223_v34  ;;  %v15788_v59 = vmul.u32.u64.low %v15742_v7, %v4220_v4  ;;  %v15789_v57 = vmul.u32.u64.high %v15742_v7, %v4220_v4, %v15788_v59  ;;  %v11790_v53 = vpop.eup %11789  ;;  %v4351_v27 = vsel %vm11188_vm13, 0, %v11187_v43 }
 0x46a   :  { %v15793_v63 = vmul.u32.u64.low %v15742_v7, %v4224_v3  ;;  %v15794_v48 = vmul.u32.u64.high %v15742_v7, %v4224_v3, %v15793_v63  ;;  %v11193_v45 = vadd.s32 4294967169, %v4490_v28  ;;  %v11792_v47 = vpop.eup %11791  ;;  %v4070_v11 = vxor.u32 2147483648, %v11790_v53 }
 0x46b   :  { %v4352_v15 = vsub.s32 32, %v4351_v27  ;;  %v4356_v30 = vsub.s32 4294967266, %v4351_v27  ;;  %v4067_v18 = vxor.u32 2147483648, %v11792_v47  ;;  %v4353_v6 = vshll.u32 %v15733_v50, %v4351_v27 }
 0x46c   :  { %v4367_v42 = vsel %vm4282_vm3, %v4366_v21, %v15712_v24  ;;  %v4496_v41 = vadd.s32 1, %v11193_v45  ;;  %v4071_v55 = vsel %vm4069_vm1, %v4070_v11, %v11792_v47  ;;  %v9256_v13 = vsel %vm9254_vm4, %v4070_v11, %v11792_v47  ;;  %v356_v11 = vpop.permute.xlu0 %355 }
 0x46d   :  { %v4354_v23 = vshrl.u32 %v4336_v8, %v4352_v15  ;;  %v4357_v52 = vadd.s32 127, %v4356_v30  ;;  %v4068_v51 = vsel %vm4066_vm5, %v11790_v53, %v4067_v18  ;;  %v9253_v40 = vsel %vm9251_vm6, %v11790_v53, %v4067_v18 }
 0x46e   :  { %v4216_v50 = vsel %vm4210_vm9, %v4213_v49, %v4215_v31  ;;  %vm4234_vm14 = vc.u32 %v15794_v48, %v15788_v59  ;;  %v4072_v24 = vsel %vm4065_vm7, %v4068_v51, %v4071_v55  ;;  %v9257_v38 = vsel %vm9250_vm8, %v9253_v40, %v9256_v13 }
 0x46f   :  { %v4355_v46 = vor.u32 %v4354_v23, %v4353_v6  ;;  %v4358_v1 = vshll.u32 %v4357_v52, 23  ;;  %v4073_v10 = vsel %vm4063_vm11, nan, %v4072_v24  ;;  %v9258_v14 = vsel %vm4063_vm11, nan, %v9257_v38 }
 0x470   :  { %v4235_v5 = vadd.s32 1, %v15789_v57  ;;  %vm4497_vm15 = vcmp.gt.s32.totalorder %v4496_v41, 0  ;;  %10853 = vst [vmem:[#allocation2 + $0x220] sm:$0xff] %v4073_v10  ;;  %10903 = vst [vmem:[#allocation2 + $0x228] sm:$0xff] %v4073_v10  ;;  %v4232_v8 = vmul.u32 %v15742_v7, %v4216_v50  ;;  %v4493_v37 = vand.u32 8388607, %v4486_v61 }
 0x471   :  { %10954 = vst [vmem:[#allocation2 + $0x540] sm:$0xff] %v9258_v14  ;;  %11004 = vst [vmem:[#allocation2 + $0x548] sm:$0xff] %v9258_v14  ;;  %v4359_v12 = vor.u32 4788187, %v4358_v1  ;;  %v4498_v16 = vsel %vm4497_vm15, %v4496_v41, 0  ;;  %v4369_v26 = vsel %vm15781_vm12, 0, %v4367_v42  ;;  %v4362_v33 = vcvt.s32.f32 %v4355_v46 }
 0x472   :  { %v4236_v19 = vsel %vm4234_vm14, %v4235_v5, %v15789_v57  ;;  %v4500_v22 = vand.u32 31, %v4498_v16  ;;  %v9560_v49 = vadd.s32 3, %v4369_v26  ;;  %v4494_v36 = vor.u32 8388608, %v4493_v37 }
 0x473   :  { %v4360_v39 = vand.u32 2147483647, %v4359_v12  ;;  %v4237_v21 = vadd.s32 %v4236_v19, %v4232_v8  ;;  %v15832_v35 = vshrl.u32 %v4498_v16, 5  ;;  %vm4179_vm1 = vcmp.lt.s32.totalorder %v15620_v44, 0 }
 0x474   :  { %v4501_v54 = vsub.s32 32, %v4500_v22  ;;  %v4503_v57 = vshll.u32 %v11883_v56, %v4500_v22  ;;  %v4506_v27 = vshll.u32 %v11884_v60, %v4500_v22  ;;  %v4509_v63 = vshll.u32 %v11885_v62, %v4500_v22 }
 0x475   :  { %v4363_v43 = vmul.f32 %v4362_v33, %v4360_v39  ;;  %v4238_v7 = vadd.s32 536870912, %v4237_v21  ;;  %v4512_v45 = vshll.u32 %v11886_v0, %v4500_v22  ;;  %v4515_v18 = vshll.u32 %v11887_v2, %v4500_v22 }
 0x476   :  { %v4504_v25 = vshrl.u32 %v11884_v60, %v4501_v54  ;;  %v4507_v4 = vshrl.u32 %v11885_v62, %v4501_v54  ;;  %v4510_v34 = vshrl.u32 %v11886_v0, %v4501_v54  ;;  %v4513_v53 = vshrl.u32 %v11887_v2, %v4501_v54 }
 0x477   :  { %v4364_v28 = vxor.u32 2147483648, %v4363_v43  ;;  %v4239_v3 = vshrl.u32 %v4238_v7, 30  ;;  %v4516_v47 = vshrl.u32 %v11888_v9, %v4501_v54  ;;  %v15850_v13 = vand.u32 3, %v4369_v26 }
 0x478   :  { %v4505_v31 = vor.u32 %v4504_v25, %v4503_v57  ;;  %v4508_v42 = vor.u32 %v4507_v4, %v4506_v27  ;;  %v4511_v41 = vor.u32 %v4510_v34, %v4509_v63  ;;  %v4514_v55 = vor.u32 %v4513_v53, %v4512_v45 }
 0x479   :  { %v4365_v15 = vsel %vm4282_vm3, %v4364_v28, %v4363_v43  ;;  %v4240_v30 = vshll.u32 %v4239_v3, 30  ;;  %v15855_v52 = vmul.f32 %v15617_v29, %v356_v11  ;;  %v15857_v51 = vand.u32 3, %v9560_v49 }
 0x47a   :  { %v4368_v6 = vsel %vm15781_vm12, %v15511_v20, %v4365_v15  ;;  %v4517_v40 = vor.u32 %v4516_v47, %v4515_v18  ;;  %v15859_v50 = vshll.u32 %v4494_v36, 8  ;;  %vm15863_vm3 = vcmp.le.f32.partialorder %v4177_v17, 0.7853982 }
 0x47b   :  { %11793 = vcosq.f32 %v4368_v6  ;;  %v15852_v23 = vsub.s32 %v4237_v21, %v4240_v30  ;;  %v4502_v38 = vshrl.u32 %v11883_v56, %v4501_v54  ;;  %vm4518_vm4 = vcmp.lt.s32.totalorder %v15832_v35, 1 }
 0x47c   :  { %11795 = vsinq.f32 %v4368_v6  ;;  %vm4521_vm2 = vcmp.lt.s32.totalorder %v15832_v35, 4  ;;  %v4263_v46 = vsub.s32 4, %v4239_v3  ;;  %v4526_v10 = vsel %vm4518_vm4, %v4505_v31, %v4508_v42 }
 0x47d   :  { %v4243_v24 = vsub.s32 0, %v15852_v23  ;;  %v4523_v1 = vsel %vm4521_vm2, %v4511_v41, 2102212464  ;;  %v4527_v14 = vsel %vm4521_vm2, %v4514_v55, 920167782  ;;  %vm4520_vm0 = vcmp.lt.s32.totalorder %v15832_v35, 3 }
 0x47e   :  { %v4530_v17 = vsel %vm4518_vm4, %v4508_v42, %v4511_v41  ;;  %v4386_v12 = vand.u32 2139095040, %v15855_v52  ;;  %vm4375_vm5 = vcmp.eq.s32.totalorder %v15850_v13, 0  ;;  %vm4519_vm6 = vcmp.lt.s32.totalorder %v15832_v35, 2 }
 0x47f   :  { %v11182_v5 = vmin.u32 %v4243_v24, %v15852_v23  ;;  %v4522_v8 = vsel %vm4518_vm4, %v4502_v38, %v4505_v31  ;;  %v4528_v37 = vsel %vm4520_vm0, %v4511_v41, %v4527_v14  ;;  %v4531_v16 = vsel %vm4521_vm2, %v4517_v40, 1326507024 }
 0x480   :  { %vm4374_vm7 = vcmp.lt.s32.totalorder %v15850_v13, 2  ;;  %v4524_v19 = vsel %vm4520_vm0, %v4508_v42, %v4523_v1  ;;  %v4529_v22 = vsel %vm4519_vm6, %v4526_v10, %v4528_v37  ;;  %v4532_v39 = vsel %vm4520_vm0, %v4514_v55, %v4531_v16  ;;  %v371_v37 = vpop.permute.xlu1 %370 }
 0x481   :  { %v4245_v26 = vclz %v11182_v5  ;;  %vm4372_vm8 = vweird.f32 %v15511_v20  ;;  %vm4378_vm9 = vcmp.eq.s32.totalorder %v15850_v13, 2  ;;  %vm9562_vm10 = vcmp.lt.s32.totalorder %v15857_v51, 2 }
 0x482   :  { %v4264_v33 = vsel %vm4179_vm1, %v4263_v46, %v4239_v3  ;;  %v4533_v21 = vsel %vm4519_vm6, %v4530_v17, %v4532_v39  ;;  %v4387_v7 = vshrl.u32 %v4386_v12, 23  ;;  %vm9563_vm11 = vcmp.eq.s32.totalorder %v15857_v51, 0 }
 0x483   :  { %v11183_v54 = vadd.s32 4294967294, %v4245_v26  ;;  %v15887_v43 = vmul.u32.u64.low %v15859_v50, %v4533_v21  ;;  %v15888_v49 = vmul.u32.u64.high %v15859_v50, %v4533_v21, %v15887_v43  ;;  %v4525_v36 = vsel %vm4519_vm6, %v4522_v8, %v4524_v19 }
 0x484   :  { %v15894_v25 = vmul.u32.u64.low %v15859_v50, %v4529_v22  ;;  %v15895_v4 = vmul.u32.u64.high %v15859_v50, %v4529_v22, %v15894_v25  ;;  %vm9566_vm12 = vcmp.eq.s32.totalorder %v15857_v51, 2  ;;  %v4233_v28 = vadd.s32 %v15788_v59, %v15794_v48 }
 0x485   :  { %v11794_v34 = vpop.eup %11793  ;;  %vm11184_vm13 = vcmp.lt.s32.totalorder %v11183_v54, 0  ;;  %v4383_v3 = vand.u32 2147483647, %v15855_v52  ;;  %v4266_v35 = vsel %vm15863_vm3, 0, %v4264_v33  ;;  %v11189_v63 = vadd.s32 4294967169, %v4387_v7 }
 0x486   :  { %v11796_v57 = vpop.eup %11795  ;;  %v4379_v53 = vxor.u32 2147483648, %v11794_v34  ;;  %v4248_v27 = vsel %vm11184_vm13, 0, %v11183_v54  ;;  %v4541_v15 = vmul.u32 %v15859_v50, %v4525_v36  ;;  %vm4543_vm14 = vc.u32 %v15888_v49, %v15894_v25 }
 0x487   :  { %v4376_v45 = vxor.u32 2147483648, %v11796_v57  ;;  %v4249_v47 = vsub.s32 32, %v4248_v27  ;;  %v4253_v11 = vsub.s32 4294967266, %v4248_v27  ;;  %v4250_v48 = vshll.u32 %v15852_v23, %v4248_v27 }
 0x488   :  { %v4380_v30 = vsel %vm4378_vm9, %v4379_v53, %v11796_v57  ;;  %v9568_v59 = vsel %vm9566_vm12, %v4379_v53, %v11796_v57  ;;  %v4544_v40 = vadd.s32 1, %v15895_v4  ;;  %v4393_v23 = vadd.s32 1, %v11189_v63 }
 0x489   :  { %v4377_v31 = vsel %vm4375_vm5, %v11794_v34, %v4376_v45  ;;  %v9565_v18 = vsel %vm9563_vm11, %v11794_v34, %v4376_v45  ;;  %v4251_v6 = vshrl.u32 %v4233_v28, %v4249_v47  ;;  %v4254_v42 = vadd.s32 127, %v4253_v11 }
 0x48a   :  { %v4381_v41 = vsel %vm4374_vm7, %v4377_v31, %v4380_v30  ;;  %v9569_v55 = vsel %vm9562_vm10, %v9565_v18, %v9568_v59  ;;  %v4545_v13 = vsel %vm4543_vm14, %v4544_v40, %v15895_v4  ;;  %vm4394_vm15 = vcmp.gt.s32.totalorder %v4393_v23, 0 }
 0x48b   :  { %v4382_v50 = vsel %vm4372_vm8, nan, %v4381_v41  ;;  %v9570_v24 = vsel %vm4372_vm8, nan, %v9569_v55  ;;  %v4252_v38 = vor.u32 %v4251_v6, %v4250_v48  ;;  %v4255_v46 = vshll.u32 %v4254_v42, 23 }
 0x48c   :  { %10856 = vst [vmem:[#allocation2 + $0x250] sm:$0xff] %v4382_v50  ;;  %10906 = vst [vmem:[#allocation2 + $0x258] sm:$0xff] %v4382_v50  ;;  %v9456_v1 = vadd.s32 3, %v4266_v35  ;;  %v4546_v10 = vadd.s32 %v4545_v13, %v4541_v15  ;;  %v4395_v14 = vsel %vm4394_vm15, %v4393_v23, 0  ;;  %v4390_v20 = vand.u32 8388607, %v4383_v3 }
 0x48d   :  { %10957 = vst [vmem:[#allocation2 + $0x570] sm:$0xff] %v9570_v24  ;;  %11007 = vst [vmem:[#allocation2 + $0x578] sm:$0xff] %v9570_v24  ;;  %v4256_v51 = vor.u32 4788187, %v4255_v46  ;;  %v4397_v5 = vand.u32 31, %v4395_v14  ;;  %v4259_v12 = vcvt.s32.f32 %v4252_v38  ;;  %v15931_v19 = vand.u32 3, %v4266_v35 }
 0x48e   :  { %v4547_v8 = vadd.s32 536870912, %v4546_v10  ;;  %v15933_v22 = vand.u32 3, %v9456_v1  ;;  %v4391_v33 = vor.u32 8388608, %v4390_v20  ;;  %v15938_v43 = vmul.f32 %v15617_v29, %v371_v37 }
 0x48f   :  { %v4257_v17 = vand.u32 2147483647, %v4256_v51  ;;  %v4398_v16 = vsub.s32 32, %v4397_v5  ;;  %v4396_v28 = vshrl.u32 %v4395_v14, 5  ;;  %v4400_v57 = vshll.u32 %v11883_v56, %v4397_v5 }
 0x490   :  { %v4548_v39 = vshrl.u32 %v4547_v8, 30  ;;  %v4403_v53 = vshll.u32 %v11884_v60, %v4397_v5  ;;  %v4406_v27 = vshll.u32 %v11885_v62, %v4397_v5  ;;  %v4409_v45 = vshll.u32 %v11886_v0, %v4397_v5 }
 0x491   :  { %v4260_v26 = vmul.f32 %v4259_v12, %v4257_v17  ;;  %v4401_v21 = vshrl.u32 %v11884_v60, %v4398_v16  ;;  %v4404_v54 = vshrl.u32 %v11885_v62, %v4398_v16  ;;  %v4407_v4 = vshrl.u32 %v11886_v0, %v4398_v16 }
 0x492   :  { %v4549_v36 = vshll.u32 %v4548_v39, 30  ;;  %v4410_v34 = vshrl.u32 %v11887_v2, %v4398_v16  ;;  %v4413_v47 = vshrl.u32 %v11888_v9, %v4398_v16  ;;  %v4412_v59 = vshll.u32 %v11887_v2, %v4397_v5 }
 0x493   :  { %v4261_v7 = vxor.u32 2147483648, %v4260_v26  ;;  %v4402_v15 = vor.u32 %v4401_v21, %v4400_v57  ;;  %v4405_v30 = vor.u32 %v4404_v54, %v4403_v53  ;;  %v4408_v31 = vor.u32 %v4407_v4, %v4406_v27 }
 0x494   :  { %v15947_v63 = vsub.s32 %v4546_v10, %v4549_v36  ;;  %v4411_v18 = vor.u32 %v4410_v34, %v4409_v45  ;;  %v4572_v6 = vsub.s32 4, %v4548_v39  ;;  %vm15959_vm4 = vcmp.le.f32.partialorder %v4486_v61, 0.7853982 }
 0x495   :  { %v4262_v35 = vsel %vm4179_vm1, %v4261_v7, %v4260_v26  ;;  %vm4488_vm1 = vcmp.lt.s32.totalorder %v15723_v58, 0  ;;  %v4542_v32 = vadd.s32 %v15894_v25, %v15888_v49  ;;  %v4414_v55 = vor.u32 %v4413_v47, %v4412_v59 }
 0x496   :  { %v4265_v11 = vsel %vm15863_vm3, %v15620_v44, %v4262_v35  ;;  %v4552_v48 = vsub.s32 0, %v15947_v63  ;;  %v15966_v40 = vshll.u32 %v4391_v33, 8  ;;  %v4399_v23 = vshrl.u32 %v11883_v56, %v4398_v16 }
 0x497   :  { %11797 = vcosq.f32 %v4265_v11  ;;  %vm4415_vm3 = vcmp.lt.s32.totalorder %v4396_v28, 1  ;;  %vm4418_vm2 = vcmp.lt.s32.totalorder %v4396_v28, 4  ;;  %v4695_v50 = vand.u32 2139095040, %v15938_v43 }
 0x498   :  { %11799 = vsinq.f32 %v4265_v11  ;;  %v11194_v41 = vmin.u32 %v4552_v48, %v15947_v63  ;;  %vm4275_vm0 = vcmp.eq.s32.totalorder %v15931_v19, 2  ;;  %vm9462_vm5 = vcmp.eq.s32.totalorder %v15933_v22, 2 }
 0x499   :  { %v4420_v24 = vsel %vm4418_vm2, %v4408_v31, 2102212464  ;;  %v4423_v49 = vsel %vm4415_vm3, %v4402_v15, %v4405_v30  ;;  %v4424_v25 = vsel %vm4418_vm2, %v4411_v18, 920167782  ;;  %vm4272_vm6 = vcmp.eq.s32.totalorder %v15931_v19, 0 }
 0x49a   :  { %v4554_v61 = vclz %v11194_v41  ;;  %vm9459_vm7 = vcmp.eq.s32.totalorder %v15933_v22, 0  ;;  %v4573_v38 = vsel %vm4488_vm1, %v4572_v6, %v4548_v39  ;;  %vm4416_vm8 = vcmp.lt.s32.totalorder %v4396_v28, 2 }
 0x49b   :  { %vm4417_vm9 = vcmp.lt.s32.totalorder %v4396_v28, 3  ;;  %v4427_v46 = vsel %vm4415_vm3, %v4405_v30, %v4408_v31  ;;  %vm4271_vm10 = vcmp.lt.s32.totalorder %v15931_v19, 2  ;;  %vm9458_vm11 = vcmp.lt.s32.totalorder %v15933_v22, 2 }
 0x49c   :  { %v11195_v13 = vadd.s32 4294967294, %v4554_v61  ;;  %v4419_v51 = vsel %vm4415_vm3, %v4399_v23, %v4402_v15  ;;  %v4425_v1 = vsel %vm4417_vm9, %v4408_v31, %v4424_v25  ;;  %v4428_v10 = vsel %vm4418_vm2, %v4414_v55, 1326507024 }
 0x49d   :  { %vm4269_vm12 = vweird.f32 %v15620_v44  ;;  %v4421_v14 = vsel %vm4417_vm9, %v4405_v30, %v4420_v24  ;;  %v4426_v20 = vsel %vm4416_vm8, %v4423_v49, %v4425_v1  ;;  %v4429_v5 = vsel %vm4417_vm9, %v4411_v18, %v4428_v10 }
 0x49e   :  { %v4696_v17 = vshrl.u32 %v4695_v50, 23  ;;  %vm11196_vm13 = vcmp.lt.s32.totalorder %v11195_v13, 0  ;;  %v4430_v12 = vsel %vm4416_vm8, %v4427_v46, %v4429_v5  ;;  %v4422_v36 = vsel %vm4416_vm8, %v4419_v51, %v4421_v14 }
 0x49f   :  { %v15988_v8 = vmul.u32.u64.low %v15966_v40, %v4426_v20  ;;  %v15989_v37 = vmul.u32.u64.high %v15966_v40, %v4426_v20, %v15988_v8  ;;  %v4557_v16 = vsel %vm11196_vm13, 0, %v11195_v13  ;;  %v4692_v4 = vand.u32 2147483647, %v15938_v43 }
 0x4a0   :  { %v15993_v26 = vmul.u32.u64.low %v15966_v40, %v4430_v12  ;;  %v15994_v39 = vmul.u32.u64.high %v15966_v40, %v4430_v12, %v15993_v26  ;;  %v11201_v33 = vadd.s32 4294967169, %v4696_v17  ;;  %v4558_v54 = vsub.s32 32, %v4557_v16 }
 0x4a1   :  { %v11798_v21 = vpop.eup %11797  ;;  %v4562_v7 = vsub.s32 4294967266, %v4557_v16  ;;  %v4559_v53 = vshll.u32 %v15947_v63, %v4557_v16  ;;  %v4575_v27 = vsel %vm15959_vm4, 0, %v4573_v38  ;;  %v4441_v15 = vadd.s32 1, %v15989_v37  ;;  %v366_v38 = vpop.permute.xlu0 %365 }
 0x4a2   :  { %v11800_v34 = vpop.eup %11799  ;;  %v4276_v57 = vxor.u32 2147483648, %v11798_v21  ;;  %v4702_v35 = vadd.s32 1, %v11201_v33  ;;  %v4560_v47 = vshrl.u32 %v4542_v32, %v4558_v54  ;;  %v4438_v59 = vmul.u32 %v15966_v40, %v4422_v36 }
 0x4a3   :  { %v4273_v45 = vxor.u32 2147483648, %v11800_v34  ;;  %v4563_v11 = vadd.s32 127, %v4562_v7  ;;  %vm4440_vm14 = vc.u32 %v15994_v39, %v15988_v8  ;;  %v4699_v19 = vand.u32 8388607, %v4692_v4 }
 0x4a4   :  { %v4277_v30 = vsel %vm4275_vm0, %v4276_v57, %v11800_v34  ;;  %v9464_v28 = vsel %vm9462_vm5, %v4276_v57, %v11800_v34  ;;  %v4561_v31 = vor.u32 %v4560_v47, %v4559_v53  ;;  %v4442_v41 = vsel %vm4440_vm14, %v4441_v15, %v15989_v37 }
 0x4a5   :  { %v4274_v63 = vsel %vm4272_vm6, %v11798_v21, %v4273_v45  ;;  %v9461_v48 = vsel %vm9459_vm7, %v11798_v21, %v4273_v45  ;;  %v4564_v18 = vshll.u32 %v4563_v11, 23  ;;  %vm4703_vm15 = vcmp.gt.s32.totalorder %v4702_v35, 0 }
 0x4a6   :  { %v4278_v6 = vsel %vm4271_vm10, %v4274_v63, %v4277_v30  ;;  %v9465_v32 = vsel %vm9458_vm11, %v9461_v48, %v9464_v28  ;;  %v4443_v50 = vadd.s32 %v4442_v41, %v4438_v59  ;;  %v4704_v22 = vsel %vm4703_vm15, %v4702_v35, 0 }
 0x4a7   :  { %v4279_v55 = vsel %vm4269_vm12, nan, %v4278_v6  ;;  %v9466_v40 = vsel %vm4269_vm12, nan, %v9465_v32  ;;  %v4565_v23 = vor.u32 4788187, %v4564_v18  ;;  %v4568_v24 = vcvt.s32.f32 %v4561_v31 }
 0x4a8   :  { %10855 = vst [vmem:[#allocation2 + $0x240] sm:$0xff] %v4279_v55  ;;  %10905 = vst [vmem:[#allocation2 + $0x248] sm:$0xff] %v4279_v55  ;;  %v9768_v49 = vadd.s32 3, %v4575_v27  ;;  %v4706_v25 = vand.u32 31, %v4704_v22  ;;  %v4444_v46 = vadd.s32 536870912, %v4443_v50  ;;  %v16024_v44 = vand.u32 3, %v4575_v27 }
 0x4a9   :  { %10956 = vst [vmem:[#allocation2 + $0x560] sm:$0xff] %v9466_v40  ;;  %11006 = vst [vmem:[#allocation2 + $0x568] sm:$0xff] %v9466_v40  ;;  %v4566_v61 = vand.u32 2147483647, %v4565_v23  ;;  %v16029_v10 = vmul.f32 %v15617_v29, %v366_v38  ;;  %v4700_v5 = vor.u32 8388608, %v4699_v19  ;;  %v16035_v37 = vshrl.u32 %v4704_v22, 5 }
 0x4aa   :  { %v4707_v51 = vsub.s32 32, %v4706_v25  ;;  %v16026_v1 = vshrl.u32 %v4444_v46, 30  ;;  %v16031_v20 = vand.u32 3, %v9768_v49  ;;  %v4709_v29 = vshll.u32 %v11883_v56, %v4706_v25 }
 0x4ab   :  { %v4569_v13 = vmul.f32 %v4568_v24, %v4566_v61  ;;  %v4712_v21 = vshll.u32 %v11884_v60, %v4706_v25  ;;  %v4718_v34 = vshll.u32 %v11886_v0, %v4706_v25  ;;  %v4715_v27 = vshll.u32 %v11885_v62, %v4706_v25 }
 0x4ac   :  { %v4710_v17 = vshrl.u32 %v11884_v60, %v4707_v51  ;;  %v4446_v12 = vshll.u32 %v16026_v1, 30  ;;  %v4713_v16 = vshrl.u32 %v11885_v62, %v4707_v51  ;;  %v4719_v26 = vshrl.u32 %v11887_v2, %v4707_v51 }
 0x4ad   :  { %v4570_v14 = vxor.u32 2147483648, %v4569_v13  ;;  %v4716_v54 = vshrl.u32 %v11886_v0, %v4707_v51  ;;  %v4722_v57 = vshrl.u32 %v11888_v9, %v4707_v51  ;;  %v4721_v35 = vshll.u32 %v11887_v2, %v4706_v25 }
 0x4ae   :  { %v16047_v36 = vsub.s32 %v4443_v50, %v4446_v12  ;;  %v4711_v53 = vor.u32 %v4710_v17, %v4709_v29  ;;  %v4714_v47 = vor.u32 %v4713_v16, %v4712_v21  ;;  %v4720_v11 = vor.u32 %v4719_v26, %v4718_v34 }
 0x4af   :  { %v4571_v33 = vsel %vm4488_vm1, %v4570_v14, %v4569_v13  ;;  %v4717_v15 = vor.u32 %v4716_v54, %v4715_v27  ;;  %vm4385_vm1 = vcmp.lt.s32.totalorder %v15855_v52, 0  ;;  %v4723_v30 = vor.u32 %v4722_v57, %v4721_v35 }
 0x4b0   :  { %v4574_v7 = vsel %vm15959_vm4, %v15723_v58, %v4571_v33  ;;  %v4449_v45 = vsub.s32 0, %v16047_v36  ;;  %v16056_v28 = vshll.u32 %v4700_v5, 8  ;;  %v4589_v59 = vand.u32 2147483647, %v16029_v10 }
 0x4b1   :  { %11801 = vcosq.f32 %v4574_v7  ;;  %vm4584_vm4 = vcmp.eq.s32.totalorder %v16024_v44, 2  ;;  %vm9774_vm3 = vcmp.eq.s32.totalorder %v16031_v20, 2  ;;  %v4439_v63 = vadd.s32 %v15988_v8, %v15994_v39 }
 0x4b2   :  { %11803 = vsinq.f32 %v4574_v7  ;;  %v11190_v42 = vmin.u32 %v4449_v45, %v16047_v36  ;;  %vm4724_vm2 = vcmp.lt.s32.totalorder %v16035_v37, 1  ;;  %vm4727_vm0 = vcmp.lt.s32.totalorder %v16035_v37, 4 }
 0x4b3   :  { %v4592_v48 = vand.u32 2139095040, %v16029_v10  ;;  %vm4581_vm5 = vcmp.eq.s32.totalorder %v16024_v44, 0  ;;  %vm9771_vm6 = vcmp.eq.s32.totalorder %v16031_v20, 0  ;;  %v4708_v18 = vshrl.u32 %v11883_v56, %v4707_v51 }
 0x4b4   :  { %v4451_v31 = vclz %v11190_v42  ;;  %v4732_v6 = vsel %vm4724_vm2, %v4711_v53, %v4714_v47  ;;  %v4733_v32 = vsel %vm4727_vm0, %v4720_v11, 920167782  ;;  %vm4580_vm7 = vcmp.lt.s32.totalorder %v16024_v44, 2 }
 0x4b5   :  { %vm9770_vm8 = vcmp.lt.s32.totalorder %v16031_v20, 2  ;;  %v4469_v8 = vsub.s32 4, %v16026_v1  ;;  %vm4725_vm9 = vcmp.lt.s32.totalorder %v16035_v37, 2  ;;  %vm4726_vm10 = vcmp.lt.s32.totalorder %v16035_v37, 3 }
 0x4b6   :  { %v4736_v39 = vsel %vm4724_vm2, %v4714_v47, %v4717_v15  ;;  %vm4578_vm11 = vweird.f32 %v15723_v58  ;;  %v11191_v41 = vadd.s32 4294967294, %v4451_v31  ;;  %v4728_v55 = vsel %vm4724_vm2, %v4708_v18, %v4711_v53 }
 0x4b7   :  { %v4734_v40 = vsel %vm4726_vm10, %v4717_v15, %v4733_v32  ;;  %v4737_v23 = vsel %vm4727_vm0, %v4723_v30, 1326507024  ;;  %v4729_v50 = vsel %vm4727_vm0, %v4717_v15, 2102212464  ;;  %v4593_v61 = vshrl.u32 %v4592_v48, 23  ;;  %v381_v48 = vpop.permute.xlu1 %380 }
 0x4b8   :  { %v4735_v19 = vsel %vm4725_vm9, %v4732_v6, %v4734_v40  ;;  %v4738_v22 = vsel %vm4726_vm10, %v4720_v11, %v4737_v23  ;;  %vm16095_vm12 = vcmp.le.f32.partialorder %v4383_v3, 0.7853982  ;;  %vm11192_vm13 = vcmp.lt.s32.totalorder %v11191_v41, 0 }
 0x4b9   :  { %v4739_v49 = vsel %vm4725_vm9, %v4736_v39, %v4738_v22  ;;  %v16102_v25 = vmul.u32.u64.low %v16056_v28, %v4735_v19  ;;  %v16103_v38 = vmul.u32.u64.high %v16056_v28, %v4735_v19, %v16102_v25  ;;  %v4454_v13 = vsel %vm11192_vm13, 0, %v11191_v41 }
 0x4ba   :  { %v16107_v51 = vmul.u32.u64.low %v16056_v28, %v4739_v49  ;;  %v16108_v14 = vmul.u32.u64.high %v16056_v28, %v4739_v49, %v16107_v51  ;;  %v11197_v5 = vadd.s32 4294967169, %v4593_v61  ;;  %v4455_v12 = vsub.s32 32, %v4454_v13 }
 0x4bb   :  { %v11802_v46 = vpop.eup %11801  ;;  %v4459_v16 = vsub.s32 4294967266, %v4454_v13  ;;  %v4730_v26 = vsel %vm4726_vm10, %v4714_v47, %v4729_v50  ;;  %v4456_v29 = vshll.u32 %v16047_v36, %v4454_v13  ;;  %v4470_v21 = vsel %vm4385_vm1, %v4469_v8, %v16026_v1 }
 0x4bc   :  { %v11804_v3 = vpop.eup %11803  ;;  %v4585_v17 = vxor.u32 2147483648, %v11802_v46  ;;  %v4599_v54 = vadd.s32 1, %v11197_v5  ;;  %v4457_v57 = vshrl.u32 %v4439_v63, %v4455_v12  ;;  %v4731_v36 = vsel %vm4725_vm9, %v4728_v55, %v4730_v26 }
 0x4bd   :  { %v4582_v33 = vxor.u32 2147483648, %v11804_v3  ;;  %v4460_v53 = vadd.s32 127, %v4459_v16  ;;  %vm4749_vm14 = vc.u32 %v16108_v14, %v16102_v25  ;;  %v4750_v37 = vadd.s32 1, %v16103_v38 }
 0x4be   :  { %v4586_v7 = vsel %vm4584_vm4, %v4585_v17, %v11804_v3  ;;  %v9776_v34 = vsel %vm9774_vm3, %v4585_v17, %v11804_v3  ;;  %v4458_v47 = vor.u32 %v4457_v57, %v4456_v29  ;;  %vm4600_vm15 = vcmp.gt.s32.totalorder %v4599_v54, 0 }
 0x4bf   :  { %v4583_v27 = vsel %vm4581_vm5, %v11802_v46, %v4582_v33  ;;  %v9773_v35 = vsel %vm9771_vm6, %v11802_v46, %v4582_v33  ;;  %v4461_v11 = vshll.u32 %v4460_v53, 23  ;;  %v4747_v30 = vmul.u32 %v16056_v28, %v4731_v36  ;;  %v16149_v28 = vld [vmem:[%s17028_s1] ss:$0 sm:$0xff] }
 0x4c0   :  { %v4587_v1 = vsel %vm4580_vm7, %v4583_v27, %v4586_v7  ;;  %v9777_v45 = vsel %vm9770_vm8, %v9773_v35, %v9776_v34  ;;  %v4596_v20 = vand.u32 8388607, %v4589_v59  ;;  %v4601_v63 = vsel %vm4600_vm15, %v4599_v54, 0 }
 0x4c1   :  { %v4588_v15 = vsel %vm4578_vm11, nan, %v4587_v1  ;;  %v9778_v42 = vsel %vm4578_vm11, nan, %v9777_v45  ;;  %v4462_v44 = vor.u32 4788187, %v4461_v11  ;;  %v4472_v31 = vsel %vm16095_vm12, 0, %v4470_v21 }
 0x4c2   :  { %10858 = vst [vmem:[#allocation2 + $0x270] sm:$0xff] %v4588_v15  ;;  %10908 = vst [vmem:[#allocation2 + $0x278] sm:$0xff] %v4588_v15  ;;  %v4751_v58 = vsel %vm4749_vm14, %v4750_v37, %v16103_v38  ;;  %v4603_v18 = vand.u32 31, %v4601_v63  ;;  %v4465_v32 = vcvt.s32.f32 %v4458_v47  ;;  %v16152_v41 = vmul.f32 %v16149_v28, %v381_v48 }
 0x4c3   :  { %10959 = vst [vmem:[#allocation2 + $0x590] sm:$0xff] %v9778_v42  ;;  %11009 = vst [vmem:[#allocation2 + $0x598] sm:$0xff] %v9778_v42  ;;  %v4463_v6 = vand.u32 2147483647, %v4462_v44  ;;  %v4752_v8 = vadd.s32 %v4751_v58, %v4747_v30  ;;  %v9664_v40 = vadd.s32 3, %v4472_v31  ;;  %v4597_v50 = vor.u32 8388608, %v4596_v20 }
 0x4c4   :  { %v4604_v39 = vsub.s32 32, %v4603_v18  ;;  %v4602_v19 = vshrl.u32 %v4601_v63, 5  ;;  %v4612_v13 = vshll.u32 %v11885_v62, %v4603_v18  ;;  %v4606_v5 = vshll.u32 %v11883_v56, %v4603_v18 }
 0x4c5   :  { %v4466_v55 = vmul.f32 %v4465_v32, %v4463_v6  ;;  %v4753_v23 = vadd.s32 536870912, %v4752_v8  ;;  %v4609_v3 = vshll.u32 %v11884_v60, %v4603_v18  ;;  %v4615_v17 = vshll.u32 %v11886_v0, %v4603_v18 }
 0x4c6   :  { %v4607_v22 = vshrl.u32 %v11884_v60, %v4604_v39  ;;  %v4610_v61 = vshrl.u32 %v11885_v62, %v4604_v39  ;;  %v4613_v49 = vshrl.u32 %v11886_v0, %v4604_v39  ;;  %v4616_v51 = vshrl.u32 %v11887_v2, %v4604_v39 }
 0x4c7   :  { %v4467_v38 = vxor.u32 2147483648, %v4466_v55  ;;  %v16157_v46 = vshrl.u32 %v4753_v23, 30  ;;  %v4619_v12 = vshrl.u32 %v11888_v9, %v4604_v39  ;;  %v4618_v29 = vshll.u32 %v11887_v2, %v4603_v18 }
 0x4c8   :  { %v4614_v33 = vor.u32 %v4613_v49, %v4612_v13  ;;  %v4608_v54 = vor.u32 %v4607_v22, %v4606_v5  ;;  %v4611_v7 = vor.u32 %v4610_v61, %v4609_v3  ;;  %v4617_v34 = vor.u32 %v4616_v51, %v4615_v17 }
 0x4c9   :  { %v4468_v16 = vsel %vm4385_vm1, %v4467_v38, %v4466_v55  ;;  %v4755_v26 = vshll.u32 %v16157_v46, 30  ;;  %v16172_v57 = vand.u32 3, %v4472_v31  ;;  %v16176_v27 = vand.u32 3, %v9664_v40 }
 0x4ca   :  { %v4471_v21 = vsel %vm16095_vm12, %v15855_v52, %v4468_v16  ;;  %v4620_v35 = vor.u32 %v4619_v12, %v4618_v29  ;;  %vm4624_vm1 = vcmp.lt.s32.totalorder %v4602_v19, 4  ;;  %vm4694_vm4 = vcmp.lt.s32.totalorder %v15938_v43, 0 }
 0x4cb   :  { %11805 = vcosq.f32 %v4471_v21  ;;  %v16174_v53 = vsub.s32 %v4752_v8, %v4755_v26  ;;  %vm4621_vm3 = vcmp.lt.s32.totalorder %v4602_v19, 1  ;;  %v4626_v24 = vsel %vm4624_vm1, %v4614_v33, 2102212464 }
 0x4cc   :  { %11807 = vsinq.f32 %v4471_v21  ;;  %v4901_v1 = vand.u32 2139095040, %v16152_v41  ;;  %v4605_v45 = vshrl.u32 %v11883_v56, %v4604_v39  ;;  %v4629_v47 = vsel %vm4621_vm3, %v4608_v54, %v4611_v7 }
 0x4cd   :  { %v4758_v36 = vsub.s32 0, %v16174_v53  ;;  %v4630_v11 = vsel %vm4624_vm1, %v4617_v34, 920167782  ;;  %v16184_v15 = vshll.u32 %v4597_v50, 8  ;;  %vm4622_vm2 = vcmp.lt.s32.totalorder %v4602_v19, 2 }
 0x4ce   :  { %vm4623_vm0 = vcmp.lt.s32.totalorder %v4602_v19, 3  ;;  %v4633_v37 = vsel %vm4621_vm3, %v4611_v7, %v4614_v33  ;;  %v4625_v44 = vsel %vm4621_vm3, %v4605_v45, %v4608_v54  ;;  %v4634_v63 = vsel %vm4624_vm1, %v4620_v35, 1326507024 }
 0x4cf   :  { %v11202_v42 = vmin.u32 %v4758_v36, %v16174_v53  ;;  %v4627_v30 = vsel %vm4623_vm0, %v4611_v7, %v4626_v24  ;;  %v4631_v20 = vsel %vm4623_vm0, %v4614_v33, %v4630_v11  ;;  %vm4477_vm5 = vcmp.lt.s32.totalorder %v16172_v57, 2 }
 0x4d0   :  { %v4632_v31 = vsel %vm4622_vm2, %v4629_v47, %v4631_v20  ;;  %v4635_v58 = vsel %vm4623_vm0, %v4617_v34, %v4634_v63  ;;  %v4902_v18 = vshrl.u32 %v4901_v1, 23  ;;  %vm4475_vm6 = vweird.f32 %v15855_v52 }
 0x4d1   :  { %v4760_v48 = vclz %v11202_v42  ;;  %vm4478_vm7 = vcmp.eq.s32.totalorder %v16172_v57, 0  ;;  %vm4481_vm8 = vcmp.eq.s32.totalorder %v16172_v57, 2  ;;  %v4778_v6 = vsub.s32 4, %v16157_v46  ;;  %v376_v42 = vpop.permute.xlu0 %375 }
 0x4d2   :  { %v4636_v32 = vsel %vm4622_vm2, %v4633_v37, %v4635_v58  ;;  %v11209_v40 = vadd.s32 4294967169, %v4902_v18  ;;  %vm9666_vm9 = vcmp.lt.s32.totalorder %v16176_v27, 2  ;;  %v4628_v23 = vsel %vm4622_vm2, %v4625_v44, %v4627_v30 }
 0x4d3   :  { %v11203_v8 = vadd.s32 4294967294, %v4760_v48  ;;  %v16196_v39 = vmul.u32.u64.low %v16184_v15, %v4636_v32  ;;  %v16197_v55 = vmul.u32.u64.high %v16184_v15, %v4636_v32, %v16196_v39  ;;  %vm9667_vm10 = vcmp.eq.s32.totalorder %v16176_v27, 0 }
 0x4d4   :  { %v16202_v50 = vmul.u32.u64.low %v16184_v15, %v4632_v31  ;;  %v16203_v22 = vmul.u32.u64.high %v16184_v15, %v4632_v31, %v16202_v50  ;;  %vm9670_vm11 = vcmp.eq.s32.totalorder %v16176_v27, 2  ;;  %v4748_v49 = vadd.s32 %v16102_v25, %v16108_v14 }
 0x4d5   :  { %v11806_v61 = vpop.eup %11805  ;;  %vm11204_vm12 = vcmp.lt.s32.totalorder %v11203_v8, 0  ;;  %v4779_v19 = vsel %vm4694_vm4, %v4778_v6, %v16157_v46  ;;  %v4908_v5 = vadd.s32 1, %v11209_v40  ;;  %v4644_v16 = vmul.u32 %v16184_v15, %v4628_v23 }
 0x4d6   :  { %v11808_v38 = vpop.eup %11807  ;;  %v4482_v13 = vxor.u32 2147483648, %v11806_v61  ;;  %v4763_v51 = vsel %vm11204_vm12, 0, %v11203_v8  ;;  %vm4646_vm13 = vc.u32 %v16197_v55, %v16202_v50  ;;  %v4647_v34 = vadd.s32 1, %v16203_v22 }
 0x4d7   :  { %v4479_v3 = vxor.u32 2147483648, %v11808_v38  ;;  %v4764_v17 = vsub.s32 32, %v4763_v51  ;;  %v4768_v12 = vsub.s32 4294967266, %v4763_v51  ;;  %v4765_v25 = vshll.u32 %v16174_v53, %v4763_v51 }
 0x4d8   :  { %v4483_v26 = vsel %vm4481_vm8, %v4482_v13, %v11808_v38  ;;  %v9672_v33 = vsel %vm9670_vm11, %v4482_v13, %v11808_v38  ;;  %vm4909_vm14 = vcmp.gt.s32.totalorder %v4908_v5, 0  ;;  %v4648_v57 = vsel %vm4646_vm13, %v4647_v34, %v16203_v22 }
 0x4d9   :  { %v4480_v14 = vsel %vm4478_vm7, %v11806_v61, %v4479_v3  ;;  %v9669_v46 = vsel %vm9667_vm10, %v11806_v61, %v4479_v3  ;;  %v4766_v29 = vshrl.u32 %v4748_v49, %v4764_v17  ;;  %v4769_v21 = vadd.s32 127, %v4768_v12 }
 0x4da   :  { %v4484_v54 = vsel %vm4477_vm5, %v4480_v14, %v4483_v26  ;;  %v9673_v7 = vsel %vm9666_vm9, %v9669_v46, %v9672_v33  ;;  %v4898_v27 = vand.u32 2147483647, %v16152_v41  ;;  %v4910_v1 = vsel %vm4909_vm14, %v4908_v5, 0 }
 0x4db   :  { %v4485_v53 = vsel %vm4475_vm6, nan, %v4484_v54  ;;  %v9674_v35 = vsel %vm4475_vm6, nan, %v9673_v7  ;;  %v4767_v36 = vor.u32 %v4766_v29, %v4765_v25  ;;  %v4770_v24 = vshll.u32 %v4769_v21, 23 }
 0x4dc   :  { %10857 = vst [vmem:[#allocation2 + $0x260] sm:$0xff] %v4485_v53  ;;  %10907 = vst [vmem:[#allocation2 + $0x268] sm:$0xff] %v4485_v53  ;;  %vm16239_vm15 = vcmp.le.f32.partialorder %v4692_v4, 0.7853982  ;;  %v4649_v47 = vadd.s32 %v4648_v57, %v4644_v16  ;;  %v4912_v15 = vand.u32 31, %v4910_v1  ;;  %v16250_v58 = vmul.f32 %v16149_v28, %v376_v42 }
 0x4dd   :  { %10958 = vst [vmem:[#allocation2 + $0x580] sm:$0xff] %v9674_v35  ;;  %11008 = vst [vmem:[#allocation2 + $0x588] sm:$0xff] %v9674_v35  ;;  %v4771_v52 = vor.u32 4788187, %v4770_v24  ;;  %v4781_v11 = vsel %vm16239_vm15, 0, %v4779_v19  ;;  %v4774_v44 = vcvt.s32.f32 %v4767_v36  ;;  %v4911_v18 = vshrl.u32 %v4910_v1, 5 }
 0x4de   :  { %v4650_v30 = vadd.s32 536870912, %v4649_v47  ;;  %v4905_v20 = vand.u32 8388607, %v4898_v27  ;;  %v4913_v63 = vsub.s32 32, %v4912_v15  ;;  %v9976_v31 = vadd.s32 3, %v4781_v11 }
 0x4df   :  { %v4772_v37 = vand.u32 2147483647, %v4771_v52  ;;  %v4915_v23 = vshll.u32 %v11883_v56, %v4912_v15  ;;  %v4918_v61 = vshll.u32 %v11884_v60, %v4912_v15  ;;  %v4921_v49 = vshll.u32 %v11885_v62, %v4912_v15 }
 0x4e0   :  { %v16247_v4 = vshrl.u32 %v4650_v30, 30  ;;  %v4916_v6 = vshrl.u32 %v11884_v60, %v4913_v63  ;;  %v4919_v32 = vshrl.u32 %v11885_v62, %v4913_v63  ;;  %v4922_v8 = vshrl.u32 %v11886_v0, %v4913_v63 }
 0x4e1   :  { %v4775_v48 = vmul.f32 %v4774_v44, %v4772_v37  ;;  %v4925_v22 = vshrl.u32 %v11887_v2, %v4913_v63  ;;  %v4924_v38 = vshll.u32 %v11886_v0, %v4912_v15  ;;  %v4928_v13 = vshrl.u32 %v11888_v9, %v4913_v63 }
 0x4e2   :  { %v4652_v40 = vshll.u32 %v16247_v4, 30  ;;  %v4917_v5 = vor.u32 %v4916_v6, %v4915_v23  ;;  %v4927_v3 = vshll.u32 %v11887_v2, %v4912_v15  ;;  %v4920_v12 = vor.u32 %v4919_v32, %v4918_v61 }
 0x4e3   :  { %v4776_v39 = vxor.u32 2147483648, %v4775_v48  ;;  %v4923_v16 = vor.u32 %v4922_v8, %v4921_v49  ;;  %v4926_v26 = vor.u32 %v4925_v22, %v4924_v38  ;;  %v16270_v33 = vand.u32 3, %v4781_v11 }
 0x4e4   :  { %v16264_v19 = vsub.s32 %v4649_v47, %v4652_v40  ;;  %v4929_v14 = vor.u32 %v4928_v13, %v4927_v3  ;;  %v16273_v46 = vand.u32 3, %v9976_v31  ;;  %vm4591_vm1 = vcmp.lt.s32.totalorder %v16029_v10, 0 }
 0x4e5   :  { %v4777_v51 = vsel %vm4694_vm4, %v4776_v39, %v4775_v48  ;;  %v4906_v29 = vor.u32 8388608, %v4905_v20  ;;  %v4798_v21 = vand.u32 2139095040, %v16250_v58  ;;  %v4914_v7 = vshrl.u32 %v11883_v56, %v4913_v63 }
 0x4e6   :  { %v4780_v17 = vsel %vm16239_vm15, %v15938_v43, %v4777_v51  ;;  %v4655_v25 = vsub.s32 0, %v16264_v19  ;;  %vm4930_vm4 = vcmp.lt.s32.totalorder %v4911_v18, 1  ;;  %vm4933_vm3 = vcmp.lt.s32.totalorder %v4911_v18, 4 }
 0x4e7   :  { %11809 = vcosq.f32 %v4780_v17  ;;  %vm4932_vm2 = vcmp.lt.s32.totalorder %v4911_v18, 3  ;;  %v4935_v34 = vsel %vm4933_vm3, %v4923_v16, 2102212464  ;;  %v4938_v53 = vsel %vm4930_vm4, %v4917_v5, %v4920_v12 }
 0x4e8   :  { %11811 = vsinq.f32 %v4780_v17  ;;  %v11198_v54 = vmin.u32 %v4655_v25, %v16264_v19  ;;  %v4939_v35 = vsel %vm4933_vm3, %v4926_v26, 920167782  ;;  %vm4790_vm0 = vcmp.eq.s32.totalorder %v16270_v33, 2 }
 0x4e9   :  { %v4940_v24 = vsel %vm4932_vm2, %v4923_v16, %v4939_v35  ;;  %v4942_v57 = vsel %vm4930_vm4, %v4920_v12, %v4923_v16  ;;  %v4943_v1 = vsel %vm4933_vm3, %v4929_v14, 1326507024  ;;  %vm4787_vm5 = vcmp.eq.s32.totalorder %v16270_v33, 0  ;;  %v391_v35 = vpop.permute.xlu1 %390 }
 0x4ea   :  { %v4657_v36 = vclz %v11198_v54  ;;  %vm4931_vm6 = vcmp.lt.s32.totalorder %v4911_v18, 2  ;;  %v4934_v45 = vsel %vm4930_vm4, %v4914_v7, %v4917_v5  ;;  %v4936_v52 = vsel %vm4932_vm2, %v4920_v12, %v4935_v34 }
 0x4eb   :  { %v4946_v47 = vshll.u32 %v4906_v29, 8  ;;  %vm4786_vm7 = vcmp.lt.s32.totalorder %v16270_v33, 2  ;;  %vm9978_vm8 = vcmp.lt.s32.totalorder %v16273_v46, 2  ;;  %v4675_v15 = vsub.s32 4, %v16247_v4 }
 0x4ec   :  { %v11199_v11 = vadd.s32 4294967294, %v4657_v36  ;;  %v4941_v42 = vsel %vm4931_vm6, %v4938_v53, %v4940_v24  ;;  %v4944_v37 = vsel %vm4932_vm2, %v4926_v26, %v4943_v1  ;;  %vm4784_vm9 = vweird.f32 %v15938_v43 }
 0x4ed   :  { %v4945_v44 = vsel %vm4931_vm6, %v4942_v57, %v4944_v37  ;;  %v16290_v30 = vmul.u32.u64.low %v4946_v47, %v4941_v42  ;;  %v16291_v20 = vmul.u32.u64.high %v4946_v47, %v4941_v42, %v16290_v30  ;;  %v4799_v63 = vshrl.u32 %v4798_v21, 23 }
 0x4ee   :  { %vm16296_vm10 = vcmp.le.f32.partialorder %v4589_v59, 0.7853982  ;;  %vm11200_vm11 = vcmp.lt.s32.totalorder %v11199_v11, 0  ;;  %v4937_v31 = vsel %vm4931_vm6, %v4934_v45, %v4936_v52  ;;  %vm9979_vm12 = vcmp.eq.s32.totalorder %v16273_v46, 0 }
 0x4ef   :  { %v16301_v6 = vmul.u32.u64.low %v4946_v47, %v4945_v44  ;;  %v16302_v32 = vmul.u32.u64.high %v4946_v47, %v4945_v44, %v16301_v6  ;;  %vm9982_vm13 = vcmp.eq.s32.totalorder %v16273_v46, 2  ;;  %v4660_v8 = vsel %vm11200_vm11, 0, %v11199_v11 }
 0x4f0   :  { %v11205_v39 = vadd.s32 4294967169, %v4799_v63  ;;  %v4645_v23 = vadd.s32 %v16202_v50, %v16197_v55  ;;  %v4661_v59 = vsub.s32 32, %v4660_v8  ;;  %v4665_v22 = vsub.s32 4294967266, %v4660_v8 }
 0x4f1   :  { %v11810_v40 = vpop.eup %11809  ;;  %v4676_v18 = vsel %vm4591_vm1, %v4675_v15, %v16247_v4  ;;  %v4953_v38 = vmul.u32 %v4946_v47, %v4937_v31  ;;  %v4956_v13 = vadd.s32 1, %v16291_v20  ;;  %v4662_v3 = vshll.u32 %v16264_v19, %v4660_v8 }
 0x4f2   :  { %v11812_v61 = vpop.eup %11811  ;;  %v4791_v49 = vxor.u32 2147483648, %v11810_v40  ;;  %v4805_v51 = vadd.s32 1, %v11205_v39  ;;  %v4663_v17 = vshrl.u32 %v4645_v23, %v4661_v59  ;;  %v4666_v12 = vadd.s32 127, %v4665_v22 }
 0x4f3   :  { %v4788_v5 = vxor.u32 2147483648, %v11812_v61  ;;  %vm4955_vm14 = vc.u32 %v16302_v32, %v16290_v30  ;;  %v4795_v53 = vand.u32 2147483647, %v16250_v58  ;;  %v4678_v33 = vsel %vm16296_vm10, 0, %v4676_v18 }
 0x4f4   :  { %v4792_v55 = vsel %vm4790_vm0, %v4791_v49, %v11812_v61  ;;  %v9984_v50 = vsel %vm9982_vm13, %v4791_v49, %v11812_v61  ;;  %vm4806_vm15 = vcmp.gt.s32.totalorder %v4805_v51, 0  ;;  %v4664_v26 = vor.u32 %v4663_v17, %v4662_v3 }
 0x4f5   :  { %v4789_v4 = vsel %vm4787_vm5, %v11810_v40, %v4788_v5  ;;  %v9981_v16 = vsel %vm9979_vm12, %v11810_v40, %v4788_v5  ;;  %v4667_v19 = vshll.u32 %v4666_v12, 23  ;;  %v4957_v29 = vsel %vm4955_vm14, %v4956_v13, %v16291_v20 }
 0x4f6   :  { %v4793_v25 = vsel %vm4786_vm7, %v4789_v4, %v4792_v55  ;;  %v9985_v14 = vsel %vm9978_vm8, %v9981_v16, %v9984_v50  ;;  %v4807_v21 = vsel %vm4806_vm15, %v4805_v51, 0  ;;  %v4958_v46 = vadd.s32 %v4957_v29, %v4953_v38 }
 0x4f7   :  { %v4794_v54 = vsel %vm4784_vm9, nan, %v4793_v25  ;;  %v9986_v7 = vsel %vm4784_vm9, nan, %v9985_v14  ;;  %v4668_v34 = vor.u32 4788187, %v4667_v19  ;;  %v4809_v36 = vand.u32 31, %v4807_v21 }
 0x4f8   :  { %10860 = vst [vmem:[#allocation2 + $0x290] sm:$0xff] %v4794_v54  ;;  %10910 = vst [vmem:[#allocation2 + $0x298] sm:$0xff] %v4794_v54  ;;  %v4671_v57 = vcvt.s32.f32 %v4664_v26  ;;  %v4959_v1 = vadd.s32 536870912, %v4958_v46  ;;  %v16336_v43 = vmul.f32 %v16149_v28, %v391_v35  ;;  %v16338_v47 = vand.u32 3, %v4678_v33 }
 0x4f9   :  { %10961 = vst [vmem:[#allocation2 + $0x5b0] sm:$0xff] %v9986_v7  ;;  %11011 = vst [vmem:[#allocation2 + $0x5b8] sm:$0xff] %v9986_v7  ;;  %v4669_v24 = vand.u32 2147483647, %v4668_v34  ;;  %v4810_v45 = vsub.s32 32, %v4809_v36  ;;  %v9872_v15 = vadd.s32 3, %v4678_v33  ;;  %v4812_v39 = vshll.u32 %v11883_v56, %v4809_v36 }
 0x4fa   :  { %v4802_v11 = vand.u32 8388607, %v4795_v53  ;;  %v16342_v42 = vshrl.u32 %v4959_v1, 30  ;;  %v16344_v37 = vshrl.u32 %v4807_v21, 5  ;;  %v5107_v23 = vand.u32 2139095040, %v16336_v43 }
 0x4fb   :  { %v4672_v52 = vmul.f32 %v4671_v57, %v4669_v24  ;;  %v4813_v44 = vshrl.u32 %v11884_v60, %v4810_v45  ;;  %v4816_v63 = vshrl.u32 %v11885_v62, %v4810_v45  ;;  %v4819_v31 = vshrl.u32 %v11886_v0, %v4810_v45 }
 0x4fc   :  { %v4822_v6 = vshrl.u32 %v11887_v2, %v4810_v45  ;;  %v4961_v8 = vshll.u32 %v16342_v42, 30  ;;  %v4825_v40 = vshrl.u32 %v11888_v9, %v4810_v45  ;;  %v4815_v22 = vshll.u32 %v11884_v60, %v4809_v36 }
 0x4fd   :  { %v4673_v20 = vxor.u32 2147483648, %v4672_v52  ;;  %v4818_v18 = vshll.u32 %v11885_v62, %v4809_v36  ;;  %v4821_v61 = vshll.u32 %v11886_v0, %v4809_v36  ;;  %v4814_v13 = vor.u32 %v4813_v44, %v4812_v39 }
 0x4fe   :  { %v16362_v38 = vsub.s32 %v4958_v46, %v4961_v8  ;;  %v4824_v51 = vshll.u32 %v11887_v2, %v4809_v36  ;;  %v4817_v5 = vor.u32 %v4816_v63, %v4815_v22  ;;  %v16365_v12 = vand.u32 3, %v9872_v15 }
 0x4ff   :  { %v4674_v59 = vsel %vm4591_vm1, %v4673_v20, %v4672_v52  ;;  %v4820_v3 = vor.u32 %v4819_v31, %v4818_v18  ;;  %v4823_v17 = vor.u32 %v4822_v6, %v4821_v61  ;;  %vm4900_vm1 = vcmp.lt.s32.totalorder %v16152_v41, 0 }
 0x500   :  { %v4677_v49 = vsel %vm16296_vm10, %v16029_v10, %v4674_v59  ;;  %v4964_v55 = vsub.s32 0, %v16362_v38  ;;  %v4826_v50 = vor.u32 %v4825_v40, %v4824_v51  ;;  %v4803_v4 = vor.u32 8388608, %v4802_v11 }
 0x501   :  { %11813 = vcosq.f32 %v4677_v49  ;;  %v4811_v48 = vshrl.u32 %v11883_v56, %v4810_v45  ;;  %vm4827_vm4 = vcmp.lt.s32.totalorder %v16344_v37, 1  ;;  %vm4829_vm3 = vcmp.lt.s32.totalorder %v16344_v37, 3 }
 0x502   :  { %11815 = vsinq.f32 %v4677_v49  ;;  %v11210_v16 = vmin.u32 %v4964_v55, %v16362_v38  ;;  %vm4830_vm2 = vcmp.lt.s32.totalorder %v16344_v37, 4  ;;  %vm4687_vm0 = vcmp.eq.s32.totalorder %v16338_v47, 2 }
 0x503   :  { %v4832_v26 = vsel %vm4830_vm2, %v4820_v3, 2102212464  ;;  %v4835_v19 = vsel %vm4827_vm4, %v4814_v13, %v4817_v5  ;;  %v4836_v25 = vsel %vm4830_vm2, %v4823_v17, 920167782  ;;  %v5108_v14 = vshrl.u32 %v5107_v23, 23 }
 0x504   :  { %vm4684_vm5 = vcmp.eq.s32.totalorder %v16338_v47, 0  ;;  %vm9875_vm6 = vcmp.eq.s32.totalorder %v16365_v12, 0  ;;  %v4966_v29 = vclz %v11210_v16  ;;  %v4837_v21 = vsel %vm4829_vm3, %v4820_v3, %v4836_v25 }
 0x505   :  { %v4839_v54 = vsel %vm4827_vm4, %v4817_v5, %v4820_v3  ;;  %v4840_v7 = vsel %vm4830_vm2, %v4826_v50, 1326507024  ;;  %vm4683_vm7 = vcmp.lt.s32.totalorder %v16338_v47, 2  ;;  %vm9874_vm8 = vcmp.lt.s32.totalorder %v16365_v12, 2 }
 0x506   :  { %v4984_v34 = vsub.s32 4, %v16342_v42  ;;  %vm4828_vm9 = vcmp.lt.s32.totalorder %v16344_v37, 2  ;;  %v4831_v35 = vsel %vm4827_vm4, %v4811_v48, %v4814_v13  ;;  %v4843_v33 = vshll.u32 %v4803_v4, 8 }
 0x507   :  { %vm4681_vm10 = vweird.f32 %v16029_v10  ;;  %v11211_v46 = vadd.s32 4294967294, %v4966_v29  ;;  %v4833_v36 = vsel %vm4829_vm3, %v4817_v5, %v4832_v26  ;;  %v4838_v24 = vsel %vm4828_vm9, %v4835_v19, %v4837_v21  ;;  %v386_v10 = vpop.permute.xlu0 %385 }
 0x508   :  { %v4841_v57 = vsel %vm4829_vm3, %v4823_v17, %v4840_v7  ;;  %v16398_v45 = vmul.u32.u64.low %v4843_v33, %v4838_v24  ;;  %v16399_v52 = vmul.u32.u64.high %v4843_v33, %v4838_v24, %v16398_v45  ;;  %v11217_v11 = vadd.s32 4294967169, %v5108_v14 }
 0x509   :  { %v4842_v1 = vsel %vm4828_vm9, %v4839_v54, %v4841_v57  ;;  %vm9878_vm11 = vcmp.eq.s32.totalorder %v16365_v12, 2  ;;  %vm11212_vm12 = vcmp.lt.s32.totalorder %v11211_v46, 0  ;;  %v4954_v63 = vadd.s32 %v16290_v30, %v16302_v32 }
 0x50a   :  { %v16403_v15 = vmul.u32.u64.low %v4843_v33, %v4842_v1  ;;  %v16404_v44 = vmul.u32.u64.high %v4843_v33, %v4842_v1, %v16403_v15  ;;  %v4969_v31 = vsel %vm11212_vm12, 0, %v11211_v46  ;;  %v4985_v6 = vsel %vm4900_vm1, %v4984_v34, %v16342_v42 }
 0x50b   :  { %v11814_v20 = vpop.eup %11813  ;;  %v5114_v8 = vadd.s32 1, %v11217_v11  ;;  %v4970_v23 = vsub.s32 32, %v4969_v31  ;;  %v4974_v59 = vsub.s32 4294967266, %v4969_v31  ;;  %v4834_v22 = vsel %vm4828_vm9, %v4831_v35, %v4833_v36 }
 0x50c   :  { %v11816_v39 = vpop.eup %11815  ;;  %v4688_v40 = vxor.u32 2147483648, %v11814_v20  ;;  %v4971_v61 = vshll.u32 %v16362_v38, %v4969_v31  ;;  %v4853_v49 = vadd.s32 1, %v16399_v52  ;;  %v4850_v5 = vmul.u32 %v4843_v33, %v4834_v22 }
 0x50d   :  { %v4685_v18 = vxor.u32 2147483648, %v11816_v39  ;;  %vm5115_vm13 = vcmp.gt.s32.totalorder %v5114_v8, 0  ;;  %v4972_v42 = vshrl.u32 %v4954_v63, %v4970_v23  ;;  %v4975_v13 = vadd.s32 127, %v4974_v59 }
 0x50e   :  { %v4689_v30 = vsel %vm4687_vm0, %v4688_v40, %v11816_v39  ;;  %v9880_v32 = vsel %vm9878_vm11, %v4688_v40, %v11816_v39  ;;  %vm4852_vm14 = vc.u32 %v16404_v44, %v16398_v45  ;;  %v5116_v16 = vsel %vm5115_vm13, %v5114_v8, 0 }
 0x50f   :  { %v4686_v51 = vsel %vm4684_vm5, %v11814_v20, %v4685_v18  ;;  %v9877_v37 = vsel %vm9875_vm6, %v11814_v20, %v4685_v18  ;;  %v4973_v17 = vor.u32 %v4972_v42, %v4971_v61  ;;  %v4976_v55 = vshll.u32 %v4975_v13, 23 }
 0x510   :  { %v4690_v38 = vsel %vm4683_vm7, %v4686_v51, %v4689_v30  ;;  %v9881_v3 = vsel %vm9874_vm8, %v9877_v37, %v9880_v32  ;;  %v4854_v48 = vsel %vm4852_vm14, %v4853_v49, %v16399_v52  ;;  %vm16437_vm15 = vcmp.le.f32.partialorder %v4898_v27, 0.7853982 }
 0x511   :  { %v4691_v50 = vsel %vm4681_vm10, nan, %v4690_v38  ;;  %v9882_v4 = vsel %vm4681_vm10, nan, %v9881_v3  ;;  %v4977_v12 = vor.u32 4788187, %v4976_v55  ;;  %v4855_v26 = vadd.s32 %v4854_v48, %v4850_v5 }
 0x512   :  { %10859 = vst [vmem:[#allocation2 + $0x280] sm:$0xff] %v4691_v50  ;;  %10909 = vst [vmem:[#allocation2 + $0x288] sm:$0xff] %v4691_v50  ;;  %v5104_v19 = vand.u32 2147483647, %v16336_v43  ;;  %v4987_v25 = vsel %vm16437_vm15, 0, %v4985_v6  ;;  %v5118_v14 = vand.u32 31, %v5116_v16  ;;  %v4980_v21 = vcvt.s32.f32 %v4973_v17 }
 0x513   :  { %10960 = vst [vmem:[#allocation2 + $0x5a0] sm:$0xff] %v9882_v4  ;;  %11010 = vst [vmem:[#allocation2 + $0x5a8] sm:$0xff] %v9882_v4  ;;  %v4978_v29 = vand.u32 2147483647, %v4977_v12  ;;  %v4856_v54 = vadd.s32 536870912, %v4855_v26  ;;  %v16445_v34 = vmul.f32 %v16149_v28, %v386_v10  ;;  %v10184_v35 = vadd.s32 3, %v4987_v25 }
 0x514   :  { %v5119_v7 = vsub.s32 32, %v5118_v14  ;;  %v5111_v46 = vand.u32 8388607, %v5104_v19  ;;  %v5117_v36 = vshrl.u32 %v5116_v16, 5  ;;  %v5121_v15 = vshll.u32 %v11883_v56, %v5118_v14 }
 0x515   :  { %v4981_v27 = vmul.f32 %v4980_v21, %v4978_v29  ;;  %v16447_v33 = vshrl.u32 %v4856_v54, 30  ;;  %v5124_v63 = vshll.u32 %v11884_v60, %v5118_v14  ;;  %v5127_v31 = vshll.u32 %v11885_v62, %v5118_v14 }
 0x516   :  { %v5122_v24 = vshrl.u32 %v11884_v60, %v5119_v7  ;;  %v5125_v57 = vshrl.u32 %v11885_v62, %v5119_v7  ;;  %v5128_v1 = vshrl.u32 %v11886_v0, %v5119_v7  ;;  %v5131_v20 = vshrl.u32 %v11887_v2, %v5119_v7 }
 0x517   :  { %v4982_v52 = vxor.u32 2147483648, %v4981_v27  ;;  %v4858_v11 = vshll.u32 %v16447_v33, 30  ;;  %v5130_v6 = vshll.u32 %v11886_v0, %v5118_v14  ;;  %v5134_v8 = vshrl.u32 %v11888_v9, %v5119_v7 }
 0x518   :  { %v5123_v23 = vor.u32 %v5122_v24, %v5121_v15  ;;  %v5133_v59 = vshll.u32 %v11887_v2, %v5118_v14  ;;  %v5126_v18 = vor.u32 %v5125_v57, %v5124_v63  ;;  %v5129_v61 = vor.u32 %v5128_v1, %v5127_v31 }
 0x519   :  { %v4983_v39 = vsel %vm4900_vm1, %v4982_v52, %v4981_v27  ;;  %v16463_v40 = vsub.s32 %v4855_v26, %v4858_v11  ;;  %v5132_v49 = vor.u32 %v5131_v20, %v5130_v6  ;;  %v16469_v30 = vand.u32 3, %v4987_v25 }
 0x51a   :  { %v4986_v22 = vsel %vm16437_vm15, %v16152_v41, %v4983_v39  ;;  %v5135_v42 = vor.u32 %v5134_v8, %v5133_v59  ;;  %v16472_v13 = vand.u32 3, %v10184_v35  ;;  %vm4797_vm1 = vcmp.lt.s32.totalorder %v16250_v58, 0 }
 0x51b   :  { %11817 = vcosq.f32 %v4986_v22  ;;  %v4861_v32 = vsub.s32 0, %v16463_v40  ;;  %v5112_v51 = vor.u32 8388608, %v5111_v46  ;;  %v5004_v37 = vand.u32 2139095040, %v16445_v34 }
 0x51c   :  { %11819 = vsinq.f32 %v4986_v22  ;;  %v5120_v38 = vshrl.u32 %v11883_v56, %v5119_v7  ;;  %vm5136_vm4 = vcmp.lt.s32.totalorder %v5117_v36, 1  ;;  %vm5139_vm3 = vcmp.lt.s32.totalorder %v5117_v36, 4 }
 0x51d   :  { %v11206_v5 = vmin.u32 %v4861_v32, %v16463_v40  ;;  %vm5138_vm2 = vcmp.lt.s32.totalorder %v5117_v36, 3  ;;  %v5141_v3 = vsel %vm5139_vm3, %v5129_v61, 2102212464  ;;  %v5144_v17 = vsel %vm5136_vm4, %v5123_v23, %v5126_v18 }
 0x51e   :  { %v5145_v55 = vsel %vm5139_vm3, %v5132_v49, 920167782  ;;  %vm4996_vm0 = vcmp.eq.s32.totalorder %v16469_v30, 2  ;;  %v5148_v48 = vsel %vm5136_vm4, %v5126_v18, %v5129_v61  ;;  %v5149_v16 = vsel %vm5139_vm3, %v5135_v42, 1326507024 }
 0x51f   :  { %v4863_v50 = vclz %v11206_v5  ;;  %v5146_v4 = vsel %vm5138_vm2, %v5129_v61, %v5145_v55  ;;  %vm4993_vm5 = vcmp.eq.s32.totalorder %v16469_v30, 0  ;;  %vm5137_vm6 = vcmp.lt.s32.totalorder %v5117_v36, 2  ;;  %v401_v55 = vpop.permute.xlu1 %400 }
 0x520   :  { %v5140_v47 = vsel %vm5136_vm4, %v5120_v38, %v5123_v23  ;;  %v5142_v12 = vsel %vm5138_vm2, %v5126_v18, %v5141_v3  ;;  %v5152_v26 = vshll.u32 %v5112_v51, 8  ;;  %vm4992_vm7 = vcmp.lt.s32.totalorder %v16469_v30, 2 }
 0x521   :  { %vm10186_vm8 = vcmp.lt.s32.totalorder %v16472_v13, 2  ;;  %v11207_v10 = vadd.s32 4294967294, %v4863_v50  ;;  %v4881_v25 = vsub.s32 4, %v16447_v33  ;;  %v5147_v14 = vsel %vm5137_vm6, %v5144_v17, %v5146_v4 }
 0x522   :  { %v5150_v29 = vsel %vm5138_vm2, %v5132_v49, %v5149_v16  ;;  %vm4990_vm9 = vweird.f32 %v16152_v41  ;;  %v16489_v54 = vmul.u32.u64.low %v5152_v26, %v5147_v14  ;;  %v16490_v7 = vmul.u32.u64.high %v5152_v26, %v5147_v14, %v16489_v54 }
 0x523   :  { %v5151_v21 = vsel %vm5137_vm6, %v5148_v48, %v5150_v29  ;;  %v5005_v27 = vshrl.u32 %v5004_v37, 23  ;;  %vm16495_vm10 = vcmp.le.f32.partialorder %v4795_v53, 0.7853982  ;;  %vm11208_vm11 = vcmp.lt.s32.totalorder %v11207_v10, 0 }
 0x524   :  { %v5143_v46 = vsel %vm5137_vm6, %v5140_v47, %v5142_v12  ;;  %v16500_v24 = vmul.u32.u64.low %v5152_v26, %v5151_v21  ;;  %v16501_v57 = vmul.u32.u64.high %v5152_v26, %v5151_v21, %v16500_v24  ;;  %vm10187_vm12 = vcmp.eq.s32.totalorder %v16472_v13, 0 }
 0x525   :  { %vm10190_vm13 = vcmp.eq.s32.totalorder %v16472_v13, 2  ;;  %v4866_v1 = vsel %vm11208_vm11, 0, %v11207_v10  ;;  %v11213_v52 = vadd.s32 4294967169, %v5005_v27  ;;  %v11818_v11 = vpop.eup %11817  ;;  %v4851_v15 = vadd.s32 %v16398_v45, %v16404_v44 }
 0x526   :  { %v4867_v53 = vsub.s32 32, %v4866_v1  ;;  %v4871_v20 = vsub.s32 4294967266, %v4866_v1  ;;  %v4882_v36 = vsel %vm4797_vm1, %v4881_v25, %v16447_v33  ;;  %v11820_v63 = vpop.eup %11819  ;;  %v4997_v31 = vxor.u32 2147483648, %v11818_v11 }
 0x527   :  { %v5159_v6 = vmul.u32 %v5152_v26, %v5143_v46  ;;  %v5162_v8 = vadd.s32 1, %v16490_v7  ;;  %v5011_v39 = vadd.s32 1, %v11213_v52  ;;  %v4994_v23 = vxor.u32 2147483648, %v11820_v63 }
 0x528   :  { %v4868_v59 = vshll.u32 %v16463_v40, %v4866_v1  ;;  %v4869_v22 = vshrl.u32 %v4851_v15, %v4867_v53  ;;  %v4872_v18 = vadd.s32 127, %v4871_v20  ;;  %v4998_v45 = vsel %vm4996_vm0, %v4997_v31, %v11820_v63 }
 0x529   :  { %v10192_v44 = vsel %vm10190_vm13, %v4997_v31, %v11820_v63  ;;  %vm5161_vm14 = vc.u32 %v16501_v57, %v16489_v54  ;;  %vm5012_vm15 = vcmp.gt.s32.totalorder %v5011_v39, 0  ;;  %v4995_v33 = vsel %vm4993_vm5, %v11818_v11, %v4994_v23 }
 0x52a   :  { %v10189_v61 = vsel %vm10187_vm12, %v11818_v11, %v4994_v23  ;;  %v4870_v49 = vor.u32 %v4869_v22, %v4868_v59  ;;  %v4873_v40 = vshll.u32 %v4872_v18, 23  ;;  %v4999_v32 = vsel %vm4992_vm7, %v4995_v33, %v4998_v45 }
 0x52b   :  { %v10193_v42 = vsel %vm10186_vm8, %v10189_v61, %v10192_v44  ;;  %v5163_v51 = vsel %vm5161_vm14, %v5162_v8, %v16490_v7  ;;  %v5013_v37 = vsel %vm5012_vm15, %v5011_v39, 0  ;;  %v5000_v5 = vsel %vm4990_vm9, nan, %v4999_v32 }
 0x52c   :  { %v10194_v38 = vsel %vm4990_vm9, nan, %v10193_v42  ;;  %v4874_v3 = vor.u32 4788187, %v4873_v40  ;;  %v5001_v17 = vand.u32 2147483647, %v16445_v34  ;;  %10862 = vst [vmem:[#allocation2 + $0x2b0] sm:$0xff] %v5000_v5  ;;  %v5164_v13 = vadd.s32 %v5163_v51, %v5159_v6 }
 0x52d   :  { %10912 = vst [vmem:[#allocation2 + $0x2b8] sm:$0xff] %v5000_v5  ;;  %10963 = vst [vmem:[#allocation2 + $0x5d0] sm:$0xff] %v10194_v38  ;;  %v4884_v30 = vsel %vm16495_vm10, 0, %v4882_v36  ;;  %v5015_v50 = vand.u32 31, %v5013_v37  ;;  %v4877_v48 = vcvt.s32.f32 %v4870_v49  ;;  %v16535_v41 = vmul.f32 %v16149_v28, %v401_v55 }
 0x52e   :  { %11013 = vst [vmem:[#allocation2 + $0x5d8] sm:$0xff] %v10194_v38  ;;  %v4875_v4 = vand.u32 2147483647, %v4874_v3  ;;  %v5165_v16 = vadd.s32 536870912, %v5164_v13  ;;  %v16537_v26 = vand.u32 3, %v4884_v30  ;;  %v10080_v25 = vadd.s32 3, %v4884_v30 }
 0x52f   :  { %v5016_v47 = vsub.s32 32, %v5015_v50  ;;  %v5008_v10 = vand.u32 8388607, %v5001_v17  ;;  %v16543_v29 = vshrl.u32 %v5013_v37, 5  ;;  %v5018_v1 = vshll.u32 %v11883_v56, %v5015_v50 }
 0x530   :  { %v4878_v12 = vmul.f32 %v4877_v48, %v4875_v4  ;;  %v16541_v14 = vshrl.u32 %v5165_v16, 30  ;;  %v5313_v11 = vand.u32 2139095040, %v16535_v41  ;;  %v5021_v53 = vshll.u32 %v11884_v60, %v5015_v50 }
 0x531   :  { %v5019_v21 = vshrl.u32 %v11884_v60, %v5016_v47  ;;  %v5022_v27 = vshrl.u32 %v11885_v62, %v5016_v47  ;;  %v5025_v46 = vshrl.u32 %v11886_v0, %v5016_v47  ;;  %v5028_v28 = vshrl.u32 %v11887_v2, %v5016_v47 }
 0x532   :  { %v4879_v7 = vxor.u32 2147483648, %v4878_v12  ;;  %v5167_v24 = vshll.u32 %v16541_v14, 30  ;;  %v5031_v52 = vshrl.u32 %v11888_v9, %v5016_v47  ;;  %v5024_v20 = vshll.u32 %v11885_v62, %v5015_v50 }
 0x533   :  { %v5027_v36 = vshll.u32 %v11886_v0, %v5015_v50  ;;  %v5020_v6 = vor.u32 %v5019_v21, %v5018_v1  ;;  %v5030_v8 = vshll.u32 %v11887_v2, %v5015_v50  ;;  %v5023_v39 = vor.u32 %v5022_v27, %v5021_v53 }
 0x534   :  { %v4880_v15 = vsel %vm4797_vm1, %v4879_v7, %v4878_v12  ;;  %v16561_v31 = vsub.s32 %v5164_v13, %v5167_v24  ;;  %v5026_v23 = vor.u32 %v5025_v46, %v5024_v20  ;;  %v16564_v22 = vand.u32 3, %v10080_v25 }
 0x535   :  { %v4883_v63 = vsel %vm16495_vm10, %v16250_v58, %v4880_v15  ;;  %v5029_v59 = vor.u32 %v5028_v28, %v5027_v36  ;;  %v5032_v45 = vor.u32 %v5031_v52, %v5030_v8  ;;  %vm5106_vm1 = vcmp.lt.s32.totalorder %v16336_v43, 0 }
 0x536   :  { %11821 = vcosq.f32 %v4883_v63  ;;  %v5170_v18 = vsub.s32 0, %v16561_v31  ;;  %v5009_v44 = vor.u32 8388608, %v5008_v10  ;;  %v5017_v35 = vshrl.u32 %v11883_v56, %v5016_v47 }
 0x537   :  { %11823 = vsinq.f32 %v4883_v63  ;;  %vm5033_vm4 = vcmp.lt.s32.totalorder %v16543_v29, 1  ;;  %vm5035_vm3 = vcmp.lt.s32.totalorder %v16543_v29, 3  ;;  %vm5036_vm2 = vcmp.lt.s32.totalorder %v16543_v29, 4 }
 0x538   :  { %v11218_v33 = vmin.u32 %v5170_v18, %v16561_v31  ;;  %vm4893_vm0 = vcmp.eq.s32.totalorder %v16537_v26, 2  ;;  %v5038_v61 = vsel %vm5036_vm2, %v5026_v23, 2102212464  ;;  %v5041_v49 = vsel %vm5033_vm4, %v5020_v6, %v5023_v39 }
 0x539   :  { %v5042_v40 = vsel %vm5036_vm2, %v5029_v59, 920167782  ;;  %v5314_v32 = vshrl.u32 %v5313_v11, 23  ;;  %vm4890_vm5 = vcmp.eq.s32.totalorder %v16537_v26, 0  ;;  %vm10083_vm6 = vcmp.eq.s32.totalorder %v16564_v22, 0 }
 0x53a   :  { %v5172_v42 = vclz %v11218_v33  ;;  %v5043_v51 = vsel %vm5035_vm3, %v5026_v23, %v5042_v40  ;;  %v5045_v37 = vsel %vm5033_vm4, %v5023_v39, %v5026_v23  ;;  %v5046_v5 = vsel %vm5036_vm2, %v5032_v45, 1326507024 }
 0x53b   :  { %vm4889_vm7 = vcmp.lt.s32.totalorder %v16537_v26, 2  ;;  %vm10082_vm8 = vcmp.lt.s32.totalorder %v16564_v22, 2  ;;  %v5190_v38 = vsub.s32 4, %v16541_v14  ;;  %vm5034_vm9 = vcmp.lt.s32.totalorder %v16543_v29, 2 }
 0x53c   :  { %v5037_v3 = vsel %vm5033_vm4, %v5017_v35, %v5020_v6  ;;  %v5049_v55 = vshll.u32 %v5009_v44, 8  ;;  %vm4887_vm10 = vweird.f32 %v16250_v58  ;;  %v11219_v30 = vadd.s32 4294967294, %v5172_v42  ;;  %v396_v58 = vpop.permute.xlu0 %395 }
 0x53d   :  { %v5039_v13 = vsel %vm5035_vm3, %v5023_v39, %v5038_v61  ;;  %v5044_v50 = vsel %vm5034_vm9, %v5041_v49, %v5043_v51  ;;  %v5047_v4 = vsel %vm5035_vm3, %v5029_v59, %v5046_v5  ;;  %v11225_v12 = vadd.s32 4294967169, %v5314_v32 }
 0x53e   :  { %v5048_v48 = vsel %vm5034_vm9, %v5045_v37, %v5047_v4  ;;  %v16597_v16 = vmul.u32.u64.low %v5049_v55, %v5044_v50  ;;  %v16598_v47 = vmul.u32.u64.high %v5049_v55, %v5044_v50, %v16597_v16  ;;  %vm10086_vm11 = vcmp.eq.s32.totalorder %v16564_v22, 2 }
 0x53f   :  { %vm11220_vm12 = vcmp.lt.s32.totalorder %v11219_v30, 0  ;;  %v16602_v10 = vmul.u32.u64.low %v5049_v55, %v5048_v48  ;;  %v16603_v25 = vmul.u32.u64.high %v5049_v55, %v5048_v48, %v16602_v10  ;;  %v5160_v7 = vadd.s32 %v16489_v54, %v16501_v57 }
 0x540   :  { %v11822_v21 = vpop.eup %11821  ;;  %v5175_v27 = vsel %vm11220_vm12, 0, %v11219_v30  ;;  %v5191_v46 = vsel %vm5106_vm1, %v5190_v38, %v16541_v14  ;;  %v5320_v28 = vadd.s32 1, %v11225_v12  ;;  %v5040_v15 = vsel %vm5034_vm9, %v5037_v3, %v5039_v13 }
 0x541   :  { %v11824_v24 = vpop.eup %11823  ;;  %v4894_v1 = vxor.u32 2147483648, %v11822_v21  ;;  %v5176_v52 = vsub.s32 32, %v5175_v27  ;;  %v5180_v11 = vsub.s32 4294967266, %v5175_v27  ;;  %v5177_v20 = vshll.u32 %v16561_v31, %v5175_v27 }
 0x542   :  { %v4891_v53 = vxor.u32 2147483648, %v11824_v24  ;;  %v5059_v36 = vadd.s32 1, %v16598_v47  ;;  %vm5321_vm13 = vcmp.gt.s32.totalorder %v5320_v28, 0  ;;  %v5056_v8 = vmul.u32 %v5049_v55, %v5040_v15 }
 0x543   :  { %v4895_v54 = vsel %vm4893_vm0, %v4894_v1, %v11824_v24  ;;  %v10088_v57 = vsel %vm10086_vm11, %v4894_v1, %v11824_v24  ;;  %v5178_v14 = vshrl.u32 %v5160_v7, %v5176_v52  ;;  %v5181_v63 = vadd.s32 127, %v5180_v11 }
 0x544   :  { %v4892_v6 = vsel %vm4890_vm5, %v11822_v21, %v4891_v53  ;;  %v10085_v29 = vsel %vm10083_vm6, %v11822_v21, %v4891_v53  ;;  %vm5058_vm14 = vc.u32 %v16603_v25, %v16597_v16  ;;  %v5322_v35 = vsel %vm5321_vm13, %v5320_v28, 0 }
 0x545   :  { %v4896_v31 = vsel %vm4889_vm7, %v4892_v6, %v4895_v54  ;;  %v10089_v39 = vsel %vm10082_vm8, %v10085_v29, %v10088_v57  ;;  %v5179_v23 = vor.u32 %v5178_v14, %v5177_v20  ;;  %v5182_v59 = vshll.u32 %v5181_v63, 23 }
 0x546   :  { %v4897_v18 = vsel %vm4887_vm10, nan, %v4896_v31  ;;  %v10090_v45 = vsel %vm4887_vm10, nan, %v10089_v39  ;;  %v5060_v44 = vsel %vm5058_vm14, %v5059_v36, %v16598_v47  ;;  %vm16636_vm15 = vcmp.le.f32.partialorder %v5104_v19, 0.7853982  ;;  %v16646_v19 = vld [vmem:[%s17028_s1] ss:$0 sm:$0xff] }
 0x547   :  { %10861 = vst [vmem:[#allocation2 + $0x2a0] sm:$0xff] %v4897_v18  ;;  %10911 = vst [vmem:[#allocation2 + $0x2a8] sm:$0xff] %v4897_v18  ;;  %v5183_v22 = vor.u32 4788187, %v5182_v59  ;;  %v5061_v33 = vadd.s32 %v5060_v44, %v5056_v8  ;;  %v5310_v61 = vand.u32 2147483647, %v16535_v41  ;;  %v5186_v42 = vcvt.s32.f32 %v5179_v23 }
 0x548   :  { %10962 = vst [vmem:[#allocation2 + $0x5c0] sm:$0xff] %v10090_v45  ;;  %11012 = vst [vmem:[#allocation2 + $0x5c8] sm:$0xff] %v10090_v45  ;;  %v5193_v49 = vsel %vm16636_vm15, 0, %v5191_v46  ;;  %v5324_v40 = vand.u32 31, %v5322_v35  ;;  %v16649_v5 = vmul.f32 %v16646_v19, %v396_v58  ;;  %v5323_v13 = vshrl.u32 %v5322_v35, 5  ;;  %s11889_s1 = smov [#allocation2]  }
 0x549   :  { %v5184_v32 = vand.u32 2147483647, %v5183_v22  ;;  %v5062_v51 = vadd.s32 536870912, %v5061_v33  ;;  %v10392_v3 = vadd.s32 3, %v5193_v49  ;;  %v5317_v30 = vand.u32 8388607, %v5310_v61 }
 0x54a   :  { %v5325_v37 = vsub.s32 32, %v5324_v40  ;;  %v5327_v10 = vshll.u32 %v11883_v56, %v5324_v40  ;;  %v5330_v7 = vshll.u32 %v11884_v60, %v5324_v40  ;;  %v5333_v27 = vshll.u32 %v11885_v62, %v5324_v40  ;;  %s11025_s16 = sshll.u32 %s11889_s1, 4  ;;  %s11026_s16 = int_to_ptr.vmem [resolvable:$true] %s11025_s16 }
 0x54b   :  { %v5187_v38 = vmul.f32 %v5186_v42, %v5184_v32  ;;  %v16651_v55 = vshrl.u32 %v5062_v51, 30  ;;  %v5336_v46 = vshll.u32 %v11886_v0, %v5324_v40  ;;  %v5339_v11 = vshll.u32 %v11887_v2, %v5324_v40  ;;  %s11858_s17 = scalar_lea.vmem %s11026_s16, 25600  ;;  %p11863_p1 = scmp.lt.s32.totalorder %s11026_s16, %s11026_s16 }
 0x54c   :  { %v5328_v50 = vshrl.u32 %v11884_v60, %v5325_v37  ;;  %v5331_v4 = vshrl.u32 %v11885_v62, %v5325_v37  ;;  %v5334_v48 = vshrl.u32 %v11886_v0, %v5325_v37  ;;  %v5337_v21 = vshrl.u32 %v11887_v2, %v5325_v37  ;;  %p11859_p0 = scmp.ne.s32.totalorder %s11026_s16, %s11858_s17  ;;  %p11864_p2 = scmp.lt.s32.totalorder %s11858_s17, %s11858_s17 }
 0x54d   :  { %v5188_v47 = vxor.u32 2147483648, %v5187_v38  ;;  %v5064_v12 = vshll.u32 %v16651_v55, 30  ;;  %v5340_v28 = vshrl.u32 %v11888_v9, %v5325_v37  ;;  %v16673_v54 = vand.u32 3, %v5193_v49 }
 0x54e   :  { %v5329_v52 = vor.u32 %v5328_v50, %v5327_v10  ;;  %v5332_v53 = vor.u32 %v5331_v4, %v5330_v7  ;;  %v5335_v20 = vor.u32 %v5334_v48, %v5333_v27  ;;  %v5338_v36 = vor.u32 %v5337_v21, %v5336_v46  ;;  %p11865_p3 = por %p11864_p2, %p11863_p1 }
 0x54f   :  { %v5189_v24 = vsel %vm5106_vm1, %v5188_v47, %v5187_v38  ;;  %v16667_v1 = vsub.s32 %v5061_v33, %v5064_v12  ;;  %v5341_v14 = vor.u32 %v5340_v28, %v5339_v11  ;;  %v16676_v63 = vand.u32 3, %v10392_v3 }
 0x550   :  { %v5192_v15 = vsel %vm16636_vm15, %v16336_v43, %v5189_v24  ;;  %vm5003_vm1 = vcmp.lt.s32.totalorder %v16445_v34, 0  ;;  %v5318_v6 = vor.u32 8388608, %v5317_v30  ;;  %v5210_v29 = vand.u32 2139095040, %v16649_v5  ;;  %p11866_p4 = pnand %p11865_p3, %p11859_p0 }
 0x551   :  { %11825 = vcosq.f32 %v5192_v15  ;;  %v5067_v57 = vsub.s32 0, %v16667_v1  ;;  %v5326_v31 = vshrl.u32 %v11883_v56, %v5325_v37  ;;  %vm5342_vm4 = vcmp.lt.s32.totalorder %v5323_v13, 1 }
 0x552   :  { %11827 = vsinq.f32 %v5192_v15  ;;  %vm5345_vm3 = vcmp.lt.s32.totalorder %v5323_v13, 4  ;;  %vm5344_vm2 = vcmp.lt.s32.totalorder %v5323_v13, 3  ;;  %v5350_v23 = vsel %vm5342_vm4, %v5329_v52, %v5332_v53 }
 0x553   :  { %v11214_v8 = vmin.u32 %v5067_v57, %v16667_v1  ;;  %v5347_v39 = vsel %vm5345_vm3, %v5335_v20, 2102212464  ;;  %v5351_v59 = vsel %vm5345_vm3, %v5338_v36, 920167782  ;;  %vm5202_vm0 = vcmp.eq.s32.totalorder %v16673_v54, 2 }
 0x554   :  { %v5352_v45 = vsel %vm5344_vm2, %v5335_v20, %v5351_v59  ;;  %v5354_v44 = vsel %vm5342_vm4, %v5332_v53, %v5335_v20  ;;  %v5355_v35 = vsel %vm5345_vm3, %v5341_v14, 1326507024  ;;  %vm5199_vm5 = vcmp.eq.s32.totalorder %v16673_v54, 0 }
 0x555   :  { %v5069_v18 = vclz %v11214_v8  ;;  %vm5343_vm6 = vcmp.lt.s32.totalorder %v5323_v13, 2  ;;  %v5346_v26 = vsel %vm5342_vm4, %v5326_v31, %v5329_v52  ;;  %v5348_v22 = vsel %vm5344_vm2, %v5332_v53, %v5347_v39 }
 0x556   :  { %v5358_v33 = vshll.u32 %v5318_v6, 8  ;;  %vm5198_vm7 = vcmp.lt.s32.totalorder %v16673_v54, 2  ;;  %vm10394_vm8 = vcmp.lt.s32.totalorder %v16676_v63, 2  ;;  %v5087_v49 = vsub.s32 4, %v16651_v55 }
 0x557   :  { %v11215_v58 = vadd.s32 4294967294, %v5069_v18  ;;  %v5353_v40 = vsel %vm5343_vm6, %v5350_v23, %v5352_v45  ;;  %v5356_v32 = vsel %vm5344_vm2, %v5338_v36, %v5355_v35  ;;  %vm5196_vm9 = vweird.f32 %v16336_v43  ;;  %v411_v23 = vpop.permute.xlu1 %410 }
 0x558   :  { %v5357_v42 = vsel %vm5343_vm6, %v5354_v44, %v5356_v32  ;;  %v16691_v51 = vmul.u32.u64.low %v5358_v33, %v5353_v40  ;;  %v16692_v37 = vmul.u32.u64.high %v5358_v33, %v5353_v40, %v16691_v51  ;;  %v5211_v38 = vshrl.u32 %v5210_v29, 23 }
 0x559   :  { %vm11216_vm10 = vcmp.lt.s32.totalorder %v11215_v58, 0  ;;  %v5349_v3 = vsel %vm5343_vm6, %v5346_v26, %v5348_v22  ;;  %v16695_v30 = vmul.u32.u64.low %v5358_v33, %v5357_v42  ;;  %v16696_v50 = vmul.u32.u64.high %v5358_v33, %v5357_v42, %v16695_v30 }
 0x55a   :  { %vm10395_vm11 = vcmp.eq.s32.totalorder %v16676_v63, 0  ;;  %vm10398_vm12 = vcmp.eq.s32.totalorder %v16676_v63, 2  ;;  %v5072_v4 = vsel %vm11216_vm10, 0, %v11215_v58  ;;  %v11221_v13 = vadd.s32 4294967169, %v5211_v38 }
 0x55b   :  { %v11826_v48 = vpop.eup %11825  ;;  %v5057_v47 = vadd.s32 %v16597_v16, %v16603_v25  ;;  %v5073_v12 = vsub.s32 32, %v5072_v4  ;;  %v5077_v10 = vsub.s32 4294967266, %v5072_v4  ;;  %v5088_v21 = vsel %vm5003_vm1, %v5087_v49, %v16651_v55 }
 0x55c   :  { %v11828_v7 = vpop.eup %11827  ;;  %v5203_v27 = vxor.u32 2147483648, %v11826_v48  ;;  %v5365_v46 = vmul.u32 %v5358_v33, %v5349_v3  ;;  %v5368_v28 = vadd.s32 1, %v16692_v37  ;;  %v5217_v24 = vadd.s32 1, %v11221_v13 }
 0x55d   :  { %v5200_v52 = vxor.u32 2147483648, %v11828_v7  ;;  %v5074_v11 = vshll.u32 %v16667_v1, %v5072_v4  ;;  %v5075_v15 = vshrl.u32 %v5057_v47, %v5073_v12  ;;  %v5078_v53 = vadd.s32 127, %v5077_v10 }
 0x55e   :  { %v5204_v16 = vsel %vm5202_vm0, %v5203_v27, %v11828_v7  ;;  %v10400_v25 = vsel %vm10398_vm12, %v5203_v27, %v11828_v7  ;;  %vm5367_vm13 = vc.u32 %v16696_v50, %v16691_v51  ;;  %vm5218_vm14 = vcmp.gt.s32.totalorder %v5217_v24, 0 }
 0x55f   :  { %v5201_v55 = vsel %vm5199_vm5, %v11826_v48, %v5200_v52  ;;  %v10397_v20 = vsel %vm10395_vm11, %v11826_v48, %v5200_v52  ;;  %v5076_v36 = vor.u32 %v5075_v15, %v5074_v11  ;;  %v5079_v1 = vshll.u32 %v5078_v53, 23 }
 0x560   :  { %v5205_v57 = vsel %vm5198_vm7, %v5201_v55, %v5204_v16  ;;  %v10401_v14 = vsel %vm10394_vm8, %v10397_v20, %v10400_v25  ;;  %v5369_v6 = vsel %vm5367_vm13, %v5368_v28, %v16692_v37  ;;  %v5219_v29 = vsel %vm5218_vm14, %v5217_v24, 0 }
 0x561   :  { %v5206_v8 = vsel %vm5196_vm9, nan, %v5205_v57  ;;  %v10402_v31 = vsel %vm5196_vm9, nan, %v10401_v14  ;;  %vm16728_vm15 = vcmp.le.f32.partialorder %v5001_v17, 0.7853982  ;;  %v5080_v54 = vor.u32 4788187, %v5079_v1 }
 0x562   :  { %10864 = vst [vmem:[#allocation2 + $0x2d0] sm:$0xff] %v5206_v8  ;;  %10914 = vst [vmem:[#allocation2 + $0x2d8] sm:$0xff] %v5206_v8  ;;  %v5090_v63 = vsel %vm16728_vm15, 0, %v5088_v21  ;;  %v5370_v59 = vadd.s32 %v5369_v6, %v5365_v46  ;;  %v5207_v18 = vand.u32 2147483647, %v16649_v5  ;;  %v5221_v43 = vand.u32 31, %v5219_v29 }
 0x563   :  { %10965 = vst [vmem:[#allocation2 + $0x5f0] sm:$0xff] %v10402_v31  ;;  %11015 = vst [vmem:[#allocation2 + $0x5f8] sm:$0xff] %v10402_v31  ;;  %v5081_v45 = vand.u32 2147483647, %v5080_v54  ;;  %v5083_v44 = vcvt.s32.f32 %v5076_v36  ;;  %v16736_v26 = vmul.f32 %v16646_v19, %v411_v23  ;;  %v16738_v33 = vand.u32 3, %v5090_v63 }
 0x564   :  { %v5371_v35 = vadd.s32 536870912, %v5370_v59  ;;  %v5222_v17 = vsub.s32 32, %v5221_v43  ;;  %v10288_v58 = vadd.s32 3, %v5090_v63  ;;  %v5214_v40 = vand.u32 8388607, %v5207_v18 }
 0x565   :  { %v5084_v22 = vmul.f32 %v5083_v44, %v5081_v45  ;;  %v16742_v32 = vshrl.u32 %v5219_v29, 5  ;;  %v5224_v13 = vshll.u32 %v11883_v56, %v5221_v43  ;;  %v5519_v47 = vand.u32 2139095040, %v16736_v26 }
 0x566   :  { %v5372_v49 = vshrl.u32 %v5371_v35, 30  ;;  %v5225_v42 = vshrl.u32 %v11884_v60, %v5222_v17  ;;  %v5228_v38 = vshrl.u32 %v11885_v62, %v5222_v17  ;;  %v5231_v3 = vshrl.u32 %v11886_v0, %v5222_v17 }
 0x567   :  { %v5085_v37 = vxor.u32 2147483648, %v5084_v22  ;;  %v5234_v30 = vshrl.u32 %v11887_v2, %v5222_v17  ;;  %v5237_v48 = vshrl.u32 %v11888_v9, %v5222_v17  ;;  %v5227_v10 = vshll.u32 %v11884_v60, %v5221_v43 }
 0x568   :  { %v5373_v4 = vshll.u32 %v5372_v49, 30  ;;  %v5230_v21 = vshll.u32 %v11885_v62, %v5221_v43  ;;  %v5233_v7 = vshll.u32 %v11886_v0, %v5221_v43  ;;  %v5226_v28 = vor.u32 %v5225_v42, %v5224_v13 }
 0x569   :  { %v5086_v12 = vsel %vm5003_vm1, %v5085_v37, %v5084_v22  ;;  %v5236_v24 = vshll.u32 %v11887_v2, %v5221_v43  ;;  %v5229_v52 = vor.u32 %v5228_v38, %v5227_v10  ;;  %v16762_v53 = vand.u32 3, %v10288_v58 }
 0x56a   :  { %v5089_v27 = vsel %vm16728_vm15, %v16445_v34, %v5086_v12  ;;  %v16759_v46 = vsub.s32 %v5370_v59, %v5373_v4  ;;  %v5232_v11 = vor.u32 %v5231_v3, %v5230_v21  ;;  %v5235_v15 = vor.u32 %v5234_v30, %v5233_v7 }
 0x56b   :  { %11829 = vcosq.f32 %v5089_v27  ;;  %vm16766_vm1 = vcmp.le.f32.partialorder %v5310_v61, 0.7853982  ;;  %v5238_v55 = vor.u32 %v5237_v48, %v5236_v24  ;;  %vm5312_vm4 = vcmp.lt.s32.totalorder %v16535_v41, 0 }
 0x56c   :  { %11831 = vsinq.f32 %v5089_v27  ;;  %v5376_v25 = vsub.s32 0, %v16759_v46  ;;  %v5396_v20 = vsub.s32 4, %v5372_v49  ;;  %v5215_v36 = vor.u32 8388608, %v5214_v40 }
 0x56d   :  { %v5223_v1 = vshrl.u32 %v11883_v56, %v5222_v17  ;;  %vm5239_vm3 = vcmp.lt.s32.totalorder %v16742_v32, 1  ;;  %vm5241_vm2 = vcmp.lt.s32.totalorder %v16742_v32, 3  ;;  %vm5242_vm0 = vcmp.lt.s32.totalorder %v16742_v32, 4 }
 0x56e   :  { %v11226_v57 = vmin.u32 %v5376_v25, %v16759_v46  ;;  %vm5099_vm5 = vcmp.eq.s32.totalorder %v16738_v33, 2  ;;  %v5244_v61 = vsel %vm5242_vm0, %v5232_v11, 2102212464  ;;  %v5247_v14 = vsel %vm5239_vm3, %v5226_v28, %v5229_v52 }
 0x56f   :  { %v5248_v6 = vsel %vm5242_vm0, %v5235_v15, 920167782  ;;  %v5520_v29 = vshrl.u32 %v5519_v47, 23  ;;  %vm5096_vm6 = vcmp.eq.s32.totalorder %v16738_v33, 0  ;;  %vm10291_vm7 = vcmp.eq.s32.totalorder %v16762_v53, 0 }
 0x570   :  { %v5378_v8 = vclz %v11226_v57  ;;  %v5249_v31 = vsel %vm5241_vm2, %v5232_v11, %v5248_v6  ;;  %v5251_v39 = vsel %vm5239_vm3, %v5229_v52, %v5232_v11  ;;  %v5252_v54 = vsel %vm5242_vm0, %v5238_v55, 1326507024 }
 0x571   :  { %vm5095_vm8 = vcmp.lt.s32.totalorder %v16738_v33, 2  ;;  %vm10290_vm9 = vcmp.lt.s32.totalorder %v16762_v53, 2  ;;  %v5397_v23 = vsel %vm5312_vm4, %v5396_v20, %v5372_v49  ;;  %vm5240_vm10 = vcmp.lt.s32.totalorder %v16742_v32, 2 }
 0x572   :  { %v5243_v63 = vsel %vm5239_vm3, %v5223_v1, %v5226_v28  ;;  %v5255_v59 = vshll.u32 %v5215_v36, 8  ;;  %vm5093_vm11 = vweird.f32 %v16445_v34  ;;  %v11227_v43 = vadd.s32 4294967294, %v5378_v8 }
 0x573   :  { %v5245_v45 = vsel %vm5241_vm2, %v5229_v52, %v5244_v61  ;;  %v5250_v44 = vsel %vm5240_vm10, %v5247_v14, %v5249_v31  ;;  %v5253_v35 = vsel %vm5241_vm2, %v5235_v15, %v5252_v54  ;;  %v11233_v49 = vadd.s32 4294967169, %v5520_v29 }
 0x574   :  { %v5254_v17 = vsel %vm5240_vm10, %v5251_v39, %v5253_v35  ;;  %v16802_v22 = vmul.u32.u64.low %v5255_v59, %v5250_v44  ;;  %v16803_v58 = vmul.u32.u64.high %v5255_v59, %v5250_v44, %v16802_v22  ;;  %vm10294_vm12 = vcmp.eq.s32.totalorder %v16762_v53, 2 }
 0x575   :  { %vm11228_vm13 = vcmp.lt.s32.totalorder %v11227_v43, 0  ;;  %v16807_v40 = vmul.u32.u64.low %v5255_v59, %v5254_v17  ;;  %v16808_v42 = vmul.u32.u64.high %v5255_v59, %v5254_v17, %v16807_v40  ;;  %v11830_v37 = vpop.eup %11829  ;;  %v5366_v38 = vadd.s32 %v16691_v51, %v16696_v50 }
 0x576   :  { %v5381_v3 = vsel %vm11228_vm13, 0, %v11227_v43  ;;  %v5399_v30 = vsel %vm16766_vm1, 0, %v5397_v23  ;;  %v5526_v4 = vadd.s32 1, %v11233_v49  ;;  %v11832_v13 = vpop.eup %11831  ;;  %v5100_v48 = vxor.u32 2147483648, %v11830_v37 }
 0x577   :  { %v5382_v47 = vsub.s32 32, %v5381_v3  ;;  %v5386_v12 = vsub.s32 4294967266, %v5381_v3  ;;  %v5246_v10 = vsel %vm5240_vm10, %v5243_v63, %v5245_v45  ;;  %v5097_v21 = vxor.u32 2147483648, %v11832_v13 }
 0x578   :  { %v5383_v7 = vshll.u32 %v16759_v46, %v5381_v3  ;;  %v5265_v27 = vadd.s32 1, %v16803_v58  ;;  %vm5527_vm14 = vcmp.gt.s32.totalorder %v5526_v4, 0  ;;  %v5101_v51 = vsel %vm5099_vm5, %v5100_v48, %v11832_v13 }
 0x579   :  { %v10296_v50 = vsel %vm10294_vm12, %v5100_v48, %v11832_v13  ;;  %v5384_v28 = vshrl.u32 %v5366_v38, %v5382_v47  ;;  %v5387_v24 = vadd.s32 127, %v5386_v12  ;;  %v5098_v52 = vsel %vm5096_vm6, %v11830_v37, %v5097_v21  ;;  %v406_v12 = vpop.permute.xlu0 %405 }
 0x57a   :  { %v10293_v32 = vsel %vm10291_vm7, %v11830_v37, %v5097_v21  ;;  %v5262_v11 = vmul.u32 %v5255_v59, %v5246_v10  ;;  %vm5264_vm15 = vc.u32 %v16808_v42, %v16802_v22  ;;  %v5102_v46 = vsel %vm5095_vm8, %v5098_v52, %v5101_v51 }
 0x57b   :  { %v10297_v15 = vsel %vm10290_vm9, %v10293_v32, %v10296_v50  ;;  %v5385_v25 = vor.u32 %v5384_v28, %v5383_v7  ;;  %v5388_v55 = vshll.u32 %v5387_v24, 23  ;;  %v5103_v20 = vsel %vm5093_vm11, nan, %v5102_v46 }
 0x57c   :  { %v10298_v36 = vsel %vm5093_vm11, nan, %v10297_v15  ;;  %v5266_v1 = vsel %vm5264_vm15, %v5265_v27, %v16803_v58  ;;  %v5528_v57 = vsel %vm5527_vm14, %v5526_v4, 0  ;;  %10863 = vst [vmem:[#allocation2 + $0x2c0] sm:$0xff] %v5103_v20  ;;  %10913 = vst [vmem:[#allocation2 + $0x2c8] sm:$0xff] %v5103_v20  ;;  %v10600_v61 = vadd.s32 3, %v5399_v30 }
 0x57d   :  { %10964 = vst [vmem:[#allocation2 + $0x5e0] sm:$0xff] %v10298_v36  ;;  %11014 = vst [vmem:[#allocation2 + $0x5e8] sm:$0xff] %v10298_v36  ;;  %v5389_v33 = vor.u32 4788187, %v5388_v55  ;;  %v5267_v53 = vadd.s32 %v5266_v1, %v5262_v11  ;;  %v5516_v14 = vand.u32 2147483647, %v16736_v26  ;;  %v5392_v8 = vcvt.s32.f32 %v5385_v25 }
 0x57e   :  { %v5530_v6 = vand.u32 31, %v5528_v57  ;;  %v16839_v39 = vand.u32 3, %v5399_v30  ;;  %v16841_v23 = vand.u32 3, %v10600_v61  ;;  %v5529_v43 = vshrl.u32 %v5528_v57, 5 }
 0x57f   :  { %v5390_v29 = vand.u32 2147483647, %v5389_v33  ;;  %v5268_v31 = vadd.s32 536870912, %v5267_v53  ;;  %v5523_v59 = vand.u32 8388607, %v5516_v14  ;;  %v16868_v52 = vmul.f32 %v16646_v19, %v406_v12 }
 0x580   :  { %v5531_v34 = vsub.s32 32, %v5530_v6  ;;  %v5533_v49 = vshll.u32 %v11883_v56, %v5530_v6  ;;  %v5536_v37 = vshll.u32 %v11884_v60, %v5530_v6  ;;  %v5539_v38 = vshll.u32 %v11885_v62, %v5530_v6 }
 0x581   :  { %v5393_v54 = vmul.f32 %v5392_v8, %v5390_v29  ;;  %v16843_v63 = vshrl.u32 %v5268_v31, 30  ;;  %v5542_v3 = vshll.u32 %v11886_v0, %v5530_v6  ;;  %v5545_v47 = vshll.u32 %v11887_v2, %v5530_v6 }
 0x582   :  { %v5534_v45 = vshrl.u32 %v11884_v60, %v5531_v34  ;;  %v5537_v44 = vshrl.u32 %v11885_v62, %v5531_v34  ;;  %v5540_v35 = vshrl.u32 %v11886_v0, %v5531_v34  ;;  %v5543_v40 = vshrl.u32 %v11887_v2, %v5531_v34 }
 0x583   :  { %v5394_v17 = vxor.u32 2147483648, %v5393_v54  ;;  %v5270_v58 = vshll.u32 %v16843_v63, 30  ;;  %v5546_v30 = vshrl.u32 %v11888_v9, %v5531_v34  ;;  %v5532_v50 = vshrl.u32 %v11883_v56, %v5531_v34 }
 0x584   :  { %v5535_v48 = vor.u32 %v5534_v45, %v5533_v49  ;;  %v5538_v21 = vor.u32 %v5537_v44, %v5536_v37  ;;  %v5541_v7 = vor.u32 %v5540_v35, %v5539_v38  ;;  %v5544_v27 = vor.u32 %v5543_v40, %v5542_v3 }
 0x585   :  { %v5395_v4 = vsel %vm5312_vm4, %v5394_v17, %v5393_v54  ;;  %v16859_v13 = vsub.s32 %v5267_v53, %v5270_v58  ;;  %v5547_v28 = vor.u32 %v5546_v30, %v5545_v47  ;;  %v5524_v24 = vor.u32 8388608, %v5523_v59 }
 0x586   :  { %v5398_v10 = vsel %vm16766_vm1, %v16535_v41, %v5395_v4  ;;  %vm5548_vm4 = vcmp.lt.s32.totalorder %v5529_v43, 1  ;;  %vm5209_vm3 = vcmp.lt.s32.totalorder %v16649_v5, 0  ;;  %vm5550_vm1 = vcmp.lt.s32.totalorder %v5529_v43, 3 }
 0x587   :  { %11833 = vcosq.f32 %v5398_v10  ;;  %v5273_v51 = vsub.s32 0, %v16859_v13  ;;  %vm5551_vm2 = vcmp.lt.s32.totalorder %v5529_v43, 4  ;;  %v5552_v32 = vsel %vm5548_vm4, %v5532_v50, %v5535_v48 }
 0x588   :  { %11835 = vsinq.f32 %v5398_v10  ;;  %v5553_v11 = vsel %vm5551_vm2, %v5541_v7, 2102212464  ;;  %v5556_v46 = vsel %vm5548_vm4, %v5535_v48, %v5538_v21  ;;  %v5557_v15 = vsel %vm5551_vm2, %v5544_v27, 920167782 }
 0x589   :  { %v11222_v16 = vmin.u32 %v5273_v51, %v16859_v13  ;;  %v5560_v25 = vsel %vm5548_vm4, %v5538_v21, %v5541_v7  ;;  %v5554_v20 = vsel %vm5550_vm1, %v5538_v21, %v5553_v11  ;;  %v5558_v36 = vsel %vm5550_vm1, %v5541_v7, %v5557_v15 }
 0x58a   :  { %v5561_v1 = vsel %vm5551_vm2, %v5547_v28, 1326507024  ;;  %vm5405_vm0 = vcmp.eq.s32.totalorder %v16839_v39, 0  ;;  %vm5408_vm5 = vcmp.eq.s32.totalorder %v16839_v39, 2  ;;  %vm5549_vm6 = vcmp.lt.s32.totalorder %v5529_v43, 2 }
 0x58b   :  { %v5275_v55 = vclz %v11222_v16  ;;  %v5564_v19 = vshll.u32 %v5524_v24, 8  ;;  %vm5404_vm7 = vcmp.lt.s32.totalorder %v16839_v39, 2  ;;  %vm10602_vm8 = vcmp.lt.s32.totalorder %v16841_v23, 2 }
 0x58c   :  { %v5293_v33 = vsub.s32 4, %v16843_v63  ;;  %v5559_v61 = vsel %vm5549_vm6, %v5556_v46, %v5558_v36  ;;  %v5562_v53 = vsel %vm5550_vm1, %v5544_v27, %v5561_v1  ;;  %vm5402_vm9 = vweird.f32 %v16535_v41 }
 0x58d   :  { %v11223_v57 = vadd.s32 4294967294, %v5275_v55  ;;  %vm16883_vm10 = vcmp.le.f32.partialorder %v5207_v18, 0.7853982  ;;  %v5555_v29 = vsel %vm5549_vm6, %v5552_v32, %v5554_v20  ;;  %v5563_v8 = vsel %vm5549_vm6, %v5560_v25, %v5562_v53 }
 0x58e   :  { %v16887_v31 = vmul.u32.u64.low %v5564_v19, %v5559_v61  ;;  %v16888_v34 = vmul.u32.u64.high %v5564_v19, %v5559_v61, %v16887_v31  ;;  %v16891_v54 = vmul.u32.u64.low %v5564_v19, %v5563_v8  ;;  %v16892_v59 = vmul.u32.u64.high %v5564_v19, %v5563_v8, %v16891_v54 }
 0x58f   :  { %vm11224_vm11 = vcmp.lt.s32.totalorder %v11223_v57, 0  ;;  %v5416_v43 = vand.u32 2139095040, %v16868_v52  ;;  %vm10603_vm12 = vcmp.eq.s32.totalorder %v16841_v23, 0  ;;  %vm10606_vm13 = vcmp.eq.s32.totalorder %v16841_v23, 2 }
 0x590   :  { %v5263_v18 = vadd.s32 %v16802_v22, %v16808_v42  ;;  %v5278_v45 = vsel %vm11224_vm11, 0, %v11223_v57  ;;  %v5413_v58 = vand.u32 2147483647, %v16868_v52  ;;  %v5294_v38 = vsel %vm5209_vm3, %v5293_v33, %v16843_v63 }
 0x591   :  { %v11834_v44 = vpop.eup %11833  ;;  %v5279_v35 = vsub.s32 32, %v5278_v45  ;;  %v5283_v17 = vsub.s32 4294967266, %v5278_v45  ;;  %v5417_v49 = vshrl.u32 %v5416_v43, 23  ;;  %v5571_v3 = vmul.u32 %v5564_v19, %v5555_v29 }
 0x592   :  { %v11836_v40 = vpop.eup %11835  ;;  %v5409_v37 = vxor.u32 2147483648, %v11834_v44  ;;  %v5574_v30 = vadd.s32 1, %v16888_v34  ;;  %v5280_v48 = vshll.u32 %v16859_v13, %v5278_v45  ;;  %vm5573_vm14 = vc.u32 %v16892_v59, %v16887_v31 }
 0x593   :  { %v5406_v4 = vxor.u32 2147483648, %v11836_v40  ;;  %v5281_v22 = vshrl.u32 %v5263_v18, %v5279_v35  ;;  %v5284_v42 = vadd.s32 127, %v5283_v17  ;;  %v11229_v10 = vadd.s32 4294967169, %v5417_v49 }
 0x594   :  { %v5410_v47 = vsel %vm5408_vm5, %v5409_v37, %v11836_v40  ;;  %v10608_v12 = vsel %vm10606_vm13, %v5409_v37, %v11836_v40  ;;  %v5575_v50 = vsel %vm5573_vm14, %v5574_v30, %v16888_v34  ;;  %v5296_v11 = vsel %vm16883_vm10, 0, %v5294_v38 }
 0x595   :  { %v5407_v63 = vsel %vm5405_vm0, %v11834_v44, %v5406_v4  ;;  %v10605_v21 = vsel %vm10603_vm12, %v11834_v44, %v5406_v4  ;;  %v5282_v7 = vor.u32 %v5281_v22, %v5280_v48  ;;  %v5285_v13 = vshll.u32 %v5284_v42, 23 }
 0x596   :  { %v5411_v27 = vsel %vm5404_vm7, %v5407_v63, %v5410_v47  ;;  %v10609_v51 = vsel %vm10602_vm8, %v10605_v21, %v10608_v12  ;;  %v5423_v28 = vadd.s32 1, %v11229_v10  ;;  %v5576_v39 = vadd.s32 %v5575_v50, %v5571_v3 }
 0x597   :  { %v5412_v24 = vsel %vm5402_vm9, nan, %v5411_v27  ;;  %v10610_v16 = vsel %vm5402_vm9, nan, %v10609_v51  ;;  %v5286_v32 = vor.u32 4788187, %v5285_v13  ;;  %v5289_v46 = vcvt.s32.f32 %v5282_v7 }
 0x598   :  { %10866 = vst [vmem:[#allocation2 + $0x2f0] sm:$0xff] %v5412_v24  ;;  %10916 = vst [vmem:[#allocation2 + $0x2f8] sm:$0xff] %v5412_v24  ;;  %vm5424_vm15 = vcmp.gt.s32.totalorder %v5423_v28, 0  ;;  %v10496_v25 = vadd.s32 3, %v5296_v11  ;;  %v5577_v55 = vadd.s32 536870912, %v5576_v39  ;;  %v16930_v33 = vand.u32 3, %v5296_v11 }
 0x599   :  { %10967 = vst [vmem:[#allocation2 + $0x610] sm:$0xff] %v10610_v16  ;;  %11017 = vst [vmem:[#allocation2 + $0x618] sm:$0xff] %v10610_v16  ;;  %v5287_v23 = vand.u32 2147483647, %v5286_v32  ;;  %v5425_v15 = vsel %vm5424_vm15, %v5423_v28, 0  ;;  %vm5299_vm8 = vweird.f32 %v16649_v5  ;;  %v5572_v51 = vadd.s32 %v16887_v31, %v16892_v59 }
 0x59a   :  { %v5420_v20 = vand.u32 8388607, %v5413_v58  ;;  %v5427_v41 = vand.u32 31, %v5425_v15  ;;  %v16928_v1 = vshrl.u32 %v5577_v55, 30  ;;  %v16932_v61 = vand.u32 3, %v10496_v25 }
 0x59b   :  { %v5290_v36 = vmul.f32 %v5289_v46, %v5287_v23  ;;  %v5426_v17 = vshrl.u32 %v5425_v15, 5  ;;  %vm5305_vm4 = vcmp.eq.s32.totalorder %v16930_v33, 2  ;;  %vm5302_vm1 = vcmp.eq.s32.totalorder %v16930_v33, 0 }
 0x59c   :  { %v5428_v19 = vsub.s32 32, %v5427_v41  ;;  %v5579_v53 = vshll.u32 %v16928_v1, 30  ;;  %v5421_v29 = vor.u32 8388608, %v5420_v20  ;;  %v5436_v44 = vshll.u32 %v11885_v62, %v5427_v41 }
 0x59d   :  { %v5291_v57 = vxor.u32 2147483648, %v5290_v36  ;;  %v5430_v49 = vshll.u32 %v11883_v56, %v5427_v41  ;;  %v5433_v40 = vshll.u32 %v11884_v60, %v5427_v41  ;;  %v5439_v3 = vshll.u32 %v11886_v0, %v5427_v41 }
 0x59e   :  { %v5431_v34 = vshrl.u32 %v11884_v60, %v5428_v19  ;;  %v5434_v54 = vshrl.u32 %v11885_v62, %v5428_v19  ;;  %v5437_v43 = vshrl.u32 %v11886_v0, %v5428_v19  ;;  %v16943_v45 = vsub.s32 %v5576_v39, %v5579_v53 }
 0x59f   :  { %v5292_v8 = vsel %vm5209_vm3, %v5291_v57, %v5290_v36  ;;  %v5440_v35 = vshrl.u32 %v11887_v2, %v5428_v19  ;;  %v5442_v4 = vshll.u32 %v11887_v2, %v5427_v41  ;;  %v5443_v62 = vshrl.u32 %v11888_v9, %v5428_v19 }
 0x5a0   :  { %v5295_v18 = vsel %vm16883_vm10, %v16649_v5, %v5292_v8  ;;  %v5582_v37 = vsub.s32 0, %v16943_v45  ;;  %v5438_v38 = vor.u32 %v5437_v43, %v5436_v44  ;;  %v5432_v6 = vor.u32 %v5431_v34, %v5430_v49 }
 0x5a1   :  { %11837 = vcosq.f32 %v5295_v18  ;;  %v5435_v30 = vor.u32 %v5434_v54, %v5433_v40  ;;  %v5441_v22 = vor.u32 %v5440_v35, %v5439_v3  ;;  %v5444_v42 = vor.u32 %v5443_v62, %v5442_v4 }
 0x5a2   :  { %11839 = vsinq.f32 %v5295_v18  ;;  %v11234_v48 = vmin.u32 %v5582_v37, %v16943_v45  ;;  %vm5448_vm3 = vcmp.lt.s32.totalorder %v5426_v17, 4  ;;  %vm10499_vm2 = vcmp.eq.s32.totalorder %v16932_v61, 0 }
 0x5a3   :  { %vm10502_vm0 = vcmp.eq.s32.totalorder %v16932_v61, 2  ;;  %vm5445_vm5 = vcmp.lt.s32.totalorder %v5426_v17, 1  ;;  %v5450_v0 = vsel %vm5448_vm3, %v5438_v38, 2102212464  ;;  %vm5301_vm6 = vcmp.lt.s32.totalorder %v16930_v33, 2 }
 0x5a4   :  { %v5584_v60 = vclz %v11234_v48  ;;  %v5429_v2 = vshrl.u32 %v11883_v56, %v5428_v19  ;;  %vm5446_vm7 = vcmp.lt.s32.totalorder %v5426_v17, 2  ;;  %v5453_v9 = vsel %vm5445_vm5, %v5432_v6, %v5435_v30 }
 0x5a5   :  { %v5461_v47 = vshll.u32 %v5421_v29, 8  ;;  %vm5447_vm9 = vcmp.lt.s32.totalorder %v5426_v17, 3  ;;  %v5454_v10 = vsel %vm5448_vm3, %v5441_v22, 920167782  ;;  %v5457_v63 = vsel %vm5445_vm5, %v5435_v30, %v5438_v38 }
 0x5a6   :  { %v11235_v12 = vadd.s32 4294967294, %v5584_v60  ;;  %v5449_v21 = vsel %vm5445_vm5, %v5429_v2, %v5432_v6  ;;  %v5451_v7 = vsel %vm5447_vm9, %v5435_v30, %v5450_v0  ;;  %v5455_v13 = vsel %vm5447_vm9, %v5438_v38, %v5454_v10 }
 0x5a7   :  { %v5458_v27 = vsel %vm5448_vm3, %v5444_v42, 1326507024  ;;  %v5456_v56 = vsel %vm5446_vm7, %v5453_v9, %v5455_v13  ;;  %v5452_v25 = vsel %vm5446_vm7, %v5449_v21, %v5451_v7  ;;  %vm10498_vm11 = vcmp.lt.s32.totalorder %v16932_v61, 2 }
 0x5a8   :  { %vm11236_vm10 = vcmp.lt.s32.totalorder %v11235_v12, 0  ;;  %v5459_v50 = vsel %vm5447_vm9, %v5441_v22, %v5458_v27  ;;  %v16968_v32 = vmul.u32.u64.low %v5461_v47, %v5456_v56  ;;  %v16969_v11 = vmul.u32.u64.high %v5461_v47, %v5456_v56, %v16968_v32 }
 0x5a9   :  { %v5587_v24 = vsel %vm11236_vm10, 0, %v11235_v12  ;;  %v5460_v16 = vsel %vm5446_vm7, %v5457_v63, %v5459_v50  ;;  %v5468_v35 = vmul.u32 %v5461_v47, %v5452_v25  ;;  %v5602_v3 = vsub.s32 4, %v16928_v1 }
 0x5aa   :  { %v5588_v46 = vsub.s32 32, %v5587_v24  ;;  %v5592_v15 = vsub.s32 4294967266, %v5587_v24  ;;  %v5589_v31 = vshll.u32 %v16943_v45, %v5587_v24  ;;  %v5471_v8 = vadd.s32 1, %v16969_v11 }
 0x5ab   :  { %v11838_v28 = vpop.eup %11837  ;;  %v16974_v59 = vmul.u32.u64.low %v5461_v47, %v5460_v16  ;;  %v16975_v20 = vmul.u32.u64.high %v5461_v47, %v5460_v16, %v16974_v59  ;;  %vm5518_vm13 = vcmp.lt.s32.totalorder %v16736_v26, 0  ;;  %vm5517_vm14 = vcmp.le.f32.partialorder %v5516_v14, 0.7853982 }
 0x5ac   :  { %v11840_v39 = vpop.eup %11839  ;;  %v5306_v23 = vxor.u32 2147483648, %v11838_v28  ;;  %v5590_v19 = vshrl.u32 %v5572_v51, %v5588_v46  ;;  %v5593_v57 = vadd.s32 127, %v5592_v15  ;;  %v5603_v62 = vsel %vm5518_vm13, %v5602_v3, %v16928_v1 }
 0x5ad   :  { %v5303_v55 = vxor.u32 2147483648, %v11840_v39  ;;  %vm5470_vm12 = vc.u32 %v16975_v20, %v16968_v32  ;;  %v5605_v42 = vsel %vm5517_vm14, 0, %v5603_v62  ;;  %v5469_v7 = vadd.s32 %v16968_v32, %v16975_v20 }
 0x5ae   :  { %v5307_v41 = vsel %vm5305_vm4, %v5306_v23, %v11840_v39  ;;  %v10504_v36 = vsel %vm10502_vm0, %v5306_v23, %v11840_v39  ;;  %v5591_v43 = vor.u32 %v5590_v19, %v5589_v31  ;;  %v5594_v18 = vshll.u32 %v5593_v57, 23 }
 0x5af   :  { %v5304_v53 = vsel %vm5302_vm1, %v11838_v28, %v5303_v55  ;;  %v10501_v29 = vsel %vm10499_vm2, %v11838_v28, %v5303_v55  ;;  %v5472_v33 = vsel %vm5470_vm12, %v5471_v8, %v16969_v11  ;;  %v10808_v2 = vadd.s32 3, %v5605_v42 }
 0x5b0   :  { %v5308_v34 = vsel %vm5301_vm6, %v5304_v53, %v5307_v41  ;;  %v10505_v54 = vsel %vm10498_vm11, %v10501_v29, %v10504_v36  ;;  %v5595_v61 = vor.u32 4788187, %v5594_v18  ;;  %v5473_v17 = vadd.s32 %v5472_v33, %v5468_v35 }
 0x5b1   :  { %v5309_v45 = vsel %vm5299_vm8, nan, %v5308_v34  ;;  %v10506_v44 = vsel %vm5299_vm8, nan, %v10505_v54  ;;  %v5598_v40 = vcvt.s32.f32 %v5591_v43  ;;  %v5609_v47 = vand.u32 3, %v5605_v42 }
 0x5b2   :  { %10865 = vst [vmem:[#allocation2 + $0x2e0] sm:$0xff] %v5309_v45  ;;  %10915 = vst [vmem:[#allocation2 + $0x2e8] sm:$0xff] %v5309_v45  ;;  %v5596_v49 = vand.u32 2147483647, %v5595_v61  ;;  %v5474_v37 = vadd.s32 536870912, %v5473_v17  ;;  %v10809_v10 = vand.u32 3, %v10808_v2  ;;  %vm5608_vm4 = vweird.f32 %v16736_v26 }
 0x5b3   :  { %10966 = vst [vmem:[#allocation2 + $0x600] sm:$0xff] %v10506_v44  ;;  %11016 = vst [vmem:[#allocation2 + $0x608] sm:$0xff] %v10506_v44  ;;  %vm5611_vm3 = vcmp.eq.s32.totalorder %v5609_v47, 0  ;;  %vm5614_vm1 = vcmp.eq.s32.totalorder %v5609_v47, 2  ;;  %vm5610_vm5 = vcmp.lt.s32.totalorder %v5609_v47, 2  ;;  %vm5415_vm7 = vcmp.lt.s32.totalorder %v16868_v52, 0 }
 0x5b4   :  { %v5599_v38 = vmul.f32 %v5598_v40, %v5596_v49  ;;  %v5475_v5 = vshrl.u32 %v5474_v37, 30  ;;  %vm10811_vm2 = vcmp.eq.s32.totalorder %v10809_v10, 0  ;;  %vm10814_vm0 = vcmp.eq.s32.totalorder %v10809_v10, 2 }
 0x5b5   :  { %vm10810_vm6 = vcmp.lt.s32.totalorder %v10809_v10, 2  ;;  %vm5414_vm8 = vcmp.le.f32.partialorder %v5413_v58, 0.7853982 }
 0x5b6   :  { %v5600_v6 = vxor.u32 2147483648, %v5599_v38  ;;  %v5476_v30 = vshll.u32 %v5475_v5, 30  ;;  %v5499_v36 = vsub.s32 4, %v5475_v5 }
 0x5b8   :  { %v5601_v4 = vsel %vm5518_vm13, %v5600_v6, %v5599_v38  ;;  %v5477_v22 = vsub.s32 %v5473_v17, %v5476_v30  ;;  %v5500_v53 = vsel %vm5415_vm7, %v5499_v36, %v5475_v5 }
 0x5b9   :  { %v5604_v48 = vsel %vm5517_vm14, %v16736_v26, %v5601_v4  ;;  %v5502_v29 = vsel %vm5414_vm8, 0, %v5500_v53 }
 0x5ba   :  { %11841 = vcosq.f32 %v5604_v48  ;;  %v5479_v60 = vsub.s32 0, %v5477_v22  ;;  %v10704_v8 = vadd.s32 3, %v5502_v29  ;;  %v5506_v34 = vand.u32 3, %v5502_v29 }
 0x5bb   :  { %11843 = vsinq.f32 %v5604_v48 }
 0x5bc   :  { %v11230_v0 = vmin.u32 %v5479_v60, %v5477_v22  ;;  %v10705_v54 = vand.u32 3, %v10704_v8  ;;  %vm5511_vm9 = vcmp.eq.s32.totalorder %v5506_v34, 2  ;;  %vm5508_vm11 = vcmp.eq.s32.totalorder %v5506_v34, 0 }
 0x5bd   :  { %vm5507_vm13 = vcmp.lt.s32.totalorder %v5506_v34, 2 }
 0x5be   :  { %v5481_v9 = vclz %v11230_v0  ;;  %vm10710_vm10 = vcmp.eq.s32.totalorder %v10705_v54, 2  ;;  %vm10707_vm12 = vcmp.eq.s32.totalorder %v10705_v54, 0  ;;  %vm10706_vm14 = vcmp.lt.s32.totalorder %v10705_v54, 2 }
 0x5c0   :  { %v11231_v12 = vadd.s32 4294967294, %v5481_v9 }
 0x5c2   :  { %vm11232_vm15 = vcmp.lt.s32.totalorder %v11231_v12, 0 }
 0x5c3   :  { %v5484_v14 = vsel %vm11232_vm15, 0, %v11231_v12  ;;  %vm5505_vm15 = vweird.f32 %v16868_v52 }
 0x5c4   :  { %v11842_v63 = vpop.eup %11841  ;;  %v5485_v13 = vsub.s32 32, %v5484_v14  ;;  %v5489_v27 = vsub.s32 4294967266, %v5484_v14  ;;  %v5486_v56 = vshll.u32 %v5477_v22, %v5484_v14 }
 0x5c5   :  { %v11844_v1 = vpop.eup %11843  ;;  %v5615_v21 = vxor.u32 2147483648, %v11842_v63 }
 0x5c6   :  { %v5612_v51 = vxor.u32 2147483648, %v11844_v1  ;;  %v5487_v24 = vshrl.u32 %v5469_v7, %v5485_v13  ;;  %v5490_v16 = vadd.s32 127, %v5489_v27 }
 0x5c7   :  { %v5616_v50 = vsel %vm5614_vm1, %v5615_v21, %v11844_v1  ;;  %v10816_v28 = vsel %vm10814_vm0, %v5615_v21, %v11844_v1 }
 0x5c8   :  { %v5613_v11 = vsel %vm5611_vm3, %v11842_v63, %v5612_v51  ;;  %v10813_v39 = vsel %vm10811_vm2, %v11842_v63, %v5612_v51  ;;  %v5488_v15 = vor.u32 %v5487_v24, %v5486_v56  ;;  %v5491_v25 = vshll.u32 %v5490_v16, 23 }
 0x5c9   :  { %v5617_v23 = vsel %vm5610_vm5, %v5613_v11, %v5616_v50  ;;  %v10817_v46 = vsel %vm10810_vm6, %v10813_v39, %v10816_v28 }
 0x5ca   :  { %v5618_v32 = vsel %vm5608_vm4, nan, %v5617_v23  ;;  %v10818_v55 = vsel %vm5608_vm4, nan, %v10817_v46  ;;  %v5492_v31 = vor.u32 4788187, %v5491_v25  ;;  %v5495_v20 = vcvt.s32.f32 %v5488_v15 }
 0x5cb   :  { %10868 = vst [vmem:[#allocation2 + $0x310] sm:$0xff] %v5618_v32  ;;  %10918 = vst [vmem:[#allocation2 + $0x318] sm:$0xff] %v5618_v32 }
 0x5cc   :  { %10969 = vst [vmem:[#allocation2 + $0x630] sm:$0xff] %v10818_v55  ;;  %11019 = vst [vmem:[#allocation2 + $0x638] sm:$0xff] %v10818_v55  ;;  %v5493_v59 = vand.u32 2147483647, %v5492_v31 }
 0x5ce   :  { %v5496_v41 = vmul.f32 %v5495_v20, %v5493_v59 }
 0x5d0   :  { %v5497_v19 = vxor.u32 2147483648, %v5496_v41 }
 0x5d2   :  { %v5498_v57 = vsel %vm5415_vm7, %v5497_v19, %v5496_v41 }
 0x5d3   :  { %v5501_v26 = vsel %vm5414_vm8, %v16868_v52, %v5498_v57 }
 0x5d4   :  { %11845 = vcosq.f32 %v5501_v26 }
 0x5d5   :  { %11847 = vsinq.f32 %v5501_v26 }
 0x5de   :  { %v11846_v43 = vpop.eup %11845 }
 0x5df   :  { %v11848_v18 = vpop.eup %11847  ;;  %v5512_v45 = vxor.u32 2147483648, %v11846_v43 }
 0x5e0   :  { %v5509_v44 = vxor.u32 2147483648, %v11848_v18 }
 0x5e1   :  { %v5513_v58 = vsel %vm5511_vm9, %v5512_v45, %v11848_v18  ;;  %v10712_v35 = vsel %vm10710_vm10, %v5512_v45, %v11848_v18 }
 0x5e2   :  { %v5510_v61 = vsel %vm5508_vm11, %v11846_v43, %v5509_v44  ;;  %v10709_v33 = vsel %vm10707_vm12, %v11846_v43, %v5509_v44 }
 0x5e3   :  { %v5514_v17 = vsel %vm5507_vm13, %v5510_v61, %v5513_v58  ;;  %v10713_v49 = vsel %vm10706_vm14, %v10709_v33, %v10712_v35 }
 0x5e4   :  { %v5515_v40 = vsel %vm5505_vm15, nan, %v5514_v17  ;;  %v10714_v37 = vsel %vm5505_vm15, nan, %v10713_v49 }
 0x5e5   :  { %10867 = vst [vmem:[#allocation2 + $0x300] sm:$0xff] %v5515_v40  ;;  %10917 = vst [vmem:[#allocation2 + $0x308] sm:$0xff] %v5515_v40 }
 0x5e6   :  { %10968 = vst [vmem:[#allocation2 + $0x620] sm:$0xff] %v10714_v37  ;;  %11018 = vst [vmem:[#allocation2 + $0x628] sm:$0xff] %v10714_v37 }
 0x5e7   :  { %11869 = shalt.err (!%p11866_p4)
}
 0x5e8   :  { %s11870_s20 = scalar_lea.hbm %s17029_s2, 25600 }
 0x5e9   :  { %p11871_p5 = scmp.ne.s32.totalorder %s17029_s2, %s11870_s20  ;;  %p11874_p6 = scmp.lt.u32.totalorder %s11870_s20, %s17029_s2 }
 0x5eb   :  { %p11876_p7 = pnand %p11874_p6, %p11871_p5 }
 0x5ed   :  { %11879 = shalt.err (!%p11876_p7)
}
 0x5ee   :  { %s11890_s25 = smov 256   ;;  %s11891_s26 = smov 16  }
 0x5ef   :  { %11031 = dma.vmem_to_hbm [thread:$0]  %s11026_s16, 25600, %s17029_s2, [#allocation3], %s11890_s25, %s11890_s25, %s11891_s26  }
 0x5f0   :  { %11880 = dma.done.wait [#allocation3], 25600  }
 0x5f1   :  { %11881 = vsyncadd [#allocation3], 4294941696 }
 0x5f2   :  { %11035 = vsyncpa [#allocation3], 1 }

</bundles_post_ra>
